<compile_context>
chip_gen: v7x
topology: tpu7x:2x2x1
jax: 0.10.0
libtpu: 0.0.40
codegen_flags: <defaults>
</compile_context>

<pallas_src>
import functools

import jax
import jax.numpy as jnp
from jax.experimental import pallas as pl
from jax.experimental.pallas import tpu as pltpu


# ---------------------------------------------------------------------------
# Fully fused kernel: conv1+tanh+pool -> conv2+tanh+pool -> MLP -> softmax
# ---------------------------------------------------------------------------
def _colon_fused_kernel(x_ref, w1_ref, b1_ref, w2_ref, b2_ref,
                        lw1_ref, lb1_ref, lw2_ref, lb2_ref,
                        o_ref,
                        p1_ref, x2_ref, p2_ref, feat_ref,
                        *, TB, H, W, RC):
    """One batch tile (TB images) per grid step; everything stays in VMEM.

    x_ref   : (TB, H*W, 9*Cin) bf16   stage-1 im2col rows (row m = y*W + x)
    w1_ref  : (9*Cin, 128)     bf16   conv-1 weight, Cout zero padded 64->128
    b1_ref  : (1, 128)         f32
    w2_ref  : (9, 128, 128)    bf16   conv-2 taps (tap t = ky*3+kx), Cin padded
    b2_ref  : (1, 128)         f32
    lw1_ref : (H2*W2, 128, Hd) bf16   Linear-1 weight per spatial position
    lb1_ref : (1, Hd)          f32
    lw2_ref : (Hd, 10)         bf16
    lb2_ref : (1, 10)          f32
    o_ref   : (1, TB, 10)      f32    softmax output for this tile
    p1_ref  : ((H+2)*2*W1, 128)  f32  -inf padded pool-1 buffer (flat rows)
    x2_ref  : ((H1+3)*(W1+2), 128) bf16 zero padded flat conv-2 input
    p2_ref  : ((H1+2)*2*W2, 128) f32  -inf padded pool-2 buffer
    feat_ref: (TB*H2*W2, 128)  bf16   pooled features, row = b*(H2*W2)+i*W2+j
    """
    H1, W1 = H // 2 + 1, W // 2 + 1          # spatial dims after pool-1
    H2, W2 = H1 // 2 + 1, W1 // 2 + 1        # spatial dims after pool-2
    Wq1 = 2 * W1                             # pool-1 buffer row width (even)
    Wp2 = W1 + 2                             # stage-2 padded flat row width
    M2 = H1 * Wp2                            # stage-2 extended conv rows
    Wq2 = 2 * W2                             # pool-2 buffer row width (even)
    P = H2 * W2                              # spatial positions feeding the MLP
    Hd = lw1_ref.shape[-1]                   # padded hidden width (512)

    # Border fills hoisted out of the per-image loop: every data position is
    # rewritten for every image, only the borders keep these values.
    p1_ref[...] = jnp.full(p1_ref.shape, -jnp.inf, p1_ref.dtype)
    x2_ref[...] = jnp.zeros(x2_ref.shape, x2_ref.dtype)
    p2_ref[...] = jnp.full(p2_ref.shape, -jnp.inf, p2_ref.dtype)

    w1 = w1_ref[...]                         # (9*Cin, 128) bf16, hoisted
    b1 = b1_ref[...]                         # (1, 128) f32, hoisted
    b2 = b2_ref[...]                         # (1, 128) f32, hoisted

    for b in range(TB):                      # static unroll over the tile
        # -- Stage 1: Conv2d(Cin,64->128,3,p=1) as a single K=9*Cin matmul over
        #    the precomputed im2col rows, chunked so the f32 partial stays small;
        #    bias+tanh fused; rows scattered into the -inf pool buffer. --
        for y0 in range(0, H, RC):
            c = jnp.dot(x_ref[b, pl.ds(y0 * W, RC * W), :], w1,
                        preferred_element_type=jnp.float32)          # (RC*W,128)
            c = jnp.tanh(c + b1)
            for r in range(RC):
                y = y0 + r
                p1_ref[pl.ds((y + 1) * Wq1 + 1, W), :] = c[r * W:(r + 1) * W, :]

        # -- MaxPool2d(2,2,p=1) #1: column pairs via stride-2 sublane loads,
        #    row pairs via static slices; writes straight into conv-2's zero
        #    padded flat input (no HBM round trip). --
        nh1 = (H + 2) * W1
        cm1 = jnp.maximum(p1_ref[pl.ds(0, nh1, stride=2), :],
                          p1_ref[pl.ds(1, nh1, stride=2), :])
        for i in range(H1):
            pooled = jnp.maximum(cm1[(2 * i) * W1:(2 * i + 1) * W1, :],
                                 cm1[(2 * i + 1) * W1:(2 * i + 2) * W1, :])
            x2_ref[pl.ds((i + 1) * Wp2 + 1, W1), :] = pooled.astype(x2_ref.dtype)

        # -- Stage 2: Conv2d(128,128,3,p=1) as 9 shifted flat-window matmuls,
        #    accumulated in a LOCAL value (no scratch read-modify-write). --
        acc = jnp.zeros((M2, 128), jnp.float32)
        for ky in range(3):
            for kx in range(3):
                acc = acc + jnp.dot(x2_ref[pl.ds(ky * Wp2 + kx, M2), :],
                                    w2_ref[ky * 3 + kx],
                                    preferred_element_type=jnp.float32)
        t2 = jnp.tanh(acc + b2)                                       # (M2, 128)
        for y in range(H1):
            p2_ref[pl.ds((y + 1) * Wq2 + 1, W1), :] = t2[y * Wp2:y * Wp2 + W1, :]

        # -- MaxPool2d(2,2,p=1) #2 -> per-image (H2*W2, 128) features stored in
        #    (H, W, C) order, matching the Linear-1 weight repack. --
        nh2 = (H1 + 2) * W2
        cm2 = jnp.maximum(p2_ref[pl.ds(0, nh2, stride=2), :],
                          p2_ref[pl.ds(1, nh2, stride=2), :])
        for i in range(H2):
            pooled = jnp.maximum(cm2[(2 * i) * W2:(2 * i + 1) * W2, :],
                                 cm2[(2 * i + 1) * W2:(2 * i + 2) * W2, :])
            feat_ref[pl.ds(b * P + i * W2, W2), :] = pooled.astype(feat_ref.dtype)

    # -- MLP head, batched over the TB images of this tile.  Dropout layers are
    #    identity at inference.  Hidden = H2*W2 accumulated (TB,128)x(128,512)
    #    MXU matmuls (no feature flatten); then Linear(512,10) + softmax (f32). --
    h = jnp.zeros((TB, Hd), jnp.float32)
    for p in range(P):
        if TB == 1:
            rows = feat_ref[pl.ds(p, 1), :]                 # (1, 128) bf16
        else:
            rows = feat_ref[pl.ds(p, TB, stride=P), :]      # (TB, 128) bf16
        h = h + jnp.dot(rows, lw1_ref[p], preferred_element_type=jnp.float32)
    h = jnp.tanh(h + lb1_ref[...])
    logits = jnp.dot(h.astype(lw2_ref.dtype), lw2_ref[...],
                     preferred_element_type=jnp.float32) + lb2_ref[...]
    m = jnp.max(logits, axis=-1, keepdims=True)
    e = jnp.exp(logits - m)
    o_ref[0] = (e / jnp.sum(e, axis=-1, keepdims=True)).astype(o_ref.dtype)


def _colon_pallas(x_im2col, params, *, H, W, TB):
    """x_im2col: (Npad, H*W, 9*Cin) bf16, Npad = G*TB.  Returns (Npad, 10) f32."""
    Npad, HW, KF = x_im2col.shape
    assert Npad % TB == 0
    G = Npad // TB
    H1, W1 = H // 2 + 1, W // 2 + 1
    H2, W2 = H1 // 2 + 1, W1 // 2 + 1
    P = H2 * W2
    Hd = params["lw1"].shape[-1]
    O = params["lw2"].shape[-1]
    RC = 4 if H % 4 == 0 else (2 if H % 2 == 0 else 1)   # image rows per chunk

    kernel = functools.partial(_colon_fused_kernel, TB=TB, H=H, W=W, RC=RC)
    out = pl.pallas_call(
        kernel,
        out_shape=jax.ShapeDtypeStruct((G, TB, O), jnp.float32),
        grid=(G,),
        in_specs=[
            pl.BlockSpec((TB, HW, KF), lambda g: (g, 0, 0)),     # im2col input
            pl.BlockSpec((KF, 128), lambda g: (0, 0)),           # conv-1 weight
            pl.BlockSpec((1, 128), lambda g: (0, 0)),            # conv-1 bias
            pl.BlockSpec((9, 128, 128), lambda g: (0, 0, 0)),    # conv-2 taps
            pl.BlockSpec((1, 128), lambda g: (0, 0)),            # conv-2 bias
            pl.BlockSpec((P, 128, Hd), lambda g: (0, 0, 0)),     # linear-1 weight
            pl.BlockSpec((1, Hd), lambda g: (0, 0)),             # linear-1 bias
            pl.BlockSpec((Hd, O), lambda g: (0, 0)),             # linear-2 weight
            pl.BlockSpec((1, O), lambda g: (0, 0)),              # linear-2 bias
        ],
        out_specs=pl.BlockSpec((1, TB, O), lambda g: (g, 0, 0)),
        scratch_shapes=[
            pltpu.VMEM(((H + 2) * 2 * W1, 128), jnp.float32),      # pool-1 buffer
            pltpu.VMEM(((H1 + 3) * (W1 + 2), 128), jnp.bfloat16),  # conv-2 flat in
            pltpu.VMEM(((H1 + 2) * 2 * W2, 128), jnp.float32),     # pool-2 buffer
            pltpu.VMEM((TB * P, 128), jnp.bfloat16),               # pooled features
        ],
        compiler_params=pltpu.CompilerParams(
            dimension_semantics=("parallel",),
            vmem_limit_bytes=32 * 1024 * 1024,
        ),
    )(x_im2col, params["w1"], params["b1"], params["w2"], params["b2"],
      params["lw1"], params["lb1"], params["lw2"], params["lb2"])
    return out.reshape(Npad, O)


# ---------------------------------------------------------------------------
# One-time parameter repack (torch layouts -> kernel layouts)
# ---------------------------------------------------------------------------
def prepare_params(raw, n_channels, H, W):
    H1, W1 = H // 2 + 1, W // 2 + 1
    H2, W2 = H1 // 2 + 1, W1 // 2 + 1

    # Conv1 (64, Cin, 3, 3) -> single K=9*Cin im2col weight (9*Cin, 128);
    # Cout zero padded 64 -> 128 so every later stage is lane dense.
    w1 = jnp.transpose(raw["w1"], (2, 3, 1, 0)).reshape(9 * n_channels, 64)
    w1 = jnp.pad(w1, ((0, 0), (0, 64))).astype(jnp.bfloat16)
    b1 = jnp.pad(raw["b1"], (0, 64)).astype(jnp.float32).reshape(1, 128)

    # Conv2 (128, 64, 3, 3) -> taps (9, 128, 128); Cin zero padded to match.
    w2 = jnp.transpose(raw["w2"], (2, 3, 1, 0)).reshape(9, 64, 128)
    w2 = jnp.pad(w2, ((0, 0), (0, 64), (0, 0))).astype(jnp.bfloat16)
    b2 = raw["b2"].astype(jnp.float32).reshape(1, 128)

    # Linear(n_inputs, 500): rows regrouped from torch's (C,H,W) flatten order
    # into per-spatial-position (H2*W2, 128, hidden) slabs so the kernel can do
    # H2*W2 accumulated (TB,128)x(128,512) matmuls without flattening features.
    # Hidden is zero padded 500 -> 512 (lane dense, numerically exact).
    lw1 = raw["lw1"].reshape(128, H2, W2, 500)
    lw1 = jnp.transpose(lw1, (1, 2, 0, 3)).reshape(H2 * W2, 128, 500)
    lw1 = jnp.pad(lw1, ((0, 0), (0, 0), (0, 12))).astype(jnp.bfloat16)
    lb1 = jnp.pad(raw["lb1"], (0, 12)).astype(jnp.float32).reshape(1, 512)
    lw2 = jnp.pad(raw["lw2"], ((0, 12), (0, 0))).astype(jnp.bfloat16)   # (512, 10)
    lb2 = raw["lb2"].astype(jnp.float32).reshape(1, 10)

    return dict(w1=w1, b1=b1, w2=w2, b2=b2, lw1=lw1, lb1=lb1, lw2=lw2, lb2=lb2)


# ---------------------------------------------------------------------------
# Full forward pass (matches Colon.forward, eval semantics)
# ---------------------------------------------------------------------------
def colon_forward(x_nchw, params):
    N, C, H, W = x_nchw.shape

    # Stage-1 im2col (tiny; runs in XLA on the raw input): (N, H*W, 9*C) bf16.
    xh = jnp.transpose(x_nchw, (0, 2, 3, 1))
    xp = jnp.pad(xh, ((0, 0), (1, 1), (1, 1), (0, 0)))
    taps = [xp[:, ky:ky + H, kx:kx + W, :] for ky in range(3) for kx in range(3)]
    xi = jnp.concatenate(taps, axis=-1).reshape(N, H * W, 9 * C).astype(jnp.bfloat16)

    # Batch tile: keep >=2 "parallel" grid steps whenever N >= 2 (v7x megacore),
    # up to 8 images per step so the MLP matmuls get M = TB rows.
    TB = max(1, min(8, N // 2))
    G = -(-N // TB)
    Npad = G * TB
    if Npad != N:
        xi = jnp.pad(xi, ((0, Npad - N), (0, 0), (0, 0)))

    out = _colon_pallas(xi, params, H=H, W=W, TB=TB)
    return out[:N]


# ---------------------------------------------------------------------------
# Pure-JAX reference (f32) for a sanity check
# ---------------------------------------------------------------------------
def colon_reference(x, raw):
    dn = ("NCHW", "OIHW", "NCHW")
    y = jax.lax.conv_general_dilated(x, raw["w1"], (1, 1), ((1, 1), (1, 1)),
                                     dimension_numbers=dn)
    y = jnp.tanh(y + raw["b1"][None, :, None, None])
    y = jax.lax.reduce_window(y, -jnp.inf, jax.lax.max, (1, 1, 2, 2),
                              (1, 1, 2, 2), ((0, 0), (0, 0), (1, 1), (1, 1)))
    y = jax.lax.conv_general_dilated(y, raw["w2"], (1, 1), ((1, 1), (1, 1)),
                                     dimension_numbers=dn)
    y = jnp.tanh(y + raw["b2"][None, :, None, None])
    y = jax.lax.reduce_window(y, -jnp.inf, jax.lax.max, (1, 1, 2, 2),
                              (1, 1, 2, 2), ((0, 0), (0, 0), (1, 1), (1, 1)))
    flat = y.reshape(y.shape[0], -1)
    h = jnp.tanh(flat @ raw["lw1"] + raw["lb1"])
    logits = h @ raw["lw2"] + raw["lb2"]
    return jax.nn.softmax(logits, axis=1)


if __name__ == "__main__":
    N, C, H, W = 2, 4, 16, 16
    H1, W1 = H // 2 + 1, W // 2 + 1          # after first MaxPool2d(2,2,p=1)
    H2, W2 = H1 // 2 + 1, W1 // 2 + 1        # after second MaxPool2d(2,2,p=1)
    n_inputs = 128 * H2 * W2                 # flatten size feeding Linear(n_inputs, 500)

    key = jax.random.PRNGKey(0)
    k = jax.random.split(key, 9)
    x = jax.random.normal(k[0], (N, C, H, W), jnp.float32)

    raw = dict(
        # Conv2d(n_channels, 64, 3) -- torch weight layout (Cout, Cin, kH, kW)
        w1=jax.random.normal(k[1], (64, C, 3, 3), jnp.float32) * 0.10,
        b1=jax.random.normal(k[2], (64,), jnp.float32) * 0.10,
        # Conv2d(64, 128, 3)
        w2=jax.random.normal(k[3], (128, 64, 3, 3), jnp.float32) * 0.05,
        b2=jax.random.normal(k[4], (128,), jnp.float32) * 0.05,
        # Linear(n_inputs, 500): stored transposed as (n_inputs, 500), rows in
        # torch's (C, H, W) flatten order.
        lw1=jax.random.normal(k[5], (n_inputs, 500), jnp.float32) * 0.02,
        lb1=jax.random.normal(k[6], (500,), jnp.float32) * 0.02,
        # Linear(500, 10): stored as (500, 10)
        lw2=jax.random.normal(k[7], (500, 10), jnp.float32) * 0.05,
        lb2=jax.random.normal(k[8], (10,), jnp.float32) * 0.05,
    )

    params = prepare_params(raw, C, H, W)        # one-time host-side repack
    out = jax.jit(colon_forward)(x, params)
    out = jax.block_until_ready(out)

    assert out.shape == (N, 10), out.shape
    assert bool(jnp.all(jnp.isfinite(out)))
    assert bool(jnp.allclose(jnp.sum(out, axis=1), 1.0, atol=1e-4))

    ref = colon_reference(x, raw)
    max_err = float(jnp.max(jnp.abs(out - ref)))
    assert max_err < 0.1, f"max |out - ref| = {max_err}"
    print("KERNEL_OK")
</pallas_src>

<mosaic_0001>
module attributes {stable_mosaic.version = 11 : i64} {
  func.func @_colon_fused_kernel(%arg0: i32, %arg1: memref<1x256x36xbf16, #tpu.memory_space<vmem>>, %arg2: memref<36x128xbf16, #tpu.memory_space<vmem>>, %arg3: memref<1x128xf32, #tpu.memory_space<vmem>>, %arg4: memref<9x128x128xbf16, #tpu.memory_space<vmem>>, %arg5: memref<1x128xf32, #tpu.memory_space<vmem>>, %arg6: memref<25x128x512xbf16, #tpu.memory_space<vmem>>, %arg7: memref<1x512xf32, #tpu.memory_space<vmem>>, %arg8: memref<512x10xbf16, #tpu.memory_space<vmem>>, %arg9: memref<1x10xf32, #tpu.memory_space<vmem>>, %arg10: memref<1x1x10xf32, #tpu.memory_space<vmem>>, %arg11: memref<324x128xf32, #tpu.memory_space<vmem>>, %arg12: memref<132x128xbf16, #tpu.memory_space<vmem>>, %arg13: memref<110x128xf32, #tpu.memory_space<vmem>>, %arg14: memref<25x128xbf16, #tpu.memory_space<vmem>>) attributes {dimension_semantics = [#tpu.dimension_semantics<parallel>], iteration_bounds = array<i64: 2>, scalar_prefetch = 0 : i64, scratch_operands = 4 : i64, tpu.core_type = #tpu.core_type<tc>, window_params = [{transform_indices = @transform_0, window_bounds = array<i64: 1, 256, 36>}, {pipeline_mode = #tpu.pipeline_mode<synchronous>, transform_indices = @transform_1, window_bounds = array<i64: 36, 128>}, {pipeline_mode = #tpu.pipeline_mode<synchronous>, transform_indices = @transform_2, window_bounds = array<i64: 1, 128>}, {pipeline_mode = #tpu.pipeline_mode<synchronous>, transform_indices = @transform_3, window_bounds = array<i64: 9, 128, 128>}, {pipeline_mode = #tpu.pipeline_mode<synchronous>, transform_indices = @transform_4, window_bounds = array<i64: 1, 128>}, {pipeline_mode = #tpu.pipeline_mode<synchronous>, transform_indices = @transform_5, window_bounds = array<i64: 25, 128, 512>}, {pipeline_mode = #tpu.pipeline_mode<synchronous>, transform_indices = @transform_6, window_bounds = array<i64: 1, 512>}, {pipeline_mode = #tpu.pipeline_mode<synchronous>, transform_indices = @transform_7, window_bounds = array<i64: 512, 10>}, {pipeline_mode = #tpu.pipeline_mode<synchronous>, transform_indices = @transform_8, window_bounds = array<i64: 1, 10>}, {transform_indices = @transform_9, window_bounds = array<i64: 1, 1, 10>}]} {
    %cst = arith.constant 0xFF800000 : f32
    %0 = vector.broadcast %cst : f32 to vector<324x128xf32>
    %c0 = arith.constant 0 : index
    %c0_0 = arith.constant 0 : index
    %1 = vector.load %arg11[%c0, %c0_0] : memref<324x128xf32, #tpu.memory_space<vmem>>, vector<324x128xf32>
    tpu.vector_store %arg11[%c0, %c0_0], %0 {strides = array<i32>} : memref<324x128xf32, #tpu.memory_space<vmem>>, vector<324x128xf32>,
    %cst_1 = arith.constant 0.000000e+00 : bf16
    %2 = vector.broadcast %cst_1 : bf16 to vector<132x128xbf16>
    %c0_2 = arith.constant 0 : index
    %c0_3 = arith.constant 0 : index
    %3 = vector.load %arg12[%c0_2, %c0_3] : memref<132x128xbf16, #tpu.memory_space<vmem>>, vector<132x128xbf16>
    tpu.vector_store %arg12[%c0_2, %c0_3], %2 {strides = array<i32>} : memref<132x128xbf16, #tpu.memory_space<vmem>>, vector<132x128xbf16>,
    %cst_4 = arith.constant 0xFF800000 : f32
    %4 = vector.broadcast %cst_4 : f32 to vector<110x128xf32>
    %c0_5 = arith.constant 0 : index
    %c0_6 = arith.constant 0 : index
    %5 = vector.load %arg13[%c0_5, %c0_6] : memref<110x128xf32, #tpu.memory_space<vmem>>, vector<110x128xf32>
    tpu.vector_store %arg13[%c0_5, %c0_6], %4 {strides = array<i32>} : memref<110x128xf32, #tpu.memory_space<vmem>>, vector<110x128xf32>,
    %c0_7 = arith.constant 0 : index
    %c0_8 = arith.constant 0 : index
    %6 = vector.load %arg2[%c0_7, %c0_8] : memref<36x128xbf16, #tpu.memory_space<vmem>>, vector<36x128xbf16>
    %c0_9 = arith.constant 0 : index
    %c0_10 = arith.constant 0 : index
    %7 = vector.load %arg3[%c0_9, %c0_10] : memref<1x128xf32, #tpu.memory_space<vmem>>, vector<1x128xf32>
    %c0_11 = arith.constant 0 : index
    %c0_12 = arith.constant 0 : index
    %8 = vector.load %arg5[%c0_11, %c0_12] : memref<1x128xf32, #tpu.memory_space<vmem>>, vector<1x128xf32>
    %c0_13 = arith.constant 0 : index
    %c0_14 = arith.constant 0 : index
    %c0_15 = arith.constant 0 : index
    %9 = vector.load %arg1[%c0_13, %c0_14, %c0_15] : memref<1x256x36xbf16, #tpu.memory_space<vmem>>, vector<1x64x36xbf16>
    %10 = vector.shape_cast %9 : vector<1x64x36xbf16> to vector<64x36xbf16>
    %cst_16 = arith.constant dense<0.000000e+00> : vector<64x128xf32>
    %11 = tpu.matmul %10, %6, %cst_16 {dimension_numbers = #tpu.dot_dimension_numbers<[1], [0], [0], [1], [0, 0, 1, 1], [], []>} : vector<64x36xbf16>, vector<36x128xbf16>, vector<64x128xf32> -> vector<64x128xf32>
    %12 = vector.broadcast %7 : vector<1x128xf32> to vector<64x128xf32>
    %13 = arith.addf %11, %12 : vector<64x128xf32>
    %14 = math.tanh %13 : vector<64x128xf32>
    %15 = vector.extract_strided_slice %14 {offsets = [0, 0], sizes = [16, 128], strides = [1, 1]} : vector<64x128xf32> to vector<16x128xf32>
    %c19 = arith.constant 19 : index
    %c0_17 = arith.constant 0 : index
    %16 = vector.load %arg11[%c19, %c0_17] : memref<324x128xf32, #tpu.memory_space<vmem>>, vector<16x128xf32>
    tpu.vector_store %arg11[%c19, %c0_17], %15 {strides = array<i32>} : memref<324x128xf32, #tpu.memory_space<vmem>>, vector<16x128xf32>,
    %17 = vector.extract_strided_slice %14 {offsets = [16, 0], sizes = [16, 128], strides = [1, 1]} : vector<64x128xf32> to vector<16x128xf32>
    %c37 = arith.constant 37 : index
    %c0_18 = arith.constant 0 : index
    %18 = vector.load %arg11[%c37, %c0_18] : memref<324x128xf32, #tpu.memory_space<vmem>>, vector<16x128xf32>
    tpu.vector_store %arg11[%c37, %c0_18], %17 {strides = array<i32>} : memref<324x128xf32, #tpu.memory_space<vmem>>, vector<16x128xf32>,
    %19 = vector.extract_strided_slice %14 {offsets = [32, 0], sizes = [16, 128], strides = [1, 1]} : vector<64x128xf32> to vector<16x128xf32>
    %c55 = arith.constant 55 : index
    %c0_19 = arith.constant 0 : index
    %20 = vector.load %arg11[%c55, %c0_19] : memref<324x128xf32, #tpu.memory_space<vmem>>, vector<16x128xf32>
    tpu.vector_store %arg11[%c55, %c0_19], %19 {strides = array<i32>} : memref<324x128xf32, #tpu.memory_space<vmem>>, vector<16x128xf32>,
    %21 = vector.extract_strided_slice %14 {offsets = [48, 0], sizes = [16, 128], strides = [1, 1]} : vector<64x128xf32> to vector<16x128xf32>
    %c73 = arith.constant 73 : index
    %c0_20 = arith.constant 0 : index
    %22 = vector.load %arg11[%c73, %c0_20] : memref<324x128xf32, #tpu.memory_space<vmem>>, vector<16x128xf32>
    tpu.vector_store %arg11[%c73, %c0_20], %21 {strides = array<i32>} : memref<324x128xf32, #tpu.memory_space<vmem>>, vector<16x128xf32>,
    %c0_21 = arith.constant 0 : index
    %c64 = arith.constant 64 : index
    %c0_22 = arith.constant 0 : index
    %23 = vector.load %arg1[%c0_21, %c64, %c0_22] : memref<1x256x36xbf16, #tpu.memory_space<vmem>>, vector<1x64x36xbf16>
    %24 = vector.shape_cast %23 : vector<1x64x36xbf16> to vector<64x36xbf16>
    %cst_23 = arith.constant dense<0.000000e+00> : vector<64x128xf32>
    %25 = tpu.matmul %24, %6, %cst_23 {dimension_numbers = #tpu.dot_dimension_numbers<[1], [0], [0], [1], [0, 0, 1, 1], [], []>} : vector<64x36xbf16>, vector<36x128xbf16>, vector<64x128xf32> -> vector<64x128xf32>
    %26 = vector.broadcast %7 : vector<1x128xf32> to vector<64x128xf32>
    %27 = arith.addf %25, %26 : vector<64x128xf32>
    %28 = math.tanh %27 : vector<64x128xf32>
    %29 = vector.extract_strided_slice %28 {offsets = [0, 0], sizes = [16, 128], strides = [1, 1]} : vector<64x128xf32> to vector<16x128xf32>
    %c91 = arith.constant 91 : index
    %c0_24 = arith.constant 0 : index
    %30 = vector.load %arg11[%c91, %c0_24] : memref<324x128xf32, #tpu.memory_space<vmem>>, vector<16x128xf32>
    tpu.vector_store %arg11[%c91, %c0_24], %29 {strides = array<i32>} : memref<324x128xf32, #tpu.memory_space<vmem>>, vector<16x128xf32>,
    %31 = vector.extract_strided_slice %28 {offsets = [16, 0], sizes = [16, 128], strides = [1, 1]} : vector<64x128xf32> to vector<16x128xf32>
    %c109 = arith.constant 109 : index
    %c0_25 = arith.constant 0 : index
    %32 = vector.load %arg11[%c109, %c0_25] : memref<324x128xf32, #tpu.memory_space<vmem>>, vector<16x128xf32>
    tpu.vector_store %arg11[%c109, %c0_25], %31 {strides = array<i32>} : memref<324x128xf32, #tpu.memory_space<vmem>>, vector<16x128xf32>,
    %33 = vector.extract_strided_slice %28 {offsets = [32, 0], sizes = [16, 128], strides = [1, 1]} : vector<64x128xf32> to vector<16x128xf32>
    %c127 = arith.constant 127 : index
    %c0_26 = arith.constant 0 : index
    %34 = vector.load %arg11[%c127, %c0_26] : memref<324x128xf32, #tpu.memory_space<vmem>>, vector<16x128xf32>
    tpu.vector_store %arg11[%c127, %c0_26], %33 {strides = array<i32>} : memref<324x128xf32, #tpu.memory_space<vmem>>, vector<16x128xf32>,
    %35 = vector.extract_strided_slice %28 {offsets = [48, 0], sizes = [16, 128], strides = [1, 1]} : vector<64x128xf32> to vector<16x128xf32>
    %c145 = arith.constant 145 : index
    %c0_27 = arith.constant 0 : index
    %36 = vector.load %arg11[%c145, %c0_27] : memref<324x128xf32, #tpu.memory_space<vmem>>, vector<16x128xf32>
    tpu.vector_store %arg11[%c145, %c0_27], %35 {strides = array<i32>} : memref<324x128xf32, #tpu.memory_space<vmem>>, vector<16x128xf32>,
    %c0_28 = arith.constant 0 : index
    %c128 = arith.constant 128 : index
    %c0_29 = arith.constant 0 : index
    %37 = vector.load %arg1[%c0_28, %c128, %c0_29] : memref<1x256x36xbf16, #tpu.memory_space<vmem>>, vector<1x64x36xbf16>
    %38 = vector.shape_cast %37 : vector<1x64x36xbf16> to vector<64x36xbf16>
    %cst_30 = arith.constant dense<0.000000e+00> : vector<64x128xf32>
    %39 = tpu.matmul %38, %6, %cst_30 {dimension_numbers = #tpu.dot_dimension_numbers<[1], [0], [0], [1], [0, 0, 1, 1], [], []>} : vector<64x36xbf16>, vector<36x128xbf16>, vector<64x128xf32> -> vector<64x128xf32>
    %40 = vector.broadcast %7 : vector<1x128xf32> to vector<64x128xf32>
    %41 = arith.addf %39, %40 : vector<64x128xf32>
    %42 = math.tanh %41 : vector<64x128xf32>
    %43 = vector.extract_strided_slice %42 {offsets = [0, 0], sizes = [16, 128], strides = [1, 1]} : vector<64x128xf32> to vector<16x128xf32>
    %c163 = arith.constant 163 : index
    %c0_31 = arith.constant 0 : index
    %44 = vector.load %arg11[%c163, %c0_31] : memref<324x128xf32, #tpu.memory_space<vmem>>, vector<16x128xf32>
    tpu.vector_store %arg11[%c163, %c0_31], %43 {strides = array<i32>} : memref<324x128xf32, #tpu.memory_space<vmem>>, vector<16x128xf32>,
    %45 = vector.extract_strided_slice %42 {offsets = [16, 0], sizes = [16, 128], strides = [1, 1]} : vector<64x128xf32> to vector<16x128xf32>
    %c181 = arith.constant 181 : index
    %c0_32 = arith.constant 0 : index
    %46 = vector.load %arg11[%c181, %c0_32] : memref<324x128xf32, #tpu.memory_space<vmem>>, vector<16x128xf32>
    tpu.vector_store %arg11[%c181, %c0_32], %45 {strides = array<i32>} : memref<324x128xf32, #tpu.memory_space<vmem>>, vector<16x128xf32>,
    %47 = vector.extract_strided_slice %42 {offsets = [32, 0], sizes = [16, 128], strides = [1, 1]} : vector<64x128xf32> to vector<16x128xf32>
    %c199 = arith.constant 199 : index
    %c0_33 = arith.constant 0 : index
    %48 = vector.load %arg11[%c199, %c0_33] : memref<324x128xf32, #tpu.memory_space<vmem>>, vector<16x128xf32>
    tpu.vector_store %arg11[%c199, %c0_33], %47 {strides = array<i32>} : memref<324x128xf32, #tpu.memory_space<vmem>>, vector<16x128xf32>,
    %49 = vector.extract_strided_slice %42 {offsets = [48, 0], sizes = [16, 128], strides = [1, 1]} : vector<64x128xf32> to vector<16x128xf32>
    %c217 = arith.constant 217 : index
    %c0_34 = arith.constant 0 : index
    %50 = vector.load %arg11[%c217, %c0_34] : memref<324x128xf32, #tpu.memory_space<vmem>>, vector<16x128xf32>
    tpu.vector_store %arg11[%c217, %c0_34], %49 {strides = array<i32>} : memref<324x128xf32, #tpu.memory_space<vmem>>, vector<16x128xf32>,
    %c0_35 = arith.constant 0 : index
    %c192 = arith.constant 192 : index
    %c0_36 = arith.constant 0 : index
    %51 = vector.load %arg1[%c0_35, %c192, %c0_36] : memref<1x256x36xbf16, #tpu.memory_space<vmem>>, vector<1x64x36xbf16>
    %52 = vector.shape_cast %51 : vector<1x64x36xbf16> to vector<64x36xbf16>
    %cst_37 = arith.constant dense<0.000000e+00> : vector<64x128xf32>
    %53 = tpu.matmul %52, %6, %cst_37 {dimension_numbers = #tpu.dot_dimension_numbers<[1], [0], [0], [1], [0, 0, 1, 1], [], []>} : vector<64x36xbf16>, vector<36x128xbf16>, vector<64x128xf32> -> vector<64x128xf32>
    %54 = vector.broadcast %7 : vector<1x128xf32> to vector<64x128xf32>
    %55 = arith.addf %53, %54 : vector<64x128xf32>
    %56 = math.tanh %55 : vector<64x128xf32>
    %57 = vector.extract_strided_slice %56 {offsets = [0, 0], sizes = [16, 128], strides = [1, 1]} : vector<64x128xf32> to vector<16x128xf32>
    %c235 = arith.constant 235 : index
    %c0_38 = arith.constant 0 : index
    %58 = vector.load %arg11[%c235, %c0_38] : memref<324x128xf32, #tpu.memory_space<vmem>>, vector<16x128xf32>
    tpu.vector_store %arg11[%c235, %c0_38], %57 {strides = array<i32>} : memref<324x128xf32, #tpu.memory_space<vmem>>, vector<16x128xf32>,
    %59 = vector.extract_strided_slice %56 {offsets = [16, 0], sizes = [16, 128], strides = [1, 1]} : vector<64x128xf32> to vector<16x128xf32>
    %c253 = arith.constant 253 : index
    %c0_39 = arith.constant 0 : index
    %60 = vector.load %arg11[%c253, %c0_39] : memref<324x128xf32, #tpu.memory_space<vmem>>, vector<16x128xf32>
    tpu.vector_store %arg11[%c253, %c0_39], %59 {strides = array<i32>} : memref<324x128xf32, #tpu.memory_space<vmem>>, vector<16x128xf32>,
    %61 = vector.extract_strided_slice %56 {offsets = [32, 0], sizes = [16, 128], strides = [1, 1]} : vector<64x128xf32> to vector<16x128xf32>
    %c271 = arith.constant 271 : index
    %c0_40 = arith.constant 0 : index
    %62 = vector.load %arg11[%c271, %c0_40] : memref<324x128xf32, #tpu.memory_space<vmem>>, vector<16x128xf32>
    tpu.vector_store %arg11[%c271, %c0_40], %61 {strides = array<i32>} : memref<324x128xf32, #tpu.memory_space<vmem>>, vector<16x128xf32>,
    %63 = vector.extract_strided_slice %56 {offsets = [48, 0], sizes = [16, 128], strides = [1, 1]} : vector<64x128xf32> to vector<16x128xf32>
    %c289 = arith.constant 289 : index
    %c0_41 = arith.constant 0 : index
    %64 = vector.load %arg11[%c289, %c0_41] : memref<324x128xf32, #tpu.memory_space<vmem>>, vector<16x128xf32>
    tpu.vector_store %arg11[%c289, %c0_41], %63 {strides = array<i32>} : memref<324x128xf32, #tpu.memory_space<vmem>>, vector<16x128xf32>,
    %c0_42 = arith.constant 0 : index
    %c0_43 = arith.constant 0 : index
    %65 = tpu.strided_load %arg11[%c0_42, %c0_43] {strides = array<i32: 2, 1>} : memref<324x128xf32, #tpu.memory_space<vmem>>, vector<162x128xf32>
    %c1 = arith.constant 1 : index
    %c0_44 = arith.constant 0 : index
    %66 = tpu.strided_load %arg11[%c1, %c0_44] {strides = array<i32: 2, 1>} : memref<324x128xf32, #tpu.memory_space<vmem>>, vector<162x128xf32>
    %67 = arith.maximumf %65, %66 : vector<162x128xf32>
    %68 = vector.extract_strided_slice %67 {offsets = [0, 0], sizes = [9, 128], strides = [1, 1]} : vector<162x128xf32> to vector<9x128xf32>
    %69 = vector.extract_strided_slice %67 {offsets = [9, 0], sizes = [9, 128], strides = [1, 1]} : vector<162x128xf32> to vector<9x128xf32>
    %70 = arith.maximumf %68, %69 : vector<9x128xf32>
    %71 = arith.truncf %70 : vector<9x128xf32> to vector<9x128xbf16>
    %c12 = arith.constant 12 : index
    %c0_45 = arith.constant 0 : index
    %72 = vector.load %arg12[%c12, %c0_45] : memref<132x128xbf16, #tpu.memory_space<vmem>>, vector<9x128xbf16>
    tpu.vector_store %arg12[%c12, %c0_45], %71 {strides = array<i32>} : memref<132x128xbf16, #tpu.memory_space<vmem>>, vector<9x128xbf16>,
    %73 = vector.extract_strided_slice %67 {offsets = [18, 0], sizes = [9, 128], strides = [1, 1]} : vector<162x128xf32> to vector<9x128xf32>
    %74 = vector.extract_strided_slice %67 {offsets = [27, 0], sizes = [9, 128], strides = [1, 1]} : vector<162x128xf32> to vector<9x128xf32>
    %75 = arith.maximumf %73, %74 : vector<9x128xf32>
    %76 = arith.truncf %75 : vector<9x128xf32> to vector<9x128xbf16>
    %c23 = arith.constant 23 : index
    %c0_46 = arith.constant 0 : index
    %77 = vector.load %arg12[%c23, %c0_46] : memref<132x128xbf16, #tpu.memory_space<vmem>>, vector<9x128xbf16>
    tpu.vector_store %arg12[%c23, %c0_46], %76 {strides = array<i32>} : memref<132x128xbf16, #tpu.memory_space<vmem>>, vector<9x128xbf16>,
    %78 = vector.extract_strided_slice %67 {offsets = [36, 0], sizes = [9, 128], strides = [1, 1]} : vector<162x128xf32> to vector<9x128xf32>
    %79 = vector.extract_strided_slice %67 {offsets = [45, 0], sizes = [9, 128], strides = [1, 1]} : vector<162x128xf32> to vector<9x128xf32>
    %80 = arith.maximumf %78, %79 : vector<9x128xf32>
    %81 = arith.truncf %80 : vector<9x128xf32> to vector<9x128xbf16>
    %c34 = arith.constant 34 : index
    %c0_47 = arith.constant 0 : index
    %82 = vector.load %arg12[%c34, %c0_47] : memref<132x128xbf16, #tpu.memory_space<vmem>>, vector<9x128xbf16>
    tpu.vector_store %arg12[%c34, %c0_47], %81 {strides = array<i32>} : memref<132x128xbf16, #tpu.memory_space<vmem>>, vector<9x128xbf16>,
    %83 = vector.extract_strided_slice %67 {offsets = [54, 0], sizes = [9, 128], strides = [1, 1]} : vector<162x128xf32> to vector<9x128xf32>
    %84 = vector.extract_strided_slice %67 {offsets = [63, 0], sizes = [9, 128], strides = [1, 1]} : vector<162x128xf32> to vector<9x128xf32>
    %85 = arith.maximumf %83, %84 : vector<9x128xf32>
    %86 = arith.truncf %85 : vector<9x128xf32> to vector<9x128xbf16>
    %c45 = arith.constant 45 : index
    %c0_48 = arith.constant 0 : index
    %87 = vector.load %arg12[%c45, %c0_48] : memref<132x128xbf16, #tpu.memory_space<vmem>>, vector<9x128xbf16>
    tpu.vector_store %arg12[%c45, %c0_48], %86 {strides = array<i32>} : memref<132x128xbf16, #tpu.memory_space<vmem>>, vector<9x128xbf16>,
    %88 = vector.extract_strided_slice %67 {offsets = [72, 0], sizes = [9, 128], strides = [1, 1]} : vector<162x128xf32> to vector<9x128xf32>
    %89 = vector.extract_strided_slice %67 {offsets = [81, 0], sizes = [9, 128], strides = [1, 1]} : vector<162x128xf32> to vector<9x128xf32>
    %90 = arith.maximumf %88, %89 : vector<9x128xf32>
    %91 = arith.truncf %90 : vector<9x128xf32> to vector<9x128xbf16>
    %c56 = arith.constant 56 : index
    %c0_49 = arith.constant 0 : index
    %92 = vector.load %arg12[%c56, %c0_49] : memref<132x128xbf16, #tpu.memory_space<vmem>>, vector<9x128xbf16>
    tpu.vector_store %arg12[%c56, %c0_49], %91 {strides = array<i32>} : memref<132x128xbf16, #tpu.memory_space<vmem>>, vector<9x128xbf16>,
    %93 = vector.extract_strided_slice %67 {offsets = [90, 0], sizes = [9, 128], strides = [1, 1]} : vector<162x128xf32> to vector<9x128xf32>
    %94 = vector.extract_strided_slice %67 {offsets = [99, 0], sizes = [9, 128], strides = [1, 1]} : vector<162x128xf32> to vector<9x128xf32>
    %95 = arith.maximumf %93, %94 : vector<9x128xf32>
    %96 = arith.truncf %95 : vector<9x128xf32> to vector<9x128xbf16>
    %c67 = arith.constant 67 : index
    %c0_50 = arith.constant 0 : index
    %97 = vector.load %arg12[%c67, %c0_50] : memref<132x128xbf16, #tpu.memory_space<vmem>>, vector<9x128xbf16>
    tpu.vector_store %arg12[%c67, %c0_50], %96 {strides = array<i32>} : memref<132x128xbf16, #tpu.memory_space<vmem>>, vector<9x128xbf16>,
    %98 = vector.extract_strided_slice %67 {offsets = [108, 0], sizes = [9, 128], strides = [1, 1]} : vector<162x128xf32> to vector<9x128xf32>
    %99 = vector.extract_strided_slice %67 {offsets = [117, 0], sizes = [9, 128], strides = [1, 1]} : vector<162x128xf32> to vector<9x128xf32>
    %100 = arith.maximumf %98, %99 : vector<9x128xf32>
    %101 = arith.truncf %100 : vector<9x128xf32> to vector<9x128xbf16>
    %c78 = arith.constant 78 : index
    %c0_51 = arith.constant 0 : index
    %102 = vector.load %arg12[%c78, %c0_51] : memref<132x128xbf16, #tpu.memory_space<vmem>>, vector<9x128xbf16>
    tpu.vector_store %arg12[%c78, %c0_51], %101 {strides = array<i32>} : memref<132x128xbf16, #tpu.memory_space<vmem>>, vector<9x128xbf16>,
    %103 = vector.extract_strided_slice %67 {offsets = [126, 0], sizes = [9, 128], strides = [1, 1]} : vector<162x128xf32> to vector<9x128xf32>
    %104 = vector.extract_strided_slice %67 {offsets = [135, 0], sizes = [9, 128], strides = [1, 1]} : vector<162x128xf32> to vector<9x128xf32>
    %105 = arith.maximumf %103, %104 : vector<9x128xf32>
    %106 = arith.truncf %105 : vector<9x128xf32> to vector<9x128xbf16>
    %c89 = arith.constant 89 : index
    %c0_52 = arith.constant 0 : index
    %107 = vector.load %arg12[%c89, %c0_52] : memref<132x128xbf16, #tpu.memory_space<vmem>>, vector<9x128xbf16>
    tpu.vector_store %arg12[%c89, %c0_52], %106 {strides = array<i32>} : memref<132x128xbf16, #tpu.memory_space<vmem>>, vector<9x128xbf16>,
    %108 = vector.extract_strided_slice %67 {offsets = [144, 0], sizes = [9, 128], strides = [1, 1]} : vector<162x128xf32> to vector<9x128xf32>
    %109 = vector.extract_strided_slice %67 {offsets = [153, 0], sizes = [9, 128], strides = [1, 1]} : vector<162x128xf32> to vector<9x128xf32>
    %110 = arith.maximumf %108, %109 : vector<9x128xf32>
    %111 = arith.truncf %110 : vector<9x128xf32> to vector<9x128xbf16>
    %c100 = arith.constant 100 : index
    %c0_53 = arith.constant 0 : index
    %112 = vector.load %arg12[%c100, %c0_53] : memref<132x128xbf16, #tpu.memory_space<vmem>>, vector<9x128xbf16>
    tpu.vector_store %arg12[%c100, %c0_53], %111 {strides = array<i32>} : memref<132x128xbf16, #tpu.memory_space<vmem>>, vector<9x128xbf16>,
    %cst_54 = arith.constant 0.000000e+00 : f32
    %113 = vector.broadcast %cst_54 : f32 to vector<99x128xf32>
    %c0_55 = arith.constant 0 : index
    %c0_56 = arith.constant 0 : index
    %114 = vector.load %arg12[%c0_55, %c0_56] : memref<132x128xbf16, #tpu.memory_space<vmem>>, vector<99x128xbf16>
    %c0_57 = arith.constant 0 : index
    %c0_58 = arith.constant 0 : index
    %c0_59 = arith.constant 0 : index
    %115 = vector.load %arg4[%c0_57, %c0_58, %c0_59] : memref<9x128x128xbf16, #tpu.memory_space<vmem>>, vector<1x128x128xbf16>
    %116 = vector.shape_cast %115 : vector<1x128x128xbf16> to vector<128x128xbf16>
    %cst_60 = arith.constant dense<0.000000e+00> : vector<99x128xf32>
    %117 = tpu.matmul %114, %116, %cst_60 {dimension_numbers = #tpu.dot_dimension_numbers<[1], [0], [0], [1], [0, 0, 1, 1], [], []>} : vector<99x128xbf16>, vector<128x128xbf16>, vector<99x128xf32> -> vector<99x128xf32>
    %118 = arith.addf %113, %117 : vector<99x128xf32>
    %c1_61 = arith.constant 1 : index
    %c0_62 = arith.constant 0 : index
    %119 = vector.load %arg12[%c1_61, %c0_62] : memref<132x128xbf16, #tpu.memory_space<vmem>>, vector<99x128xbf16>
    %c1_63 = arith.constant 1 : index
    %c0_64 = arith.constant 0 : index
    %c0_65 = arith.constant 0 : index
    %120 = vector.load %arg4[%c1_63, %c0_64, %c0_65] : memref<9x128x128xbf16, #tpu.memory_space<vmem>>, vector<1x128x128xbf16>
    %121 = vector.shape_cast %120 : vector<1x128x128xbf16> to vector<128x128xbf16>
    %cst_66 = arith.constant dense<0.000000e+00> : vector<99x128xf32>
    %122 = tpu.matmul %119, %121, %cst_66 {dimension_numbers = #tpu.dot_dimension_numbers<[1], [0], [0], [1], [0, 0, 1, 1], [], []>} : vector<99x128xbf16>, vector<128x128xbf16>, vector<99x128xf32> -> vector<99x128xf32>
    %123 = arith.addf %118, %122 : vector<99x128xf32>
    %c2 = arith.constant 2 : index
    %c0_67 = arith.constant 0 : index
    %124 = vector.load %arg12[%c2, %c0_67] : memref<132x128xbf16, #tpu.memory_space<vmem>>, vector<99x128xbf16>
    %c2_68 = arith.constant 2 : index
    %c0_69 = arith.constant 0 : index
    %c0_70 = arith.constant 0 : index
    %125 = vector.load %arg4[%c2_68, %c0_69, %c0_70] : memref<9x128x128xbf16, #tpu.memory_space<vmem>>, vector<1x128x128xbf16>
    %126 = vector.shape_cast %125 : vector<1x128x128xbf16> to vector<128x128xbf16>
    %cst_71 = arith.constant dense<0.000000e+00> : vector<99x128xf32>
    %127 = tpu.matmul %124, %126, %cst_71 {dimension_numbers = #tpu.dot_dimension_numbers<[1], [0], [0], [1], [0, 0, 1, 1], [], []>} : vector<99x128xbf16>, vector<128x128xbf16>, vector<99x128xf32> -> vector<99x128xf32>
    %128 = arith.addf %123, %127 : vector<99x128xf32>
    %c11 = arith.constant 11 : index
    %c0_72 = arith.constant 0 : index
    %129 = vector.load %arg12[%c11, %c0_72] : memref<132x128xbf16, #tpu.memory_space<vmem>>, vector<99x128xbf16>
    %c3 = arith.constant 3 : index
    %c0_73 = arith.constant 0 : index
    %c0_74 = arith.constant 0 : index
    %130 = vector.load %arg4[%c3, %c0_73, %c0_74] : memref<9x128x128xbf16, #tpu.memory_space<vmem>>, vector<1x128x128xbf16>
    %131 = vector.shape_cast %130 : vector<1x128x128xbf16> to vector<128x128xbf16>
    %cst_75 = arith.constant dense<0.000000e+00> : vector<99x128xf32>
    %132 = tpu.matmul %129, %131, %cst_75 {dimension_numbers = #tpu.dot_dimension_numbers<[1], [0], [0], [1], [0, 0, 1, 1], [], []>} : vector<99x128xbf16>, vector<128x128xbf16>, vector<99x128xf32> -> vector<99x128xf32>
    %133 = arith.addf %128, %132 : vector<99x128xf32>
    %c12_76 = arith.constant 12 : index
    %c0_77 = arith.constant 0 : index
    %134 = vector.load %arg12[%c12_76, %c0_77] : memref<132x128xbf16, #tpu.memory_space<vmem>>, vector<99x128xbf16>
    %c4 = arith.constant 4 : index
    %c0_78 = arith.constant 0 : index
    %c0_79 = arith.constant 0 : index
    %135 = vector.load %arg4[%c4, %c0_78, %c0_79] : memref<9x128x128xbf16, #tpu.memory_space<vmem>>, vector<1x128x128xbf16>
    %136 = vector.shape_cast %135 : vector<1x128x128xbf16> to vector<128x128xbf16>
    %cst_80 = arith.constant dense<0.000000e+00> : vector<99x128xf32>
    %137 = tpu.matmul %134, %136, %cst_80 {dimension_numbers = #tpu.dot_dimension_numbers<[1], [0], [0], [1], [0, 0, 1, 1], [], []>} : vector<99x128xbf16>, vector<128x128xbf16>, vector<99x128xf32> -> vector<99x128xf32>
    %138 = arith.addf %133, %137 : vector<99x128xf32>
    %c13 = arith.constant 13 : index
    %c0_81 = arith.constant 0 : index
    %139 = vector.load %arg12[%c13, %c0_81] : memref<132x128xbf16, #tpu.memory_space<vmem>>, vector<99x128xbf16>
    %c5 = arith.constant 5 : index
    %c0_82 = arith.constant 0 : index
    %c0_83 = arith.constant 0 : index
    %140 = vector.load %arg4[%c5, %c0_82, %c0_83] : memref<9x128x128xbf16, #tpu.memory_space<vmem>>, vector<1x128x128xbf16>
    %141 = vector.shape_cast %140 : vector<1x128x128xbf16> to vector<128x128xbf16>
    %cst_84 = arith.constant dense<0.000000e+00> : vector<99x128xf32>
    %142 = tpu.matmul %139, %141, %cst_84 {dimension_numbers = #tpu.dot_dimension_numbers<[1], [0], [0], [1], [0, 0, 1, 1], [], []>} : vector<99x128xbf16>, vector<128x128xbf16>, vector<99x128xf32> -> vector<99x128xf32>
    %143 = arith.addf %138, %142 : vector<99x128xf32>
    %c22 = arith.constant 22 : index
    %c0_85 = arith.constant 0 : index
    %144 = vector.load %arg12[%c22, %c0_85] : memref<132x128xbf16, #tpu.memory_space<vmem>>, vector<99x128xbf16>
    %c6 = arith.constant 6 : index
    %c0_86 = arith.constant 0 : index
    %c0_87 = arith.constant 0 : index
    %145 = vector.load %arg4[%c6, %c0_86, %c0_87] : memref<9x128x128xbf16, #tpu.memory_space<vmem>>, vector<1x128x128xbf16>
    %146 = vector.shape_cast %145 : vector<1x128x128xbf16> to vector<128x128xbf16>
    %cst_88 = arith.constant dense<0.000000e+00> : vector<99x128xf32>
    %147 = tpu.matmul %144, %146, %cst_88 {dimension_numbers = #tpu.dot_dimension_numbers<[1], [0], [0], [1], [0, 0, 1, 1], [], []>} : vector<99x128xbf16>, vector<128x128xbf16>, vector<99x128xf32> -> vector<99x128xf32>
    %148 = arith.addf %143, %147 : vector<99x128xf32>
    %c23_89 = arith.constant 23 : index
    %c0_90 = arith.constant 0 : index
    %149 = vector.load %arg12[%c23_89, %c0_90] : memref<132x128xbf16, #tpu.memory_space<vmem>>, vector<99x128xbf16>
    %c7 = arith.constant 7 : index
    %c0_91 = arith.constant 0 : index
    %c0_92 = arith.constant 0 : index
    %150 = vector.load %arg4[%c7, %c0_91, %c0_92] : memref<9x128x128xbf16, #tpu.memory_space<vmem>>, vector<1x128x128xbf16>
    %151 = vector.shape_cast %150 : vector<1x128x128xbf16> to vector<128x128xbf16>
    %cst_93 = arith.constant dense<0.000000e+00> : vector<99x128xf32>
    %152 = tpu.matmul %149, %151, %cst_93 {dimension_numbers = #tpu.dot_dimension_numbers<[1], [0], [0], [1], [0, 0, 1, 1], [], []>} : vector<99x128xbf16>, vector<128x128xbf16>, vector<99x128xf32> -> vector<99x128xf32>
    %153 = arith.addf %148, %152 : vector<99x128xf32>
    %c24 = arith.constant 24 : index
    %c0_94 = arith.constant 0 : index
    %154 = vector.load %arg12[%c24, %c0_94] : memref<132x128xbf16, #tpu.memory_space<vmem>>, vector<99x128xbf16>
    %c8 = arith.constant 8 : index
    %c0_95 = arith.constant 0 : index
    %c0_96 = arith.constant 0 : index
    %155 = vector.load %arg4[%c8, %c0_95, %c0_96] : memref<9x128x128xbf16, #tpu.memory_space<vmem>>, vector<1x128x128xbf16>
    %156 = vector.shape_cast %155 : vector<1x128x128xbf16> to vector<128x128xbf16>
    %cst_97 = arith.constant dense<0.000000e+00> : vector<99x128xf32>
    %157 = tpu.matmul %154, %156, %cst_97 {dimension_numbers = #tpu.dot_dimension_numbers<[1], [0], [0], [1], [0, 0, 1, 1], [], []>} : vector<99x128xbf16>, vector<128x128xbf16>, vector<99x128xf32> -> vector<99x128xf32>
    %158 = arith.addf %153, %157 : vector<99x128xf32>
    %159 = vector.broadcast %8 : vector<1x128xf32> to vector<99x128xf32>
    %160 = arith.addf %158, %159 : vector<99x128xf32>
    %161 = math.tanh %160 : vector<99x128xf32>
    %162 = vector.extract_strided_slice %161 {offsets = [0, 0], sizes = [9, 128], strides = [1, 1]} : vector<99x128xf32> to vector<9x128xf32>
    %c11_98 = arith.constant 11 : index
    %c0_99 = arith.constant 0 : index
    %163 = vector.load %arg13[%c11_98, %c0_99] : memref<110x128xf32, #tpu.memory_space<vmem>>, vector<9x128xf32>
    tpu.vector_store %arg13[%c11_98, %c0_99], %162 {strides = array<i32>} : memref<110x128xf32, #tpu.memory_space<vmem>>, vector<9x128xf32>,
    %164 = vector.extract_strided_slice %161 {offsets = [11, 0], sizes = [9, 128], strides = [1, 1]} : vector<99x128xf32> to vector<9x128xf32>
    %c21 = arith.constant 21 : index
    %c0_100 = arith.constant 0 : index
    %165 = vector.load %arg13[%c21, %c0_100] : memref<110x128xf32, #tpu.memory_space<vmem>>, vector<9x128xf32>
    tpu.vector_store %arg13[%c21, %c0_100], %164 {strides = array<i32>} : memref<110x128xf32, #tpu.memory_space<vmem>>, vector<9x128xf32>,
    %166 = vector.extract_strided_slice %161 {offsets = [22, 0], sizes = [9, 128], strides = [1, 1]} : vector<99x128xf32> to vector<9x128xf32>
    %c31 = arith.constant 31 : index
    %c0_101 = arith.constant 0 : index
    %167 = vector.load %arg13[%c31, %c0_101] : memref<110x128xf32, #tpu.memory_space<vmem>>, vector<9x128xf32>
    tpu.vector_store %arg13[%c31, %c0_101], %166 {strides = array<i32>} : memref<110x128xf32, #tpu.memory_space<vmem>>, vector<9x128xf32>,
    %168 = vector.extract_strided_slice %161 {offsets = [33, 0], sizes = [9, 128], strides = [1, 1]} : vector<99x128xf32> to vector<9x128xf32>
    %c41 = arith.constant 41 : index
    %c0_102 = arith.constant 0 : index
    %169 = vector.load %arg13[%c41, %c0_102] : memref<110x128xf32, #tpu.memory_space<vmem>>, vector<9x128xf32>
    tpu.vector_store %arg13[%c41, %c0_102], %168 {strides = array<i32>} : memref<110x128xf32, #tpu.memory_space<vmem>>, vector<9x128xf32>,
    %170 = vector.extract_strided_slice %161 {offsets = [44, 0], sizes = [9, 128], strides = [1, 1]} : vector<99x128xf32> to vector<9x128xf32>
    %c51 = arith.constant 51 : index
    %c0_103 = arith.constant 0 : index
    %171 = vector.load %arg13[%c51, %c0_103] : memref<110x128xf32, #tpu.memory_space<vmem>>, vector<9x128xf32>
    tpu.vector_store %arg13[%c51, %c0_103], %170 {strides = array<i32>} : memref<110x128xf32, #tpu.memory_space<vmem>>, vector<9x128xf32>,
    %172 = vector.extract_strided_slice %161 {offsets = [55, 0], sizes = [9, 128], strides = [1, 1]} : vector<99x128xf32> to vector<9x128xf32>
    %c61 = arith.constant 61 : index
    %c0_104 = arith.constant 0 : index
    %173 = vector.load %arg13[%c61, %c0_104] : memref<110x128xf32, #tpu.memory_space<vmem>>, vector<9x128xf32>
    tpu.vector_store %arg13[%c61, %c0_104], %172 {strides = array<i32>} : memref<110x128xf32, #tpu.memory_space<vmem>>, vector<9x128xf32>,
    %174 = vector.extract_strided_slice %161 {offsets = [66, 0], sizes = [9, 128], strides = [1, 1]} : vector<99x128xf32> to vector<9x128xf32>
    %c71 = arith.constant 71 : index
    %c0_105 = arith.constant 0 : index
    %175 = vector.load %arg13[%c71, %c0_105] : memref<110x128xf32, #tpu.memory_space<vmem>>, vector<9x128xf32>
    tpu.vector_store %arg13[%c71, %c0_105], %174 {strides = array<i32>} : memref<110x128xf32, #tpu.memory_space<vmem>>, vector<9x128xf32>,
    %176 = vector.extract_strided_slice %161 {offsets = [77, 0], sizes = [9, 128], strides = [1, 1]} : vector<99x128xf32> to vector<9x128xf32>
    %c81 = arith.constant 81 : index
    %c0_106 = arith.constant 0 : index
    %177 = vector.load %arg13[%c81, %c0_106] : memref<110x128xf32, #tpu.memory_space<vmem>>, vector<9x128xf32>
    tpu.vector_store %arg13[%c81, %c0_106], %176 {strides = array<i32>} : memref<110x128xf32, #tpu.memory_space<vmem>>, vector<9x128xf32>,
    %178 = vector.extract_strided_slice %161 {offsets = [88, 0], sizes = [9, 128], strides = [1, 1]} : vector<99x128xf32> to vector<9x128xf32>
    %c91_107 = arith.constant 91 : index
    %c0_108 = arith.constant 0 : index
    %179 = vector.load %arg13[%c91_107, %c0_108] : memref<110x128xf32, #tpu.memory_space<vmem>>, vector<9x128xf32>
    tpu.vector_store %arg13[%c91_107, %c0_108], %178 {strides = array<i32>} : memref<110x128xf32, #tpu.memory_space<vmem>>, vector<9x128xf32>,
    %c0_109 = arith.constant 0 : index
    %c0_110 = arith.constant 0 : index
    %180 = tpu.strided_load %arg13[%c0_109, %c0_110] {strides = array<i32: 2, 1>} : memref<110x128xf32, #tpu.memory_space<vmem>>, vector<55x128xf32>
    %c1_111 = arith.constant 1 : index
    %c0_112 = arith.constant 0 : index
    %181 = tpu.strided_load %arg13[%c1_111, %c0_112] {strides = array<i32: 2, 1>} : memref<110x128xf32, #tpu.memory_space<vmem>>, vector<55x128xf32>
    %182 = arith.maximumf %180, %181 : vector<55x128xf32>
    %183 = vector.extract_strided_slice %182 {offsets = [0, 0], sizes = [5, 128], strides = [1, 1]} : vector<55x128xf32> to vector<5x128xf32>
    %184 = vector.extract_strided_slice %182 {offsets = [5, 0], sizes = [5, 128], strides = [1, 1]} : vector<55x128xf32> to vector<5x128xf32>
    %185 = arith.maximumf %183, %184 : vector<5x128xf32>
    %186 = arith.truncf %185 : vector<5x128xf32> to vector<5x128xbf16>
    %c0_113 = arith.constant 0 : index
    %c0_114 = arith.constant 0 : index
    %187 = vector.load %arg14[%c0_113, %c0_114] : memref<25x128xbf16, #tpu.memory_space<vmem>>, vector<5x128xbf16>
    tpu.vector_store %arg14[%c0_113, %c0_114], %186 {strides = array<i32>} : memref<25x128xbf16, #tpu.memory_space<vmem>>, vector<5x128xbf16>,
    %188 = vector.extract_strided_slice %182 {offsets = [10, 0], sizes = [5, 128], strides = [1, 1]} : vector<55x128xf32> to vector<5x128xf32>
    %189 = vector.extract_strided_slice %182 {offsets = [15, 0], sizes = [5, 128], strides = [1, 1]} : vector<55x128xf32> to vector<5x128xf32>
    %190 = arith.maximumf %188, %189 : vector<5x128xf32>
    %191 = arith.truncf %190 : vector<5x128xf32> to vector<5x128xbf16>
    %c5_115 = arith.constant 5 : index
    %c0_116 = arith.constant 0 : index
    %192 = vector.load %arg14[%c5_115, %c0_116] : memref<25x128xbf16, #tpu.memory_space<vmem>>, vector<5x128xbf16>
    tpu.vector_store %arg14[%c5_115, %c0_116], %191 {strides = array<i32>} : memref<25x128xbf16, #tpu.memory_space<vmem>>, vector<5x128xbf16>,
    %193 = vector.extract_strided_slice %182 {offsets = [20, 0], sizes = [5, 128], strides = [1, 1]} : vector<55x128xf32> to vector<5x128xf32>
    %194 = vector.extract_strided_slice %182 {offsets = [25, 0], sizes = [5, 128], strides = [1, 1]} : vector<55x128xf32> to vector<5x128xf32>
    %195 = arith.maximumf %193, %194 : vector<5x128xf32>
    %196 = arith.truncf %195 : vector<5x128xf32> to vector<5x128xbf16>
    %c10 = arith.constant 10 : index
    %c0_117 = arith.constant 0 : index
    %197 = vector.load %arg14[%c10, %c0_117] : memref<25x128xbf16, #tpu.memory_space<vmem>>, vector<5x128xbf16>
    tpu.vector_store %arg14[%c10, %c0_117], %196 {strides = array<i32>} : memref<25x128xbf16, #tpu.memory_space<vmem>>, vector<5x128xbf16>,
    %198 = vector.extract_strided_slice %182 {offsets = [30, 0], sizes = [5, 128], strides = [1, 1]} : vector<55x128xf32> to vector<5x128xf32>
    %199 = vector.extract_strided_slice %182 {offsets = [35, 0], sizes = [5, 128], strides = [1, 1]} : vector<55x128xf32> to vector<5x128xf32>
    %200 = arith.maximumf %198, %199 : vector<5x128xf32>
    %201 = arith.truncf %200 : vector<5x128xf32> to vector<5x128xbf16>
    %c15 = arith.constant 15 : index
    %c0_118 = arith.constant 0 : index
    %202 = vector.load %arg14[%c15, %c0_118] : memref<25x128xbf16, #tpu.memory_space<vmem>>, vector<5x128xbf16>
    tpu.vector_store %arg14[%c15, %c0_118], %201 {strides = array<i32>} : memref<25x128xbf16, #tpu.memory_space<vmem>>, vector<5x128xbf16>,
    %203 = vector.extract_strided_slice %182 {offsets = [40, 0], sizes = [5, 128], strides = [1, 1]} : vector<55x128xf32> to vector<5x128xf32>
    %204 = vector.extract_strided_slice %182 {offsets = [45, 0], sizes = [5, 128], strides = [1, 1]} : vector<55x128xf32> to vector<5x128xf32>
    %205 = arith.maximumf %203, %204 : vector<5x128xf32>
    %206 = arith.truncf %205 : vector<5x128xf32> to vector<5x128xbf16>
    %c20 = arith.constant 20 : index
    %c0_119 = arith.constant 0 : index
    %207 = vector.load %arg14[%c20, %c0_119] : memref<25x128xbf16, #tpu.memory_space<vmem>>, vector<5x128xbf16>
    tpu.vector_store %arg14[%c20, %c0_119], %206 {strides = array<i32>} : memref<25x128xbf16, #tpu.memory_space<vmem>>, vector<5x128xbf16>,
    %cst_120 = arith.constant 0.000000e+00 : f32
    %208 = vector.broadcast %cst_120 : f32 to vector<1x512xf32>
    %c0_121 = arith.constant 0 : index
    %c0_122 = arith.constant 0 : index
    %209 = vector.load %arg14[%c0_121, %c0_122] : memref<25x128xbf16, #tpu.memory_space<vmem>>, vector<1x128xbf16>
    %c0_123 = arith.constant 0 : index
    %c0_124 = arith.constant 0 : index
    %c0_125 = arith.constant 0 : index
    %210 = vector.load %arg6[%c0_123, %c0_124, %c0_125] : memref<25x128x512xbf16, #tpu.memory_space<vmem>>, vector<1x128x512xbf16>
    %211 = vector.shape_cast %210 : vector<1x128x512xbf16> to vector<128x512xbf16>
    %cst_126 = arith.constant dense<0.000000e+00> : vector<1x512xf32>
    %212 = tpu.matmul %209, %211, %cst_126 {dimension_numbers = #tpu.dot_dimension_numbers<[1], [0], [0], [1], [0, 0, 1, 1], [], []>} : vector<1x128xbf16>, vector<128x512xbf16>, vector<1x512xf32> -> vector<1x512xf32>
    %213 = arith.addf %208, %212 : vector<1x512xf32>
    %c1_127 = arith.constant 1 : index
    %c0_128 = arith.constant 0 : index
    %214 = vector.load %arg14[%c1_127, %c0_128] : memref<25x128xbf16, #tpu.memory_space<vmem>>, vector<1x128xbf16>
    %c1_129 = arith.constant 1 : index
    %c0_130 = arith.constant 0 : index
    %c0_131 = arith.constant 0 : index
    %215 = vector.load %arg6[%c1_129, %c0_130, %c0_131] : memref<25x128x512xbf16, #tpu.memory_space<vmem>>, vector<1x128x512xbf16>
    %216 = vector.shape_cast %215 : vector<1x128x512xbf16> to vector<128x512xbf16>
    %cst_132 = arith.constant dense<0.000000e+00> : vector<1x512xf32>
    %217 = tpu.matmul %214, %216, %cst_132 {dimension_numbers = #tpu.dot_dimension_numbers<[1], [0], [0], [1], [0, 0, 1, 1], [], []>} : vector<1x128xbf16>, vector<128x512xbf16>, vector<1x512xf32> -> vector<1x512xf32>
    %218 = arith.addf %213, %217 : vector<1x512xf32>
    %c2_133 = arith.constant 2 : index
    %c0_134 = arith.constant 0 : index
    %219 = vector.load %arg14[%c2_133, %c0_134] : memref<25x128xbf16, #tpu.memory_space<vmem>>, vector<1x128xbf16>
    %c2_135 = arith.constant 2 : index
    %c0_136 = arith.constant 0 : index
    %c0_137 = arith.constant 0 : index
    %220 = vector.load %arg6[%c2_135, %c0_136, %c0_137] : memref<25x128x512xbf16, #tpu.memory_space<vmem>>, vector<1x128x512xbf16>
    %221 = vector.shape_cast %220 : vector<1x128x512xbf16> to vector<128x512xbf16>
    %cst_138 = arith.constant dense<0.000000e+00> : vector<1x512xf32>
    %222 = tpu.matmul %219, %221, %cst_138 {dimension_numbers = #tpu.dot_dimension_numbers<[1], [0], [0], [1], [0, 0, 1, 1], [], []>} : vector<1x128xbf16>, vector<128x512xbf16>, vector<1x512xf32> -> vector<1x512xf32>
    %223 = arith.addf %218, %222 : vector<1x512xf32>
    %c3_139 = arith.constant 3 : index
    %c0_140 = arith.constant 0 : index
    %224 = vector.load %arg14[%c3_139, %c0_140] : memref<25x128xbf16, #tpu.memory_space<vmem>>, vector<1x128xbf16>
    %c3_141 = arith.constant 3 : index
    %c0_142 = arith.constant 0 : index
    %c0_143 = arith.constant 0 : index
    %225 = vector.load %arg6[%c3_141, %c0_142, %c0_143] : memref<25x128x512xbf16, #tpu.memory_space<vmem>>, vector<1x128x512xbf16>
    %226 = vector.shape_cast %225 : vector<1x128x512xbf16> to vector<128x512xbf16>
    %cst_144 = arith.constant dense<0.000000e+00> : vector<1x512xf32>
    %227 = tpu.matmul %224, %226, %cst_144 {dimension_numbers = #tpu.dot_dimension_numbers<[1], [0], [0], [1], [0, 0, 1, 1], [], []>} : vector<1x128xbf16>, vector<128x512xbf16>, vector<1x512xf32> -> vector<1x512xf32>
    %228 = arith.addf %223, %227 : vector<1x512xf32>
    %c4_145 = arith.constant 4 : index
    %c0_146 = arith.constant 0 : index
    %229 = vector.load %arg14[%c4_145, %c0_146] : memref<25x128xbf16, #tpu.memory_space<vmem>>, vector<1x128xbf16>
    %c4_147 = arith.constant 4 : index
    %c0_148 = arith.constant 0 : index
    %c0_149 = arith.constant 0 : index
    %230 = vector.load %arg6[%c4_147, %c0_148, %c0_149] : memref<25x128x512xbf16, #tpu.memory_space<vmem>>, vector<1x128x512xbf16>
    %231 = vector.shape_cast %230 : vector<1x128x512xbf16> to vector<128x512xbf16>
    %cst_150 = arith.constant dense<0.000000e+00> : vector<1x512xf32>
    %232 = tpu.matmul %229, %231, %cst_150 {dimension_numbers = #tpu.dot_dimension_numbers<[1], [0], [0], [1], [0, 0, 1, 1], [], []>} : vector<1x128xbf16>, vector<128x512xbf16>, vector<1x512xf32> -> vector<1x512xf32>
    %233 = arith.addf %228, %232 : vector<1x512xf32>
    %c5_151 = arith.constant 5 : index
    %c0_152 = arith.constant 0 : index
    %234 = vector.load %arg14[%c5_151, %c0_152] : memref<25x128xbf16, #tpu.memory_space<vmem>>, vector<1x128xbf16>
    %c5_153 = arith.constant 5 : index
    %c0_154 = arith.constant 0 : index
    %c0_155 = arith.constant 0 : index
    %235 = vector.load %arg6[%c5_153, %c0_154, %c0_155] : memref<25x128x512xbf16, #tpu.memory_space<vmem>>, vector<1x128x512xbf16>
    %236 = vector.shape_cast %235 : vector<1x128x512xbf16> to vector<128x512xbf16>
    %cst_156 = arith.constant dense<0.000000e+00> : vector<1x512xf32>
    %237 = tpu.matmul %234, %236, %cst_156 {dimension_numbers = #tpu.dot_dimension_numbers<[1], [0], [0], [1], [0, 0, 1, 1], [], []>} : vector<1x128xbf16>, vector<128x512xbf16>, vector<1x512xf32> -> vector<1x512xf32>
    %238 = arith.addf %233, %237 : vector<1x512xf32>
    %c6_157 = arith.constant 6 : index
    %c0_158 = arith.constant 0 : index
    %239 = vector.load %arg14[%c6_157, %c0_158] : memref<25x128xbf16, #tpu.memory_space<vmem>>, vector<1x128xbf16>
    %c6_159 = arith.constant 6 : index
    %c0_160 = arith.constant 0 : index
    %c0_161 = arith.constant 0 : index
    %240 = vector.load %arg6[%c6_159, %c0_160, %c0_161] : memref<25x128x512xbf16, #tpu.memory_space<vmem>>, vector<1x128x512xbf16>
    %241 = vector.shape_cast %240 : vector<1x128x512xbf16> to vector<128x512xbf16>
    %cst_162 = arith.constant dense<0.000000e+00> : vector<1x512xf32>
    %242 = tpu.matmul %239, %241, %cst_162 {dimension_numbers = #tpu.dot_dimension_numbers<[1], [0], [0], [1], [0, 0, 1, 1], [], []>} : vector<1x128xbf16>, vector<128x512xbf16>, vector<1x512xf32> -> vector<1x512xf32>
    %243 = arith.addf %238, %242 : vector<1x512xf32>
    %c7_163 = arith.constant 7 : index
    %c0_164 = arith.constant 0 : index
    %244 = vector.load %arg14[%c7_163, %c0_164] : memref<25x128xbf16, #tpu.memory_space<vmem>>, vector<1x128xbf16>
    %c7_165 = arith.constant 7 : index
    %c0_166 = arith.constant 0 : index
    %c0_167 = arith.constant 0 : index
    %245 = vector.load %arg6[%c7_165, %c0_166, %c0_167] : memref<25x128x512xbf16, #tpu.memory_space<vmem>>, vector<1x128x512xbf16>
    %246 = vector.shape_cast %245 : vector<1x128x512xbf16> to vector<128x512xbf16>
    %cst_168 = arith.constant dense<0.000000e+00> : vector<1x512xf32>
    %247 = tpu.matmul %244, %246, %cst_168 {dimension_numbers = #tpu.dot_dimension_numbers<[1], [0], [0], [1], [0, 0, 1, 1], [], []>} : vector<1x128xbf16>, vector<128x512xbf16>, vector<1x512xf32> -> vector<1x512xf32>
    %248 = arith.addf %243, %247 : vector<1x512xf32>
    %c8_169 = arith.constant 8 : index
    %c0_170 = arith.constant 0 : index
    %249 = vector.load %arg14[%c8_169, %c0_170] : memref<25x128xbf16, #tpu.memory_space<vmem>>, vector<1x128xbf16>
    %c8_171 = arith.constant 8 : index
    %c0_172 = arith.constant 0 : index
    %c0_173 = arith.constant 0 : index
    %250 = vector.load %arg6[%c8_171, %c0_172, %c0_173] : memref<25x128x512xbf16, #tpu.memory_space<vmem>>, vector<1x128x512xbf16>
    %251 = vector.shape_cast %250 : vector<1x128x512xbf16> to vector<128x512xbf16>
    %cst_174 = arith.constant dense<0.000000e+00> : vector<1x512xf32>
    %252 = tpu.matmul %249, %251, %cst_174 {dimension_numbers = #tpu.dot_dimension_numbers<[1], [0], [0], [1], [0, 0, 1, 1], [], []>} : vector<1x128xbf16>, vector<128x512xbf16>, vector<1x512xf32> -> vector<1x512xf32>
    %253 = arith.addf %248, %252 : vector<1x512xf32>
    %c9 = arith.constant 9 : index
    %c0_175 = arith.constant 0 : index
    %254 = vector.load %arg14[%c9, %c0_175] : memref<25x128xbf16, #tpu.memory_space<vmem>>, vector<1x128xbf16>
    %c9_176 = arith.constant 9 : index
    %c0_177 = arith.constant 0 : index
    %c0_178 = arith.constant 0 : index
    %255 = vector.load %arg6[%c9_176, %c0_177, %c0_178] : memref<25x128x512xbf16, #tpu.memory_space<vmem>>, vector<1x128x512xbf16>
    %256 = vector.shape_cast %255 : vector<1x128x512xbf16> to vector<128x512xbf16>
    %cst_179 = arith.constant dense<0.000000e+00> : vector<1x512xf32>
    %257 = tpu.matmul %254, %256, %cst_179 {dimension_numbers = #tpu.dot_dimension_numbers<[1], [0], [0], [1], [0, 0, 1, 1], [], []>} : vector<1x128xbf16>, vector<128x512xbf16>, vector<1x512xf32> -> vector<1x512xf32>
    %258 = arith.addf %253, %257 : vector<1x512xf32>
    %c10_180 = arith.constant 10 : index
    %c0_181 = arith.constant 0 : index
    %259 = vector.load %arg14[%c10_180, %c0_181] : memref<25x128xbf16, #tpu.memory_space<vmem>>, vector<1x128xbf16>
    %c10_182 = arith.constant 10 : index
    %c0_183 = arith.constant 0 : index
    %c0_184 = arith.constant 0 : index
    %260 = vector.load %arg6[%c10_182, %c0_183, %c0_184] : memref<25x128x512xbf16, #tpu.memory_space<vmem>>, vector<1x128x512xbf16>
    %261 = vector.shape_cast %260 : vector<1x128x512xbf16> to vector<128x512xbf16>
    %cst_185 = arith.constant dense<0.000000e+00> : vector<1x512xf32>
    %262 = tpu.matmul %259, %261, %cst_185 {dimension_numbers = #tpu.dot_dimension_numbers<[1], [0], [0], [1], [0, 0, 1, 1], [], []>} : vector<1x128xbf16>, vector<128x512xbf16>, vector<1x512xf32> -> vector<1x512xf32>
    %263 = arith.addf %258, %262 : vector<1x512xf32>
    %c11_186 = arith.constant 11 : index
    %c0_187 = arith.constant 0 : index
    %264 = vector.load %arg14[%c11_186, %c0_187] : memref<25x128xbf16, #tpu.memory_space<vmem>>, vector<1x128xbf16>
    %c11_188 = arith.constant 11 : index
    %c0_189 = arith.constant 0 : index
    %c0_190 = arith.constant 0 : index
    %265 = vector.load %arg6[%c11_188, %c0_189, %c0_190] : memref<25x128x512xbf16, #tpu.memory_space<vmem>>, vector<1x128x512xbf16>
    %266 = vector.shape_cast %265 : vector<1x128x512xbf16> to vector<128x512xbf16>
    %cst_191 = arith.constant dense<0.000000e+00> : vector<1x512xf32>
    %267 = tpu.matmul %264, %266, %cst_191 {dimension_numbers = #tpu.dot_dimension_numbers<[1], [0], [0], [1], [0, 0, 1, 1], [], []>} : vector<1x128xbf16>, vector<128x512xbf16>, vector<1x512xf32> -> vector<1x512xf32>
    %268 = arith.addf %263, %267 : vector<1x512xf32>
    %c12_192 = arith.constant 12 : index
    %c0_193 = arith.constant 0 : index
    %269 = vector.load %arg14[%c12_192, %c0_193] : memref<25x128xbf16, #tpu.memory_space<vmem>>, vector<1x128xbf16>
    %c12_194 = arith.constant 12 : index
    %c0_195 = arith.constant 0 : index
    %c0_196 = arith.constant 0 : index
    %270 = vector.load %arg6[%c12_194, %c0_195, %c0_196] : memref<25x128x512xbf16, #tpu.memory_space<vmem>>, vector<1x128x512xbf16>
    %271 = vector.shape_cast %270 : vector<1x128x512xbf16> to vector<128x512xbf16>
    %cst_197 = arith.constant dense<0.000000e+00> : vector<1x512xf32>
    %272 = tpu.matmul %269, %271, %cst_197 {dimension_numbers = #tpu.dot_dimension_numbers<[1], [0], [0], [1], [0, 0, 1, 1], [], []>} : vector<1x128xbf16>, vector<128x512xbf16>, vector<1x512xf32> -> vector<1x512xf32>
    %273 = arith.addf %268, %272 : vector<1x512xf32>
    %c13_198 = arith.constant 13 : index
    %c0_199 = arith.constant 0 : index
    %274 = vector.load %arg14[%c13_198, %c0_199] : memref<25x128xbf16, #tpu.memory_space<vmem>>, vector<1x128xbf16>
    %c13_200 = arith.constant 13 : index
    %c0_201 = arith.constant 0 : index
    %c0_202 = arith.constant 0 : index
    %275 = vector.load %arg6[%c13_200, %c0_201, %c0_202] : memref<25x128x512xbf16, #tpu.memory_space<vmem>>, vector<1x128x512xbf16>
    %276 = vector.shape_cast %275 : vector<1x128x512xbf16> to vector<128x512xbf16>
    %cst_203 = arith.constant dense<0.000000e+00> : vector<1x512xf32>
    %277 = tpu.matmul %274, %276, %cst_203 {dimension_numbers = #tpu.dot_dimension_numbers<[1], [0], [0], [1], [0, 0, 1, 1], [], []>} : vector<1x128xbf16>, vector<128x512xbf16>, vector<1x512xf32> -> vector<1x512xf32>
    %278 = arith.addf %273, %277 : vector<1x512xf32>
    %c14 = arith.constant 14 : index
    %c0_204 = arith.constant 0 : index
    %279 = vector.load %arg14[%c14, %c0_204] : memref<25x128xbf16, #tpu.memory_space<vmem>>, vector<1x128xbf16>
    %c14_205 = arith.constant 14 : index
    %c0_206 = arith.constant 0 : index
    %c0_207 = arith.constant 0 : index
    %280 = vector.load %arg6[%c14_205, %c0_206, %c0_207] : memref<25x128x512xbf16, #tpu.memory_space<vmem>>, vector<1x128x512xbf16>
    %281 = vector.shape_cast %280 : vector<1x128x512xbf16> to vector<128x512xbf16>
    %cst_208 = arith.constant dense<0.000000e+00> : vector<1x512xf32>
    %282 = tpu.matmul %279, %281, %cst_208 {dimension_numbers = #tpu.dot_dimension_numbers<[1], [0], [0], [1], [0, 0, 1, 1], [], []>} : vector<1x128xbf16>, vector<128x512xbf16>, vector<1x512xf32> -> vector<1x512xf32>
    %283 = arith.addf %278, %282 : vector<1x512xf32>
    %c15_209 = arith.constant 15 : index
    %c0_210 = arith.constant 0 : index
    %284 = vector.load %arg14[%c15_209, %c0_210] : memref<25x128xbf16, #tpu.memory_space<vmem>>, vector<1x128xbf16>
    %c15_211 = arith.constant 15 : index
    %c0_212 = arith.constant 0 : index
    %c0_213 = arith.constant 0 : index
    %285 = vector.load %arg6[%c15_211, %c0_212, %c0_213] : memref<25x128x512xbf16, #tpu.memory_space<vmem>>, vector<1x128x512xbf16>
    %286 = vector.shape_cast %285 : vector<1x128x512xbf16> to vector<128x512xbf16>
    %cst_214 = arith.constant dense<0.000000e+00> : vector<1x512xf32>
    %287 = tpu.matmul %284, %286, %cst_214 {dimension_numbers = #tpu.dot_dimension_numbers<[1], [0], [0], [1], [0, 0, 1, 1], [], []>} : vector<1x128xbf16>, vector<128x512xbf16>, vector<1x512xf32> -> vector<1x512xf32>
    %288 = arith.addf %283, %287 : vector<1x512xf32>
    %c16 = arith.constant 16 : index
    %c0_215 = arith.constant 0 : index
    %289 = vector.load %arg14[%c16, %c0_215] : memref<25x128xbf16, #tpu.memory_space<vmem>>, vector<1x128xbf16>
    %c16_216 = arith.constant 16 : index
    %c0_217 = arith.constant 0 : index
    %c0_218 = arith.constant 0 : index
    %290 = vector.load %arg6[%c16_216, %c0_217, %c0_218] : memref<25x128x512xbf16, #tpu.memory_space<vmem>>, vector<1x128x512xbf16>
    %291 = vector.shape_cast %290 : vector<1x128x512xbf16> to vector<128x512xbf16>
    %cst_219 = arith.constant dense<0.000000e+00> : vector<1x512xf32>
    %292 = tpu.matmul %289, %291, %cst_219 {dimension_numbers = #tpu.dot_dimension_numbers<[1], [0], [0], [1], [0, 0, 1, 1], [], []>} : vector<1x128xbf16>, vector<128x512xbf16>, vector<1x512xf32> -> vector<1x512xf32>
    %293 = arith.addf %288, %292 : vector<1x512xf32>
    %c17 = arith.constant 17 : index
    %c0_220 = arith.constant 0 : index
    %294 = vector.load %arg14[%c17, %c0_220] : memref<25x128xbf16, #tpu.memory_space<vmem>>, vector<1x128xbf16>
    %c17_221 = arith.constant 17 : index
    %c0_222 = arith.constant 0 : index
    %c0_223 = arith.constant 0 : index
    %295 = vector.load %arg6[%c17_221, %c0_222, %c0_223] : memref<25x128x512xbf16, #tpu.memory_space<vmem>>, vector<1x128x512xbf16>
    %296 = vector.shape_cast %295 : vector<1x128x512xbf16> to vector<128x512xbf16>
    %cst_224 = arith.constant dense<0.000000e+00> : vector<1x512xf32>
    %297 = tpu.matmul %294, %296, %cst_224 {dimension_numbers = #tpu.dot_dimension_numbers<[1], [0], [0], [1], [0, 0, 1, 1], [], []>} : vector<1x128xbf16>, vector<128x512xbf16>, vector<1x512xf32> -> vector<1x512xf32>
    %298 = arith.addf %293, %297 : vector<1x512xf32>
    %c18 = arith.constant 18 : index
    %c0_225 = arith.constant 0 : index
    %299 = vector.load %arg14[%c18, %c0_225] : memref<25x128xbf16, #tpu.memory_space<vmem>>, vector<1x128xbf16>
    %c18_226 = arith.constant 18 : index
    %c0_227 = arith.constant 0 : index
    %c0_228 = arith.constant 0 : index
    %300 = vector.load %arg6[%c18_226, %c0_227, %c0_228] : memref<25x128x512xbf16, #tpu.memory_space<vmem>>, vector<1x128x512xbf16>
    %301 = vector.shape_cast %300 : vector<1x128x512xbf16> to vector<128x512xbf16>
    %cst_229 = arith.constant dense<0.000000e+00> : vector<1x512xf32>
    %302 = tpu.matmul %299, %301, %cst_229 {dimension_numbers = #tpu.dot_dimension_numbers<[1], [0], [0], [1], [0, 0, 1, 1], [], []>} : vector<1x128xbf16>, vector<128x512xbf16>, vector<1x512xf32> -> vector<1x512xf32>
    %303 = arith.addf %298, %302 : vector<1x512xf32>
    %c19_230 = arith.constant 19 : index
    %c0_231 = arith.constant 0 : index
    %304 = vector.load %arg14[%c19_230, %c0_231] : memref<25x128xbf16, #tpu.memory_space<vmem>>, vector<1x128xbf16>
    %c19_232 = arith.constant 19 : index
    %c0_233 = arith.constant 0 : index
    %c0_234 = arith.constant 0 : index
    %305 = vector.load %arg6[%c19_232, %c0_233, %c0_234] : memref<25x128x512xbf16, #tpu.memory_space<vmem>>, vector<1x128x512xbf16>
    %306 = vector.shape_cast %305 : vector<1x128x512xbf16> to vector<128x512xbf16>
    %cst_235 = arith.constant dense<0.000000e+00> : vector<1x512xf32>
    %307 = tpu.matmul %304, %306, %cst_235 {dimension_numbers = #tpu.dot_dimension_numbers<[1], [0], [0], [1], [0, 0, 1, 1], [], []>} : vector<1x128xbf16>, vector<128x512xbf16>, vector<1x512xf32> -> vector<1x512xf32>
    %308 = arith.addf %303, %307 : vector<1x512xf32>
    %c20_236 = arith.constant 20 : index
    %c0_237 = arith.constant 0 : index
    %309 = vector.load %arg14[%c20_236, %c0_237] : memref<25x128xbf16, #tpu.memory_space<vmem>>, vector<1x128xbf16>
    %c20_238 = arith.constant 20 : index
    %c0_239 = arith.constant 0 : index
    %c0_240 = arith.constant 0 : index
    %310 = vector.load %arg6[%c20_238, %c0_239, %c0_240] : memref<25x128x512xbf16, #tpu.memory_space<vmem>>, vector<1x128x512xbf16>
    %311 = vector.shape_cast %310 : vector<1x128x512xbf16> to vector<128x512xbf16>
    %cst_241 = arith.constant dense<0.000000e+00> : vector<1x512xf32>
    %312 = tpu.matmul %309, %311, %cst_241 {dimension_numbers = #tpu.dot_dimension_numbers<[1], [0], [0], [1], [0, 0, 1, 1], [], []>} : vector<1x128xbf16>, vector<128x512xbf16>, vector<1x512xf32> -> vector<1x512xf32>
    %313 = arith.addf %308, %312 : vector<1x512xf32>
    %c21_242 = arith.constant 21 : index
    %c0_243 = arith.constant 0 : index
    %314 = vector.load %arg14[%c21_242, %c0_243] : memref<25x128xbf16, #tpu.memory_space<vmem>>, vector<1x128xbf16>
    %c21_244 = arith.constant 21 : index
    %c0_245 = arith.constant 0 : index
    %c0_246 = arith.constant 0 : index
    %315 = vector.load %arg6[%c21_244, %c0_245, %c0_246] : memref<25x128x512xbf16, #tpu.memory_space<vmem>>, vector<1x128x512xbf16>
    %316 = vector.shape_cast %315 : vector<1x128x512xbf16> to vector<128x512xbf16>
    %cst_247 = arith.constant dense<0.000000e+00> : vector<1x512xf32>
    %317 = tpu.matmul %314, %316, %cst_247 {dimension_numbers = #tpu.dot_dimension_numbers<[1], [0], [0], [1], [0, 0, 1, 1], [], []>} : vector<1x128xbf16>, vector<128x512xbf16>, vector<1x512xf32> -> vector<1x512xf32>
    %318 = arith.addf %313, %317 : vector<1x512xf32>
    %c22_248 = arith.constant 22 : index
    %c0_249 = arith.constant 0 : index
    %319 = vector.load %arg14[%c22_248, %c0_249] : memref<25x128xbf16, #tpu.memory_space<vmem>>, vector<1x128xbf16>
    %c22_250 = arith.constant 22 : index
    %c0_251 = arith.constant 0 : index
    %c0_252 = arith.constant 0 : index
    %320 = vector.load %arg6[%c22_250, %c0_251, %c0_252] : memref<25x128x512xbf16, #tpu.memory_space<vmem>>, vector<1x128x512xbf16>
    %321 = vector.shape_cast %320 : vector<1x128x512xbf16> to vector<128x512xbf16>
    %cst_253 = arith.constant dense<0.000000e+00> : vector<1x512xf32>
    %322 = tpu.matmul %319, %321, %cst_253 {dimension_numbers = #tpu.dot_dimension_numbers<[1], [0], [0], [1], [0, 0, 1, 1], [], []>} : vector<1x128xbf16>, vector<128x512xbf16>, vector<1x512xf32> -> vector<1x512xf32>
    %323 = arith.addf %318, %322 : vector<1x512xf32>
    %c23_254 = arith.constant 23 : index
    %c0_255 = arith.constant 0 : index
    %324 = vector.load %arg14[%c23_254, %c0_255] : memref<25x128xbf16, #tpu.memory_space<vmem>>, vector<1x128xbf16>
    %c23_256 = arith.constant 23 : index
    %c0_257 = arith.constant 0 : index
    %c0_258 = arith.constant 0 : index
    %325 = vector.load %arg6[%c23_256, %c0_257, %c0_258] : memref<25x128x512xbf16, #tpu.memory_space<vmem>>, vector<1x128x512xbf16>
    %326 = vector.shape_cast %325 : vector<1x128x512xbf16> to vector<128x512xbf16>
    %cst_259 = arith.constant dense<0.000000e+00> : vector<1x512xf32>
    %327 = tpu.matmul %324, %326, %cst_259 {dimension_numbers = #tpu.dot_dimension_numbers<[1], [0], [0], [1], [0, 0, 1, 1], [], []>} : vector<1x128xbf16>, vector<128x512xbf16>, vector<1x512xf32> -> vector<1x512xf32>
    %328 = arith.addf %323, %327 : vector<1x512xf32>
    %c24_260 = arith.constant 24 : index
    %c0_261 = arith.constant 0 : index
    %329 = vector.load %arg14[%c24_260, %c0_261] : memref<25x128xbf16, #tpu.memory_space<vmem>>, vector<1x128xbf16>
    %c24_262 = arith.constant 24 : index
    %c0_263 = arith.constant 0 : index
    %c0_264 = arith.constant 0 : index
    %330 = vector.load %arg6[%c24_262, %c0_263, %c0_264] : memref<25x128x512xbf16, #tpu.memory_space<vmem>>, vector<1x128x512xbf16>
    %331 = vector.shape_cast %330 : vector<1x128x512xbf16> to vector<128x512xbf16>
    %cst_265 = arith.constant dense<0.000000e+00> : vector<1x512xf32>
    %332 = tpu.matmul %329, %331, %cst_265 {dimension_numbers = #tpu.dot_dimension_numbers<[1], [0], [0], [1], [0, 0, 1, 1], [], []>} : vector<1x128xbf16>, vector<128x512xbf16>, vector<1x512xf32> -> vector<1x512xf32>
    %333 = arith.addf %328, %332 : vector<1x512xf32>
    %c0_266 = arith.constant 0 : index
    %c0_267 = arith.constant 0 : index
    %334 = vector.load %arg7[%c0_266, %c0_267] : memref<1x512xf32, #tpu.memory_space<vmem>>, vector<1x512xf32>
    %335 = arith.addf %333, %334 : vector<1x512xf32>
    %336 = math.tanh %335 : vector<1x512xf32>
    %337 = arith.truncf %336 : vector<1x512xf32> to vector<1x512xbf16>
    %c0_268 = arith.constant 0 : index
    %c0_269 = arith.constant 0 : index
    %338 = vector.load %arg8[%c0_268, %c0_269] : memref<512x10xbf16, #tpu.memory_space<vmem>>, vector<512x10xbf16>
    %cst_270 = arith.constant dense<0.000000e+00> : vector<1x10xf32>
    %339 = tpu.matmul %337, %338, %cst_270 {dimension_numbers = #tpu.dot_dimension_numbers<[1], [0], [0], [1], [0, 0, 1, 1], [], []>} : vector<1x512xbf16>, vector<512x10xbf16>, vector<1x10xf32> -> vector<1x10xf32>
    %c0_271 = arith.constant 0 : index
    %c0_272 = arith.constant 0 : index
    %340 = vector.load %arg9[%c0_271, %c0_272] : memref<1x10xf32, #tpu.memory_space<vmem>>, vector<1x10xf32>
    %341 = arith.addf %339, %340 : vector<1x10xf32>
    %cst_273 = arith.constant dense<0xFF800000> : vector<1xf32>
    %342 = vector.multi_reduction <maximumf>, %341, %cst_273 [1] : vector<1x10xf32> to vector<1xf32>
    %343 = vector.shape_cast %342 : vector<1xf32> to vector<1x1xf32>
    %344 = vector.broadcast %343 : vector<1x1xf32> to vector<1x10xf32>
    %345 = arith.subf %341, %344 : vector<1x10xf32>
    %346 = math.exp %345 : vector<1x10xf32>
    %cst_274 = arith.constant dense<0.000000e+00> : vector<1xf32>
    %347 = vector.multi_reduction <add>, %346, %cst_274 [1] : vector<1x10xf32> to vector<1xf32>
    %348 = vector.shape_cast %347 : vector<1xf32> to vector<1x1xf32>
    %349 = vector.broadcast %348 : vector<1x1xf32> to vector<1x10xf32>
    %350 = arith.divf %346, %349 : vector<1x10xf32>
    %c0_275 = arith.constant 0 : index
    %c0_276 = arith.constant 0 : index
    %c0_277 = arith.constant 0 : index
    %351 = vector.load %arg10[%c0_275, %c0_276, %c0_277] : memref<1x1x10xf32, #tpu.memory_space<vmem>>, vector<1x1x10xf32>
    %352 = vector.shape_cast %351 : vector<1x1x10xf32> to vector<1x10xf32>
    %353 = vector.shape_cast %350 : vector<1x10xf32> to vector<1x1x10xf32>
    tpu.vector_store %arg10[%c0_275, %c0_276, %c0_277], %353 {strides = array<i32>} : memref<1x1x10xf32, #tpu.memory_space<vmem>>, vector<1x1x10xf32>,
    return
  }
  func.func @transform_0(%arg0: i32) -> (i32, i32, i32) {
    %c0_i32 = arith.constant 0 : i32
    %c0_i32_0 = arith.constant 0 : i32
    %c0_i32_1 = arith.constant 0 : i32
    return %arg0, %c0_i32, %c0_i32_0 : i32, i32, i32
  }
  func.func @transform_1(%arg0: i32) -> (i32, i32) {
    %c0_i32 = arith.constant 0 : i32
    %c0_i32_0 = arith.constant 0 : i32
    %c0_i32_1 = arith.constant 0 : i32
    return %c0_i32, %c0_i32_0 : i32, i32
  }
  func.func @transform_2(%arg0: i32) -> (i32, i32) {
    %c0_i32 = arith.constant 0 : i32
    %c0_i32_0 = arith.constant 0 : i32
    %c0_i32_1 = arith.constant 0 : i32
    return %c0_i32, %c0_i32_0 : i32, i32
  }
  func.func @transform_3(%arg0: i32) -> (i32, i32, i32) {
    %c0_i32 = arith.constant 0 : i32
    %c0_i32_0 = arith.constant 0 : i32
    %c0_i32_1 = arith.constant 0 : i32
    %c0_i32_2 = arith.constant 0 : i32
    return %c0_i32, %c0_i32_0, %c0_i32_1 : i32, i32, i32
  }
  func.func @transform_4(%arg0: i32) -> (i32, i32) {
    %c0_i32 = arith.constant 0 : i32
    %c0_i32_0 = arith.constant 0 : i32
    %c0_i32_1 = arith.constant 0 : i32
    return %c0_i32, %c0_i32_0 : i32, i32
  }
  func.func @transform_5(%arg0: i32) -> (i32, i32, i32) {
    %c0_i32 = arith.constant 0 : i32
    %c0_i32_0 = arith.constant 0 : i32
    %c0_i32_1 = arith.constant 0 : i32
    %c0_i32_2 = arith.constant 0 : i32
    return %c0_i32, %c0_i32_0, %c0_i32_1 : i32, i32, i32
  }
  func.func @transform_6(%arg0: i32) -> (i32, i32) {
    %c0_i32 = arith.constant 0 : i32
    %c0_i32_0 = arith.constant 0 : i32
    %c0_i32_1 = arith.constant 0 : i32
    return %c0_i32, %c0_i32_0 : i32, i32
  }
  func.func @transform_7(%arg0: i32) -> (i32, i32) {
    %c0_i32 = arith.constant 0 : i32
    %c0_i32_0 = arith.constant 0 : i32
    %c0_i32_1 = arith.constant 0 : i32
    return %c0_i32, %c0_i32_0 : i32, i32
  }
  func.func @transform_8(%arg0: i32) -> (i32, i32) {
    %c0_i32 = arith.constant 0 : i32
    %c0_i32_0 = arith.constant 0 : i32
    %c0_i32_1 = arith.constant 0 : i32
    return %c0_i32, %c0_i32_0 : i32, i32
  }
  func.func @transform_9(%arg0: i32) -> (i32, i32, i32) {
    %c0_i32 = arith.constant 0 : i32
    %c0_i32_0 = arith.constant 0 : i32
    %c0_i32_1 = arith.constant 0 : i32
    return %arg0, %c0_i32, %c0_i32_0 : i32, i32, i32
  }
}

</mosaic_0001>

<bundles_post_ra>
// kernel: colon_forward.1
= control target key start
LH: loop header
LB: loop body
LE: loop exit
PB: predicated region body
PF: predicated region fallthrough
CT: control target
= control target key end

     0   :  { %14 = vsyncpa [#allocation7], 0  ;;  %s19453_s0 = inlined_call_operand.vmem [shape: bf16[2,256,36], index: 0, kind: input, shape index: {}]   ;;  %s19454_s1 = inlined_call_operand.vmem [shape: bf16[36,128], index: 1, kind: input, shape index: {}]   ;;  %s19455_s2 = inlined_call_operand.vmem [shape: f32[1,128], index: 2, kind: input, shape index: {}]   ;;  %s19456_s3 = inlined_call_operand.vmem [shape: bf16[9,128,128], index: 3, kind: input, shape index: {}]   ;;  %s19457_s4 = inlined_call_operand.vmem [shape: f32[1,128], index: 4, kind: input, shape index: {}]   ;;  %s19458_s5 = inlined_call_operand.vmem [shape: bf16[25,128,512], index: 5, kind: input, shape index: {}]   ;;  %s19459_s6 = inlined_call_operand.vmem [shape: f32[1,512], index: 6, kind: input, shape index: {}]   ;;  %s19460_s7 = inlined_call_operand.vmem [shape: bf16[512,10], index: 7, kind: input, shape index: {}]   ;;  %s19461_s8 = inlined_call_operand.vmem [shape: f32[1,10], index: 8, kind: input, shape index: {}]   ;;  %s19462_s9 = inlined_call_operand.hbm [shape: f32[2,1,10], index: 9, kind: output, shape index: {}]  }
   0x1   :  { %16 = vsyncpa [#allocation7 + $0x1], 0  ;;  %s15275_s30 = smov 0   ;;  %s15277_s10 = smov 0  }
   0x2   :  { %s15279_s11 = smov 0   ;;  %s15281_s12 = smov 0  }
   0x3 LB: > { %s15296_s13 = sadd.s32 4294967295, %s15218_s12   ;;  %s11032_s14 = sadd.s32 4294967294, %s15218_s12   ;;  %s15218_s12 = sphi %s15281_s12, %s19525_s12   ;;  %s15214_s11 = sphi %s15279_s11, %s19524_s11   ;;  %s15210_s10 = sphi %s15277_s10, %s19523_s10   ;;  %s15206_s30 = sphi %s15275_s30, %s19522_s30  }
   0x4   : > { %s15300_s15 = sadd.s32 1, %s15218_s12   ;;  %s223_s16 = sadd.s32 1, %s15214_s11 }
   0x5   : > { %s220_s17 = ssub.s32 %s15218_s12, %s15300_s15  ;;  %p233_p0 = scmp.ne.s32.totalorder %s15214_s11, %s15210_s10 }
   0x6   : > { %p221_p1 = scmp.eq.s32.totalorder %s220_s17, 0  ;;  %p234_p2 = scmp.eq.s32.totalorder %s15296_s13, 1 }
   0x7   : > { %p239_p3 = scmp.ne.s32.totalorder %s15210_s10, %s15206_s30  ;;  %p240_p4 = scmp.eq.s32.totalorder %s11032_s14, 1 }
   0x8   : > { %s15311_s18 = scalar_select %p221_p1, %s15214_s11, %s223_s16  }
   0x9   : > { %p15313_p5 = por %p234_p2, %p233_p0  ;;  %p15317_p6 = por %p240_p4, %p239_p3 }
   0xa   : > { %p11035_p7 = scmp.ge.s32.totalorder %s15218_s12, 1  ;;  %p290_p8 = scmp.lt.s32.totalorder %s15218_s12, 3 }
   0xc   : > { %p291_p9 = pnand %p11035_p7, %p290_p8 }
   0xd   : > { %v15326_v0 = vld [vmem:[%s19454_s1] sm:$0xff] (!%p291_p9)   ;;  %v15331_v1 = vld [vmem:[%s19454_s1 + $0x8] sm:$0xff] (!%p291_p9)   ;;  %p325_p10 = scmp.lt.s32.totalorder (!%p291_p9), %s15296_s13, 1  ;;  %v15341_v2 = vld [vmem:[%s19454_s1 + $0x10] ss:$0 sps:$4 sm:$0x33] (!%p291_p9)  }
   0xe   : > { %294 = sbr.rel (%p291_p9) target bundleno = 2375 (0x947), region = 56  ;;  %13181 = vmatprep.subr.bf16.mxu0 (!%p291_p9), %v15326_v0  ;;  %13195 = vmatprep.subr.bf16.mxu1 (!%p291_p9), %v15326_v0  ;;  %v15220_v3 = vmov (!%p291_p9), -inf   ;;  %vm472_vm0 = vcmask (!%p291_p9), 1041408   ;;  %vm459_vm1 = vcmask (!%p291_p9), 293888   ;;  %v13699_v21 = vld [vmem:[%s19456_s3] sm:$0xff] (!%p291_p9)   ;;  %v15221_v22 = vmov (!%p291_p9), 0.0  }
   0xf   : > { %13182 = vmatpush3.bf16.msra.mxu0 (!%p291_p9), %v15326_v0  ;;  %13196 = vmatpush3.bf16.msra.mxu1 (!%p291_p9), %v15326_v0  ;;  %335 = vst [vmem:[#allocation2 + $0x20] sm:$0xff] (!%p291_p9), %v15220_v3  ;;  %336 = vst [vmem:[#allocation2 + $0x28] sm:$0xff] (!%p291_p9), %v15220_v3  ;;  %v474_v4 = vsel (!%p291_p9), %vm472_vm0, %v15341_v2, 0  ;;  %v13700_v23 = vld [vmem:[%s19456_s3 + $0x8] sm:$0xff] (!%p291_p9)   ;;  %v13701_v24 = vld [vmem:[%s19456_s3 + $0x10] sm:$0xff] (!%p291_p9)   ;;  %v15222_v27 = vmov (!%p291_p9), 0  }
  0x10   : > { %13183 = vmatprep.subr.bf16.mxu0 (!%p291_p9), %v15331_v1  ;;  %13197 = vmatprep.subr.bf16.mxu1 (!%p291_p9), %v15331_v1  ;;  %331 = vst [vmem:[#allocation2] sm:$0xff] (!%p291_p9), %v15220_v3  ;;  %332 = vst [vmem:[#allocation2 + $0x8] sm:$0xff] (!%p291_p9), %v15220_v3  ;;  %v13702_v25 = vld [vmem:[%s19456_s3 + $0x18] sm:$0xff] (!%p291_p9)   ;;  %v13703_v26 = vld [vmem:[%s19456_s3 + $0x20] sm:$0xff] (!%p291_p9)   ;;  %vm15223_vm2 = vmmov (!%p291_p9), 0   ;;  %vm1041_vm3 = vcmask (!%p291_p9), 1045508  }
  0x11   : > { %333 = vst [vmem:[#allocation2 + $0x10] sm:$0xff] (!%p291_p9), %v15220_v3  ;;  %334 = vst [vmem:[#allocation2 + $0x18] sm:$0xff] (!%p291_p9), %v15220_v3  ;;  %v13704_v28 = vld [vmem:[%s19456_s3 + $0x40] sm:$0xff] (!%p291_p9)   ;;  %v13705_v29 = vld [vmem:[%s19456_s3 + $0x28] sm:$0xff] (!%p291_p9)   ;;  %vm19465_vm4 = vcmask (!%p291_p9), 1046528   ;;  %vm19463_vm7 = vcmask (!%p291_p9), 1042432  }
  0x12   : > { %337 = vst [vmem:[#allocation2 + $0x30] sm:$0xff] (!%p291_p9), %v15220_v3  ;;  %338 = vst [vmem:[#allocation2 + $0x38] sm:$0xff] (!%p291_p9), %v15220_v3  ;;  %v13706_v30 = vld [vmem:[%s19456_s3 + $0x48] sm:$0xff] (!%p291_p9)   ;;  %v13707_v31 = vld [vmem:[%s19456_s3 + $0x30] sm:$0xff] (!%p291_p9)   ;;  %vm19464_vm5 = vsmask.f32 (!%p291_p9), 1280 }
  0x13   : > { %339 = vst [vmem:[#allocation2 + $0x40] sm:$0xff] (!%p291_p9), %v15220_v3  ;;  %340 = vst [vmem:[#allocation2 + $0x48] sm:$0xff] (!%p291_p9), %v15220_v3  ;;  %13184 = vmatpush3.bf16.msra.mxu0 (!%p291_p9), %v15331_v1  ;;  %13198 = vmatpush3.bf16.msra.mxu1 (!%p291_p9), %v15331_v1  ;;  %v13708_v32 = vld [vmem:[%s19456_s3 + $0x50] sm:$0xff] (!%p291_p9)   ;;  %v13709_v33 = vld [vmem:[%s19456_s3 + $0x38] sm:$0xff] (!%p291_p9)   ;;  %vm1051_vm8 = vsmask.f32 (!%p291_p9), 2304 }
  0x14   : > { %341 = vst [vmem:[#allocation2 + $0x50] sm:$0xff] (!%p291_p9), %v15220_v3  ;;  %342 = vst [vmem:[#allocation2 + $0x58] sm:$0xff] (!%p291_p9), %v15220_v3  ;;  %13633 = vmatprep.subr.msk.bf16.mxu0 (!%p291_p9), %vm472_vm0, %v15341_v2  ;;  %13634 = vmatprep.subr.msk.bf16.mxu1 (!%p291_p9), %vm472_vm0, %v15341_v2  ;;  %v13710_v34 = vld [vmem:[%s19456_s3 + $0x58] sm:$0xff] (!%p291_p9)   ;;  %v13712_v35 = vld [vmem:[%s19456_s3 + $0x60] sm:$0xff] (!%p291_p9)   ;;  %vm1115_vm10 = vcmask (!%p291_p9), 1046532   ;;  %vm1093_vm11 = vcmask (!%p291_p9), 1043459  }
  0x15   : > { %s15346_s27 = scalar_select %p325_p10, %s15296_s13, 1  ;;  %343 = vst [vmem:[#allocation2 + $0x60] sm:$0xff] %v15220_v3  ;;  %344 = vst [vmem:[#allocation2 + $0x68] sm:$0xff] %v15220_v3  ;;  %v13713_v36 = vld [vmem:[%s19456_s3 + $0x68] sm:$0xff]   ;;  %v13714_v37 = vld [vmem:[%s19456_s3 + $0x70] sm:$0xff]  }
  0x16   : > { %345 = vst [vmem:[#allocation2 + $0x70] sm:$0xff] %v15220_v3  ;;  %346 = vst [vmem:[#allocation2 + $0x78] sm:$0xff] %v15220_v3  ;;  %v13716_v38 = vld [vmem:[%s19456_s3 + $0x78] sm:$0xff]   ;;  %v15495_v39 = vld [vmem:[%s19455_s2] ss:$0 sm:$0xff]  ;;  %s323_s24 = sand.u32 1, %s15210_s10  }
  0x17   : > { %347 = vst [vmem:[#allocation2 + $0x80] sm:$0xff] %v15220_v3  ;;  %348 = vst [vmem:[#allocation2 + $0x88] sm:$0xff] %v15220_v3  ;;  %s12949_s28 = sshll.u32 %s15346_s27, 7  ;;  %13186 = vmatpush3.bf16.msra.mxu0 %v474_v4  ;;  %13200 = vmatpush3.bf16.msra.mxu1 %v474_v4  ;;  %vm1094_vm12 = vsmask.f32 7950  ;;  %s12946_s25 = sshll.u32 %s15296_s13, 4 }
  0x18   : > { %349 = vst [vmem:[#allocation2 + $0x90] sm:$0xff] %v15220_v3  ;;  %350 = vst [vmem:[#allocation2 + $0x98] sm:$0xff] %v15220_v3  ;;  %s15354_s16 = scalar_lea.vmem %s19453_s0, %s12949_s28  ;;  %13209 = vmatprep.subr.bf16.mxu0 %v15326_v0  ;;  %13223 = vmatprep.subr.bf16.mxu1 %v15326_v0  ;;  %vm1071_vm14 = vsmask.f32 6416  ;;  %s324_s26 = scalar_lea.vmem [#allocation6], %s323_s24 }
  0x19   : > { %351 = vst [vmem:[#allocation2 + $0xa0] sm:$0xff] %v15220_v3  ;;  %352 = vst [vmem:[#allocation2 + $0xa8] sm:$0xff] %v15220_v3  ;;  %v13683_v5 = vld [vmem:[%s15354_s16] sm:$0xff]   ;;  %v13685_v7 = vld [vmem:[%s15354_s16 + $0x8] sm:$0xff]   ;;  %s10977_s27 = sshll.u32 %s324_s26, 4  ;;  %s19410_s14 = scalar_lea.hbm %s19462_s9, %s12946_s25  ;;  %s19412_s27 = int_to_ptr.vmem [resolvable:$true] %s10977_s27 }
  0x1a   : > { %353 = vst [vmem:[#allocation2 + $0xb0] sm:$0xff] %v15220_v3  ;;  %354 = vst [vmem:[#allocation2 + $0xb8] sm:$0xff] %v15220_v3  ;;  %v13684_v6 = vld [vmem:[%s15354_s16 + $0x20] sm:$0xff]   ;;  %13187 = vmatprep.mubr.msk.bf16.mxu0 %vm459_vm1, %v13683_v5  ;;  %v13686_v8 = vld [vmem:[%s15354_s16 + $0x28] sm:$0xff]   ;;  %s15156_s17 = scalar_lea.vmem %s19412_s27, 16  ;;  %s15224_s13 = smov [#allocation6]  }
  0x1b   : > { %355 = vst [vmem:[#allocation2 + $0xc0] sm:$0xff] %v15220_v3  ;;  %356 = vst [vmem:[#allocation2 + $0xc8] sm:$0xff] %v15220_v3  ;;  %13201 = vmatprep.mubr.msk.bf16.mxu1 %vm459_vm1, %v13684_v6  ;;  %v13687_v9 = vld [vmem:[%s15354_s16 + $0x10] sm:$0xff]   ;;  %13188 = vmatmul.mubr.msk.bf16.vlgmr.msra.gmra.mrb[0].mxu0 %vm459_vm1, %v13685_v7  ;;  %v13689_v11 = vld [vmem:[%s15354_s16 + $0x18] sm:$0xff]   ;;  %p15157_p11 = scmp.ne.s32.totalorder %s19412_s27, %s15156_s17  ;;  %s15160_s21 = sshll.u32 %s15224_s13, 4  ;;  %s15161_s21 = int_to_ptr.vmem [resolvable:$false] %s15160_s21 }
  0x1c   : > { %357 = vst [vmem:[#allocation2 + $0xd0] sm:$0xff] %v15220_v3  ;;  %358 = vst [vmem:[#allocation2 + $0xd8] sm:$0xff] %v15220_v3  ;;  %v13688_v10 = vld [vmem:[%s15354_s16 + $0x30] sm:$0xff]   ;;  %13202 = vmatmul.mubr.msk.bf16.vlgmr.msra.gmra.mrb[0].mxu1 %vm459_vm1, %v13686_v8  ;;  %13210 = vmatpush3.bf16.msra.mxu0 %v15326_v0  ;;  %v13690_v12 = vld [vmem:[%s15354_s16 + $0x38] sm:$0xff]   ;;  %s15162_s22 = scalar_lea.vmem %s15161_s21, 32  ;;  %p15163_p0 = scmp.lt.s32.totalorder %s19412_s27, %s15161_s21 }
  0x1d   : > { %359 = vst [vmem:[#allocation2 + $0xe0] sm:$0xff] %v15220_v3  ;;  %360 = vst [vmem:[#allocation2 + $0xe8] sm:$0xff] %v15220_v3  ;;  %13224 = vmatpush3.bf16.msra.mxu1 %v15326_v0  ;;  %13191 = vmatprep.mubr.msk.bf16.mxu0 %vm459_vm1, %v13687_v9  ;;  %v13691_v13 = vld [vmem:[%s15354_s16 + $0x40] sm:$0xff]   ;;  %v13693_v15 = vld [vmem:[%s15354_s16 + $0x48] sm:$0xff]   ;;  %p15158_p12 = pnand %p15157_p11, %p15313_p5  ;;  %p15164_p1 = scmp.lt.s32.totalorder %s15162_s22, %s15156_s17 }
  0x1e   : > { %361 = vst [vmem:[#allocation2 + $0xf0] sm:$0xff] %v15220_v3  ;;  %362 = vst [vmem:[#allocation2 + $0xf8] sm:$0xff] %v15220_v3  ;;  %13205 = vmatprep.mubr.msk.bf16.mxu1 %vm459_vm1, %v13688_v10  ;;  %13211 = vmatprep.subr.bf16.mxu0 %v15331_v1  ;;  %v13692_v14 = vld [vmem:[%s15354_s16 + $0x60] sm:$0xff]   ;;  %v13694_v16 = vld [vmem:[%s15354_s16 + $0x68] sm:$0xff]  }
  0x1f   : > { %363 = vst [vmem:[#allocation2 + $0x100] sm:$0xff] %v15220_v3  ;;  %364 = vst [vmem:[#allocation2 + $0x108] sm:$0xff] %v15220_v3  ;;  %13225 = vmatprep.subr.bf16.mxu1 %v15331_v1  ;;  %v13695_v17 = vld [vmem:[%s15354_s16 + $0x50] sm:$0xff]   ;;  %v13697_v19 = vld [vmem:[%s15354_s16 + $0x58] sm:$0xff]   ;;  %p15159_p13 = pneg %p15158_p12  ;;  %p15165_p2 = por %p15164_p1, %p15163_p0 }
  0x20   : > { %365 = vst [vmem:[#allocation2 + $0x110] sm:$0xff] %v15220_v3  ;;  %366 = vst [vmem:[#allocation2 + $0x118] sm:$0xff] %v15220_v3  ;;  %13212 = vmatpush3.bf16.msra.mxu0 %v15331_v1  ;;  %v13696_v18 = vld [vmem:[%s15354_s16 + $0x70] sm:$0xff]   ;;  %v13698_v20 = vld [vmem:[%s15354_s16 + $0x78] sm:$0xff]   ;;  %s10965_s16 = scalar_lea.sflag [#allocation7], %s323_s24 }
  0x21   : > { %367 = vst [vmem:[#allocation2 + $0x120] sm:$0xff] %v15220_v3  ;;  %368 = vst [vmem:[#allocation2 + $0x128] sm:$0xff] %v15220_v3  ;;  %13226 = vmatpush3.bf16.msra.mxu1 %v15331_v1  ;;  %13635 = vmatprep.subr.msk.bf16.mxu0 %vm472_vm0, %v15341_v2  ;;  %p15166_p3 = pnand %p15165_p2, %p15159_p13 }
  0x22   : > { %369 = vst [vmem:[#allocation2 + $0x130] sm:$0xff] %v15220_v3  ;;  %370 = vst [vmem:[#allocation2 + $0x138] sm:$0xff] %v15220_v3  ;;  %13636 = vmatprep.subr.msk.bf16.mxu1 %vm472_vm0, %v15341_v2 }
  0x23   : > { %371 = vst [vmem:[#allocation2 + $0x140] sm:$0xf] %v15220_v3  ;;  %389 = vst [vmem:[#allocation4] sm:$0xff] %v15220_v3  ;;  %13192 = vmatmul.mubr.msk.bf16.gmra.mrb[4].mxu0 %vm459_vm1, %v13689_v11 }
  0x24   : > { %390 = vst [vmem:[#allocation4 + $0x8] sm:$0xff] %v15220_v3  ;;  %391 = vst [vmem:[#allocation4 + $0x10] sm:$0xff] %v15220_v3  ;;  %13206 = vmatmul.mubr.msk.bf16.gmra.mrb[4].mxu1 %vm459_vm1, %v13690_v12  ;;  %13214 = vmatpush3.bf16.msra.mxu0 %v474_v4 }
  0x25   : > { %392 = vst [vmem:[#allocation4 + $0x18] sm:$0xff] %v15220_v3  ;;  %393 = vst [vmem:[#allocation4 + $0x20] sm:$0xff] %v15220_v3  ;;  %13228 = vmatpush3.bf16.msra.mxu1 %v474_v4  ;;  %13215 = vmatprep.mubr.msk.bf16.mxu0 %vm459_vm1, %v13691_v13 }
  0x26   : > { %394 = vst [vmem:[#allocation4 + $0x28] sm:$0xff] %v15220_v3  ;;  %395 = vst [vmem:[#allocation4 + $0x30] sm:$0xff] %v15220_v3  ;;  %13229 = vmatprep.mubr.msk.bf16.mxu1 %vm459_vm1, %v13692_v14  ;;  %13281 = vmatprep.subr.bf16.mxu1 %v15221_v22 }
  0x27   : > { %396 = vst [vmem:[#allocation4 + $0x38] sm:$0xff] %v15220_v3  ;;  %397 = vst [vmem:[#allocation4 + $0x40] sm:$0xff] %v15220_v3  ;;  %13237 = vmatprep.subr.bf16.mxu0 %v15221_v22 }
  0x28   : > { %398 = vst [vmem:[#allocation4 + $0x48] sm:$0xff] %v15220_v3  ;;  %399 = vst [vmem:[#allocation4 + $0x50] sm:$0xff] %v15220_v3 }
  0x29   : > { %400 = vst [vmem:[#allocation4 + $0x58] sm:$0xff] %v15220_v3  ;;  %401 = vst [vmem:[#allocation4 + $0x60] sm:$0xff] %v15220_v3 }
  0x2a   : > { %402 = vst [vmem:[#allocation4 + $0x68] sm:$0x3f] %v15220_v3  ;;  %372 = vst [vmem:[#allocation3] sm:$0xf] %v15222_v27 }
  0x2b   : > { %13216 = vmatmul.mubr.msk.bf16.vlgmr.msra.gmra.mrb[8].mxu0 %vm459_vm1, %v13693_v15  ;;  %373 = vst [vmem:[#allocation3 + $0x4] sm:$0xf] %v15222_v27  ;;  %374 = vst [vmem:[#allocation3 + $0x8] sm:$0xf] %v15222_v27 }
  0x2c   : > { %13230 = vmatmul.mubr.msk.bf16.vlgmr.msra.gmra.mrb[8].mxu1 %vm459_vm1, %v13694_v16  ;;  %13219 = vmatprep.mubr.msk.bf16.mxu0 %vm459_vm1, %v13695_v17  ;;  %375 = vst [vmem:[#allocation3 + $0xc] sm:$0xf] %v15222_v27  ;;  %376 = vst [vmem:[#allocation3 + $0x10] sm:$0xf] %v15222_v27 }
  0x2d   : > { %13233 = vmatprep.mubr.msk.bf16.mxu1 %vm459_vm1, %v13696_v18  ;;  %13282 = vmatpush3.bf16.msra.mxu1 %v13699_v21  ;;  %377 = vst [vmem:[#allocation3 + $0x14] sm:$0xf] %v15222_v27  ;;  %378 = vst [vmem:[#allocation3 + $0x18] sm:$0xf] %v15222_v27 }
  0x2e   : > { %13283 = vmatprep.subr.bf16.mxu1 %v15221_v22  ;;  %379 = vst [vmem:[#allocation3 + $0x1c] sm:$0xf] %v15222_v27  ;;  %380 = vst [vmem:[#allocation3 + $0x20] sm:$0xf] %v15222_v27  ;;  %13238 = vmatpush3.bf16.msra.mxu0 %v13704_v28 }
  0x2f   : > { %381 = vst [vmem:[#allocation3 + $0x24] sm:$0xf] %v15222_v27  ;;  %382 = vst [vmem:[#allocation3 + $0x28] sm:$0xf] %v15222_v27  ;;  %13239 = vmatprep.subr.bf16.mxu0 %v15221_v22 }
  0x30   : > { %383 = vst [vmem:[#allocation3 + $0x2c] sm:$0xf] %v15222_v27  ;;  %384 = vst [vmem:[#allocation3 + $0x30] sm:$0xf] %v15222_v27 }
  0x31   : > { %13284 = vmatpush3.bf16.msra.mxu1 %v13700_v23  ;;  %385 = vst [vmem:[#allocation3 + $0x34] sm:$0xf] %v15222_v27  ;;  %386 = vst [vmem:[#allocation3 + $0x38] sm:$0xf] %v15222_v27 }
  0x32   : > { %13285 = vmatprep.subr.bf16.mxu1 %v15221_v22  ;;  %387 = vst [vmem:[#allocation3 + $0x3c] sm:$0xf] %v15222_v27  ;;  %13240 = vmatpush3.bf16.msra.mxu0 %v13706_v30  ;;  %vm15546_vm6 = vmor %vm472_vm0, %vm1041_vm3  ;;  %vm1169_vm3 = vcmask 1043458  }
  0x33   : > { %13220 = vmatmul.mubr.msk.bf16.gmra.mrb[12].mxu0 %vm459_vm1, %v13697_v19  ;;  %13241 = vmatprep.subr.bf16.mxu0 %v15221_v22  ;;  %vm15556_vm9 = vmand %vm472_vm0, %vm19464_vm5  ;;  %vm19467_vm0 = vsmask.f32 3328  ;;  %vm19466_vm5 = vsmask.f32 256 }
  0x34   : > { %13234 = vmatmul.mubr.msk.bf16.gmra.mrb[12].mxu1 %vm459_vm1, %v13698_v20  ;;  %13253 = vmatprep.mubr.msk.bf16.mxu0 %vm15223_vm2, %v15221_v22  ;;  %vm15562_vm13 = vmand %vm19463_vm7, %vm1051_vm8  ;;  %vm1146_vm1 = vsmask.f32 7440 }
  0x35   : > { %13286 = vmatpush3.bf16.msra.mxu1 %v13701_v24  ;;  %13297 = vmatprep.mubr.msk.bf16.mxu1 %vm15223_vm2, %v15221_v22  ;;  %vm15570_vm15 = vmor %vm19463_vm7, %vm1115_vm10  ;;  %vm1170_vm10 = vsmask.f32 7946  ;;  %vm1194_vm7 = vcmask 1040384  }
  0x36   : > { %13287 = vmatprep.subr.bf16.mxu1 %v15221_v22  ;;  %13242 = vmatpush3.bf16.msra.mxu0 %v13708_v32 }
  0x37   : > { %13243 = vmatprep.subr.bf16.mxu0 %v15221_v22 }
  0x39   : > { %13288 = vmatpush3.bf16.msra.mxu1 %v13702_v25 }
  0x3a   : > { %13289 = vmatprep.subr.bf16.mxu1 %v15221_v22  ;;  %13244 = vmatpush3.bf16.msra.mxu0 %v13710_v34 }
  0x3b   : > { %13245 = vmatprep.subr.bf16.mxu0 %v15221_v22 }
  0x3d   : > { %13290 = vmatpush3.bf16.msra.mxu1 %v13703_v26 }
  0x3e   : > { %13291 = vmatprep.subr.bf16.mxu1 %v15221_v22  ;;  %13246 = vmatpush3.bf16.msra.mxu0 %v13712_v35 }
  0x3f   : > { %13247 = vmatprep.subr.bf16.mxu0 %v15221_v22 }
  0x41   : > { %13292 = vmatpush3.bf16.msra.mxu1 %v13705_v29 }
  0x42   : > { %13293 = vmatprep.subr.bf16.mxu1 %v15221_v22  ;;  %13248 = vmatpush3.bf16.msra.mxu0 %v13713_v36 }
  0x43   : > { %13249 = vmatprep.subr.bf16.mxu0 %v15221_v22 }
  0x45   : > { %13294 = vmatpush3.bf16.msra.mxu1 %v13707_v31 }
  0x46   : > { %13295 = vmatprep.subr.bf16.mxu1 %v15221_v22  ;;  %13250 = vmatpush3.bf16.msra.mxu0 %v13714_v37  ;;  %v15521_v37 = vld [vmem:[#allocation2] ss:$2 sm:$0xff] }
  0x47   : > { %13251 = vmatprep.subr.bf16.mxu0 %v15221_v22 }
  0x49   : > { %13296 = vmatpush3.bf16.msra.mxu1 %v13709_v33 }
  0x4a   : > { %13369 = vmatprep.subr.bf16.mxu1 %v15221_v22  ;;  %13252 = vmatpush3.bf16.msra.mxu0 %v13716_v38  ;;  %v15523_v38 = vld [vmem:[#allocation2 + $0x1] ss:$2 sm:$0xff] }
  0x4b   : > { %13325 = vmatprep.subr.bf16.mxu0 %v15221_v22 }
  0xee   : > { %v13189_v40 = vpop.f32.mrb[0].mxu0 }
  0xef   : > { %v13203_v41 = vpop.f32.mrb[0].mxu1  ;;  %v519_v42 = vadd.f32 %v13189_v40, %v15495_v39  ;;  %v510_v43 = vpop.f32.mrb[1].mxu0 }
  0xf0   : > { %v631_v44 = vpop.f32.mrb[1].mxu1  ;;  %v511_v45 = vadd.f32 %v15495_v39, %v510_v43  ;;  %v13190_v46 = vpop.f32.mrb[2].mxu0  ;;  %v640_v50 = vadd.f32 %v13203_v41, %v15495_v39 }
  0xf1   : > { %v13204_v47 = vpop.f32.mrb[2].mxu1  ;;  %15047 = vtanh.f32 %v519_v42  ;;  %v522_v48 = vadd.f32 %v13190_v46, %v15495_v39  ;;  %v513_v49 = vpop.f32.mrb[3].mxu0  ;;  %v632_v53 = vadd.f32 %v15495_v39, %v631_v44 }
  0xf2   : > { %v634_v51 = vpop.f32.mrb[3].mxu1  ;;  %15049 = vtanh.f32 %v511_v45  ;;  %v514_v52 = vadd.f32 %v15495_v39, %v513_v49  ;;  %v643_v54 = vadd.f32 %v13204_v47, %v15495_v39 }
  0xf3   : > { %15051 = vtanh.f32 %v522_v48  ;;  %v635_v55 = vadd.f32 %v15495_v39, %v634_v51 }
  0xf4   : > { %15053 = vtanh.f32 %v514_v52 }
  0xf5   : > { %15055 = vtanh.f32 %v640_v50 }
  0xf6   : > { %15057 = vtanh.f32 %v632_v53  ;;  %v13193_v56 = vpop.f32.mrb[4].mxu0 }
  0xf7   : > { %v13207_v57 = vpop.f32.mrb[4].mxu1  ;;  %15059 = vtanh.f32 %v643_v54  ;;  %v535_v58 = vadd.f32 %v13193_v56, %v15495_v39  ;;  %v526_v60 = vpop.f32.mrb[5].mxu0 }
  0xf8   : > { %v656_v59 = vadd.f32 %v13207_v57, %v15495_v39  ;;  %v647_v61 = vpop.f32.mrb[5].mxu1  ;;  %15061 = vtanh.f32 %v635_v55  ;;  %v527_v62 = vadd.f32 %v15495_v39, %v526_v60  ;;  %v13194_v0 = vpop.f32.mrb[6].mxu0 }
  0xf9   : > { %v648_v63 = vadd.f32 %v15495_v39, %v647_v61  ;;  %v13208_v1 = vpop.f32.mrb[6].mxu1  ;;  %15063 = vtanh.f32 %v535_v58  ;;  %v538_v2 = vadd.f32 %v13194_v0, %v15495_v39  ;;  %v529_v3 = vpop.f32.mrb[7].mxu0  ;;  %v15534_v0 = vld [vmem:[#allocation2 + $0x140] ss:$2 sm:$0x3] }
  0xfa   : > { %v650_v4 = vpop.f32.mrb[7].mxu1  ;;  %15065 = vtanh.f32 %v656_v59  ;;  %v659_v5 = vadd.f32 %v13208_v1, %v15495_v39  ;;  %v530_v7 = vadd.f32 %v15495_v39, %v529_v3  ;;  %v15536_v1 = vld [vmem:[#allocation2 + $0x141] ss:$2 sm:$0x3] }
  0xfb   : > { %v15048_v6 = vpop.eup %15047  ;;  %15067 = vtanh.f32 %v527_v62  ;;  %v651_v9 = vadd.f32 %v15495_v39, %v650_v4  ;;  %v1003_v62 = vmax.f32 %v15521_v37, %v15523_v38 }
  0xfc   : > { %v15050_v8 = vpop.eup %15049  ;;  %551 = vst [vmem:[#allocation2 + $0x25] sm:$0xff] %v15048_v6  ;;  %15069 = vtanh.f32 %v648_v63 }
  0xfd   : > { %v15052_v10 = vpop.eup %15051  ;;  %549 = vst [vmem:[#allocation2 + $0x13] sm:$0xff] %v15050_v8  ;;  %15071 = vtanh.f32 %v538_v2 }
  0xfe   : > { %v15054_v11 = vpop.eup %15053  ;;  %552 = vst [vmem:[#allocation2 + $0x2d] sm:$0xff] %v15052_v10  ;;  %15073 = vtanh.f32 %v659_v5  ;;  %v13217_v12 = vpop.f32.mrb[8].mxu0 }
  0xff   : > { %v13231_v13 = vpop.f32.mrb[8].mxu1  ;;  %v15056_v14 = vpop.eup %15055  ;;  %550 = vst [vmem:[#allocation2 + $0x1b] sm:$0xff] %v15054_v11  ;;  %15075 = vtanh.f32 %v530_v7  ;;  %v761_v15 = vadd.f32 %v13217_v12, %v15495_v39 }
 0x100   : > { %v752_v16 = vpop.f32.mrb[9].mxu0  ;;  %v873_v17 = vpop.f32.mrb[9].mxu1  ;;  %672 = vst [vmem:[#allocation2 + $0x6d] sm:$0xff] %v15056_v14  ;;  %15077 = vtanh.f32 %v651_v9  ;;  %v882_v26 = vadd.f32 %v13231_v13, %v15495_v39 }
 0x101   : > { %v15058_v18 = vpop.eup %15057  ;;  %v753_v19 = vadd.f32 %v15495_v39, %v752_v16  ;;  %v13218_v20 = vpop.f32.mrb[10].mxu0  ;;  %15079 = vtanh.f32 %v761_v15  ;;  %v874_v31 = vadd.f32 %v15495_v39, %v873_v17 }
 0x102   : > { %v13232_v21 = vpop.f32.mrb[10].mxu1  ;;  %v15060_v23 = vpop.eup %15059  ;;  %670 = vst [vmem:[#allocation2 + $0x5b] sm:$0xff] %v15058_v18  ;;  %v764_v24 = vadd.f32 %v13218_v20, %v15495_v39 }
 0x103   : > { %v755_v25 = vpop.f32.mrb[11].mxu0  ;;  %v876_v28 = vpop.f32.mrb[11].mxu1  ;;  %673 = vst [vmem:[#allocation2 + $0x75] sm:$0xff] %v15060_v23  ;;  %15081 = vtanh.f32 %v753_v19  ;;  %v885_v33 = vadd.f32 %v13232_v21, %v15495_v39 }
 0x104   : > { %v15062_v29 = vpop.eup %15061  ;;  %v756_v30 = vadd.f32 %v15495_v39, %v755_v25  ;;  %15083 = vtanh.f32 %v764_v24  ;;  %v877_v35 = vadd.f32 %v15495_v39, %v876_v28 }
 0x105   : > { %v15064_v32 = vpop.eup %15063  ;;  %671 = vst [vmem:[#allocation2 + $0x63] sm:$0xff] %v15062_v29 }
 0x106   : > { %v15066_v34 = vpop.eup %15065  ;;  %555 = vst [vmem:[#allocation2 + $0x49] sm:$0xff] %v15064_v32  ;;  %15085 = vtanh.f32 %v756_v30  ;;  %v13221_v41 = vpop.f32.mrb[12].mxu0  ;;  %v922_v43 = vld [vmem:[#allocation2 + $0x10] ss:$2 sm:$0xff]  ;;  %v924_v44 = vld [vmem:[#allocation2 + $0x20] ss:$2 sm:$0xff] }
 0x107   : > { %v15068_v36 = vpop.eup %15067  ;;  %676 = vst [vmem:[#allocation2 + $0x91] sm:$0xff] %v15066_v34  ;;  %15087 = vtanh.f32 %v882_v26  ;;  %v13235_v42 = vpop.f32.mrb[12].mxu1  ;;  %v777_v46 = vadd.f32 %v13221_v41, %v15495_v39  ;;  %v964_v50 = vld [vmem:[#allocation2 + $0x11] ss:$2 sm:$0xff]  ;;  %v966_v51 = vld [vmem:[#allocation2 + $0x21] ss:$2 sm:$0xff] }
 0x108   : > { %v15070_v40 = vpop.eup %15069  ;;  %553 = vst [vmem:[#allocation2 + $0x37] sm:$0xff] %v15068_v36  ;;  %15089 = vtanh.f32 %v874_v31  ;;  %v898_v47 = vadd.f32 %v13235_v42, %v15495_v39  ;;  %v768_v48 = vpop.f32.mrb[13].mxu0  ;;  %v1004_v57 = vmax.f32 %v922_v43, %v964_v50  ;;  %v15532_v63 = vmax.f32 %v924_v44, %v966_v51  ;;  %v13851_v43 = vld [vmem:[%s19458_s5 + $0x200] ss:$16 sps:$4 sm:$0xff]  }
 0x109   : > { %v15072_v45 = vpop.eup %15071  ;;  %674 = vst [vmem:[#allocation2 + $0x7f] sm:$0xff] %v15070_v40  ;;  %15091 = vtanh.f32 %v885_v33  ;;  %v889_v49 = vpop.f32.mrb[13].mxu1  ;;  %v769_v53 = vadd.f32 %v15495_v39, %v768_v48 }
 0x10a   : > { %v15074_v52 = vpop.eup %15073  ;;  %556 = vst [vmem:[#allocation2 + $0x51] sm:$0xff] %v15072_v45  ;;  %15093 = vtanh.f32 %v877_v35  ;;  %v890_v54 = vadd.f32 %v15495_v39, %v889_v49  ;;  %v13222_v55 = vpop.f32.mrb[14].mxu0  ;;  %v1027_v4 = vrot.slane %v1004_v57, 1  ;;  %v1028_v9 = vrot.slane %v15532_v63, 1  ;;  %v934_v31 = vld [vmem:[#allocation2 + $0x70] ss:$2 sm:$0xff] }
 0x10b   : > { %v13236_v56 = vpop.f32.mrb[14].mxu1  ;;  %v15076_v58 = vpop.eup %15075  ;;  %677 = vst [vmem:[#allocation2 + $0x99] sm:$0xff] %v15074_v52  ;;  %15095 = vtanh.f32 %v777_v46  ;;  %v780_v59 = vadd.f32 %v13222_v55, %v15495_v39  ;;  %v1053_v49 = vld [vmem:[#allocation3 + $0x8] sm:$0x7] }
 0x10c   : > { %v771_v60 = vpop.f32.mrb[15].mxu0  ;;  %v892_v61 = vpop.f32.mrb[15].mxu1  ;;  %554 = vst [vmem:[#allocation2 + $0x3f] sm:$0xff] %v15076_v58  ;;  %15097 = vtanh.f32 %v898_v47  ;;  %v901_v3 = vadd.f32 %v13236_v56, %v15495_v39  ;;  %v932_v5 = vld [vmem:[#allocation2 + $0x60] ss:$2 sm:$0xff]  ;;  %v1029_v15 = vsel %vm19465_vm4, %v1027_v4, %v1028_v9  ;;  %v1033_v16 = vmax.f32 %v1004_v57, %v1028_v9 }
 0x10d   : > { %v15078_v2 = vpop.eup %15077  ;;  %v974_v6 = vld [vmem:[#allocation2 + $0x61] ss:$2 sm:$0xff]  ;;  %15099 = vtanh.f32 %v769_v53  ;;  %v772_v8 = vadd.f32 %v15495_v39, %v771_v60  ;;  %v893_v12 = vadd.f32 %v15495_v39, %v892_v61  ;;  %v1032_v18 = vmax.f32 %v1003_v62, %v1029_v15 }
 0x10e   : > { %v15080_v7 = vpop.eup %15079  ;;  %675 = vst [vmem:[#allocation2 + $0x87] sm:$0xff] %v15078_v2  ;;  %v15541_v10 = vmax.f32 %v932_v5, %v974_v6  ;;  %15101 = vtanh.f32 %v890_v54  ;;  %v1023_v39 = vmax.f32 %v15534_v0, %v15536_v1  ;;  %v12951_v21 = vpack.c.bf16 %v1033_v16, %v1033_v16  ;;  %v1127_v5 = vld [vmem:[#allocation3 + $0x14] sm:$0x3] }
 0x10f   : > { %v15082_v11 = vpop.eup %15081  ;;  %793 = vst [vmem:[#allocation2 + $0xb5] sm:$0xff] %v15080_v7  ;;  %15103 = vtanh.f32 %v780_v59  ;;  %v12950_v29 = vpack.c.bf16 %v1032_v18, %v1032_v18  ;;  %v926_v30 = vld [vmem:[#allocation2 + $0x30] ss:$2 sm:$0xff] }
 0x110   : > { %v15084_v13 = vpop.eup %15083  ;;  %791 = vst [vmem:[#allocation2 + $0xa3] sm:$0xff] %v15082_v11  ;;  %15105 = vtanh.f32 %v901_v3  ;;  %v976_v19 = vld [vmem:[#allocation2 + $0x71] ss:$2 sm:$0xff]  ;;  %v1103_v25 = vrot.slane %v15541_v10, 1  ;;  %v15566_v46 = vrot.slane %v1023_v39, 1  ;;  %v1045_v48 = vrot.slane %v12951_v21, 6 }
 0x111   : > { %v15086_v17 = vpop.eup %15085  ;;  %794 = vst [vmem:[#allocation2 + $0xbd] sm:$0xff] %v15084_v13  ;;  %15107 = vtanh.f32 %v772_v8  ;;  %v930_v23 = vld [vmem:[#allocation2 + $0x50] ss:$2 sm:$0xff]  ;;  %v972_v24 = vld [vmem:[#allocation2 + $0x51] ss:$2 sm:$0xff]  ;;  %v1010_v37 = vmax.f32 %v934_v31, %v976_v19  ;;  %v1043_v40 = vrot.slane %v12950_v29, 6 }
 0x112   : > { %v15088_v20 = vpop.eup %15087  ;;  %792 = vst [vmem:[#allocation2 + $0xab] sm:$0xff] %v15086_v17  ;;  %15109 = vtanh.f32 %v893_v12  ;;  %v1008_v32 = vmax.f32 %v930_v23, %v972_v24  ;;  %v1340_v23 = vld [vmem:[#allocation3] sm:$0xf]  ;;  %v13881_v53 = vld [vmem:[%s19458_s5 + $0x18c] ss:$16 sps:$4 sm:$0xff]  }
 0x113   : > { %v15090_v26 = vpop.eup %15089  ;;  %914 = vst [vmem:[#allocation2 + $0xfd] sm:$0xff] %v15088_v20  ;;  %v928_v34 = vld [vmem:[#allocation2 + $0x40] ss:$2 sm:$0xff]  ;;  %v968_v35 = vld [vmem:[#allocation2 + $0x31] ss:$2 sm:$0xff]  ;;  %v1044_v55 = vrot.slane %v1043_v40, 4 }
 0x114   : > { %v15092_v33 = vpop.eup %15091  ;;  %912 = vst [vmem:[#allocation2 + $0xeb] sm:$0xff] %v15090_v26  ;;  %v970_v36 = vld [vmem:[#allocation2 + $0x41] ss:$2 sm:$0xff]  ;;  %v1006_v41 = vmax.f32 %v926_v30, %v968_v35  ;;  %v1102_v51 = vrot.slane %v1008_v32, 1  ;;  %v1108_v52 = vmax.f32 %v1008_v32, %v1103_v25  ;;  %1049 = vst [vmem:[#allocation3 + $0x4] sm:$0xc] %v1043_v40 }
 0x115   : > { %v15094_v38 = vpop.eup %15093  ;;  %915 = vst [vmem:[#allocation2 + $0x105] sm:$0xff] %v15092_v33  ;;  %v1007_v42 = vmax.f32 %v928_v34, %v970_v36  ;;  %v936_v44 = vld [vmem:[#allocation2 + $0x80] ss:$2 sm:$0xff]  ;;  %v978_v45 = vld [vmem:[#allocation2 + $0x81] ss:$2 sm:$0xff]  ;;  %v1132_v61 = vrot.slane %v1010_v37, 1  ;;  %v1046_v1 = vsel %vm15546_vm6, %v1044_v55, %v1045_v48 }
 0x116   : > { %v15096_v47 = vpop.eup %15095  ;;  %913 = vst [vmem:[#allocation2 + $0xf3] sm:$0xff] %v15094_v38  ;;  %v1011_v50 = vmax.f32 %v936_v44, %v978_v45  ;;  %v1058_v56 = vrot.slane %v1006_v41, 1  ;;  %v1104_v59 = vsel %vm19465_vm4, %v1102_v51, %v1103_v25  ;;  %v12955_v60 = vpack.c.bf16 %v1108_v52, %v1108_v52  ;;  %v15587_v34 = vld [vmem:[#allocation2 + $0x90] ss:$2 sm:$0xff]  ;;  %v1096_v48 = vld [vmem:[#allocation3 + $0x8] sm:$0x8] }
 0x117   : > { %v15098_v54 = vpop.eup %15097  ;;  %797 = vst [vmem:[#allocation2 + $0xd9] sm:$0xff] %v15096_v47  ;;  %v1059_v57 = vrot.slane %v1007_v42, 1  ;;  %v1107_v4 = vmax.f32 %v1007_v42, %v1104_v59  ;;  %v1054_v11 = vsel %vm15562_vm13, %v1046_v1, %v1053_v49 }
 0x118   : > { %v15100_v58 = vpop.eup %15099  ;;  %918 = vst [vmem:[#allocation2 + $0x121] sm:$0xff] %v15098_v54  ;;  %v1133_v62 = vrot.slane %v1011_v50, 1  ;;  %v1119_v13 = vrot.slane %v12955_v60, 5  ;;  %1055 = vst [vmem:[#allocation3 + $0x8] sm:$0x7] %v1054_v11 }
 0x119   : > { %v15102_v0 = vpop.eup %15101  ;;  %795 = vst [vmem:[#allocation2 + $0xc7] sm:$0xff] %v15100_v58  ;;  %v1060_v2 = vsel %vm19465_vm4, %v1058_v56, %v1059_v57  ;;  %v1064_v3 = vmax.f32 %v1006_v41, %v1059_v57  ;;  %v940_v6 = vld [vmem:[#allocation2 + $0xa0] ss:$2 sm:$0xff]  ;;  %v942_v7 = vld [vmem:[#allocation2 + $0xb0] ss:$2 sm:$0xff]  ;;  %v12954_v19 = vpack.c.bf16 %v1107_v4, %v1107_v4 }
 0x11a   : > { %v982_v8 = vld [vmem:[#allocation2 + $0xa1] ss:$2 sm:$0xff]  ;;  %v15104_v9 = vpop.eup %15103  ;;  %916 = vst [vmem:[#allocation2 + $0x10f] sm:$0xff] %v15102_v0  ;;  %v1063_v12 = vmax.f32 %v15532_v63, %v1060_v2  ;;  %v1134_v15 = vsel %vm19465_vm4, %v1132_v61, %v1133_v62  ;;  %v984_v16 = vld [vmem:[#allocation2 + $0xb1] ss:$2 sm:$0xff]  ;;  %v1138_v20 = vmax.f32 %v1010_v37, %v1133_v62  ;;  %v1121_v25 = vrot.slane %v1119_v13, 4  ;;  %vm15603_vm4 = vmand %vm1093_vm11, %vm1094_vm12 }
 0x11b   : > { %v15106_v17 = vpop.eup %15105  ;;  %798 = vst [vmem:[#allocation2 + $0xe1] sm:$0xff] %v15104_v9  ;;  %v12953_v18 = vpack.c.bf16 %v1064_v3, %v1064_v3  ;;  %v1137_v39 = vmax.f32 %v15541_v10, %v1134_v15  ;;  %v15583_v63 = vmax.f32 %v940_v6, %v982_v8  ;;  %v15585_v26 = vmax.f32 %v942_v7, %v984_v16  ;;  %v13721_v10 = vld [vmem:[%s19456_s3 + $0xc0] sm:$0xff]   ;;  %v15592_v35 = vld [vmem:[#allocation3 + $0x4] sm:$0xf]  ;;  %v15596_v41 = vld [vmem:[#allocation2 + $0x91] ss:$2 sm:$0xff] }
 0x11c   : > { %v15108_v21 = vpop.eup %15107  ;;  %919 = vst [vmem:[#allocation2 + $0x129] sm:$0xff] %v15106_v17  ;;  %v12952_v24 = vpack.c.bf16 %v1063_v12, %v1063_v12  ;;  %v11080_v32 = vrot.slane %v12954_v19, 9  ;;  %v1128_v38 = vsel %vm15556_vm9, %v1121_v25, %v1127_v5  ;;  %v12957_v40 = vpack.c.bf16 %v1138_v20, %v1138_v20  ;;  %v952_v28 = vld [vmem:[#allocation2 + $0x100] ss:$2 sm:$0xff]  ;;  %vm15611_vm9 = vmor %vm1051_vm8, %vm1071_vm14 }
 0x11d   : > { %v15110_v29 = vpop.eup %15109  ;;  %796 = vst [vmem:[#allocation2 + $0xcf] sm:$0xff] %v15108_v21  ;;  %v1083_v30 = vshrl.u32 %v12953_v18, 16  ;;  %v1086_v31 = vshll.u32 %v12953_v18, 16  ;;  %v12956_v33 = vpack.c.bf16 %v1137_v39, %v1137_v39  ;;  %v15599_v42 = vcombine.low %v1340_v23, %v15592_v35  ;;  %1129 = vst [vmem:[#allocation3 + $0x14] sm:$0x3] %v1128_v38  ;;  %v13723_v56 = vld [vmem:[%s19456_s3 + $0xc8] sm:$0xff]  }
 0x11e   : > { %917 = vst [vmem:[#allocation2 + $0x117] sm:$0xff] %v15110_v29  ;;  %v1074_v36 = vshll.u32 %v12952_v24, 16  ;;  %v1077_v37 = vshrl.u32 %v12952_v24, 16  ;;  %v1120_v49 = vsel %vm15570_vm15, %v11080_v32, %v1119_v13  ;;  %v950_v57 = vld [vmem:[#allocation2 + $0xf0] ss:$2 sm:$0xff]  ;;  %v1158_v59 = vshll.u32 %v12957_v40, 16  ;;  %vm15628_vm8 = vmor %vm19467_vm0, %vm1146_vm1 }
 0x11f   : > { %v1085_v44 = vrot.slane %v1083_v30, 5  ;;  %v1088_v45 = vrot.slane %v1086_v31, 6  ;;  %1124 = vst [vmem:[#allocation3 + $0x10] sm:$0xe] %v1120_v49  ;;  %v1149_v54 = vshrl.u32 %v12956_v33, 16  ;;  %v1152_v55 = vshll.u32 %v12956_v33, 16  ;;  %13298 = vmatmul.mubr.bf16.vlgmr.msra.gmra.mrb[16].mxu1 %v15599_v42  ;;  %vm15635_vm11 = vmand %vm1169_vm3, %vm1170_vm10 }
 0x120   : > { %v1076_v51 = vrot.slane %v1074_v36, 6  ;;  %v1079_v52 = vrot.slane %v1077_v37, 5  ;;  %v1012_v60 = vmax.f32 %v15587_v34, %v15596_v41  ;;  %v992_v61 = vld [vmem:[#allocation2 + $0xf1] ss:$2 sm:$0xff]  ;;  %13301 = vmatprep.mubr.msk.bf16.mxu1 %vm15223_vm2, %v15221_v22  ;;  %13370 = vmatpush3.bf16.msra.mxu1 %v13721_v10  ;;  %v1423_v5 = vshll.u32 %v15599_v42, 16  ;;  %vm15645_vm14 = vmand %vm1194_vm7, %vm19466_vm5  ;;  %v13730_v6 = vld [vmem:[%s19456_s3 + $0xe0] sm:$0xff]  }
 0x121   : > { %v994_v58 = vld [vmem:[#allocation2 + $0x101] ss:$2 sm:$0xff]  ;;  %v1089_v0 = vor.u32 %v1088_v45, %v1085_v44  ;;  %v1151_v2 = vrot.slane %v1149_v54, 4  ;;  %v1154_v7 = vrot.slane %v1152_v55, 5  ;;  %v1160_v8 = vrot.slane %v1158_v59, 5  ;;  %13371 = vmatprep.subr.bf16.mxu1 %v15221_v22  ;;  %v13725_v37 = vld [vmem:[%s19456_s3 + $0xd0] sm:$0xff]  }
 0x122   : > { %v1080_v62 = vor.u32 %v1079_v52, %v1076_v51  ;;  %v1097_v1 = vsel %vm15603_vm4, %v1076_v51, %v1096_v48  ;;  %v948_v3 = vld [vmem:[#allocation2 + $0xe0] ss:$2 sm:$0xff]  ;;  %v990_v4 = vld [vmem:[#allocation2 + $0xe1] ss:$2 sm:$0xff]  ;;  %v1162_v9 = vshrl.u32 %v12957_v40, 16  ;;  %v1178_v15 = vrot.slane %v15583_v63, 1 }
 0x123   : > { %1098 = vst [vmem:[#allocation3 + $0x8] sm:$0x8] %v1097_v1  ;;  %v944_v11 = vld [vmem:[#allocation2 + $0xc0] ss:$2 sm:$0xff]  ;;  %v1179_v16 = vrot.slane %v15585_v26, 1  ;;  %v1017_v18 = vmax.f32 %v948_v3, %v990_v4  ;;  %vm1257_vm12 = vcmask 1044484   ;;  %v15641_v19 = vmax.f32 %v952_v28, %v994_v58 }
 0x124   : > { %v1081_v12 = vrot.slane %v1080_v62, 4  ;;  %v946_v17 = vld [vmem:[#allocation2 + $0xd0] ss:$2 sm:$0xff]  ;;  %v1155_v21 = vor.u32 %v1154_v7, %v1151_v2  ;;  %v1164_v24 = vrot.slane %v1162_v9, 4  ;;  %v1018_v25 = vmax.f32 %v950_v57, %v992_v61  ;;  %v1197_v30 = vld [vmem:[#allocation3 + $0x20] sm:$0x1]  ;;  %13372 = vmatpush3.bf16.msra.mxu1 %v13723_v56 }
 0x125   : > { %v954_v39 = vld [vmem:[#allocation2 + $0x110] ss:$2 sm:$0xff]  ;;  %v996_v20 = vld [vmem:[#allocation2 + $0x111] ss:$2 sm:$0xff]  ;;  %vm19468_vm1 = vcmask 1043456   ;;  %vm19489_vm3 = vcmask 1046528   ;;  %v1184_v36 = vmax.f32 %v15583_v63, %v1179_v16  ;;  %13373 = vmatprep.subr.bf16.mxu1 %v15221_v22 }
 0x126   : > { %v1172_v23 = vld [vmem:[#allocation3 + $0x14] sm:$0xc]  ;;  %v1020_v31 = vmax.f32 %v954_v39, %v996_v20  ;;  %v1090_v32 = vsel %vm15611_vm9, %v1081_v12, %v1089_v0  ;;  %v1180_v33 = vsel %vm19489_vm3, %v1178_v15, %v1179_v16  ;;  %v986_v34 = vld [vmem:[#allocation2 + $0xc1] ss:$2 sm:$0xff]  ;;  %v1156_v38 = vrot.slane %v1155_v21, 4  ;;  %vm19490_vm10 = vmmov %vm19489_vm3 }
 0x127   : > { %v988_v10 = vld [vmem:[#allocation2 + $0xd1] ss:$2 sm:$0xff]  ;;  %1099 = vst [vmem:[#allocation3 + $0xc] sm:$0xf] %v1090_v32  ;;  %v1165_v40 = vor.u32 %v1164_v24, %v1160_v8  ;;  %v1183_v41 = vmax.f32 %v1012_v60, %v1180_v33  ;;  %v1015_v44 = vmax.f32 %v944_v11, %v986_v34  ;;  %v12959_v49 = vpack.c.bf16 %v1184_v36, %v1184_v36  ;;  %v958_v55 = vld [vmem:[#allocation2 + $0x130] ss:$2 sm:$0xff] }
 0x128   : > { %v1000_v45 = vld [vmem:[#allocation2 + $0x131] ss:$2 sm:$0xff]  ;;  %v1016_v48 = vmax.f32 %v946_v17, %v988_v10  ;;  %v1244_v28 = vrot.slane %v1017_v18, 1  ;;  %v1245_v50 = vrot.slane %v1018_v25, 1  ;;  %vm1419_vm9 = vsmask.f32 7424  ;;  %13374 = vmatpush3.bf16.msra.mxu1 %v13725_v37 }
 0x129   : > { %v1161_v63 = vsel %vm15628_vm8, %v1156_v38, %v1160_v8  ;;  %v1166_v51 = vrot.slane %v1165_v40, 4  ;;  %v12958_v52 = vpack.c.bf16 %v1183_v41, %v1183_v41  ;;  %v1202_v54 = vrot.slane %v1015_v44, 1  ;;  %v13727_v60 = vld [vmem:[%s19456_s3 + $0xd8] sm:$0xff]   ;;  %13375 = vmatprep.subr.bf16.mxu1 %v15221_v22  ;;  %v1268_v37 = vld [vmem:[#allocation3 + $0x28] sm:$0xf] }
 0x12a   : > { %v1173_v56 = vsel %vm15635_vm11, %v1161_v63, %v1172_v23  ;;  %v1198_v57 = vsel %vm15645_vm14, %v12959_v49, %v1197_v30  ;;  %v1203_v58 = vrot.slane %v1016_v48, 1  ;;  %v1246_v59 = vsel %vm19490_vm10, %v1244_v28, %v1245_v50  ;;  %vm19491_vm10 = vmmov %vm19489_vm3  ;;  %v13731_v63 = vld [vmem:[%s19456_s3 + $0xe8] sm:$0xff]   ;;  %v13933_v29 = vld [vmem:[%s19458_s5 + $0x3a4] ss:$16 sps:$4 sm:$0xff]  }
 0x12b   : > { %1174 = vst [vmem:[#allocation3 + $0x14] sm:$0xc] %v1173_v56  ;;  %1175 = vst [vmem:[#allocation3 + $0x18] sm:$0x7] %v1166_v51  ;;  %v1249_v61 = vmax.f32 %v1016_v48, %v1246_v59  ;;  %v1273_v62 = vrot.slane %v15641_v19, 1  ;;  %v1274_v0 = vrot.slane %v1020_v31, 1  ;;  %v1250_v1 = vmax.f32 %v1017_v18, %v1245_v50 }
 0x12c   : > { %1193 = vst [vmem:[#allocation3 + $0x1c] sm:$0xf] %v12958_v52  ;;  %1199 = vst [vmem:[#allocation3 + $0x20] sm:$0x1] %v1198_v57  ;;  %vm1286_vm8 = vsmask.f32 5392  ;;  %v1204_v3 = vsel %vm19491_vm10, %v1202_v54, %v1203_v58  ;;  %v1208_v4 = vmax.f32 %v1015_v44, %v1203_v58  ;;  %v15674_v7 = vmax.f32 %v958_v55, %v1000_v45  ;;  %13376 = vmatpush3.bf16.msra.mxu1 %v13727_v60 }
 0x12d   : > { %v1421_v2 = vshrl.u32 %v15599_v42, 16  ;;  %v1207_v8 = vmax.f32 %v15585_v26, %v1204_v3  ;;  %v12962_v9 = vpack.c.bf16 %v1249_v61, %v1249_v61  ;;  %v1275_v11 = vsel %vm19489_vm3, %v1273_v62, %v1274_v0  ;;  %vm15684_vm10 = vmor %vm1194_vm7, %vm1257_vm12  ;;  %13377 = vmatprep.subr.bf16.mxu1 %v15221_v22  ;;  %v956_v31 = vld [vmem:[#allocation2 + $0x120] ss:$2 sm:$0xff] }
 0x12e   : > { %v12963_v12 = vpack.c.bf16 %v1250_v1, %v1250_v1  ;;  %vm1309_vm5 = vsmask.f32 7938  ;;  %v15678_v15 = vld [vmem:[#allocation3 + $0x8] sm:$0xff]   ;;  %v1425_v16 = vrot.slane %v1423_v5, 1  ;;  %v12961_v17 = vpack.c.bf16 %v1208_v4, %v1208_v4  ;;  %v13717_v5 = vld [vmem:[%s19456_s3 + $0x80] sm:$0xff]   ;;  %vm15697_vm7 = vmand %vm19468_vm1, %vm19467_vm0 }
 0x12f   : > { %v1278_v18 = vmax.f32 %v1018_v25, %v1275_v11  ;;  %v12960_v39 = vpack.c.bf16 %v1207_v8, %v1207_v8  ;;  %v1259_v26 = vrot.slane %v12962_v9, 7  ;;  %v1279_v23 = vmax.f32 %v15641_v19, %v1274_v0  ;;  %13302 = vmatmul.mubr.bf16.gmra.mrb[20].mxu1 %v15678_v15  ;;  %v998_v19 = vld [vmem:[#allocation2 + $0x121] ss:$2 sm:$0xff]  ;;  %v13734_v8 = vld [vmem:[%s19456_s3 + $0xf0] sm:$0xff]  }
 0x130   : > { %v1261_v21 = vrot.slane %v12963_v12, 7  ;;  %v1428_v42 = vshll.u32 %v15678_v15, 16  ;;  %v1226_v24 = vshrl.u32 %v12961_v17, 16  ;;  %v1229_v25 = vshll.u32 %v12961_v17, 16  ;;  %13305 = vmatprep.mubr.msk.bf16.mxu1 %vm15223_vm2, %v15221_v22  ;;  %v1238_v44 = vld [vmem:[#allocation3 + $0x20] sm:$0xe]  ;;  %13378 = vmatpush3.bf16.msra.mxu1 %v13730_v6 }
 0x131   : > { %v1317_v32 = vrot.slane %v15674_v7, 1  ;;  %v1218_v33 = vshrl.u32 %v12960_v39, 16  ;;  %v1221_v34 = vshll.u32 %v12960_v39, 16  ;;  %v1260_v10 = vrot.slane %v1259_v26, 4  ;;  %1265 = vst [vmem:[#allocation3 + $0x24] sm:$0x8] %v1259_v26  ;;  %13379 = vmatprep.subr.bf16.mxu1 %v15221_v22 }
 0x132   : > { %v12964_v36 = vpack.c.bf16 %v1278_v18, %v1278_v18  ;;  %v1426_v38 = vor.u32 %v1425_v16, %v1421_v2  ;;  %v1430_v40 = vrot.slane %v1428_v42, 1  ;;  %v15704_v41 = vld [vmem:[#allocation3 + $0x10] sm:$0xff]   ;;  %vm19496_vm12 = vsmask.f32 4368  ;;  %v13719_v60 = vld [vmem:[%s19456_s3 + $0x88] sm:$0xff]   ;;  %v13722_v16 = vld [vmem:[%s19456_s3 + $0x90] sm:$0xff]  }
 0x133   : > { %vm19497_vm3 = vsmask.f32 256  ;;  %v1220_v48 = vrot.slane %v1218_v33, 7  ;;  %v1228_v49 = vrot.slane %v1226_v24, 7  ;;  %v1262_v28 = vsel %vm15684_vm10, %v1260_v10, %v1261_v21  ;;  %v15751_v12 = vld [vmem:[#allocation3 + $0x18] sm:$0xff]   ;;  %v13735_v21 = vld [vmem:[%s19456_s3 + $0xf8] sm:$0xff]  }
 0x134   : > { %vm15708_vm0 = vmor %vm19497_vm3, %vm19496_vm12  ;;  %v1289_v50 = vshrl.u32 %v12964_v36, 16  ;;  %v1431_v51 = vsel %vm1419_vm9, %v1426_v38, %v1430_v40  ;;  %v1436_v52 = vshll.u32 %v15704_v41, 16  ;;  %vm19500_vm12 = vsmask.f32 7942  ;;  %13380 = vmatpush3.bf16.msra.mxu1 %v13731_v63  ;;  %v1311_v33 = vld [vmem:[#allocation3 + $0x2c] sm:$0xf] }
 0x135   : > { %vm19501_vm3 = vcmask 1043457   ;;  %v12965_v55 = vpack.c.bf16 %v1279_v23, %v1279_v23  ;;  %13254 = vmatmul.mubr.bf16.vlgmr.msra.gmra.mrb[16].mxu0 %v1431_v51  ;;  %v1223_v56 = vor.u32 %v1221_v34, %v1220_v48  ;;  %v1224_v57 = vrot.slane %v1220_v48, 4  ;;  %13381 = vmatprep.subr.bf16.mxu1 %v15221_v22  ;;  %v15833_v14 = vld [vmem:[#allocation3 + $0x14] sm:$0xff]  }
 0x136   : > { %vm15722_vm1 = vmand %vm19501_vm3, %vm19500_vm12  ;;  %v1231_v58 = vor.u32 %v1229_v25, %v1228_v49  ;;  %v1021_v59 = vmax.f32 %v956_v31, %v998_v19  ;;  %13326 = vmatpush3.bf16.msra.mxu0 %v13717_v5  ;;  %13257 = vmatprep.mubr.msk.bf16.mxu0 %vm15223_vm2, %v15221_v22  ;;  %v1432_v61 = vshrl.u32 %v15678_v15, 16  ;;  %v1269_v62 = vsel %vm15697_vm7, %v1262_v28, %v1268_v37  ;;  %v1761_v5 = vld [vmem:[#allocation3] sm:$0xe]  ;;  %v13726_v19 = vld [vmem:[%s19456_s3 + $0x98] sm:$0xff]  }
 0x137   : > { %vm19504_vm10 = vcmask 1046528   ;;  %vm19505_vm12 = vsmask.f32 1280  ;;  %13327 = vmatprep.subr.bf16.mxu0 %v15221_v22  ;;  %v1239_v3 = vsel %vm15722_vm1, %v1223_v56, %v1238_v44  ;;  %1270 = vst [vmem:[#allocation3 + $0x28] sm:$0xf] %v1269_v62  ;;  %v1291_v4 = vrot.slane %v1289_v50, 6  ;;  %13306 = vmatmul.mubr.bf16.gmra.mrb[24].mxu1 %v15704_v41 }
 0x138   : > { %v1319_v0 = vsel %vm19504_vm10, %v1317_v32, %v15566_v46  ;;  %vm15738_vm3 = vmor %vm19505_vm12, %vm1286_vm8  ;;  %v1232_v2 = vsel %vm15708_vm0, %v1224_v57, %v1231_v58  ;;  %v1292_v6 = vshll.u32 %v12964_v36, 16  ;;  %v1434_v9 = vor.u32 %v1432_v61, %v1430_v40  ;;  %1240 = vst [vmem:[#allocation3 + $0x20] sm:$0xe] %v1239_v3  ;;  %13309 = vmatprep.mubr.msk.bf16.mxu1 %vm15223_vm2, %v15221_v22  ;;  %v13733_v56 = vld [vmem:[%s19456_s3 + $0xa8] sm:$0xff]  }
 0x139   : > { %v1438_v11 = vrot.slane %v1436_v52, 1  ;;  %1241 = vst [vmem:[#allocation3 + $0x24] sm:$0x3] %v1232_v2  ;;  %v1298_v17 = vshrl.u32 %v12965_v55, 16  ;;  %v1301_v18 = vshll.u32 %v12965_v55, 16  ;;  %vm19508_vm1 = vcmask 1043456   ;;  %13382 = vmatpush3.bf16.msra.mxu1 %v13734_v8 }
 0x13a   : > { %vm15758_vm8 = vmand %vm19508_vm1, %vm1309_vm5  ;;  %v1294_v20 = vrot.slane %v1292_v6, 7  ;;  %v1322_v26 = vmax.f32 %v1021_v59, %v1319_v0  ;;  %13328 = vmatpush3.bf16.msra.mxu0 %v13719_v60  ;;  %13383 = vmatprep.subr.bf16.mxu1 %v15221_v22  ;;  %v1440_v10 = vshrl.u32 %v15704_v41, 16  ;;  %v1444_v36 = vshll.u32 %v15751_v12, 16  ;;  %v1337_v59 = vld [vmem:[#allocation3 + $0x34] sm:$0x7]  ;;  %v13736_v0 = vld [vmem:[%s19456_s3 + $0xb0] sm:$0xff]  }
 0x13b   : > { %v1300_v23 = vrot.slane %v1298_v17, 6  ;;  %v1303_v42 = vrot.slane %v1301_v18, 7  ;;  %13329 = vmatprep.subr.bf16.mxu0 %v15221_v22  ;;  %v1439_v30 = vsel %vm1419_vm9, %v1434_v9, %v1438_v11  ;;  %v11148_v44 = vcombine.low %v1761_v5, %v15592_v35  ;;  %v13729_v35 = vld [vmem:[%s19456_s3 + $0xa0] sm:$0xff]   ;;  %vm19511_vm5 = vmmov %vm19504_vm10  ;;  %v15826_v6 = vld [vmem:[#allocation3 + $0x8] sm:$0xf] }
 0x13c   : > { %v1295_v24 = vor.u32 %v1294_v20, %v1291_v4  ;;  %v12966_v25 = vpack.c.bf16 %v1322_v26, %v1322_v26  ;;  %v1442_v48 = vor.u32 %v1440_v10, %v1438_v11  ;;  %v1788_v28 = vrot.slane %v15678_v15, 1  ;;  %v13740_v8 = vld [vmem:[%s19456_s3 + $0xb8] sm:$0xff]   ;;  %vm19513_vm10 = vmmov %vm19511_vm5 }
 0x13d   : > { %v1304_v31 = vor.u32 %v1303_v42, %v1300_v23  ;;  %13258 = vmatmul.mubr.bf16.gmra.mrb[20].mxu0 %v1439_v30  ;;  %13384 = vmatpush3.bf16.msra.mxu1 %v13735_v21  ;;  %v1787_v50 = vrot.slane %v11148_v44, 1  ;;  %v1446_v63 = vrot.slane %v1444_v36, 1  ;;  %v1323_v51 = vmax.f32 %v15674_v7, %v15566_v46  ;;  %v15831_v9 = vld [vmem:[#allocation3 + $0xc] sm:$0xff]   ;;  %vm19514_vm12 = vmmov %vm19511_vm5  ;;  %v13906_v45 = vld [vmem:[%s19458_s5 + $0xc] ss:$16 sps:$4 sm:$0xff]  }
 0x13e   : > { %v1296_v32 = vrot.slane %v1295_v24, 4  ;;  %v1330_v34 = vrot.slane %v12966_v25, 6  ;;  %13330 = vmatpush3.bf16.msra.mxu0 %v13722_v16  ;;  %13261 = vmatprep.mubr.msk.bf16.mxu0 %vm15223_vm2, %v15221_v22  ;;  %v1448_v57 = vshrl.u32 %v15751_v12, 16  ;;  %v1956_v16 = vld [vmem:[#allocation3 + $0x4] sm:$0xe]  ;;  %v2265_v23 = vrot.slane %v15831_v9, 2 }
 0x13f   : > { %v1306_v37 = vrot.slane %v1304_v31, 4  ;;  %13331 = vmatprep.subr.bf16.mxu0 %v15221_v22  ;;  %13310 = vmatmul.mubr.bf16.gmra.mrb[28].mxu1 %v15751_v12  ;;  %v15801_v54 = vsel %vm19511_vm5, %v1787_v50, %v1788_v28  ;;  %v1447_v55 = vsel %vm1419_vm9, %v1442_v48, %v1446_v63  ;;  %v12967_v7 = vpack.c.bf16 %v1323_v51, %v1323_v51  ;;  %v15838_v17 = vld [vmem:[#allocation3 + $0x1c] sm:$0xff]  }
 0x140   : > { %v15778_v38 = vld [vmem:[#allocation3 + $0x20] sm:$0xff]   ;;  %v1305_v40 = vsel %vm15738_vm3, %v1296_v32, %v1304_v31  ;;  %1336 = vst [vmem:[#allocation3 + $0x30] sm:$0xc] %v1330_v34  ;;  %13457 = vmatprep.subr.bf16.mxu1 %v15221_v22  ;;  %13313 = vmatprep.mubr.msk.bf16.mxu1 %vm15223_vm2, %v15221_v22  ;;  %v1331_v46 = vrot.slane %v1330_v34, 4  ;;  %v1450_v62 = vor.u32 %v1448_v57, %v1446_v63  ;;  %v2267_v42 = vrot.slane %v15833_v14, 2  ;;  %vm19515_vm3 = vmmov %vm19511_vm5 }
 0x141   : > { %v1312_v49 = vsel %vm15758_vm8, %v1305_v40, %v1311_v33  ;;  %1314 = vst [vmem:[#allocation3 + $0x30] sm:$0x1] %v1306_v37  ;;  %v1452_v52 = vshll.u32 %v15778_v38, 16  ;;  %v1332_v61 = vrot.slane %v12967_v7, 6  ;;  %v1456_v11 = vshrl.u32 %v15778_v38, 16  ;;  %v15842_v26 = vld [vmem:[#allocation3 + $0x24] sm:$0xff]   ;;  %vm19516_vm1 = vmmov %vm19515_vm3 }
 0x142   : > { %1313 = vst [vmem:[#allocation3 + $0x2c] sm:$0xf] %v1312_v49  ;;  %13332 = vmatpush3.bf16.msra.mxu0 %v13726_v19  ;;  %v11174_v21 = vcombine.low %v1956_v16, %v15826_v6  ;;  %v2029_v5 = vshrl.u32 %v15831_v9, 16  ;;  %v2032_v24 = vshll.u32 %v15831_v9, 16  ;;  %v2269_v19 = vrot.slane %v15838_v17, 2 }
 0x143   : > { %13333 = vmatprep.subr.bf16.mxu0 %v15221_v22  ;;  %v1454_v58 = vrot.slane %v1452_v52, 1  ;;  %v1333_v1 = vsel %vm15546_vm6, %v1331_v46, %v1332_v61  ;;  %vm2263_vm6 = vcmask 1045504   ;;  %v2271_v37 = vrot.slane %v15842_v26, 2  ;;  %v15910_v16 = vld [vmem:[#allocation3 + $0x24] sm:$0xf] }
 0x144   : > { %v1338_v2 = vsel %vm15562_vm13, %v1333_v1, %v1337_v59  ;;  %v15858_v31 = vsel %vm2263_vm6, %v2265_v23, %v2267_v42  ;;  %v2021_v32 = vshrl.u32 %v11174_v21, 16  ;;  %v2024_v33 = vshll.u32 %v11174_v21, 16  ;;  %v13749_v1 = vld [vmem:[%s19456_s3 + $0x148] sm:$0xff]   ;;  %v13751_v21 = vld [vmem:[%s19456_s3 + $0x150] sm:$0xff]  }
 0x145   : > { %13262 = vmatmul.mubr.bf16.gmra.mrb[24].mxu0 %v1447_v55  ;;  %v1455_v3 = vsel %vm1419_vm9, %v1450_v62, %v1454_v58  ;;  %1339 = vst [vmem:[#allocation3 + $0x34] sm:$0x7] %v1338_v2  ;;  %v1458_v18 = vor.u32 %v1456_v11, %v1454_v58  ;;  %v15865_v36 = vsel %vm2263_vm6, %v2267_v42, %v2269_v19  ;;  %v2031_v40 = vrot.slane %v2029_v5, 1  ;;  %v13747_v58 = vld [vmem:[%s19456_s3 + $0x140] sm:$0xff]   ;;  %v15899_v2 = vld [vmem:[#allocation3 + $0xc] sm:$0xf] }
 0x146   : > { %13265 = vmatprep.mubr.msk.bf16.mxu0 %vm15223_vm2, %v15221_v22  ;;  %13334 = vmatpush3.bf16.msra.mxu0 %v13729_v35  ;;  %v2034_v44 = vrot.slane %v2032_v24, 2  ;;  %v15873_v49 = vsel %vm2263_vm6, %v2269_v19, %v2271_v37  ;;  %v2023_v63 = vrot.slane %v2021_v32, 1  ;;  %v2026_v35 = vrot.slane %v2024_v33, 2  ;;  %v15908_v11 = vld [vmem:[#allocation3 + $0x20] sm:$0xf] }
 0x147   : > { %13335 = vmatprep.subr.bf16.mxu0 %v15221_v22  ;;  %13314 = vmatmul.mubr.bf16.gmra.mrb[32].mxu1 %v15778_v38  ;;  %v2038_v52 = vshrl.u32 %v15833_v14, 16  ;;  %v2041_v55 = vshll.u32 %v15833_v14, 16  ;;  %vm2019_vm7 = vsmask.f32 6400  ;;  %v15917_v42 = vld [vmem:[#allocation3 + $0x18] sm:$0xf] }
 0x148   : > { %13317 = vmatprep.mubr.msk.bf16.mxu1 %vm15223_vm2, %v15221_v22  ;;  %v13732_v20 = vld [vmem:[#allocation3 + $0x30] ss:$0 sps:$4 sm:$0x33]   ;;  %v2035_v46 = vor.u32 %v2034_v44, %v2031_v40  ;;  %v2027_v57 = vor.u32 %v2026_v35, %v2023_v63  ;;  %v15921_v19 = vld [vmem:[#allocation3 + $0x1c] sm:$0xf] }
 0x149   : > { %v15812_v60 = vld [vmem:[#allocation3 + $0x28] sm:$0xff]   ;;  %v1468_v10 = vshll.u32 %v13732_v20, 16  ;;  %v2040_v59 = vrot.slane %v2038_v52, 1  ;;  %v2043_v61 = vrot.slane %v2041_v55, 2  ;;  %v15925_v33 = vld [vmem:[#allocation3 + $0x30] sm:$0xf] }
 0x14a   : > { %13336 = vmatpush3.bf16.msra.mxu0 %v13733_v56  ;;  %v1460_v4 = vshll.u32 %v15812_v60, 16  ;;  %v15853_v30 = vld [vmem:[#allocation3 + $0x2c] sm:$0xff]   ;;  %v1464_v34 = vshrl.u32 %v15812_v60, 16  ;;  %v2036_v62 = vsel %vm2019_vm7, %v2027_v57, %v2035_v46  ;;  %v15923_v32 = vld [vmem:[#allocation3 + $0x28] sm:$0xf]  ;;  %v13743_v35 = vld [vmem:[%s19456_s3 + $0x100] sm:$0xff]  }
 0x14b   : > { %13337 = vmatprep.subr.bf16.mxu0 %v15221_v22  ;;  %v2273_v50 = vrot.slane %v15853_v30, 2  ;;  %v1470_v51 = vrot.slane %v1468_v10, 1  ;;  %v11313_v63 = vcombine.low %v15910_v16, %v15923_v32  ;;  %v2056_v57 = vshrl.u32 %v15842_v26, 16 }
 0x14c   : > { %v1462_v39 = vrot.slane %v1460_v4, 1  ;;  %v2044_v4 = vor.u32 %v2043_v61, %v2040_v59  ;;  %v13756_v59 = vld [vmem:[%s19456_s3 + $0x160] sm:$0xff]   ;;  %v13745_v61 = vld [vmem:[%s19456_s3 + $0x108] sm:$0xff]   ;;  %vm2450_vm8 = vsmask.f32 5376 }
 0x14d   : > { %13266 = vmatmul.mubr.bf16.gmra.mrb[28].mxu0 %v1455_v3  ;;  %v15883_v56 = vsel %vm2263_vm6, %v2271_v37, %v2273_v50  ;;  %v15903_v3 = vld [vmem:[#allocation3 + $0x14] sm:$0xf]  ;;  %v2471_v9 = vrot.slane %v2056_v57, 2 }
 0x14e   : > { %13269 = vmatprep.mubr.msk.bf16.mxu0 %vm15223_vm2, %v15221_v22  ;;  %13338 = vmatpush3.bf16.msra.mxu0 %v13736_v0  ;;  %v1463_v25 = vsel %vm1419_vm9, %v1458_v18, %v1462_v39  ;;  %v1466_v48 = vor.u32 %v1464_v34, %v1462_v39  ;;  %v1472_v0 = vshrl.u32 %v13732_v20, 16  ;;  %v2047_v39 = vshrl.u32 %v15838_v17, 16 }
 0x14f   : > { %13339 = vmatprep.subr.bf16.mxu0 %v15221_v22  ;;  %13318 = vmatmul.mubr.bf16.gmra.mrb[36].mxu1 %v15812_v60  ;;  %v2045_v10 = vsel %vm2019_vm7, %v2035_v46, %v2044_v4  ;;  %v11311_v37 = vcombine.low %v15903_v3, %v15917_v42 }
 0x150   : > { %13321 = vmatprep.mubr.msk.bf16.mxu1 %vm15223_vm2, %v15221_v22  ;;  %v1471_v7 = vsel %vm1419_vm9, %v1466_v48, %v1470_v51  ;;  %v1474_v18 = vor.u32 %v1472_v0, %v1470_v51  ;;  %v2049_v40 = vrot.slane %v2047_v39, 1  ;;  %v11312_v48 = vcombine.low %v15921_v19, %v15908_v11  ;;  %v13753_v51 = vld [vmem:[%s19456_s3 + $0x158] sm:$0xff]   ;;  %vm19512_vm9 = vmmov %vm19511_vm5 }
 0x151   : > { %v2058_v0 = vrot.slane %v2056_v57, 1  ;;  %vm2897_vm5 = vsmask.f32 4352 }
 0x152   : > { %13340 = vmatpush3.bf16.msra.mxu0 %v13740_v8  ;;  %v15906_v8 = vld [vmem:[#allocation3 + $0x10] sm:$0xf] }
 0x153   : > { %13413 = vmatprep.subr.bf16.mxu0 %v15221_v22  ;;  %v11310_v34 = vcombine.low %v15899_v2, %v15906_v8 }
 0x155   : > { %13270 = vmatmul.mubr.bf16.gmra.mrb[32].mxu0 %v1463_v25  ;;  %v15919_v25 = vld [vmem:[#allocation3 + $0x2c] sm:$0xf] }
 0x156   : > { %13273 = vmatprep.mubr.msk.bf16.mxu0 %vm15223_vm2, %v15221_v22  ;;  %v11314_v46 = vcombine.low %v15919_v25, %v15925_v33 }
 0x157   : > { %13322 = vmatmul.mubr.bf16.gmra.mrb[40].mxu1 %v13732_v20  ;;  %v2050_v20 = vshll.u32 %v15838_v17, 16  ;;  %v13774_v17 = vld [vmem:[%s19456_s3 + $0x1e0] sm:$0xff]  }
 0x158   : > { %13385 = vmatprep.mubr.msk.bf16.mxu1 %vm15223_vm2, %v15221_v22 }
 0x159   : > { %v2052_v44 = vrot.slane %v2050_v20, 2 }
 0x15d   : > { %13274 = vmatmul.mubr.bf16.gmra.mrb[36].mxu0 %v1471_v7  ;;  %v2053_v7 = vor.u32 %v2052_v44, %v2049_v40  ;;  %v13759_v40 = vld [vmem:[%s19456_s3 + $0x170] sm:$0xff]  }
 0x15e   : > { %13277 = vmatprep.mubr.msk.bf16.mxu0 %vm15223_vm2, %v15221_v22 }
 0x15f   : > { %13386 = vmatmul.mubr.bf16.vlgmr.msra.gmra.mrb[44].mxu1 %v2036_v62  ;;  %v2054_v62 = vsel %vm2019_vm7, %v2044_v4, %v2053_v7  ;;  %v13757_v4 = vld [vmem:[%s19456_s3 + $0x168] sm:$0xff]  }
 0x160   : > { %13389 = vmatprep.mubr.msk.bf16.mxu1 %vm15223_vm2, %v15221_v22  ;;  %13458 = vmatpush3.bf16.msra.mxu1 %v13747_v58  ;;  %v2059_v58 = vshll.u32 %v15842_v26, 16 }
 0x161   : > { %13459 = vmatprep.subr.bf16.mxu1 %v15221_v22 }
 0x164   : > { %13460 = vmatpush3.bf16.msra.mxu1 %v13749_v1  ;;  %v2061_v1 = vrot.slane %v2059_v58, 2 }
 0x165   : > { %13278 = vmatmul.mubr.bf16.gmra.mrb[40].mxu0 %v1474_v18  ;;  %13461 = vmatprep.subr.bf16.mxu1 %v15221_v22  ;;  %v13748_v18 = vld [vmem:[%s19456_s3 + $0x110] sm:$0xff]  }
 0x166   : > { %13341 = vmatprep.mubr.msk.bf16.mxu0 %vm15223_vm2, %v15221_v22 }
 0x167   : > { %13390 = vmatmul.mubr.bf16.gmra.mrb[48].mxu1 %v2045_v10  ;;  %v2068_v10 = vshll.u32 %v15853_v30, 16 }
 0x168   : > { %13393 = vmatprep.mubr.msk.bf16.mxu1 %vm15223_vm2, %v15221_v22  ;;  %13462 = vmatpush3.bf16.msra.mxu1 %v13751_v21  ;;  %v2062_v21 = vor.u32 %v2061_v1, %v2058_v0 }
 0x169   : > { %13463 = vmatprep.subr.bf16.mxu1 %v15221_v22  ;;  %v2070_v15 = vrot.slane %v2068_v10, 2 }
 0x16c   : > { %13464 = vmatpush3.bf16.msra.mxu1 %v13753_v51  ;;  %v13754_v51 = vld [vmem:[#allocation3 + $0x34] ss:$0 sps:$4 sm:$0x77]  }
 0x16d   : > { %13342 = vmatmul.mubr.bf16.vlgmr.msra.gmra.mrb[44].mxu0 %v15801_v54  ;;  %13465 = vmatprep.subr.bf16.mxu1 %v15221_v22  ;;  %v1790_v54 = vrot.slane %v15704_v41, 1  ;;  %v2065_v41 = vshrl.u32 %v15853_v30, 16  ;;  %v2074_v1 = vshrl.u32 %v13754_v51, 16 }
 0x16e   : > { %13414 = vmatpush3.bf16.msra.mxu0 %v13743_v35  ;;  %13345 = vmatprep.mubr.msk.bf16.mxu0 %vm15223_vm2, %v15221_v22  ;;  %v13752_v35 = vld [vmem:[%s19456_s3 + $0x118] sm:$0xff]  }
 0x16f   : > { %13415 = vmatprep.subr.bf16.mxu0 %v15221_v22  ;;  %13394 = vmatmul.mubr.bf16.gmra.mrb[52].mxu1 %v2054_v62  ;;  %v1791_v44 = vsel %vm19512_vm9, %v1788_v28, %v1790_v54  ;;  %v13755_v28 = vld [vmem:[%s19456_s3 + $0x120] sm:$0xff]   ;;  %v13761_v62 = vld [vmem:[%s19456_s3 + $0x178] sm:$0xff]  }
 0x170   : > { %13397 = vmatprep.mubr.msk.bf16.mxu1 %vm15223_vm2, %v15221_v22  ;;  %13466 = vmatpush3.bf16.msra.mxu1 %v13756_v59  ;;  %v2063_v59 = vsel %vm2019_vm7, %v2053_v7, %v2062_v21  ;;  %v1792_v7 = vrot.slane %v15751_v12, 1 }
 0x171   : > { %13467 = vmatprep.subr.bf16.mxu1 %v15221_v22 }
 0x172   : > { %13416 = vmatpush3.bf16.msra.mxu0 %v13745_v61  ;;  %v2067_v61 = vrot.slane %v2065_v41, 1 }
 0x173   : > { %13417 = vmatprep.subr.bf16.mxu0 %v15221_v22 }
 0x174   : > { %13468 = vmatpush3.bf16.msra.mxu1 %v13757_v4  ;;  %v2071_v0 = vor.u32 %v2070_v15, %v2067_v61  ;;  %v1793_v4 = vsel %vm19513_vm10, %v1790_v54, %v1792_v7  ;;  %v1794_v54 = vrot.slane %v15778_v38, 1  ;;  %v13763_v61 = vld [vmem:[%s19456_s3 + $0x138] sm:$0xff]   ;;  %v2238_v15 = vld [vmem:[#allocation3 + $0x4] sm:$0xc] }
 0x175   : > { %13346 = vmatmul.mubr.bf16.gmra.mrb[48].mxu0 %v1791_v44  ;;  %13469 = vmatprep.subr.bf16.mxu1 %v15221_v22  ;;  %v13758_v44 = vld [vmem:[%s19456_s3 + $0x128] sm:$0xff]  }
 0x176   : > { %13418 = vmatpush3.bf16.msra.mxu0 %v13748_v18  ;;  %13349 = vmatprep.mubr.msk.bf16.mxu0 %vm15223_vm2, %v15221_v22  ;;  %v2077_v18 = vshll.u32 %v13754_v51, 16  ;;  %v2072_v12 = vsel %vm2019_vm7, %v2062_v21, %v2071_v0  ;;  %v13762_v51 = vld [vmem:[%s19456_s3 + $0x130] sm:$0xff]   ;;  %v1795_v21 = vsel %vm19514_vm12, %v1792_v7, %v1794_v54  ;;  %v13760_v7 = vld [vmem:[#allocation3 + $0x30] ss:$0 sps:$4 sm:$0x77]  }
 0x177   : > { %13419 = vmatprep.subr.bf16.mxu0 %v15221_v22  ;;  %13398 = vmatmul.mubr.bf16.gmra.mrb[56].mxu1 %v2063_v59 }
 0x178   : > { %13401 = vmatprep.mubr.msk.bf16.mxu1 %vm15223_vm2, %v15221_v22  ;;  %13470 = vmatpush3.bf16.msra.mxu1 %v13759_v40  ;;  %v2076_v40 = vrot.slane %v2074_v1, 1 }
 0x179   : > { %13471 = vmatprep.subr.bf16.mxu1 %v15221_v22 }
 0x17a   : > { %13420 = vmatpush3.bf16.msra.mxu0 %v13752_v35  ;;  %v2079_v35 = vrot.slane %v2077_v18, 2 }
 0x17b   : > { %13421 = vmatprep.subr.bf16.mxu0 %v15221_v22 }
 0x17c   : > { %13472 = vmatpush3.bf16.msra.mxu1 %v13761_v62  ;;  %v2080_v59 = vor.u32 %v2079_v35, %v2076_v40  ;;  %v11205_v62 = vcombine.low %v2238_v15, %v15826_v6  ;;  %v2460_v6 = vrot.slane %v2032_v24, 3  ;;  %v13766_v35 = vld [vmem:[%s19456_s3 + $0x1c0] sm:$0xff]   ;;  %v13769_v15 = vld [vmem:[%s19456_s3 + $0x1d0] sm:$0xff]  }
 0x17d   : > { %13350 = vmatmul.mubr.bf16.gmra.mrb[52].mxu0 %v1793_v4  ;;  %13545 = vmatprep.subr.bf16.mxu1 %v15221_v22 }
 0x17e   : > { %13353 = vmatprep.mubr.msk.bf16.mxu0 %vm15223_vm2, %v15221_v22  ;;  %13422 = vmatpush3.bf16.msra.mxu0 %v13755_v28  ;;  %v2081_v38 = vsel %vm2019_vm7, %v2071_v0, %v2080_v59  ;;  %v1796_v28 = vrot.slane %v15812_v60, 1  ;;  %v2452_v18 = vshrl.u32 %v11205_v62, 16  ;;  %v2455_v4 = vshll.u32 %v11205_v62, 16 }
 0x17f   : > { %13423 = vmatprep.subr.bf16.mxu0 %v15221_v22  ;;  %13402 = vmatmul.mubr.bf16.gmra.mrb[60].mxu1 %v2072_v12  ;;  %v2459_v60 = vrot.slane %v2029_v5, 2  ;;  %v1798_v0 = vrot.slane %v13760_v7, 1  ;;  %v2264_v7 = vrot.slane %v11205_v62, 2  ;;  %v2644_v62 = vld [vmem:[#allocation3 + $0x8] sm:$0x8] }
 0x180   : > { %13405 = vmatprep.mubr.msk.bf16.mxu1 %vm15223_vm2, %v15221_v22  ;;  %v1797_v1 = vsel %vm19515_vm3, %v1794_v54, %v1796_v28  ;;  %v2457_v12 = vrot.slane %v2455_v4, 3  ;;  %v16120_v26 = vcombine.low %v2644_v62, %v15899_v2  ;;  %v15150_v62 = vld [vmem:[#allocation3 + $0x1c] sm:$0xf] }
 0x181   : > { %v2461_v40 = vor.u32 %v2460_v6, %v2459_v60  ;;  %v1799_v54 = vsel %vm19516_vm1, %v1796_v28, %v1798_v0  ;;  %v13764_v28 = vld [vmem:[%s19456_s3 + $0x180] sm:$0xff]   ;;  %v13775_v60 = vld [vmem:[%s19456_s3 + $0x1e8] sm:$0xff]   ;;  %v13767_v6 = vld [vmem:[%s19456_s3 + $0x190] sm:$0xff]  }
 0x182   : > { %13424 = vmatpush3.bf16.msra.mxu0 %v13758_v44  ;;  %v2454_v44 = vrot.slane %v2452_v18, 2  ;;  %v13765_v18 = vld [vmem:[%s19456_s3 + $0x188] sm:$0xff]  }
 0x183   : > { %13425 = vmatprep.subr.bf16.mxu0 %v15221_v22 }
 0x184   : > { %v2458_v5 = vor.u32 %v2457_v12, %v2454_v44  ;;  %v13777_v44 = vld [vmem:[%s19456_s3 + $0x1f0] sm:$0xff]   ;;  %v2475_v12 = vrot.slane %v2065_v41, 2  ;;  %v2902_v41 = vshll.u32 %v16120_v26, 16 }
 0x185   : > { %13354 = vmatmul.mubr.bf16.gmra.mrb[56].mxu0 %v1795_v21  ;;  %v13768_v21 = vld [vmem:[%s19456_s3 + $0x1c8] sm:$0xff]  }
 0x186   : > { %13357 = vmatprep.mubr.msk.bf16.mxu0 %vm15223_vm2, %v15221_v22  ;;  %13426 = vmatpush3.bf16.msra.mxu0 %v13762_v51  ;;  %v2462_v24 = vsel %vm2450_vm8, %v2458_v5, %v2461_v40  ;;  %v2463_v51 = vrot.slane %v2038_v52, 2  ;;  %v2467_v52 = vrot.slane %v2047_v39, 2 }
 0x187   : > { %13427 = vmatprep.subr.bf16.mxu0 %v15221_v22  ;;  %13406 = vmatmul.mubr.bf16.gmra.mrb[64].mxu1 %v2081_v38  ;;  %v13771_v38 = vld [vmem:[%s19456_s3 + $0x1d8] sm:$0xff]  }
 0x188   : > { %13409 = vmatprep.mubr.msk.bf16.mxu1 %vm15223_vm2, %v15221_v22 }
 0x18a   : > { %13428 = vmatpush3.bf16.msra.mxu0 %v13763_v61 }
 0x18b   : > { %13501 = vmatprep.subr.bf16.mxu0 %v15221_v22 }
 0x18d   : > { %13358 = vmatmul.mubr.bf16.gmra.mrb[60].mxu0 %v1797_v1  ;;  %v16089_v1 = vld [vmem:[#allocation3 + $0x34] ss:$0 sps:$4 sm:$0xff]  }
 0x18e   : > { %13361 = vmatprep.mubr.msk.bf16.mxu0 %vm15223_vm2, %v15221_v22  ;;  %v2483_v57 = vshll.u32 %v16089_v1, 16 }
 0x18f   : > { %13410 = vmatmul.mubr.bf16.gmra.mrb[68].mxu1 %v2080_v59  ;;  %v2464_v59 = vrot.slane %v2041_v55, 3  ;;  %v2468_v55 = vrot.slane %v2050_v20, 3  ;;  %v2266_v20 = vsel %vm2263_vm6, %v2264_v7, %v2265_v23  ;;  %v2472_v23 = vrot.slane %v2059_v58, 3 }
 0x190   : > { %13473 = vmatprep.mubr.msk.bf16.mxu1 %vm15223_vm2, %v15221_v22  ;;  %v2485_v5 = vrot.slane %v2483_v57, 3  ;;  %v2904_v7 = vrot.slane %v2902_v41, 4  ;;  %v15152_v57 = vld [vmem:[#allocation3 + $0x24] sm:$0xf]  ;;  %v15154_v41 = vld [vmem:[#allocation3 + $0x28] sm:$0xf] }
 0x191   : > { %v2465_v61 = vor.u32 %v2464_v59, %v2463_v51  ;;  %v2469_v39 = vor.u32 %v2468_v55, %v2467_v52  ;;  %v2473_v58 = vor.u32 %v2472_v23, %v2471_v9  ;;  %v16175_v55 = vcombine.low %v15906_v8, %v15903_v3 }
 0x193   : > { %v2466_v14 = vsel %vm2450_vm8, %v2461_v40, %v2465_v61  ;;  %v2470_v4 = vsel %vm2450_vm8, %v2465_v61, %v2469_v39  ;;  %v2476_v40 = vrot.slane %v2068_v10, 3  ;;  %v2474_v51 = vsel %vm2450_vm8, %v2469_v39, %v2473_v58  ;;  %v13773_v10 = vld [vmem:[%s19456_s3 + $0x1a0] sm:$0xff]  }
 0x195   : > { %13362 = vmatmul.mubr.bf16.gmra.mrb[64].mxu0 %v1799_v54  ;;  %v2477_v59 = vor.u32 %v2476_v40, %v2475_v12 }
 0x196   : > { %13365 = vmatprep.mubr.msk.bf16.mxu0 %vm15223_vm2, %v15221_v22 }
 0x197   : > { %13474 = vmatmul.mubr.bf16.vlgmr.msra.gmra.mrb[72].mxu1 %v2462_v24  ;;  %v2899_v24 = vshrl.u32 %v16120_v26, 16  ;;  %v2478_v61 = vsel %vm2450_vm8, %v2473_v58, %v2477_v59 }
 0x198   : > { %13477 = vmatprep.mubr.msk.bf16.mxu1 %vm15223_vm2, %v15221_v22  ;;  %13546 = vmatpush3.bf16.msra.mxu1 %v13766_v35  ;;  %v13770_v35 = vld [vmem:[%s19456_s3 + $0x198] sm:$0xff]  }
 0x199   : > { %13547 = vmatprep.subr.bf16.mxu1 %v15221_v22 }
 0x19c   : > { %13548 = vmatpush3.bf16.msra.mxu1 %v13768_v21  ;;  %v13776_v21 = vld [vmem:[%s19456_s3 + $0x1a8] sm:$0xff]  }
 0x19d   : > { %13366 = vmatmul.mubr.bf16.gmra.mrb[68].mxu0 %v1798_v0  ;;  %13549 = vmatprep.subr.bf16.mxu1 %v15221_v22  ;;  %v2480_v0 = vshrl.u32 %v16089_v1, 16 }
 0x19e   : > { %13429 = vmatprep.mubr.msk.bf16.mxu0 %vm15223_vm2, %v15221_v22 }
 0x19f   : > { %13478 = vmatmul.mubr.bf16.gmra.mrb[76].mxu1 %v2466_v14  ;;  %v2482_v54 = vrot.slane %v2480_v0, 2  ;;  %v15151_v0 = vld [vmem:[#allocation3 + $0x20] sm:$0xf] }
 0x1a0   : > { %13481 = vmatprep.mubr.msk.bf16.mxu1 %vm15223_vm2, %v15221_v22  ;;  %13550 = vmatpush3.bf16.msra.mxu1 %v13769_v15  ;;  %v13779_v15 = vld [vmem:[%s19456_s3 + $0x1b0] sm:$0xff]   ;;  %v16199_v58 = vcombine.low %v15151_v0, %v15152_v57  ;;  %v13792_v57 = vld [vmem:[%s19456_s3 + $0x220] sm:$0xff]  }
 0x1a1   : > { %13551 = vmatprep.subr.bf16.mxu1 %v15221_v22  ;;  %v2486_v14 = vor.u32 %v2485_v5, %v2482_v54 }
 0x1a2   : > { %v2928_v12 = vshll.u32 %v16199_v58, 16  ;;  %v2716_v0 = vrot.slane %v16199_v58, 3 }
 0x1a3   : > { %v2487_v52 = vsel %vm2450_vm8, %v2477_v59, %v2486_v14  ;;  %v13784_v59 = vld [vmem:[%s19456_s3 + $0x200] sm:$0xff]  }
 0x1a4   : > { %13552 = vmatpush3.bf16.msra.mxu1 %v13771_v38  ;;  %v2907_v38 = vshrl.u32 %v16175_v55, 16  ;;  %v2930_v5 = vrot.slane %v2928_v12, 4 }
 0x1a5   : > { %13430 = vmatmul.mubr.bf16.vlgmr.msra.gmra.mrb[72].mxu0 %v2266_v20  ;;  %13553 = vmatprep.subr.bf16.mxu1 %v15221_v22  ;;  %v2275_v20 = vrot.slane %v16089_v1, 2 }
 0x1a6   : > { %13502 = vmatpush3.bf16.msra.mxu0 %v13764_v28  ;;  %13433 = vmatprep.mubr.msk.bf16.mxu0 %vm15223_vm2, %v15221_v22  ;;  %v2901_v28 = vrot.slane %v2899_v24, 3  ;;  %v2909_v39 = vrot.slane %v2907_v38, 3  ;;  %v15153_v24 = vld [vmem:[#allocation3 + $0x2c] sm:$0xf] }
 0x1a7   : > { %13503 = vmatprep.subr.bf16.mxu0 %v15221_v22  ;;  %13482 = vmatmul.mubr.bf16.gmra.mrb[80].mxu1 %v2470_v4 }
 0x1a8   : > { %13485 = vmatprep.mubr.msk.bf16.mxu1 %vm15223_vm2, %v15221_v22  ;;  %13554 = vmatpush3.bf16.msra.mxu1 %v13774_v17  ;;  %v2905_v9 = vor.u32 %v2904_v7, %v2901_v28 }
 0x1a9   : > { %13555 = vmatprep.subr.bf16.mxu1 %v15221_v22 }
 0x1aa   : > { %13504 = vmatpush3.bf16.msra.mxu0 %v13765_v18  ;;  %v15149_v18 = vld [vmem:[#allocation3 + $0x18] sm:$0xf] }
 0x1ab   : > { %13505 = vmatprep.subr.bf16.mxu0 %v15221_v22  ;;  %v16189_v4 = vcombine.low %v15149_v18, %v15150_v62 }
 0x1ac   : > { %13556 = vmatpush3.bf16.msra.mxu1 %v13775_v60 }
 0x1ad   : > { %13434 = vmatmul.mubr.bf16.gmra.mrb[76].mxu0 %v15858_v31  ;;  %13557 = vmatprep.subr.bf16.mxu1 %v15221_v22  ;;  %v13778_v31 = vld [vmem:[%s19456_s3 + $0x1f8] sm:$0xff]   ;;  %v2916_v60 = vshrl.u32 %v16189_v4, 16  ;;  %v2714_v7 = vrot.slane %v16189_v4, 3 }
 0x1ae   : > { %13506 = vmatpush3.bf16.msra.mxu0 %v13767_v6  ;;  %13437 = vmatprep.mubr.msk.bf16.mxu0 %vm15223_vm2, %v15221_v22  ;;  %v2919_v6 = vshll.u32 %v16189_v4, 16  ;;  %v13790_v4 = vld [vmem:[%s19456_s3 + $0x218] sm:$0xff]  }
 0x1af   : > { %13507 = vmatprep.subr.bf16.mxu0 %v15221_v22  ;;  %13486 = vmatmul.mubr.bf16.gmra.mrb[84].mxu1 %v2474_v51  ;;  %v2918_v30 = vrot.slane %v2916_v60, 3  ;;  %v16208_v51 = vcombine.low %v15154_v41, %v15153_v24  ;;  %v13794_v24 = vld [vmem:[%s19456_s3 + $0x230] sm:$0xff]  }
 0x1b0   : > { %13489 = vmatprep.mubr.msk.bf16.mxu1 %vm15223_vm2, %v15221_v22  ;;  %13558 = vmatpush3.bf16.msra.mxu1 %v13777_v44  ;;  %v2925_v44 = vshrl.u32 %v16199_v58, 16  ;;  %v13793_v58 = vld [vmem:[%s19456_s3 + $0x228] sm:$0xff]  }
 0x1b1   : > { %13559 = vmatprep.subr.bf16.mxu1 %v15221_v22 }
 0x1b2   : > { %13508 = vmatpush3.bf16.msra.mxu0 %v13770_v35  ;;  %v2927_v54 = vrot.slane %v2925_v44, 3 }
 0x1b3   : > { %13509 = vmatprep.subr.bf16.mxu0 %v15221_v22 }
 0x1b4   : > { %13560 = vmatpush3.bf16.msra.mxu1 %v13778_v31  ;;  %v2711_v31 = vrot.slane %v16120_v26, 3  ;;  %v13786_v26 = vld [vmem:[%s19456_s3 + $0x208] sm:$0xff]  }
 0x1b5   : > { %13438 = vmatmul.mubr.bf16.gmra.mrb[80].mxu0 %v15865_v36  ;;  %v13782_v36 = vld [vmem:[%s19456_s3 + $0x1b8] sm:$0xff]  }
 0x1b6   : > { %13441 = vmatprep.mubr.msk.bf16.mxu0 %vm15223_vm2, %v15221_v22  ;;  %13510 = vmatpush3.bf16.msra.mxu0 %v13773_v10  ;;  %v2712_v10 = vrot.slane %v16175_v55, 3 }
 0x1b7   : > { %13511 = vmatprep.subr.bf16.mxu0 %v15221_v22  ;;  %13490 = vmatmul.mubr.bf16.gmra.mrb[88].mxu1 %v2478_v61  ;;  %v2934_v61 = vshrl.u32 %v16208_v51, 16 }
 0x1b8   : > { %13493 = vmatprep.mubr.msk.bf16.mxu1 %vm15223_vm2, %v15221_v22 }
 0x1ba   : > { %13512 = vmatpush3.bf16.msra.mxu0 %v13776_v21  ;;  %v2931_v21 = vor.u32 %v2930_v5, %v2927_v54  ;;  %v2718_v5 = vrot.slane %v16208_v51, 3 }
 0x1bb   : > { %13513 = vmatprep.subr.bf16.mxu0 %v15221_v22 }
 0x1bd   : > { %13442 = vmatmul.mubr.bf16.gmra.mrb[84].mxu0 %v15873_v49  ;;  %v2910_v49 = vshll.u32 %v16175_v55, 16  ;;  %v2936_v55 = vrot.slane %v2934_v61, 3 }
 0x1be   : > { %13445 = vmatprep.mubr.msk.bf16.mxu0 %vm15223_vm2, %v15221_v22  ;;  %13514 = vmatpush3.bf16.msra.mxu0 %v13779_v15  ;;  %v2937_v15 = vshll.u32 %v16208_v51, 16  ;;  %v13795_v51 = vld [vmem:[%s19456_s3 + $0x238] sm:$0xff]  }
 0x1bf   : > { %13515 = vmatprep.subr.bf16.mxu0 %v15221_v22  ;;  %13494 = vmatmul.mubr.bf16.gmra.mrb[92].mxu1 %v2487_v52  ;;  %v2912_v17 = vrot.slane %v2910_v49, 4  ;;  %v15155_v49 = vld [vmem:[#allocation3 + $0x30] sm:$0xf] }
 0x1c0   : > { %13497 = vmatprep.mubr.msk.bf16.mxu1 %vm15223_vm2, %v15221_v22  ;;  %v2939_v38 = vrot.slane %v2937_v15, 4 }
 0x1c1   : > { %v2913_v23 = vor.u32 %v2912_v17, %v2909_v39  ;;  %v13788_v39 = vld [vmem:[%s19456_s3 + $0x210] sm:$0xff]  }
 0x1c2   : > { %13516 = vmatpush3.bf16.msra.mxu0 %v13782_v36  ;;  %v16220_v36 = vld [vmem:[#allocation3 + $0x34] sm:$0xf]  ;;  %v2940_v17 = vor.u32 %v2939_v38, %v2936_v55 }
 0x1c3   : > { %13589 = vmatprep.subr.bf16.mxu0 %v15221_v22  ;;  %v2914_v1 = vsel %vm2897_vm5, %v2905_v9, %v2913_v23  ;;  %v16230_v28 = vcombine.low %v15155_v49, %v16220_v36  ;;  %v16242_v9 = vld [vmem:[#allocation3 + $0x38] sm:$0xf] }
 0x1c5   : > { %13446 = vmatmul.mubr.bf16.gmra.mrb[88].mxu0 %v15883_v56  ;;  %v2276_v56 = vsel %vm2263_vm6, %v2273_v50, %v2275_v20  ;;  %v2921_v50 = vrot.slane %v2919_v6, 4  ;;  %vm2710_vm6 = vcmask 1044480   ;;  %v2946_v18 = vshll.u32 %v16230_v28, 16 }
 0x1c6   : > { %13449 = vmatprep.mubr.msk.bf16.mxu0 %vm15223_vm2, %v15221_v22  ;;  %v2715_v62 = vsel %vm2710_vm6, %v2712_v10, %v2714_v7  ;;  %v2717_v12 = vsel %vm2710_vm6, %v2714_v7, %v2716_v0 }
 0x1c7   : > { %13498 = vmatmul.mubr.bf16.gmra.mrb[96].mxu1 %v2486_v14  ;;  %v2922_v40 = vor.u32 %v2921_v50, %v2918_v30  ;;  %v2713_v14 = vsel %vm2710_vm6, %v2711_v31, %v2712_v10  ;;  %v2948_v6 = vrot.slane %v2946_v18, 4  ;;  %v2719_v10 = vsel %vm2710_vm6, %v2716_v0, %v2718_v5 }
 0x1c8   : > { %13561 = vmatprep.mubr.msk.bf16.mxu1 %vm15223_vm2, %v15221_v22 }
 0x1c9   : > { %v2923_v35 = vsel %vm2897_vm5, %v2913_v23, %v2922_v40  ;;  %v2932_v52 = vsel %vm2897_vm5, %v2922_v40, %v2931_v21  ;;  %v2657_v23 = vld [vmem:[#allocation3 + $0x3c] sm:$0x1] }
 0x1cd   : > { %13450 = vmatmul.mubr.bf16.gmra.mrb[92].mxu0 %v2276_v56  ;;  %v2941_v56 = vsel %vm2897_vm5, %v2931_v21, %v2940_v17 }
 0x1ce   : > { %13453 = vmatprep.mubr.msk.bf16.mxu0 %vm15223_vm2, %v15221_v22 }
 0x1cf   : > { %13562 = vmatmul.mubr.bf16.vlgmr.msra.gmra.mrb[100].mxu1 %v2914_v1  ;;  %v16252_v1 = vcombine.low %v16242_v9, %v2657_v23 }
 0x1d0   : > { %13565 = vmatprep.mubr.msk.bf16.mxu1 %vm15223_vm2, %v15221_v22 }
 0x1d1   : > { %v2952_v50 = vshrl.u32 %v16252_v1, 16  ;;  %v2955_v44 = vshll.u32 %v16252_v1, 16 }
 0x1d3   : > { %v2957_v54 = vrot.slane %v2955_v44, 4 }
 0x1d5   : > { %13454 = vmatmul.mubr.bf16.gmra.mrb[96].mxu0 %v2275_v20  ;;  %v2943_v20 = vshrl.u32 %v16230_v28, 16 }
 0x1d6   : > { %13517 = vmatprep.mubr.msk.bf16.mxu0 %vm15223_vm2, %v15221_v22 }
 0x1d7   : > { %13566 = vmatmul.mubr.bf16.gmra.mrb[104].mxu1 %v2923_v35  ;;  %v2945_v60 = vrot.slane %v2943_v20, 3  ;;  %v2954_v35 = vrot.slane %v2952_v50, 3 }
 0x1d8   : > { %13569 = vmatprep.mubr.msk.bf16.mxu1 %vm15223_vm2, %v15221_v22 }
 0x1d9   : > { %v2949_v30 = vor.u32 %v2948_v6, %v2945_v60  ;;  %v2958_v41 = vor.u32 %v2957_v54, %v2954_v35 }
 0x1db   : > { %v2950_v40 = vsel %vm2897_vm5, %v2940_v17, %v2949_v30  ;;  %v2959_v15 = vsel %vm2897_vm5, %v2949_v30, %v2958_v41 }
 0x1dd   : > { %13518 = vmatmul.mubr.bf16.vlgmr.msra.gmra.mrb[100].mxu0 %v2713_v14  ;;  %v2720_v14 = vrot.slane %v16230_v28, 3 }
 0x1de   : > { %13590 = vmatpush3.bf16.msra.mxu0 %v13784_v59  ;;  %13521 = vmatprep.mubr.msk.bf16.mxu0 %vm15223_vm2, %v15221_v22 }
 0x1df   : > { %13591 = vmatprep.subr.bf16.mxu0 %v15221_v22  ;;  %13570 = vmatmul.mubr.bf16.gmra.mrb[108].mxu1 %v2932_v52  ;;  %v2722_v52 = vrot.slane %v16252_v1, 3 }
 0x1e0   : > { %13573 = vmatprep.mubr.msk.bf16.mxu1 %vm15223_vm2, %v15221_v22 }
 0x1e1   : > { %v2723_v49 = vsel %vm2710_vm6, %v2720_v14, %v2722_v52 }
 0x1e2   : > { %13592 = vmatpush3.bf16.msra.mxu0 %v13786_v26  ;;  %v2721_v26 = vsel %vm2710_vm6, %v2718_v5, %v2720_v14 }
 0x1e3   : > { %13593 = vmatprep.subr.bf16.mxu0 %v15221_v22 }
 0x1e5   : > { %13522 = vmatmul.mubr.bf16.gmra.mrb[104].mxu0 %v2715_v62 }
 0x1e6   : > { %13594 = vmatpush3.bf16.msra.mxu0 %v13788_v39  ;;  %13525 = vmatprep.mubr.msk.bf16.mxu0 %vm15223_vm2, %v15221_v22 }
 0x1e7   : > { %13595 = vmatprep.subr.bf16.mxu0 %v15221_v22  ;;  %13574 = vmatmul.mubr.bf16.gmra.mrb[112].mxu1 %v2941_v56 }
 0x1e8   : > { %13577 = vmatprep.mubr.msk.bf16.mxu1 %vm15223_vm2, %v15221_v22 }
 0x1ea   : > { %13596 = vmatpush3.bf16.msra.mxu0 %v13790_v4 }
 0x1eb   : > { %13597 = vmatprep.subr.bf16.mxu0 %v15221_v22 }
 0x1ed   : > { %13526 = vmatmul.mubr.bf16.gmra.mrb[108].mxu0 %v2717_v12 }
 0x1ee   : > { %13529 = vmatprep.mubr.msk.bf16.mxu0 %vm15223_vm2, %v15221_v22  ;;  %13598 = vmatpush3.bf16.msra.mxu0 %v13792_v57 }
 0x1ef   : > { %13599 = vmatprep.subr.bf16.mxu0 %v15221_v22  ;;  %13578 = vmatmul.mubr.bf16.gmra.mrb[116].mxu1 %v2950_v40 }
 0x1f0   : > { %13581 = vmatprep.mubr.msk.bf16.mxu1 %vm15223_vm2, %v15221_v22 }
 0x1f2   : > { %13600 = vmatpush3.bf16.msra.mxu0 %v13793_v58  ;;  %v1707_v31 = vpop.f32.mrb[16].mxu1 }
 0x1f3   : > { %13601 = vmatprep.subr.bf16.mxu0 %v15221_v22  ;;  %v13299_v59 = vpop.f32.mrb[17].mxu1 }
 0x1f4   : > { %v1710_v21 = vpop.f32.mrb[18].mxu1 }
 0x1f5   : > { %13530 = vmatmul.mubr.bf16.gmra.mrb[112].mxu0 %v2719_v10  ;;  %v13300_v61 = vpop.f32.mrb[19].mxu1 }
 0x1f6   : > { %13533 = vmatprep.mubr.msk.bf16.mxu0 %vm15223_vm2, %v15221_v22  ;;  %13602 = vmatpush3.bf16.msra.mxu0 %v13794_v24 }
 0x1f7   : > { %13603 = vmatprep.subr.bf16.mxu0 %v15221_v22  ;;  %13582 = vmatmul.mubr.bf16.gmra.mrb[120].mxu1 %v2959_v15 }
 0x1f8   : > { %13585 = vmatprep.mubr.msk.bf16.mxu1 %vm15223_vm2, %v15221_v22 }
 0x1fa   : > { %13604 = vmatpush3.bf16.msra.mxu0 %v13795_v51 }
 0x1fd   : > { %13534 = vmatmul.mubr.bf16.gmra.mrb[116].mxu0 %v2721_v26 }
 0x1fe   : > { %13537 = vmatprep.mubr.msk.bf16.mxu0 %vm15223_vm2, %v15221_v22 }
 0x1ff   : > { %13586 = vmatmul.mubr.bf16.gmra.mrb[124].mxu1 %v2958_v41 }
 0x200   : > { %3755 = vmatprep.mubr.bf16.mxu1 %v15222_v27 }
 0x202   : > { %v1715_v55 = vpop.f32.mrb[20].mxu1 }
 0x203   : > { %v13303_v38 = vpop.f32.mrb[21].mxu1 }
 0x204   : > { %v1718_v28 = vpop.f32.mrb[22].mxu1 }
 0x205   : > { %13538 = vmatmul.mubr.bf16.gmra.mrb[120].mxu0 %v2723_v49  ;;  %v13304_v7 = vpop.f32.mrb[23].mxu1 }
 0x206   : > { %13541 = vmatprep.mubr.msk.bf16.mxu0 %vm15223_vm2, %v15221_v22 }
 0x208   : > { %v1564_v39 = vpop.f32.mrb[16].mxu0 }
 0x209   : > { %v16297_v17 = vadd.f32 %v1707_v31, %v1564_v39  ;;  %v13255_v20 = vpop.f32.mrb[17].mxu0 }
 0x20a   : > { %v1567_v18 = vpop.f32.mrb[18].mxu0  ;;  %v1723_v4 = vpop.f32.mrb[24].mxu1 }
 0x20b   : > { %v16299_v62 = vadd.f32 %v1710_v21, %v1567_v18  ;;  %v13256_v23 = vpop.f32.mrb[19].mxu0  ;;  %v13307_v56 = vpop.f32.mrb[25].mxu1 }
 0x20c   : > { %v1726_v60 = vpop.f32.mrb[26].mxu1 }
 0x20d   : > { %13542 = vmatmul.mubr.bf16.gmra.mrb[124].mxu0 %v2722_v52  ;;  %v13308_v6 = vpop.f32.mrb[27].mxu1 }
 0x20e   : > { %13605 = vmatprep.mubr.msk.bf16.mxu0 %vm15223_vm2, %v15221_v22 }
 0x210   : > { %v1572_v1 = vpop.f32.mrb[20].mxu0 }
 0x211   : > { %v16303_v0 = vadd.f32 %v1715_v55, %v1572_v1  ;;  %v13259_v57 = vpop.f32.mrb[21].mxu0 }
 0x212   : > { %v1575_v30 = vpop.f32.mrb[22].mxu0  ;;  %v1731_v12 = vpop.f32.mrb[28].mxu1 }
 0x213   : > { %v16305_v50 = vadd.f32 %v1718_v28, %v1575_v30  ;;  %v13260_v44 = vpop.f32.mrb[23].mxu0  ;;  %v13311_v58 = vpop.f32.mrb[29].mxu1 }
 0x214   : > { %v1734_v40 = vpop.f32.mrb[30].mxu1 }
 0x215   : > { %13606 = vmatmul.mubr.bf16.vlgmr.msra.gmra.mrb[128].mxu0 %v11310_v34  ;;  %v13312_v35 = vpop.f32.mrb[31].mxu1 }
 0x216   : > { %13609 = vmatprep.mubr.msk.bf16.mxu0 %vm15223_vm2, %v15221_v22  ;;  %v11315_v35 = vcombine.low %v16220_v36, %v16242_v9 }
 0x218   : > { %v1580_v54 = vpop.f32.mrb[24].mxu0 }
 0x219   : > { %v16312_v5 = vadd.f32 %v1723_v4, %v1580_v54  ;;  %v13263_v24 = vpop.f32.mrb[25].mxu0 }
 0x21a   : > { %v1583_v41 = vpop.f32.mrb[26].mxu0  ;;  %v1739_v59 = vpop.f32.mrb[32].mxu1 }
 0x21b   : > { %v16314_v31 = vadd.f32 %v1726_v60, %v1583_v41  ;;  %v13264_v10 = vpop.f32.mrb[27].mxu0  ;;  %v13315_v21 = vpop.f32.mrb[33].mxu1 }
 0x21c   : > { %v1742_v51 = vpop.f32.mrb[34].mxu1  ;;  %v13802_v10 = vld [vmem:[#allocation3 + $0x3c] ss:$0 sps:$4 sm:$0x33]  }
 0x21d   : > { %13610 = vmatmul.mubr.bf16.gmra.mrb[132].mxu0 %v11311_v37  ;;  %v13316_v2 = vpop.f32.mrb[35].mxu1 }
 0x21e   : > { %13613 = vmatprep.mubr.msk.bf16.mxu0 %vm15223_vm2, %v15221_v22 }
 0x220   : > { %v1588_v8 = vpop.f32.mrb[28].mxu0 }
 0x221   : > { %v16321_v34 = vadd.f32 %v1731_v12, %v1588_v8  ;;  %v13267_v61 = vpop.f32.mrb[29].mxu0 }
 0x222   : > { %v1591_v15 = vpop.f32.mrb[30].mxu0  ;;  %v1747_v52 = vpop.f32.mrb[36].mxu1 }
 0x223   : > { %v16323_v14 = vadd.f32 %v1734_v40, %v1591_v15  ;;  %v13268_v26 = vpop.f32.mrb[31].mxu0  ;;  %v13319_v55 = vpop.f32.mrb[37].mxu1 }
 0x224   : > { %v1750_v38 = vpop.f32.mrb[38].mxu1 }
 0x225   : > { %13614 = vmatmul.mubr.bf16.gmra.mrb[136].mxu0 %v11312_v48  ;;  %v13320_v3 = vpop.f32.mrb[39].mxu1 }
 0x226   : > { %13617 = vmatprep.mubr.msk.bf16.mxu0 %vm15223_vm2, %v15221_v22 }
 0x228   : > { %v1596_v42 = vpop.f32.mrb[32].mxu0 }
 0x229   : > { %v16330_v37 = vadd.f32 %v1739_v59, %v1596_v42  ;;  %v13271_v49 = vpop.f32.mrb[33].mxu0 }
 0x22a   : > { %v1599_v28 = vpop.f32.mrb[34].mxu0  ;;  %v1755_v20 = vpop.f32.mrb[40].mxu1 }
 0x22b   : > { %v16332_v7 = vadd.f32 %v1742_v51, %v1599_v28  ;;  %v13272_v39 = vpop.f32.mrb[35].mxu0  ;;  %v13323_v18 = vpop.f32.mrb[41].mxu1 }
 0x22c   : > { %v1758_v23 = vpop.f32.mrb[42].mxu1 }
 0x22d   : > { %13618 = vmatmul.mubr.bf16.gmra.mrb[140].mxu0 %v11313_v63  ;;  %v13324_v11 = vpop.f32.mrb[43].mxu1 }
 0x22e   : > { %13621 = vmatprep.mubr.msk.bf16.mxu0 %vm15223_vm2, %v15221_v22 }
 0x230   : > { %v1604_v19 = vpop.f32.mrb[36].mxu0 }
 0x231   : > { %v16339_v48 = vadd.f32 %v1747_v52, %v1604_v19  ;;  %v13275_v4 = vpop.f32.mrb[37].mxu0 }
 0x232   : > { %v1607_v56 = vpop.f32.mrb[38].mxu0  ;;  %v2171_v1 = vpop.f32.mrb[44].mxu1 }
 0x233   : > { %v16341_v60 = vadd.f32 %v1750_v38, %v1607_v56  ;;  %v13276_v6 = vpop.f32.mrb[39].mxu0  ;;  %v13387_v57 = vpop.f32.mrb[45].mxu1 }
 0x234   : > { %v2174_v30 = vpop.f32.mrb[46].mxu1 }
 0x235   : > { %13622 = vmatmul.mubr.bf16.gmra.mrb[144].mxu0 %v11314_v46  ;;  %v13388_v16 = vpop.f32.mrb[47].mxu1 }
 0x236   : > { %13625 = vmatprep.mubr.msk.bf16.mxu0 %vm15223_vm2, %v15221_v22 }
 0x238   : > { %v1612_v32 = vpop.f32.mrb[40].mxu0 }
 0x239   : > { %v16348_v63 = vadd.f32 %v1755_v20, %v1612_v32  ;;  %v13279_v44 = vpop.f32.mrb[41].mxu0 }
 0x23a   : > { %v1615_v12 = vpop.f32.mrb[42].mxu0  ;;  %v2179_v40 = vpop.f32.mrb[48].mxu1 }
 0x23b   : > { %v13280_v58 = vpop.f32.mrb[43].mxu0  ;;  %v13391_v54 = vpop.f32.mrb[49].mxu1 }
 0x23c   : > { %v2182_v24 = vpop.f32.mrb[50].mxu1 }
 0x23d   : > { %13626 = vmatmul.mubr.bf16.gmra.mrb[148].mxu0 %v11315_v35  ;;  %v13392_v41 = vpop.f32.mrb[51].mxu1 }
 0x23e   : > { %13629 = vmatprep.mubr.msk.bf16.mxu0 %vm15223_vm2, %v15221_v22  ;;  %vm19517_vm2 = vcmask 1042432  }
 0x23f   : > { %vm19518_vm7 = vmmov %vm19517_vm2 }
 0x240   : > { %v1889_v25 = vpop.f32.mrb[44].mxu0 }
 0x241   : > { %v1943_v33 = vadd.f32 %v1889_v25, %v16297_v17  ;;  %v13343_v46 = vpop.f32.mrb[45].mxu0 }
 0x242   : > { %v1892_v59 = vpop.f32.mrb[46].mxu0  ;;  %v2187_v2 = vpop.f32.mrb[52].mxu1 }
 0x243   : > { %v1944_v21 = vadd.f32 %v1892_v59, %v16299_v62  ;;  %v13344_v51 = vpop.f32.mrb[47].mxu0  ;;  %v16356_v8 = vadd.f32 %v2171_v1, %v1943_v33  ;;  %v13395_v36 = vpop.f32.mrb[53].mxu1 }
 0x244   : > { %v2190_v9 = vpop.f32.mrb[54].mxu1  ;;  %v13805_v51 = vld [vmem:[%s19458_s5 + $0x104] ss:$16 sps:$4 sm:$0xff]  }
 0x245   : > { %13630 = vmatmul.mubr.bf16.gmra.mrb[152].mxu0 %v13802_v10  ;;  %v16358_v61 = vadd.f32 %v2174_v30, %v1944_v21  ;;  %v13396_v15 = vpop.f32.mrb[55].mxu1  ;;  %3723 = vmatprep.subr.bf16.mxu1 %v13805_v51 }
 0x246   : > { %3997 = vmatprep.mubr.bf16.mxu0 %v15222_v27 }
 0x248   : > { %v1897_v22 = vpop.f32.mrb[48].mxu0 }
 0x249   : > { %v1945_v17 = vadd.f32 %v1897_v22, %v16303_v0  ;;  %v13347_v26 = vpop.f32.mrb[49].mxu0 }
 0x24a   : > { %v1900_v52 = vpop.f32.mrb[50].mxu0  ;;  %v2195_v38 = vpop.f32.mrb[56].mxu1 }
 0x24b   : > { %v1946_v55 = vadd.f32 %v1900_v52, %v16305_v50  ;;  %v13348_v62 = vpop.f32.mrb[51].mxu0  ;;  %v16363_v3 = vadd.f32 %v2179_v40, %v1945_v17  ;;  %v13399_v42 = vpop.f32.mrb[57].mxu1 }
 0x24c   : > { %v2198_v49 = vpop.f32.mrb[58].mxu1 }
 0x24d   : > { %v16365_v28 = vadd.f32 %v2182_v24, %v1946_v55  ;;  %v13400_v39 = vpop.f32.mrb[59].mxu1 }
 0x250   : > { %v1905_v20 = vpop.f32.mrb[52].mxu0 }
 0x251   : > { %v1947_v18 = vadd.f32 %v1905_v20, %v16312_v5  ;;  %v13351_v23 = vpop.f32.mrb[53].mxu0 }
 0x252   : > { %v1908_v11 = vpop.f32.mrb[54].mxu0  ;;  %v2203_v4 = vpop.f32.mrb[60].mxu1 }
 0x253   : > { %v1948_v0 = vadd.f32 %v1908_v11, %v16314_v31  ;;  %v13352_v19 = vpop.f32.mrb[55].mxu0  ;;  %v16369_v56 = vadd.f32 %v2187_v2, %v1947_v18  ;;  %v13403_v50 = vpop.f32.mrb[61].mxu1 }
 0x254   : > { %v2206_v6 = vpop.f32.mrb[62].mxu1 }
 0x255   : > { %v16371_v1 = vadd.f32 %v2190_v9, %v1948_v0  ;;  %v13404_v57 = vpop.f32.mrb[63].mxu1 }
 0x258   : > { %v1913_v30 = vpop.f32.mrb[56].mxu0 }
 0x259   : > { %v1949_v16 = vadd.f32 %v1913_v30, %v16321_v34  ;;  %v13355_v32 = vpop.f32.mrb[57].mxu0 }
 0x25a   : > { %v1916_v44 = vpop.f32.mrb[58].mxu0  ;;  %v2211_v58 = vpop.f32.mrb[64].mxu1  ;;  %v13806_v32 = vld [vmem:[%s19458_s5 + $0x120] ss:$16 sps:$4 sm:$0xff]  }
 0x25b   : > { %v1950_v5 = vadd.f32 %v1916_v44, %v16323_v14  ;;  %v13356_v12 = vpop.f32.mrb[59].mxu0  ;;  %v16375_v40 = vadd.f32 %v2195_v38, %v1949_v16  ;;  %v13407_v31 = vpop.f32.mrb[65].mxu1  ;;  %v13803_v14 = vld [vmem:[%s19458_s5 + $0x100] ss:$16 sps:$4 sm:$0xff]  }
 0x25c   : > { %v2214_v35 = vpop.f32.mrb[66].mxu1  ;;  %3724 = vmatpush1.bf16.msra.mxu1 %v13803_v14 }
 0x25d   : > { %v16377_v54 = vadd.f32 %v2198_v49, %v1950_v5  ;;  %v13408_v24 = vpop.f32.mrb[67].mxu1 }
 0x260   : > { %v1921_v41 = vpop.f32.mrb[60].mxu0 }
 0x261   : > { %v1951_v25 = vadd.f32 %v1921_v41, %v16330_v37  ;;  %v13359_v33 = vpop.f32.mrb[61].mxu0 }
 0x262   : > { %v1924_v46 = vpop.f32.mrb[62].mxu0  ;;  %v2219_v59 = vpop.f32.mrb[68].mxu1 }
 0x263   : > { %v1952_v34 = vadd.f32 %v1924_v46, %v16332_v7  ;;  %v13360_v10 = vpop.f32.mrb[63].mxu0  ;;  %v16381_v21 = vadd.f32 %v2203_v4, %v1951_v25  ;;  %v13411_v2 = vpop.f32.mrb[69].mxu1 }
 0x264   : > { %v2222_v36 = vpop.f32.mrb[70].mxu1 }
 0x265   : > { %v16389_v9 = vadd.f32 %v2206_v6, %v1952_v34  ;;  %v13412_v37 = vpop.f32.mrb[71].mxu1 }
 0x268   : > { %v1929_v7 = vpop.f32.mrb[64].mxu0 }
 0x269   : > { %v1953_v15 = vadd.f32 %v1929_v7, %v16339_v48  ;;  %v13363_v22 = vpop.f32.mrb[65].mxu0  ;;  %v13809_v7 = vld [vmem:[%s19458_s5 + $0x140] ss:$16 sps:$4 sm:$0xff]  }
 0x26a   : > { %v1932_v17 = vpop.f32.mrb[66].mxu0  ;;  %v2577_v55 = vpop.f32.mrb[72].mxu1 }
 0x26b   : > { %v1954_v26 = vadd.f32 %v1932_v17, %v16341_v60  ;;  %v13364_v52 = vpop.f32.mrb[67].mxu0  ;;  %v16393_v62 = vadd.f32 %v2211_v58, %v1953_v15  ;;  %v13475_v38 = vpop.f32.mrb[73].mxu1 }
 0x26c   : > { %v2580_v42 = vpop.f32.mrb[74].mxu1 }
 0x26d   : > { %v16395_v49 = vadd.f32 %v2214_v35, %v1954_v26  ;;  %v13476_v39 = vpop.f32.mrb[75].mxu1 }
 0x270   : > { %v1937_v20 = vpop.f32.mrb[68].mxu0 }
 0x271   : > { %v1955_v18 = vadd.f32 %v1937_v20, %v16348_v63  ;;  %v13367_v23 = vpop.f32.mrb[69].mxu0  ;;  %v13808_v63 = vld [vmem:[%s19458_s5 + $0x124] ss:$16 sps:$4 sm:$0xff]  }
 0x272   : > { %v1940_v11 = vpop.f32.mrb[70].mxu0  ;;  %v2585_v48 = vpop.f32.mrb[76].mxu1  ;;  %3725 = vmatprep.subr.bf16.mxu1 %v13808_v63  ;;  %v13823_v63 = vld [vmem:[%s19458_s5 + $0x184] ss:$16 sps:$4 sm:$0xff]  }
 0x273   : > { %v13368_v0 = vpop.f32.mrb[71].mxu0  ;;  %v16398_v19 = vadd.f32 %v2219_v59, %v1955_v18  ;;  %v13479_v4 = vpop.f32.mrb[77].mxu1  ;;  %3726 = vmatpush1.bf16.msra.mxu1 %v13806_v32  ;;  %v13818_v32 = vld [vmem:[%s19458_s5 + $0x20] ss:$16 sps:$4 sm:$0xff]  }
 0x274   : > { %v2588_v60 = vpop.f32.mrb[78].mxu1  ;;  %v13812_v0 = vld [vmem:[%s19458_s5] ss:$16 sps:$4 sm:$0xff]  }
 0x275   : > { %v13480_v50 = vpop.f32.mrb[79].mxu1 }
 0x278   : > { %v2366_v6 = vpop.f32.mrb[72].mxu0 }
 0x279   : > { %v2420_v57 = vadd.f32 %v2366_v6, %v16356_v8  ;;  %v13431_v30 = vpop.f32.mrb[73].mxu0  ;;  %v13817_v6 = vld [vmem:[%s19458_s5 + $0x164] ss:$16 sps:$4 sm:$0xff]  }
 0x27a   : > { %v2369_v16 = vpop.f32.mrb[74].mxu0  ;;  %v2593_v12 = vpop.f32.mrb[80].mxu1  ;;  %v13820_v30 = vld [vmem:[%s19458_s5 + $0x24] ss:$16 sps:$4 sm:$0xff]  }
 0x27b   : > { %v2421_v44 = vadd.f32 %v2369_v16, %v16358_v61  ;;  %v13432_v5 = vpop.f32.mrb[75].mxu0  ;;  %v16408_v58 = vadd.f32 %v2577_v55, %v2420_v57  ;;  %v13483_v31 = vpop.f32.mrb[81].mxu1 }
 0x27c   : > { %v2596_v35 = vpop.f32.mrb[82].mxu1  ;;  %v13821_v5 = vld [vmem:[%s19458_s5 + $0x180] ss:$16 sps:$4 sm:$0xff]  }
 0x27d   : > { %v16410_v8 = vadd.f32 %v2580_v42, %v2421_v44  ;;  %v13484_v24 = vpop.f32.mrb[83].mxu1 }
 0x280   : > { %v2374_v41 = vpop.f32.mrb[76].mxu0 }
 0x281   : > { %v2422_v25 = vadd.f32 %v2374_v41, %v16363_v3  ;;  %v13435_v33 = vpop.f32.mrb[77].mxu0  ;;  %v13811_v3 = vld [vmem:[%s19458_s5 + $0x144] ss:$16 sps:$4 sm:$0xff]  }
 0x282   : > { %v2377_v46 = vpop.f32.mrb[78].mxu0  ;;  %v2601_v61 = vpop.f32.mrb[84].mxu1  ;;  %3727 = vmatprep.subr.bf16.mxu1 %v13811_v3 }
 0x283   : > { %v2423_v34 = vadd.f32 %v2377_v46, %v16365_v28  ;;  %v13436_v10 = vpop.f32.mrb[79].mxu0  ;;  %v16414_v59 = vadd.f32 %v2585_v48, %v2422_v25  ;;  %v13487_v14 = vpop.f32.mrb[85].mxu1  ;;  %3728 = vmatpush1.bf16.msra.mxu1 %v13809_v7  ;;  %v13824_v25 = vld [vmem:[%s19458_s5 + $0x40] ss:$16 sps:$4 sm:$0xff]   ;;  %v13829_v46 = vld [vmem:[%s19458_s5 + $0x64] ss:$16 sps:$4 sm:$0xff]  }
 0x284   : > { %v2604_v51 = vpop.f32.mrb[86].mxu1  ;;  %3729 = vmatprep.subr.bf16.mxu1 %v13817_v6  ;;  %v13827_v7 = vld [vmem:[%s19458_s5 + $0x60] ss:$16 sps:$4 sm:$0xff]   ;;  %v13844_v6 = vld [vmem:[%s19458_s5 + $0xc4] ss:$16 sps:$4 sm:$0xff]  }
 0x285   : > { %v16416_v2 = vadd.f32 %v2588_v60, %v2423_v34  ;;  %v13488_v36 = vpop.f32.mrb[87].mxu1  ;;  %v13830_v34 = vld [vmem:[%s19458_s5 + $0x1a0] ss:$16 sps:$4 sm:$0xff]  }
 0x288   : > { %v2382_v37 = vpop.f32.mrb[80].mxu0 }
 0x289   : > { %v2424_v28 = vadd.f32 %v2382_v37, %v16369_v56  ;;  %v13439_v15 = vpop.f32.mrb[81].mxu0 }
 0x28a   : > { %v2385_v22 = vpop.f32.mrb[82].mxu0  ;;  %v2609_v52 = vpop.f32.mrb[88].mxu1 }
 0x28b   : > { %v2425_v17 = vadd.f32 %v2385_v22, %v16371_v1  ;;  %v13440_v26 = vpop.f32.mrb[83].mxu0  ;;  %v16426_v55 = vadd.f32 %v2593_v12, %v2424_v28  ;;  %v13491_v38 = vpop.f32.mrb[89].mxu1  ;;  %v13814_v1 = vld [vmem:[%s19458_s5 + $0x4] ss:$16 sps:$4 sm:$0xff]  }
 0x28c   : > { %v2612_v42 = vpop.f32.mrb[90].mxu1  ;;  %3965 = vmatprep.subr.bf16.mxu0 %v13814_v1  ;;  %v13826_v12 = vld [vmem:[%s19458_s5 + $0x44] ss:$16 sps:$4 sm:$0xff]  }
 0x28d   : > { %v16428_v39 = vadd.f32 %v2596_v35, %v2425_v17  ;;  %v13492_v20 = vpop.f32.mrb[91].mxu1  ;;  %3966 = vmatpush1.bf16.msra.mxu0 %v13812_v0  ;;  %v13832_v35 = vld [vmem:[%s19458_s5 + $0x1a4] ss:$16 sps:$4 sm:$0xff]   ;;  %v13833_v17 = vld [vmem:[%s19458_s5 + $0x80] ss:$16 sps:$4 sm:$0xff]  }
 0x28e   : > { %3967 = vmatprep.subr.bf16.mxu0 %v13820_v30  ;;  %v13836_v0 = vld [vmem:[%s19458_s5 + $0xa0] ss:$16 sps:$4 sm:$0xff]   ;;  %v13838_v1 = vld [vmem:[%s19458_s5 + $0xa4] ss:$16 sps:$4 sm:$0xff]  }
 0x290   : > { %v2390_v18 = vpop.f32.mrb[84].mxu0 }
 0x291   : > { %v2426_v23 = vadd.f32 %v2390_v18, %v16375_v40  ;;  %v13443_v11 = vpop.f32.mrb[85].mxu0  ;;  %v13815_v40 = vld [vmem:[%s19458_s5 + $0x160] ss:$16 sps:$4 sm:$0xff]   ;;  %3968 = vmatpush1.bf16.msra.mxu0 %v13818_v32  ;;  %v13847_v32 = vld [vmem:[%s19458_s5 + $0xe4] ss:$16 sps:$4 sm:$0xff]  }
 0x292   : > { %v2393_v56 = vpop.f32.mrb[86].mxu0  ;;  %v2617_v60 = vpop.f32.mrb[92].mxu1  ;;  %3730 = vmatpush1.bf16.msra.mxu1 %v13815_v40  ;;  %3969 = vmatprep.subr.bf16.mxu0 %v13826_v12 }
 0x293   : > { %v2427_v48 = vadd.f32 %v2393_v56, %v16377_v54  ;;  %v13444_v4 = vpop.f32.mrb[87].mxu0  ;;  %v16438_v50 = vadd.f32 %v2601_v61, %v2426_v23  ;;  %v13495_v57 = vpop.f32.mrb[93].mxu1  ;;  %3731 = vmatprep.subr.bf16.mxu1 %v13823_v63 }
 0x294   : > { %v2620_v16 = vpop.f32.mrb[94].mxu1  ;;  %v13839_v4 = vld [vmem:[%s19458_s5 + $0x1c0] ss:$16 sps:$4 sm:$0xff]  }
 0x295   : > { %v16449_v54 = vadd.f32 %v2604_v51, %v2427_v48  ;;  %v13496_v44 = vpop.f32.mrb[95].mxu1  ;;  %3970 = vmatpush1.bf16.msra.mxu0 %v13824_v25 }
 0x296   : > { %3732 = vmatpush1.bf16.msra.mxu1 %v13821_v5  ;;  %3971 = vmatprep.subr.bf16.mxu0 %v13829_v46  ;;  %v13848_v44 = vld [vmem:[%s19458_s5 + $0x1e0] ss:$16 sps:$4 sm:$0xff]   ;;  %v13850_v5 = vld [vmem:[%s19458_s5 + $0x1e4] ss:$16 sps:$4 sm:$0xff]  }
 0x297   : > { %3733 = vmatprep.subr.bf16.mxu1 %v13832_v35  ;;  %v13845_v35 = vld [vmem:[%s19458_s5 + $0xe0] ss:$16 sps:$4 sm:$0xff]   ;;  %v13853_v46 = vld [vmem:[%s19458_s5 + $0x204] ss:$16 sps:$4 sm:$0xff]  }
 0x298   : > { %v2398_v31 = vpop.f32.mrb[88].mxu0 }
 0x299   : > { %v2428_v24 = vadd.f32 %v2398_v31, %v16381_v21  ;;  %v13447_v41 = vpop.f32.mrb[89].mxu0  ;;  %3972 = vmatpush1.bf16.msra.mxu0 %v13827_v7 }
 0x29a   : > { %v2401_v33 = vpop.f32.mrb[90].mxu0  ;;  %v2625_v61 = vpop.f32.mrb[96].mxu1  ;;  %3734 = vmatpush1.bf16.msra.mxu1 %v13830_v34 }
 0x29b   : > { %v2429_v10 = vadd.f32 %v2401_v33, %v16389_v9  ;;  %v13448_v21 = vpop.f32.mrb[91].mxu0  ;;  %v16477_v14 = vadd.f32 %v2609_v52, %v2428_v24  ;;  %v13499_v51 = vpop.f32.mrb[97].mxu1  ;;  %v13835_v9 = vld [vmem:[%s19458_s5 + $0x84] ss:$16 sps:$4 sm:$0xff]  }
 0x29c   : > { %v2628_v36 = vpop.f32.mrb[98].mxu1  ;;  %3973 = vmatprep.subr.bf16.mxu0 %v13835_v9 }
 0x29d   : > { %v16479_v37 = vadd.f32 %v2612_v42, %v2429_v10  ;;  %v13500_v3 = vpop.f32.mrb[99].mxu1  ;;  %3974 = vmatpush1.bf16.msra.mxu0 %v13833_v17  ;;  %v13857_v36 = vld [vmem:[%s19458_s5 + $0x10c] ss:$16 sps:$4 sm:$0xff]  }
 0x29e   : > { %3975 = vmatprep.subr.bf16.mxu0 %v13838_v1 }
 0x2a0   : > { %v2406_v28 = vpop.f32.mrb[92].mxu0 }
 0x2a1   : > { %v2430_v15 = vadd.f32 %v2406_v28, %v16393_v62  ;;  %v13451_v22 = vpop.f32.mrb[93].mxu0  ;;  %3976 = vmatpush1.bf16.msra.mxu0 %v13836_v0 }
 0x2a2   : > { %v2409_v26 = vpop.f32.mrb[94].mxu0  ;;  %v3049_v42 = vpop.f32.mrb[100].mxu1  ;;  %3977 = vmatprep.subr.bf16.mxu0 %v13844_v6 }
 0x2a3   : > { %v2431_v52 = vadd.f32 %v2409_v26, %v16395_v49  ;;  %v13452_v38 = vpop.f32.mrb[95].mxu0  ;;  %v16492_v20 = vadd.f32 %v2617_v60, %v2430_v15  ;;  %v13563_v18 = vpop.f32.mrb[101].mxu1  ;;  %v13841_v60 = vld [vmem:[%s19458_s5 + $0x1c4] ss:$16 sps:$4 sm:$0xff]  }
 0x2a4   : > { %v3052_v23 = vpop.f32.mrb[102].mxu1  ;;  %3735 = vmatprep.subr.bf16.mxu1 %v13841_v60 }
 0x2a5   : > { %v16494_v11 = vadd.f32 %v2620_v16, %v2431_v52  ;;  %v13564_v62 = vpop.f32.mrb[103].mxu1  ;;  %3736 = vmatpush1.bf16.msra.mxu1 %v13839_v4 }
 0x2a6   : > { %3737 = vmatprep.subr.bf16.mxu1 %v13850_v5 }
 0x2a8   : > { %v2414_v56 = vpop.f32.mrb[96].mxu0 }
 0x2a9   : > { %v2432_v49 = vadd.f32 %v2414_v56, %v16398_v19  ;;  %v13455_v48 = vpop.f32.mrb[97].mxu0  ;;  %v13842_v19 = vld [vmem:[%s19458_s5 + $0xc0] ss:$16 sps:$4 sm:$0xff]   ;;  %3738 = vmatpush1.bf16.msra.mxu1 %v13848_v44 }
 0x2aa   : > { %v2417_v40 = vpop.f32.mrb[98].mxu0  ;;  %v3057_v30 = vpop.f32.mrb[104].mxu1  ;;  %3978 = vmatpush1.bf16.msra.mxu0 %v13842_v19  ;;  %3764 = vmatprep.subr.bf16.mxu1 %v13857_v36 }
 0x2ab   : > { %v13456_v57 = vpop.f32.mrb[99].mxu0  ;;  %v16512_v16 = vadd.f32 %v2625_v61, %v2432_v49  ;;  %v13567_v63 = vpop.f32.mrb[105].mxu1  ;;  %3979 = vmatprep.subr.bf16.mxu0 %v13847_v32 }
 0x2ac   : > { %v3060_v12 = vpop.f32.mrb[106].mxu1 }
 0x2ad   : > { %v13568_v31 = vpop.f32.mrb[107].mxu1 }
 0x2ae   : > { %3980 = vmatpush1.bf16.msra.mxu0 %v13845_v35 }
 0x2af   : > { %4246 = vmatprep.subr.bf16.mxu0 %v13853_v46 }
 0x2b0   : > { %v2813_v24 = vpop.f32.mrb[100].mxu0 }
 0x2b1   : > { %v2867_v41 = vadd.f32 %v2813_v24, %v16408_v58  ;;  %v13519_v25 = vpop.f32.mrb[101].mxu0 }
 0x2b2   : > { %v2816_v33 = vpop.f32.mrb[102].mxu0  ;;  %v3065_v21 = vpop.f32.mrb[108].mxu1 }
 0x2b3   : > { %v2868_v34 = vadd.f32 %v2816_v33, %v16410_v8  ;;  %v13520_v10 = vpop.f32.mrb[103].mxu0  ;;  %v16534_v61 = vadd.f32 %v3049_v42, %v2867_v41  ;;  %v13571_v51 = vpop.f32.mrb[109].mxu1 }
 0x2b4   : > { %v3068_v58 = vpop.f32.mrb[110].mxu1 }
 0x2b5   : > { %v16539_v7 = vadd.f32 %v3052_v23, %v2868_v34  ;;  %v13572_v3 = vpop.f32.mrb[111].mxu1 }
 0x2b8   : > { %v2821_v9 = vpop.f32.mrb[104].mxu0 }
 0x2b9   : > { %v2869_v28 = vadd.f32 %v2821_v9, %v16414_v59  ;;  %v13523_v8 = vpop.f32.mrb[105].mxu0 }
 0x2ba   : > { %v2824_v15 = vpop.f32.mrb[106].mxu0  ;;  %v3073_v26 = vpop.f32.mrb[112].mxu1 }
 0x2bb   : > { %v2870_v22 = vadd.f32 %v2824_v15, %v16416_v2  ;;  %v13524_v17 = vpop.f32.mrb[107].mxu0  ;;  %v16543_v52 = vadd.f32 %v3057_v30, %v2869_v28  ;;  %v13575_v38 = vpop.f32.mrb[113].mxu1 }
 0x2bc   : > { %v3076_v42 = vpop.f32.mrb[114].mxu1 }
 0x2bd   : > { %v16545_v18 = vadd.f32 %v3060_v12, %v2870_v22  ;;  %v13576_v62 = vpop.f32.mrb[115].mxu1 }
 0x2c0   : > { %v2829_v23 = vpop.f32.mrb[108].mxu0 }
 0x2c1   : > { %v2871_v56 = vadd.f32 %v2829_v23, %v16426_v55  ;;  %v13527_v0 = vpop.f32.mrb[109].mxu0 }
 0x2c2   : > { %v2832_v1 = vpop.f32.mrb[110].mxu0  ;;  %v3081_v48 = vpop.f32.mrb[116].mxu1 }
 0x2c3   : > { %v2872_v59 = vadd.f32 %v2832_v1, %v16428_v39  ;;  %v13528_v49 = vpop.f32.mrb[111].mxu0  ;;  %v16549_v4 = vadd.f32 %v3065_v21, %v2871_v56  ;;  %v13579_v2 = vpop.f32.mrb[117].mxu1 }
 0x2c4   : > { %v3084_v60 = vpop.f32.mrb[118].mxu1 }
 0x2c5   : > { %v16551_v40 = vadd.f32 %v3068_v58, %v2872_v59  ;;  %v13580_v6 = vpop.f32.mrb[119].mxu1 }
 0x2c8   : > { %v2837_v57 = vpop.f32.mrb[112].mxu0 }
 0x2c9   : > { %v2873_v30 = vadd.f32 %v2837_v57, %v16438_v50  ;;  %v13531_v19 = vpop.f32.mrb[113].mxu0 }
 0x2ca   : > { %v2840_v32 = vpop.f32.mrb[114].mxu0  ;;  %v3089_v44 = vpop.f32.mrb[120].mxu1 }
 0x2cb   : > { %v2874_v55 = vadd.f32 %v2840_v32, %v16449_v54  ;;  %v13532_v63 = vpop.f32.mrb[115].mxu0  ;;  %v16555_v5 = vadd.f32 %v3073_v26, %v2873_v30  ;;  %v13583_v39 = vpop.f32.mrb[121].mxu1 }
 0x2cc   : > { %v3092_v12 = vpop.f32.mrb[122].mxu1 }
 0x2cd   : > { %v16557_v31 = vadd.f32 %v3076_v42, %v2874_v55  ;;  %v13584_v35 = vpop.f32.mrb[123].mxu1 }
 0x2d0   : > { %v2845_v24 = vpop.f32.mrb[116].mxu0 }
 0x2d1   : > { %v2875_v41 = vadd.f32 %v2845_v24, %v16477_v14  ;;  %v13535_v25 = vpop.f32.mrb[117].mxu0 }
 0x2d2   : > { %v2848_v33 = vpop.f32.mrb[118].mxu0  ;;  %v3097_v34 = vpop.f32.mrb[124].mxu1 }
 0x2d3   : > { %v2876_v50 = vadd.f32 %v2848_v33, %v16479_v37  ;;  %v13536_v46 = vpop.f32.mrb[119].mxu0  ;;  %v16561_v10 = vadd.f32 %v3081_v48, %v2875_v41  ;;  %v13587_v54 = vpop.f32.mrb[125].mxu1 }
 0x2d4   : > { %v3100_v51 = vpop.f32.mrb[126].mxu1 }
 0x2d5   : > { %v16563_v21 = vadd.f32 %v3084_v60, %v2876_v50  ;;  %v13588_v36 = vpop.f32.mrb[127].mxu1 }
 0x2d8   : > { %v2853_v58 = vpop.f32.mrb[120].mxu0 }
 0x2d9   : > { %v2877_v3 = vadd.f32 %v2853_v58, %v16492_v20  ;;  %v13539_v9 = vpop.f32.mrb[121].mxu0  ;;  %v16577_v20 = vld [vmem:[%s19457_s4] ss:$0 sm:$0xff] }
 0x2da   : > { %v2856_v28 = vpop.f32.mrb[122].mxu0 }
 0x2db   : > { %v2878_v14 = vadd.f32 %v2856_v28, %v16494_v11  ;;  %v13540_v8 = vpop.f32.mrb[123].mxu0  ;;  %v16567_v15 = vadd.f32 %v3089_v44, %v2877_v3 }
 0x2dd   : > { %v16569_v37 = vadd.f32 %v3092_v12, %v2878_v14 }
 0x2e0   : > { %v2861_v22 = vpop.f32.mrb[124].mxu0 }
 0x2e1   : > { %v2879_v17 = vadd.f32 %v2861_v22, %v16512_v16  ;;  %v13543_v26 = vpop.f32.mrb[125].mxu0 }
 0x2e2   : > { %v2864_v38 = vpop.f32.mrb[126].mxu0 }
 0x2e3   : > { %v16572_v42 = vadd.f32 %v3097_v34, %v2879_v17  ;;  %v13544_v62 = vpop.f32.mrb[127].mxu0 }
 0x2e8   : > { %v3232_v23 = vpop.f32.mrb[128].mxu0 }
 0x2e9   : > { %v3286_v11 = vadd.f32 %v3232_v23, %v16534_v61  ;;  %v13607_v56 = vpop.f32.mrb[129].mxu0 }
 0x2ea   : > { %v3235_v0 = vpop.f32.mrb[130].mxu0 }
 0x2eb   : > { %v3305_v1 = vadd.f32 %v16577_v20, %v3286_v11  ;;  %v3287_v59 = vadd.f32 %v3235_v0, %v16539_v7  ;;  %v13608_v16 = vpop.f32.mrb[131].mxu0 }
 0x2ed   : > { %15111 = vtanh.f32 %v3305_v1  ;;  %v3306_v49 = vadd.f32 %v16577_v20, %v3287_v59  ;;  %v3392_v59 = vld [vmem:[#allocation5] sm:$0x7] }
 0x2ef   : > { %15113 = vtanh.f32 %v3306_v49 }
 0x2f0   : > { %v3240_v48 = vpop.f32.mrb[132].mxu0 }
 0x2f1   : > { %v3288_v2 = vadd.f32 %v3240_v48, %v16543_v52  ;;  %v13611_v60 = vpop.f32.mrb[133].mxu0 }
 0x2f2   : > { %v3243_v6 = vpop.f32.mrb[134].mxu0 }
 0x2f3   : > { %v3307_v57 = vadd.f32 %v16577_v20, %v3288_v2  ;;  %v3289_v61 = vadd.f32 %v3243_v6, %v16545_v18  ;;  %v13612_v30 = vpop.f32.mrb[135].mxu0 }
 0x2f5   : > { %15115 = vtanh.f32 %v3307_v57  ;;  %v3308_v19 = vadd.f32 %v16577_v20, %v3289_v61 }
 0x2f7   : > { %v15112_v32 = vpop.eup %15111  ;;  %15117 = vtanh.f32 %v3308_v19 }
 0x2f8   : > { %3331 = vst [vmem:[#allocation4 + $0xb] sm:$0xff] %v15112_v32  ;;  %v3248_v7 = vpop.f32.mrb[136].mxu0 }
 0x2f9   : > { %v15114_v55 = vpop.eup %15113  ;;  %v3290_v63 = vadd.f32 %v3248_v7, %v16549_v4  ;;  %v13615_v44 = vpop.f32.mrb[137].mxu0 }
 0x2fa   : > { %3332 = vst [vmem:[#allocation4 + $0x13] sm:$0x1] %v15114_v55  ;;  %3333 = vst [vmem:[#allocation4 + $0x12] sm:$0xf8] %v15114_v55  ;;  %v3251_v52 = vpop.f32.mrb[138].mxu0 }
 0x2fb   : > { %v3309_v39 = vadd.f32 %v16577_v20, %v3290_v63  ;;  %v3291_v12 = vadd.f32 %v3251_v52, %v16551_v40  ;;  %v13616_v18 = vpop.f32.mrb[139].mxu0 }
 0x2fd   : > { %15119 = vtanh.f32 %v3309_v39  ;;  %v3310_v35 = vadd.f32 %v16577_v20, %v3291_v12 }
 0x2ff   : > { %v15116_v24 = vpop.eup %15115  ;;  %15121 = vtanh.f32 %v3310_v35  ;;  %v3349_v54 = vld [vmem:[#allocation4] ss:$2 sm:$0xff]  ;;  %v3363_v51 = vld [vmem:[#allocation4 + $0x1] ss:$2 sm:$0xff] }
 0x300   : > { %3334 = vst [vmem:[#allocation4 + $0x1a] sm:$0xf] %v15116_v24  ;;  %3335 = vst [vmem:[#allocation4 + $0x19] sm:$0xc0] %v15116_v24  ;;  %v3256_v41 = vpop.f32.mrb[140].mxu0  ;;  %v3376_v58 = vmax.f32 %v3349_v54, %v3363_v51 }
 0x301   : > { %v15118_v25 = vpop.eup %15117  ;;  %v3292_v4 = vadd.f32 %v3256_v41, %v16555_v5  ;;  %v13619_v33 = vpop.f32.mrb[141].mxu0 }
 0x302   : > { %3336 = vst [vmem:[#allocation4 + $0x21] sm:$0x7f] %v15118_v25  ;;  %v3259_v50 = vpop.f32.mrb[142].mxu0  ;;  %v3386_v26 = vrot.slane %v3376_v58, 5 }
 0x303   : > { %v3311_v46 = vadd.f32 %v16577_v20, %v3292_v4  ;;  %v3293_v34 = vadd.f32 %v3259_v50, %v16557_v31  ;;  %v13620_v40 = vpop.f32.mrb[143].mxu0 }
 0x305   : > { %15123 = vtanh.f32 %v3311_v46  ;;  %v3312_v36 = vadd.f32 %v16577_v20, %v3293_v34  ;;  %v13855_v34 = vld [vmem:[%s19458_s5 + $0x108] ss:$16 sps:$4 sm:$0xff]  }
 0x307   : > { %v15120_v3 = vpop.eup %15119  ;;  %v3351_v9 = vld [vmem:[#allocation4 + $0x10] ss:$2 sm:$0xff]  ;;  %v3365_v28 = vld [vmem:[#allocation4 + $0x11] ss:$2 sm:$0xff]  ;;  %15125 = vtanh.f32 %v3312_v36 }
 0x308   : > { %v3377_v14 = vmax.f32 %v3351_v9, %v3365_v28  ;;  %3337 = vst [vmem:[#allocation4 + $0x28] sm:$0xfe] %v15120_v3  ;;  %v3264_v5 = vpop.f32.mrb[144].mxu0  ;;  %v13866_v36 = vld [vmem:[%s19458_s5 + $0x244] ss:$16 sps:$4 sm:$0xff]  }
 0x309   : > { %v15122_v8 = vpop.eup %15121  ;;  %v3294_v22 = vadd.f32 %v3264_v5, %v16561_v10  ;;  %v13623_v17 = vpop.f32.mrb[145].mxu0 }
 0x30a   : > { %3338 = vst [vmem:[#allocation4 + $0x30] sm:$0x3] %v15122_v8  ;;  %3339 = vst [vmem:[#allocation4 + $0x2f] sm:$0xf0] %v15122_v8  ;;  %v3267_v31 = vpop.f32.mrb[146].mxu0  ;;  %v3387_v38 = vrot.slane %v3377_v14, 5 }
 0x30b   : > { %v3313_v62 = vadd.f32 %v16577_v20, %v3294_v22  ;;  %v3295_v23 = vadd.f32 %v3267_v31, %v16563_v21  ;;  %v13624_v11 = vpop.f32.mrb[147].mxu0  ;;  %v13861_v8 = vld [vmem:[%s19458_s5 + $0x128] ss:$16 sps:$4 sm:$0xff]   ;;  %v13864_v22 = vld [vmem:[%s19458_s5 + $0x240] ss:$16 sps:$4 sm:$0xff]  }
 0x30c   : > { %v3388_v56 = vsel %vm19517_vm2, %v3386_v26, %v3387_v38 }
 0x30d   : > { %15127 = vtanh.f32 %v3313_v62  ;;  %v3314_v0 = vadd.f32 %v16577_v20, %v3295_v23  ;;  %v3390_v1 = vmax.f32 %v3376_v58, %v3388_v56  ;;  %v13872_v62 = vld [vmem:[%s19458_s5 + $0x264] ss:$16 sps:$4 sm:$0xff]  }
 0x30f   : > { %v15124_v16 = vpop.eup %15123  ;;  %v3353_v10 = vld [vmem:[#allocation4 + $0x20] ss:$2 sm:$0xff]  ;;  %v3367_v49 = vld [vmem:[#allocation4 + $0x21] ss:$2 sm:$0xff]  ;;  %15129 = vtanh.f32 %v3314_v0  ;;  %v3391_v48 = vpack.c.bf16 %v3390_v1, %v3390_v1 }
 0x310   : > { %v3378_v2 = vmax.f32 %v3353_v10, %v3367_v49  ;;  %3340 = vst [vmem:[#allocation4 + $0x37] sm:$0x1f] %v15124_v16  ;;  %3341 = vst [vmem:[#allocation4 + $0x36] sm:$0x80] %v15124_v16  ;;  %v3272_v60 = vpop.f32.mrb[148].mxu0 }
 0x311   : > { %v15126_v6 = vpop.eup %15125  ;;  %v3296_v21 = vadd.f32 %v3272_v60, %v16567_v15  ;;  %v13627_v57 = vpop.f32.mrb[149].mxu0  ;;  %v3393_v61 = vsel %vm15562_vm13, %v3391_v48, %v3392_v59  ;;  %v13867_v48 = vld [vmem:[%s19458_s5 + $0x148] ss:$16 sps:$4 sm:$0xff]   ;;  %vm19519_vm13 = vsmask.f32 3328 }
 0x312   : > { %v3396_v30 = vrot.slane %v3378_v2, 5  ;;  %3342 = vst [vmem:[#allocation4 + $0x3e] sm:$0xff] %v15126_v6  ;;  %v3275_v19 = vpop.f32.mrb[150].mxu0  ;;  %3394 = vst [vmem:[#allocation5] sm:$0x7] %v3393_v61 }
 0x313   : > { %v3315_v32 = vadd.f32 %v16577_v20, %v3296_v21  ;;  %v3297_v7 = vadd.f32 %v3275_v19, %v16569_v37  ;;  %v13628_v55 = vpop.f32.mrb[151].mxu0  ;;  %v13860_v37 = vld [vmem:[%s19458_s5 + $0x224] ss:$16 sps:$4 sm:$0xff]   ;;  %v3436_v6 = vld [vmem:[#allocation5 + $0x4] sm:$0xe] }
 0x314   : > { %v3397_v63 = vsel %vm19518_vm7, %v3387_v38, %v3396_v30  ;;  %v13869_v38 = vld [vmem:[%s19458_s5 + $0x14c] ss:$16 sps:$4 sm:$0xff]   ;;  %v13878_v61 = vld [vmem:[%s19458_s5 + $0x284] ss:$16 sps:$4 sm:$0xff]   ;;  %v13873_v55 = vld [vmem:[%s19458_s5 + $0x168] ss:$16 sps:$4 sm:$0xff]  }
 0x315   : > { %15131 = vtanh.f32 %v3315_v32  ;;  %v3316_v44 = vadd.f32 %v16577_v20, %v3297_v7  ;;  %v3399_v52 = vmax.f32 %v3377_v14, %v3397_v63  ;;  %v13875_v57 = vld [vmem:[%s19458_s5 + $0x16c] ss:$16 sps:$4 sm:$0xff]   ;;  %v13876_v63 = vld [vmem:[%s19458_s5 + $0x280] ss:$16 sps:$4 sm:$0xff]  }
 0x317   : > { %v15128_v15 = vpop.eup %15127  ;;  %15133 = vtanh.f32 %v3316_v44  ;;  %v12968_v39 = vpack.c.bf16 %v3399_v52, %v3399_v52  ;;  %v13884_v52 = vld [vmem:[%s19458_s5 + $0x2a4] ss:$16 sps:$4 sm:$0xff]  }
 0x318   : > { %3343 = vst [vmem:[#allocation4 + $0x45] sm:$0xfc] %v15128_v15  ;;  %v3280_v12 = vpop.f32.mrb[152].mxu0 }
 0x319   : > { %v15130_v18 = vpop.eup %15129  ;;  %v3355_v35 = vld [vmem:[#allocation4 + $0x30] ss:$2 sm:$0xff]  ;;  %v3369_v24 = vld [vmem:[#allocation4 + $0x31] ss:$2 sm:$0xff]  ;;  %v3298_v41 = vadd.f32 %v3280_v12, %v16572_v42  ;;  %v3405_v50 = vshrl.u32 %v12968_v39, 16  ;;  %v3408_v40 = vshll.u32 %v12968_v39, 16 }
 0x31a   : > { %v16614_v25 = vld [vmem:[#allocation5] sm:$0x1]  ;;  %3344 = vst [vmem:[#allocation4 + $0x4d] sm:$0x7] %v15130_v18  ;;  %3345 = vst [vmem:[#allocation4 + $0x4c] sm:$0xe0] %v15130_v18  ;;  %v16616_v4 = vmax.f32 %v3355_v35, %v3369_v24 }
 0x31b   : > { %v11366_v33 = vcombine.low %v16614_v25, %v16614_v25  ;;  %3998 = vmatmul.mubr.bf16.vlgmr.msra.gmra.mrb[156].mxu0 %v16614_v25  ;;  %v3317_v46 = vadd.f32 %v16577_v20, %v3298_v41  ;;  %v13858_v42 = vld [vmem:[%s19458_s5 + $0x220] ss:$16 sps:$4 sm:$0xff]   ;;  %v13631_v54 = vpop.f32.mrb[153].mxu0  ;;  %v13863_v20 = vld [vmem:[%s19458_s5 + $0x12c] ss:$16 sps:$4 sm:$0xff]   ;;  %v3407_v58 = vrot.slane %v3405_v50, 6 }
 0x31c   : > { %4247 = vmatpush1.bf16.msra.mxu0 %v13851_v43  ;;  %4278 = vmatprep.mubr.bf16.mxu0 %v15222_v27  ;;  %v3410_v3 = vrot.slane %v3408_v40, 7  ;;  %v3283_v9 = vpop.f32.mrb[154].mxu0  ;;  %v3420_v28 = vrot.slane %v16616_v4, 5  ;;  %v3415_v23 = vld [vmem:[#allocation5] sm:$0xc] }
 0x31d   : > { %v16629_v51 = vshrl.u32 %v11366_v33, 16  ;;  %4248 = vmatprep.subr.bf16.mxu0 %v13860_v37  ;;  %15135 = vtanh.f32 %v3317_v46  ;;  %v13632_v14 = vpop.f32.mrb[155].mxu0  ;;  %v13879_v43 = vld [vmem:[%s19458_s5 + $0x188] ss:$16 sps:$4 sm:$0xff]   ;;  %v13882_v39 = vld [vmem:[%s19458_s5 + $0x2a0] ss:$16 sps:$4 sm:$0xff]  }
 0x31e   : > { %v3411_v17 = vor.u32 %v3410_v3, %v3407_v58  ;;  %v3422_v31 = vmax.f32 %v3378_v2, %v3420_v28  ;;  %v3423_v26 = vmax.f32 %v16616_v4, %v3420_v28  ;;  %v13870_v2 = vld [vmem:[%s19458_s5 + $0x260] ss:$16 sps:$4 sm:$0xff]   ;;  %v13887_v37 = vld [vmem:[%s19458_s5 + $0x1ac] ss:$16 sps:$4 sm:$0xff]   ;;  %v13890_v18 = vld [vmem:[%s19458_s5 + $0x2c4] ss:$16 sps:$4 sm:$0xff]  }
 0x31f   : > { %3756 = vmatmul.mubr.bf16.vlgmr.msra.gmra.mrb[128].mxu1 %v16629_v51  ;;  %v15132_v5 = vpop.eup %15131  ;;  %v13885_v35 = vld [vmem:[%s19458_s5 + $0x1a8] ss:$16 sps:$4 sm:$0xff]   ;;  %v13893_v33 = vld [vmem:[%s19458_s5 + $0x1cc] ss:$16 sps:$4 sm:$0xff]   ;;  %v13896_v50 = vld [vmem:[%s19458_s5 + $0x2e4] ss:$16 sps:$4 sm:$0xff]  }
 0x320   : > { %3765 = vmatpush1.bf16.msra.mxu1 %v13855_v34  ;;  %4249 = vmatpush1.bf16.msra.mxu0 %v13858_v42  ;;  %3346 = vst [vmem:[#allocation4 + $0x54] sm:$0x3f] %v15132_v5  ;;  %v3416_v1 = vsel %vm15635_vm11, %v3411_v17, %v3415_v23  ;;  %v3412_v59 = vrot.slane %v3411_v17, 4  ;;  %v12969_v16 = vpack.c.bf16 %v3422_v31, %v3422_v31  ;;  %vm19520_vm11 = vcmask 1043457   ;;  %v13891_v3 = vld [vmem:[%s19458_s5 + $0x1c8] ss:$16 sps:$4 sm:$0xff]  }
 0x321   : > { %3766 = vmatprep.subr.bf16.mxu1 %v13863_v20  ;;  %4250 = vmatprep.subr.bf16.mxu0 %v13866_v36  ;;  %v15134_v11 = vpop.eup %15133  ;;  %v3357_v56 = vld [vmem:[#allocation4 + $0x40] ss:$2 sm:$0xff]  ;;  %v3371_v0 = vld [vmem:[#allocation4 + $0x41] ss:$2 sm:$0xff]  ;;  %v12970_v10 = vpack.c.bf16 %v3423_v26, %v3423_v26  ;;  %3417 = vst [vmem:[#allocation5] sm:$0xc] %v3416_v1  ;;  %vm3435_vm9 = vmand %vm19520_vm11, %vm19519_vm13 }
 0x322   : > { %3796 = vmatprep.mubr.bf16.mxu1 %v15222_v27  ;;  %v3380_v49 = vmax.f32 %v3357_v56, %v3371_v0  ;;  %3347 = vst [vmem:[#allocation4 + $0x5b] sm:$0xff] %v15134_v11  ;;  %3418 = vst [vmem:[#allocation5 + $0x4] sm:$0x1] %v3412_v59  ;;  %v11329_v60 = vrot.slane %v12969_v16, 9  ;;  %v13894_v9 = vld [vmem:[%s19458_s5 + $0x2e0] ss:$16 sps:$4 sm:$0xff]  }
 0x323   : > { %v3432_v13 = vrot.slane %v12970_v10, 5  ;;  %v13899_v28 = vld [vmem:[%s19458_s5 + $0x1ec] ss:$16 sps:$4 sm:$0xff]   ;;  %v13903_v14 = vld [vmem:[%s19458_s5 + $0x304] ss:$16 sps:$4 sm:$0xff]  }
 0x324   : > { %3767 = vmatpush1.bf16.msra.mxu1 %v13861_v8  ;;  %4251 = vmatpush1.bf16.msra.mxu0 %v13864_v22  ;;  %v3440_v21 = vrot.slane %v3380_v49, 5  ;;  %v16719_v47 = vld [vmem:[#allocation5] ss:$0 sps:$4 sm:$0x22]   ;;  %v13901_v23 = vld [vmem:[%s19458_s5 + $0x300] ss:$16 sps:$4 sm:$0xff]  }
 0x325   : > { %3768 = vmatprep.subr.bf16.mxu1 %v13869_v38  ;;  %4252 = vmatprep.subr.bf16.mxu0 %v13872_v62  ;;  %v3433_v30 = vsel %vm15570_vm15, %v11329_v60, %v3432_v13  ;;  %v13897_v62 = vld [vmem:[%s19458_s5 + $0x1e8] ss:$16 sps:$4 sm:$0xff]   ;;  %v4084_v11 = vrot.slane %v16719_v47, 1  ;;  %v13909_v56 = vld [vmem:[%s19458_s5 + $0x324] ss:$16 sps:$4 sm:$0xff]   ;;  %vm10951_vm15 = vcmask 73728  }
 0x326   : > { %v3437_v19 = vsel %vm3435_vm9, %v3433_v30, %v3436_v6  ;;  %v3443_v32 = vmax.f32 %v3380_v49, %v3440_v21  ;;  %v3442_v44 = vmax.f32 %v16616_v4, %v3440_v21  ;;  %v13888_v4 = vld [vmem:[%s19458_s5 + $0x2c0] ss:$16 sps:$4 sm:$0xff]   ;;  %v13904_v59 = vld [vmem:[%s19458_s5 + $0x8] ss:$16 sps:$4 sm:$0xff]   ;;  %v13912_v49 = vld [vmem:[%s19458_s5 + $0x2c] ss:$16 sps:$4 sm:$0xff]  }
 0x327   : > { %v15136_v7 = vpop.eup %15135  ;;  %3438 = vst [vmem:[#allocation5 + $0x4] sm:$0xe] %v3437_v19  ;;  %v13907_v16 = vld [vmem:[%s19458_s5 + $0x320] ss:$16 sps:$4 sm:$0xff]   ;;  %v13910_v60 = vld [vmem:[%s19458_s5 + $0x28] ss:$16 sps:$4 sm:$0xff]  }
 0x328   : > { %3769 = vmatpush1.bf16.msra.mxu1 %v13867_v48  ;;  %4253 = vmatpush1.bf16.msra.mxu0 %v13870_v2  ;;  %3348 = vst [vmem:[#allocation4 + $0x63] sm:$0x1] %v15136_v7  ;;  %v12972_v15 = vpack.c.bf16 %v3443_v32, %v3443_v32  ;;  %v12971_v12 = vpack.c.bf16 %v3442_v44, %v3442_v44  ;;  %v13915_v48 = vld [vmem:[%s19458_s5 + $0x344] ss:$16 sps:$4 sm:$0xff]   ;;  %v13913_v13 = vld [vmem:[%s19458_s5 + $0x340] ss:$16 sps:$4 sm:$0xff]  }
 0x329   : > { %3770 = vmatprep.subr.bf16.mxu1 %v13875_v57  ;;  %4254 = vmatprep.subr.bf16.mxu0 %v13878_v61  ;;  %v3361_v42 = vld [vmem:[#allocation4 + $0x60] ss:$2 sm:$0x7f]  ;;  %v3359_v22 = vld [vmem:[#allocation4 + $0x50] ss:$2 sm:$0xff] }
 0x32a   : > { %v3458_v24 = vshrl.u32 %v12972_v15, 16  ;;  %v3451_v46 = vshll.u32 %v12971_v12, 16  ;;  %v3453_v34 = vshrl.u32 %v12971_v12, 16  ;;  %v3461_v58 = vshll.u32 %v12972_v15, 16  ;;  %v3373_v17 = vld [vmem:[#allocation4 + $0x51] ss:$2 sm:$0xff] }
 0x32b   : > { %v3381_v38 = vmax.f32 %v3359_v22, %v3373_v17  ;;  %v13918_v6 = vld [vmem:[%s19458_s5 + $0x4c] ss:$16 sps:$4 sm:$0xff]   ;;  %v3487_v57 = vld [vmem:[#allocation5 + $0xc] sm:$0x1]  ;;  %v13919_v19 = vld [vmem:[%s19458_s5 + $0x360] ss:$16 sps:$4 sm:$0xff]  }
 0x32c   : > { %3771 = vmatpush1.bf16.msra.mxu1 %v13873_v55  ;;  %4255 = vmatpush1.bf16.msra.mxu0 %v13876_v63  ;;  %v3460_v36 = vrot.slane %v3458_v24, 7  ;;  %v11332_v5 = vrot.slane %v3453_v34, 11  ;;  %v13916_v30 = vld [vmem:[%s19458_s5 + $0x48] ss:$16 sps:$4 sm:$0xff]   ;;  %v13924_v32 = vld [vmem:[%s19458_s5 + $0x6c] ss:$16 sps:$4 sm:$0xff]  }
 0x32d   : > { %3772 = vmatprep.subr.bf16.mxu1 %v13881_v53  ;;  %4256 = vmatprep.subr.bf16.mxu0 %v13884_v52  ;;  %v3473_v0 = vrot.slane %v3381_v38, 5  ;;  %v13927_v7 = vld [vmem:[%s19458_s5 + $0x384] ss:$16 sps:$4 sm:$0xff]   ;;  %v13922_v63 = vld [vmem:[%s19458_s5 + $0x68] ss:$16 sps:$4 sm:$0xff]  }
 0x32e   : > { %v3467_v40 = vld [vmem:[#allocation5 + $0x4] sm:$0x8]  ;;  %v3463_v8 = vor.u32 %v3461_v58, %v3460_v36  ;;  %v13930_v53 = vld [vmem:[%s19458_s5 + $0x8c] ss:$16 sps:$4 sm:$0xff]   ;;  %v13928_v52 = vld [vmem:[%s19458_s5 + $0x88] ss:$16 sps:$4 sm:$0xff]  }
 0x32f   : > { %v3375_v41 = vld [vmem:[#allocation4 + $0x61] ss:$2 sm:$0x7f]  ;;  %v3468_v20 = vsel %vm15603_vm4, %v3451_v46, %v3467_v40  ;;  %vm19521_vm4 = vmmov %vm19517_vm2 }
 0x330   : > { %3773 = vmatpush1.bf16.msra.mxu1 %v13879_v43  ;;  %4257 = vmatpush1.bf16.msra.mxu0 %v13882_v39  ;;  %v3382_v54 = vmax.f32 %v3361_v42, %v3375_v41  ;;  %3469 = vst [vmem:[#allocation5 + $0x4] sm:$0x8] %v3468_v20  ;;  %v3464_v26 = vsel %vm15708_vm0, %v11332_v5, %v3463_v8  ;;  %v13925_v44 = vld [vmem:[%s19458_s5 + $0x380] ss:$16 sps:$4 sm:$0xff]   ;;  %v13936_v43 = vld [vmem:[%s19458_s5 + $0xac] ss:$16 sps:$4 sm:$0xff]  }
 0x331   : > { %3774 = vmatprep.subr.bf16.mxu1 %v13887_v37  ;;  %4258 = vmatprep.subr.bf16.mxu0 %v13890_v18  ;;  %3470 = vst [vmem:[#allocation5 + $0x8] sm:$0x3] %v3464_v26  ;;  %v13931_v15 = vld [vmem:[%s19458_s5 + $0x3a0] ss:$16 sps:$4 sm:$0xff]   ;;  %v13939_v39 = vld [vmem:[%s19458_s5 + $0x3c4] ss:$16 sps:$4 sm:$0xff]  }
 0x332   : > { %v3474_v31 = vrot.slane %v3382_v54, 5  ;;  %v13934_v12 = vld [vmem:[%s19458_s5 + $0xa8] ss:$16 sps:$4 sm:$0xff]   ;;  %v13937_v37 = vld [vmem:[%s19458_s5 + $0x3c0] ss:$16 sps:$4 sm:$0xff]  }
 0x333   : > { %v13942_v18 = vld [vmem:[%s19458_s5 + $0xcc] ss:$16 sps:$4 sm:$0xff]   ;;  %v13940_v24 = vld [vmem:[%s19458_s5 + $0xc8] ss:$16 sps:$4 sm:$0xff]   ;;  %v13943_v41 = vld [vmem:[%s19458_s5 + $0x3e0] ss:$16 sps:$4 sm:$0xff]  }
 0x334   : > { %3775 = vmatpush1.bf16.msra.mxu1 %v13885_v35  ;;  %4259 = vmatpush1.bf16.msra.mxu0 %v13888_v4  ;;  %v3475_v1 = vsel %vm19521_vm4, %v3473_v0, %v3474_v31  ;;  %v13945_v35 = vld [vmem:[%s19458_s5 + $0x3e4] ss:$16 sps:$4 sm:$0xff]   ;;  %v13948_v4 = vld [vmem:[%s19458_s5 + $0xec] ss:$16 sps:$4 sm:$0xff]   ;;  %v13946_v46 = vld [vmem:[%s19458_s5 + $0xe8] ss:$16 sps:$4 sm:$0xff]  }
 0x335   : > { %3776 = vmatprep.subr.bf16.mxu1 %v13893_v33  ;;  %4260 = vmatprep.subr.bf16.mxu0 %v13896_v50  ;;  %v3477_v10 = vmax.f32 %v3381_v38, %v3475_v1  ;;  %v4366_v33 = vshrl.u32 %v16719_v47, 16  ;;  %v13951_v50 = vld [vmem:[%s19458_s5 + $0x404] ss:$16 sps:$4 sm:$0xff]   ;;  %v13949_v34 = vld [vmem:[%s19458_s5 + $0x400] ss:$16 sps:$4 sm:$0xff]  }
 0x336   : > { %v13954_v40 = vld [vmem:[%s19458_s5 + $0x20c] ss:$16 sps:$4 sm:$0xff]   ;;  %v13957_v54 = vld [vmem:[%s19458_s5 + $0x424] ss:$16 sps:$4 sm:$0xff]   ;;  %v13952_v20 = vld [vmem:[%s19458_s5 + $0x208] ss:$16 sps:$4 sm:$0xff]  }
 0x337   : > { %v12973_v2 = vpack.c.bf16 %v3477_v10, %v3477_v10  ;;  %v16838_v42 = vrot.slane %v4366_v33, 1  ;;  %v13955_v36 = vld [vmem:[%s19458_s5 + $0x420] ss:$16 sps:$4 sm:$0xff]   ;;  %v13960_v58 = vld [vmem:[%s19458_s5 + $0x22c] ss:$16 sps:$4 sm:$0xff]  }
 0x338   : > { %3777 = vmatpush1.bf16.msra.mxu1 %v13891_v3  ;;  %4261 = vmatpush1.bf16.msra.mxu0 %v13894_v9  ;;  %v13963_v3 = vld [vmem:[%s19458_s5 + $0x444] ss:$16 sps:$4 sm:$0xff]   ;;  %v13958_v9 = vld [vmem:[%s19458_s5 + $0x228] ss:$16 sps:$4 sm:$0xff]   ;;  %v13967_v8 = vld [vmem:[%s19458_s5 + $0x460] ss:$16 sps:$4 sm:$0xff]  }
 0x339   : > { %3778 = vmatprep.subr.bf16.mxu1 %v13899_v28  ;;  %4530 = vmatprep.subr.bf16.mxu0 %v13903_v14  ;;  %v3482_v21 = vrot.slane %v12973_v2, 6  ;;  %v13961_v28 = vld [vmem:[%s19458_s5 + $0x440] ss:$16 sps:$4 sm:$0xff]   ;;  %v13966_v14 = vld [vmem:[%s19458_s5 + $0x24c] ss:$16 sps:$4 sm:$0xff]  }
 0x33a   : > { %v13964_v5 = vld [vmem:[%s19458_s5 + $0x248] ss:$16 sps:$4 sm:$0xff]   ;;  %v13972_v22 = vld [vmem:[%s19458_s5 + $0x26c] ss:$16 sps:$4 sm:$0xff]   ;;  %v13975_v17 = vld [vmem:[%s19458_s5 + $0x484] ss:$16 sps:$4 sm:$0xff]  }
 0x33b   : > { %4279 = vmatmul.mubr.bf16.vlgmr.msra.gmra.mrb[160].mxu0 %v4084_v11  ;;  %v3483_v61 = vrot.slane %v3482_v21, 4  ;;  %v13970_v31 = vld [vmem:[%s19458_s5 + $0x268] ss:$16 sps:$4 sm:$0xff]   ;;  %v13973_v26 = vld [vmem:[%s19458_s5 + $0x480] ss:$16 sps:$4 sm:$0xff]  }
 0x33c   : > { %3779 = vmatpush1.bf16.msra.mxu1 %v13897_v62  ;;  %4531 = vmatpush1.bf16.msra.mxu0 %v13901_v23  ;;  %v13978_v38 = vld [vmem:[%s19458_s5 + $0x28c] ss:$16 sps:$4 sm:$0xff]   ;;  %v13981_v62 = vld [vmem:[%s19458_s5 + $0x4a4] ss:$16 sps:$4 sm:$0xff]   ;;  %v13976_v23 = vld [vmem:[%s19458_s5 + $0x288] ss:$16 sps:$4 sm:$0xff]  }
 0x33d   : > { %4006 = vmatprep.subr.bf16.mxu1 %v13906_v45  ;;  %4532 = vmatprep.subr.bf16.mxu0 %v13909_v56  ;;  %v3488_v55 = vsel %vm15645_vm14, %v3483_v61, %v3487_v57  ;;  %v13979_v45 = vld [vmem:[%s19458_s5 + $0x4a0] ss:$16 sps:$4 sm:$0xff]   ;;  %v13984_v56 = vld [vmem:[%s19458_s5 + $0x2ac] ss:$16 sps:$4 sm:$0xff]   ;;  %v13987_v0 = vld [vmem:[%s19458_s5 + $0x4c4] ss:$16 sps:$4 sm:$0xff]  }
 0x33e   : > { %4562 = vmatprep.mubr.bf16.mxu0 %v15222_v27  ;;  %3489 = vst [vmem:[#allocation5 + $0xc] sm:$0x1] %v3488_v55  ;;  %v13982_v1 = vld [vmem:[%s19458_s5 + $0x2a8] ss:$16 sps:$4 sm:$0xff]   ;;  %v13993_v10 = vld [vmem:[%s19458_s5 + $0x4e4] ss:$16 sps:$4 sm:$0xff]  }
 0x33f   : > { %3797 = vmatmul.mubr.bf16.vlgmr.msra.gmra.mrb[132].mxu1 %v16629_v51  ;;  %v13921_v51 = vld [vmem:[%s19458_s5 + $0x364] ss:$16 sps:$4 sm:$0xff]   ;;  %v13996_v2 = vld [vmem:[%s19458_s5 + $0x2ec] ss:$16 sps:$4 sm:$0xff]   ;;  %v14007_v55 = vld [vmem:[%s19458_s5 + $0x328] ss:$16 sps:$4 sm:$0xff]  }
 0x340   : > { %4007 = vmatpush1.bf16.msra.mxu1 %v13904_v59  ;;  %4533 = vmatpush1.bf16.msra.mxu0 %v13907_v16  ;;  %v13985_v59 = vld [vmem:[%s19458_s5 + $0x4c0] ss:$16 sps:$4 sm:$0xff]   ;;  %v13990_v16 = vld [vmem:[%s19458_s5 + $0x2cc] ss:$16 sps:$4 sm:$0xff]   ;;  %v14006_v61 = vld [vmem:[%s19458_s5 + $0x524] ss:$16 sps:$4 sm:$0xff]  }
 0x341   : > { %4008 = vmatprep.subr.bf16.mxu1 %v13912_v49  ;;  %4534 = vmatprep.subr.bf16.mxu0 %v13915_v48  ;;  %v13988_v49 = vld [vmem:[%s19458_s5 + $0x2c8] ss:$16 sps:$4 sm:$0xff]   ;;  %v13991_v48 = vld [vmem:[%s19458_s5 + $0x4e0] ss:$16 sps:$4 sm:$0xff]   ;;  %v14003_v57 = vld [vmem:[%s19458_s5 + $0x30c] ss:$16 sps:$4 sm:$0xff]  }
 0x342   : > { %4038 = vmatprep.mubr.bf16.mxu1 %v15222_v27  ;;  %v14018_v47 = vld [vmem:[%s19458_s5 + $0x564] ss:$16 sps:$4 sm:$0xff]   ;;  %v14039_v33 = vld [vmem:[%s19458_s5 + $0x3cc] ss:$16 sps:$4 sm:$0xff]  }
 0x344   : > { %4009 = vmatpush1.bf16.msra.mxu1 %v13910_v60  ;;  %4535 = vmatpush1.bf16.msra.mxu0 %v13913_v13  ;;  %v16931_v60 = vld [vmem:[#allocation5] ss:$0 sps:$4 sm:$0x44]   ;;  %v14000_v13 = vld [vmem:[%s19458_s5 + $0x504] ss:$16 sps:$4 sm:$0xff]  }
 0x345   : > { %4010 = vmatprep.subr.bf16.mxu1 %v13918_v6  ;;  %4536 = vmatprep.subr.bf16.mxu0 %v13921_v51  ;;  %v13994_v6 = vld [vmem:[%s19458_s5 + $0x2e8] ss:$16 sps:$4 sm:$0xff]   ;;  %v13998_v51 = vld [vmem:[%s19458_s5 + $0x500] ss:$16 sps:$4 sm:$0xff]   ;;  %v4653_v21 = vrot.slane %v16931_v60, 2 }
 0x348   : > { %4011 = vmatpush1.bf16.msra.mxu1 %v13916_v30  ;;  %4537 = vmatpush1.bf16.msra.mxu0 %v13919_v19  ;;  %v14001_v30 = vld [vmem:[%s19458_s5 + $0x308] ss:$16 sps:$4 sm:$0xff]   ;;  %v14004_v19 = vld [vmem:[%s19458_s5 + $0x520] ss:$16 sps:$4 sm:$0xff]  }
 0x349   : > { %4012 = vmatprep.subr.bf16.mxu1 %v13924_v32  ;;  %4538 = vmatprep.subr.bf16.mxu0 %v13927_v7  ;;  %v14009_v32 = vld [vmem:[%s19458_s5 + $0x32c] ss:$16 sps:$4 sm:$0xff]   ;;  %v14012_v7 = vld [vmem:[%s19458_s5 + $0x544] ss:$16 sps:$4 sm:$0xff]  }
 0x34c   : > { %4013 = vmatpush1.bf16.msra.mxu1 %v13922_v63  ;;  %4539 = vmatpush1.bf16.msra.mxu0 %v13925_v44  ;;  %v14010_v63 = vld [vmem:[%s19458_s5 + $0x540] ss:$16 sps:$4 sm:$0xff]   ;;  %v14015_v44 = vld [vmem:[%s19458_s5 + $0x34c] ss:$16 sps:$4 sm:$0xff]  }
 0x34d   : > { %4014 = vmatprep.subr.bf16.mxu1 %v13930_v53  ;;  %4540 = vmatprep.subr.bf16.mxu0 %v13933_v29  ;;  %v14016_v53 = vld [vmem:[%s19458_s5 + $0x560] ss:$16 sps:$4 sm:$0xff]   ;;  %v14021_v29 = vld [vmem:[%s19458_s5 + $0x36c] ss:$16 sps:$4 sm:$0xff]  }
 0x350   : > { %4015 = vmatpush1.bf16.msra.mxu1 %v13928_v52  ;;  %4541 = vmatpush1.bf16.msra.mxu0 %v13931_v15  ;;  %v14024_v52 = vld [vmem:[%s19458_s5 + $0x584] ss:$16 sps:$4 sm:$0xff]   ;;  %v14019_v15 = vld [vmem:[%s19458_s5 + $0x368] ss:$16 sps:$4 sm:$0xff]  }
 0x351   : > { %4016 = vmatprep.subr.bf16.mxu1 %v13936_v43  ;;  %4542 = vmatprep.subr.bf16.mxu0 %v13939_v39  ;;  %v14022_v43 = vld [vmem:[%s19458_s5 + $0x580] ss:$16 sps:$4 sm:$0xff]   ;;  %v14027_v39 = vld [vmem:[%s19458_s5 + $0x38c] ss:$16 sps:$4 sm:$0xff]  }
 0x354   : > { %4017 = vmatpush1.bf16.msra.mxu1 %v13934_v12  ;;  %4543 = vmatpush1.bf16.msra.mxu0 %v13937_v37  ;;  %v14030_v12 = vld [vmem:[%s19458_s5 + $0x5a4] ss:$16 sps:$4 sm:$0xff]   ;;  %v14025_v37 = vld [vmem:[%s19458_s5 + $0x388] ss:$16 sps:$4 sm:$0xff]  }
 0x355   : > { %4018 = vmatprep.subr.bf16.mxu1 %v13942_v18  ;;  %4544 = vmatprep.subr.bf16.mxu0 %v13945_v35  ;;  %v14028_v18 = vld [vmem:[%s19458_s5 + $0x5a0] ss:$16 sps:$4 sm:$0xff]   ;;  %v14033_v35 = vld [vmem:[%s19458_s5 + $0x3ac] ss:$16 sps:$4 sm:$0xff]  }
 0x358   : > { %4019 = vmatpush1.bf16.msra.mxu1 %v13940_v24  ;;  %4545 = vmatpush1.bf16.msra.mxu0 %v13943_v41  ;;  %v14036_v24 = vld [vmem:[%s19458_s5 + $0x5c4] ss:$16 sps:$4 sm:$0xff]   ;;  %v14031_v41 = vld [vmem:[%s19458_s5 + $0x3a8] ss:$16 sps:$4 sm:$0xff]  }
 0x359   : > { %4020 = vmatprep.subr.bf16.mxu1 %v13948_v4  ;;  %4815 = vmatprep.subr.bf16.mxu0 %v13951_v50  ;;  %v14034_v4 = vld [vmem:[%s19458_s5 + $0x5c0] ss:$16 sps:$4 sm:$0xff]   ;;  %v14042_v50 = vld [vmem:[%s19458_s5 + $0x5e4] ss:$16 sps:$4 sm:$0xff]  }
 0x35b   : > { %4563 = vmatmul.mubr.bf16.vlgmr.msra.gmra.mrb[164].mxu0 %v16838_v42 }
 0x35c   : > { %4021 = vmatpush1.bf16.msra.mxu1 %v13946_v46  ;;  %4816 = vmatpush1.bf16.msra.mxu0 %v13949_v34  ;;  %v14037_v46 = vld [vmem:[%s19458_s5 + $0x3c8] ss:$16 sps:$4 sm:$0xff]   ;;  %v14040_v34 = vld [vmem:[%s19458_s5 + $0x5e0] ss:$16 sps:$4 sm:$0xff]  }
 0x35d   : > { %4287 = vmatprep.subr.bf16.mxu1 %v13954_v40  ;;  %4817 = vmatprep.subr.bf16.mxu0 %v13957_v54  ;;  %v14045_v40 = vld [vmem:[%s19458_s5 + $0x3ec] ss:$16 sps:$4 sm:$0xff]   ;;  %v4935_v54 = vshrl.u32 %v16931_v60, 16  ;;  %v14115_v60 = vld [vmem:[%s19458_s5 + $0x764] ss:$16 sps:$4 sm:$0xff]  }
 0x35e   : > { %4847 = vmatprep.mubr.bf16.mxu0 %v15222_v27 }
 0x35f   : > { %4039 = vmatmul.mubr.bf16.vlgmr.msra.gmra.mrb[136].mxu1 %v16614_v25  ;;  %v13969_v25 = vld [vmem:[%s19458_s5 + $0x464] ss:$16 sps:$4 sm:$0xff]  }
 0x360   : > { %4288 = vmatpush1.bf16.msra.mxu1 %v13952_v20  ;;  %4818 = vmatpush1.bf16.msra.mxu0 %v13955_v36  ;;  %v14048_v20 = vld [vmem:[%s19458_s5 + $0x604] ss:$16 sps:$4 sm:$0xff]   ;;  %v14043_v36 = vld [vmem:[%s19458_s5 + $0x3e8] ss:$16 sps:$4 sm:$0xff]  }
 0x361   : > { %4289 = vmatprep.subr.bf16.mxu1 %v13960_v58  ;;  %4819 = vmatprep.subr.bf16.mxu0 %v13963_v3  ;;  %v14046_v58 = vld [vmem:[%s19458_s5 + $0x600] ss:$16 sps:$4 sm:$0xff]   ;;  %v17046_v3 = vrot.slane %v4935_v54, 2  ;;  %v14136_v54 = vld [vmem:[%s19458_s5 + $0x5cc] ss:$16 sps:$4 sm:$0xff]  }
 0x362   : > { %4319 = vmatprep.mubr.bf16.mxu1 %v15222_v27 }
 0x364   : > { %4290 = vmatpush1.bf16.msra.mxu1 %v13958_v9  ;;  %4820 = vmatpush1.bf16.msra.mxu0 %v13961_v28  ;;  %v14051_v9 = vld [vmem:[%s19458_s5 + $0x40c] ss:$16 sps:$4 sm:$0xff]   ;;  %v14054_v28 = vld [vmem:[%s19458_s5 + $0x624] ss:$16 sps:$4 sm:$0xff]  }
 0x365   : > { %4291 = vmatprep.subr.bf16.mxu1 %v13966_v14  ;;  %4821 = vmatprep.subr.bf16.mxu0 %v13969_v25  ;;  %v14049_v14 = vld [vmem:[%s19458_s5 + $0x408] ss:$16 sps:$4 sm:$0xff]   ;;  %v14052_v25 = vld [vmem:[%s19458_s5 + $0x620] ss:$16 sps:$4 sm:$0xff]  }
 0x368   : > { %4292 = vmatpush1.bf16.msra.mxu1 %v13964_v5  ;;  %4822 = vmatpush1.bf16.msra.mxu0 %v13967_v8  ;;  %v14057_v5 = vld [vmem:[%s19458_s5 + $0x42c] ss:$16 sps:$4 sm:$0xff]   ;;  %v14060_v8 = vld [vmem:[%s19458_s5 + $0x644] ss:$16 sps:$4 sm:$0xff]  }
 0x369   : > { %4293 = vmatprep.subr.bf16.mxu1 %v13972_v22  ;;  %4823 = vmatprep.subr.bf16.mxu0 %v13975_v17  ;;  %v14055_v22 = vld [vmem:[%s19458_s5 + $0x428] ss:$16 sps:$4 sm:$0xff]   ;;  %v14058_v17 = vld [vmem:[%s19458_s5 + $0x640] ss:$16 sps:$4 sm:$0xff]  }
 0x36c   : > { %4294 = vmatpush1.bf16.msra.mxu1 %v13970_v31  ;;  %4824 = vmatpush1.bf16.msra.mxu0 %v13973_v26  ;;  %v14063_v31 = vld [vmem:[%s19458_s5 + $0x44c] ss:$16 sps:$4 sm:$0xff]   ;;  %v14061_v26 = vld [vmem:[%s19458_s5 + $0x448] ss:$16 sps:$4 sm:$0xff]  }
 0x36d   : > { %4295 = vmatprep.subr.bf16.mxu1 %v13978_v38  ;;  %4825 = vmatprep.subr.bf16.mxu0 %v13981_v62  ;;  %v14064_v38 = vld [vmem:[%s19458_s5 + $0x660] ss:$16 sps:$4 sm:$0xff]   ;;  %v14069_v62 = vld [vmem:[%s19458_s5 + $0x46c] ss:$16 sps:$4 sm:$0xff]  }
 0x370   : > { %4296 = vmatpush1.bf16.msra.mxu1 %v13976_v23  ;;  %4826 = vmatpush1.bf16.msra.mxu0 %v13979_v45  ;;  %v14072_v23 = vld [vmem:[%s19458_s5 + $0x684] ss:$16 sps:$4 sm:$0xff]   ;;  %v14067_v45 = vld [vmem:[%s19458_s5 + $0x468] ss:$16 sps:$4 sm:$0xff]  }
 0x371   : > { %4297 = vmatprep.subr.bf16.mxu1 %v13984_v56  ;;  %4827 = vmatprep.subr.bf16.mxu0 %v13987_v0  ;;  %v14070_v56 = vld [vmem:[%s19458_s5 + $0x680] ss:$16 sps:$4 sm:$0xff]   ;;  %v14075_v0 = vld [vmem:[%s19458_s5 + $0x48c] ss:$16 sps:$4 sm:$0xff]  }
 0x374   : > { %4298 = vmatpush1.bf16.msra.mxu1 %v13982_v1  ;;  %4828 = vmatpush1.bf16.msra.mxu0 %v13985_v59  ;;  %v14078_v1 = vld [vmem:[%s19458_s5 + $0x6a4] ss:$16 sps:$4 sm:$0xff]   ;;  %v14073_v59 = vld [vmem:[%s19458_s5 + $0x488] ss:$16 sps:$4 sm:$0xff]  }
 0x375   : > { %4299 = vmatprep.subr.bf16.mxu1 %v13990_v16  ;;  %4829 = vmatprep.subr.bf16.mxu0 %v13993_v10  ;;  %v14076_v16 = vld [vmem:[%s19458_s5 + $0x6a0] ss:$16 sps:$4 sm:$0xff]   ;;  %v14081_v10 = vld [vmem:[%s19458_s5 + $0x4ac] ss:$16 sps:$4 sm:$0xff]  }
 0x378   : > { %4300 = vmatpush1.bf16.msra.mxu1 %v13988_v49  ;;  %4830 = vmatpush1.bf16.msra.mxu0 %v13991_v48  ;;  %v14084_v49 = vld [vmem:[%s19458_s5 + $0x6c4] ss:$16 sps:$4 sm:$0xff]   ;;  %v14079_v48 = vld [vmem:[%s19458_s5 + $0x4a8] ss:$16 sps:$4 sm:$0xff]  }
 0x379   : > { %4301 = vmatprep.subr.bf16.mxu1 %v13996_v2  ;;  %5099 = vmatprep.subr.bf16.mxu0 %v14000_v13  ;;  %v14082_v2 = vld [vmem:[%s19458_s5 + $0x6c0] ss:$16 sps:$4 sm:$0xff]   ;;  %v14087_v13 = vld [vmem:[%s19458_s5 + $0x4cc] ss:$16 sps:$4 sm:$0xff]  }
 0x37b   : > { %4848 = vmatmul.mubr.bf16.vlgmr.msra.gmra.mrb[168].mxu0 %v4653_v21 }
 0x37c   : > { %4302 = vmatpush1.bf16.msra.mxu1 %v13994_v6  ;;  %5100 = vmatpush1.bf16.msra.mxu0 %v13998_v51  ;;  %v14090_v6 = vld [vmem:[%s19458_s5 + $0x6e4] ss:$16 sps:$4 sm:$0xff]   ;;  %v17130_v51 = vld [vmem:[#allocation5] ss:$0 sps:$4 sm:$0x88]  }
 0x37d   : > { %4571 = vmatprep.subr.bf16.mxu1 %v14003_v57  ;;  %5101 = vmatprep.subr.bf16.mxu0 %v14006_v61  ;;  %v14085_v57 = vld [vmem:[%s19458_s5 + $0x4c8] ss:$16 sps:$4 sm:$0xff]   ;;  %v14088_v61 = vld [vmem:[%s19458_s5 + $0x6e0] ss:$16 sps:$4 sm:$0xff]  }
 0x37e   : > { %5131 = vmatprep.mubr.bf16.mxu0 %v15222_v27 }
 0x37f   : > { %4320 = vmatmul.mubr.bf16.vlgmr.msra.gmra.mrb[140].mxu1 %v4084_v11  ;;  %v14013_v11 = vld [vmem:[%s19458_s5 + $0x348] ss:$16 sps:$4 sm:$0xff]  }
 0x380   : > { %4572 = vmatpush1.bf16.msra.mxu1 %v14001_v30  ;;  %5102 = vmatpush1.bf16.msra.mxu0 %v14004_v19  ;;  %v14093_v30 = vld [vmem:[%s19458_s5 + $0x4ec] ss:$16 sps:$4 sm:$0xff]   ;;  %v14097_v19 = vld [vmem:[%s19458_s5 + $0x704] ss:$16 sps:$4 sm:$0xff]  }
 0x381   : > { %4573 = vmatprep.subr.bf16.mxu1 %v14009_v32  ;;  %5103 = vmatprep.subr.bf16.mxu0 %v14012_v7  ;;  %v14091_v32 = vld [vmem:[%s19458_s5 + $0x4e8] ss:$16 sps:$4 sm:$0xff]   ;;  %v14095_v7 = vld [vmem:[%s19458_s5 + $0x700] ss:$16 sps:$4 sm:$0xff]  }
 0x382   : > { %4603 = vmatprep.mubr.bf16.mxu1 %v15222_v27 }
 0x384   : > { %4574 = vmatpush1.bf16.msra.mxu1 %v14007_v55  ;;  %5104 = vmatpush1.bf16.msra.mxu0 %v14010_v63  ;;  %v5222_v55 = vrot.slane %v17130_v51, 3  ;;  %v14100_v63 = vld [vmem:[%s19458_s5 + $0x50c] ss:$16 sps:$4 sm:$0xff]  }
 0x385   : > { %4575 = vmatprep.subr.bf16.mxu1 %v14015_v44  ;;  %5105 = vmatprep.subr.bf16.mxu0 %v14018_v47  ;;  %v14103_v44 = vld [vmem:[%s19458_s5 + $0x724] ss:$16 sps:$4 sm:$0xff]   ;;  %v14098_v47 = vld [vmem:[%s19458_s5 + $0x508] ss:$16 sps:$4 sm:$0xff]  }
 0x388   : > { %4576 = vmatpush1.bf16.msra.mxu1 %v14013_v11  ;;  %5106 = vmatpush1.bf16.msra.mxu0 %v14016_v53  ;;  %v14101_v11 = vld [vmem:[%s19458_s5 + $0x720] ss:$16 sps:$4 sm:$0xff]   ;;  %v14106_v53 = vld [vmem:[%s19458_s5 + $0x52c] ss:$16 sps:$4 sm:$0xff]  }
 0x389   : > { %4577 = vmatprep.subr.bf16.mxu1 %v14021_v29  ;;  %5107 = vmatprep.subr.bf16.mxu0 %v14024_v52  ;;  %v14109_v29 = vld [vmem:[%s19458_s5 + $0x744] ss:$16 sps:$4 sm:$0xff]   ;;  %v14104_v52 = vld [vmem:[%s19458_s5 + $0x528] ss:$16 sps:$4 sm:$0xff]  }
 0x38c   : > { %4578 = vmatpush1.bf16.msra.mxu1 %v14019_v15  ;;  %5108 = vmatpush1.bf16.msra.mxu0 %v14022_v43  ;;  %v14107_v15 = vld [vmem:[%s19458_s5 + $0x740] ss:$16 sps:$4 sm:$0xff]   ;;  %v14112_v43 = vld [vmem:[%s19458_s5 + $0x54c] ss:$16 sps:$4 sm:$0xff]  }
 0x38d   : > { %4579 = vmatprep.subr.bf16.mxu1 %v14027_v39  ;;  %5109 = vmatprep.subr.bf16.mxu0 %v14030_v12  ;;  %v14113_v39 = vld [vmem:[%s19458_s5 + $0x760] ss:$16 sps:$4 sm:$0xff]   ;;  %v14118_v12 = vld [vmem:[%s19458_s5 + $0x56c] ss:$16 sps:$4 sm:$0xff]  }
 0x390   : > { %4580 = vmatpush1.bf16.msra.mxu1 %v14025_v37  ;;  %5110 = vmatpush1.bf16.msra.mxu0 %v14028_v18  ;;  %v14121_v37 = vld [vmem:[%s19458_s5 + $0x784] ss:$16 sps:$4 sm:$0xff]   ;;  %v14116_v18 = vld [vmem:[%s19458_s5 + $0x568] ss:$16 sps:$4 sm:$0xff]  }
 0x391   : > { %4581 = vmatprep.subr.bf16.mxu1 %v14033_v35  ;;  %5111 = vmatprep.subr.bf16.mxu0 %v14036_v24  ;;  %v14119_v35 = vld [vmem:[%s19458_s5 + $0x780] ss:$16 sps:$4 sm:$0xff]   ;;  %v14124_v24 = vld [vmem:[%s19458_s5 + $0x58c] ss:$16 sps:$4 sm:$0xff]  }
 0x394   : > { %4582 = vmatpush1.bf16.msra.mxu1 %v14031_v41  ;;  %5112 = vmatpush1.bf16.msra.mxu0 %v14034_v4  ;;  %v14127_v41 = vld [vmem:[%s19458_s5 + $0x7a4] ss:$16 sps:$4 sm:$0xff]   ;;  %v14122_v4 = vld [vmem:[%s19458_s5 + $0x588] ss:$16 sps:$4 sm:$0xff]  }
 0x395   : > { %4583 = vmatprep.subr.bf16.mxu1 %v14039_v33  ;;  %5113 = vmatprep.subr.bf16.mxu0 %v14042_v50  ;;  %v14125_v33 = vld [vmem:[%s19458_s5 + $0x7a0] ss:$16 sps:$4 sm:$0xff]   ;;  %v14130_v50 = vld [vmem:[%s19458_s5 + $0x5ac] ss:$16 sps:$4 sm:$0xff]  }
 0x398   : > { %4584 = vmatpush1.bf16.msra.mxu1 %v14037_v46  ;;  %5114 = vmatpush1.bf16.msra.mxu0 %v14040_v34  ;;  %v14133_v46 = vld [vmem:[%s19458_s5 + $0x7c4] ss:$16 sps:$4 sm:$0xff]   ;;  %v14128_v34 = vld [vmem:[%s19458_s5 + $0x5a8] ss:$16 sps:$4 sm:$0xff]  }
 0x399   : > { %4585 = vmatprep.subr.bf16.mxu1 %v14045_v40  ;;  %5384 = vmatprep.subr.bf16.mxu0 %v14048_v20  ;;  %v14131_v40 = vld [vmem:[%s19458_s5 + $0x7c0] ss:$16 sps:$4 sm:$0xff]   ;;  %v14139_v20 = vld [vmem:[%s19458_s5 + $0x7e4] ss:$16 sps:$4 sm:$0xff]  }
 0x39b   : > { %5132 = vmatmul.mubr.bf16.vlgmr.msra.gmra.mrb[172].mxu0 %v17046_v3 }
 0x39c   : > { %4586 = vmatpush1.bf16.msra.mxu1 %v14043_v36  ;;  %5385 = vmatpush1.bf16.msra.mxu0 %v14046_v58  ;;  %v14134_v36 = vld [vmem:[%s19458_s5 + $0x5c8] ss:$16 sps:$4 sm:$0xff]   ;;  %v14137_v58 = vld [vmem:[%s19458_s5 + $0x7e0] ss:$16 sps:$4 sm:$0xff]  }
 0x39d   : > { %4856 = vmatprep.subr.bf16.mxu1 %v14051_v9  ;;  %5386 = vmatprep.subr.bf16.mxu0 %v14054_v28  ;;  %v14142_v9 = vld [vmem:[%s19458_s5 + $0x5ec] ss:$16 sps:$4 sm:$0xff]   ;;  %v5504_v28 = vshrl.u32 %v17130_v51, 16  ;;  %v14212_v51 = vld [vmem:[%s19458_s5 + $0x964] ss:$16 sps:$4 sm:$0xff]  }
 0x39e   : > { %5416 = vmatprep.mubr.bf16.mxu0 %v15222_v27 }
 0x39f   : > { %4604 = vmatmul.mubr.bf16.vlgmr.msra.gmra.mrb[144].mxu1 %v16838_v42  ;;  %v14066_v42 = vld [vmem:[%s19458_s5 + $0x664] ss:$16 sps:$4 sm:$0xff]  }
 0x3a0   : > { %4857 = vmatpush1.bf16.msra.mxu1 %v14049_v14  ;;  %5387 = vmatpush1.bf16.msra.mxu0 %v14052_v25  ;;  %v14145_v14 = vld [vmem:[%s19458_s5 + $0x804] ss:$16 sps:$4 sm:$0xff]   ;;  %v14140_v25 = vld [vmem:[%s19458_s5 + $0x5e8] ss:$16 sps:$4 sm:$0xff]  }
 0x3a1   : > { %4858 = vmatprep.subr.bf16.mxu1 %v14057_v5  ;;  %5388 = vmatprep.subr.bf16.mxu0 %v14060_v8  ;;  %v14143_v5 = vld [vmem:[%s19458_s5 + $0x800] ss:$16 sps:$4 sm:$0xff]   ;;  %v17254_v8 = vrot.slane %v5504_v28, 3 }
 0x3a2   : > { %4888 = vmatprep.mubr.bf16.mxu1 %v15222_v27  ;;  %v14216_v28 = vld [vmem:[%s19458_s5 + $0x980] ss:$16 sps:$4 sm:$0xff]  }
 0x3a4   : > { %4859 = vmatpush1.bf16.msra.mxu1 %v14055_v22  ;;  %5389 = vmatpush1.bf16.msra.mxu0 %v14058_v17  ;;  %v14148_v22 = vld [vmem:[%s19458_s5 + $0x60c] ss:$16 sps:$4 sm:$0xff]   ;;  %v14151_v17 = vld [vmem:[%s19458_s5 + $0x824] ss:$16 sps:$4 sm:$0xff]  }
 0x3a5   : > { %4860 = vmatprep.subr.bf16.mxu1 %v14063_v31  ;;  %5390 = vmatprep.subr.bf16.mxu0 %v14066_v42  ;;  %v14146_v31 = vld [vmem:[%s19458_s5 + $0x608] ss:$16 sps:$4 sm:$0xff]   ;;  %v14149_v42 = vld [vmem:[%s19458_s5 + $0x820] ss:$16 sps:$4 sm:$0xff]  }
 0x3a8   : > { %4861 = vmatpush1.bf16.msra.mxu1 %v14061_v26  ;;  %5391 = vmatpush1.bf16.msra.mxu0 %v14064_v38  ;;  %v14154_v26 = vld [vmem:[%s19458_s5 + $0x62c] ss:$16 sps:$4 sm:$0xff]   ;;  %v14157_v38 = vld [vmem:[%s19458_s5 + $0x844] ss:$16 sps:$4 sm:$0xff]  }
 0x3a9   : > { %4862 = vmatprep.subr.bf16.mxu1 %v14069_v62  ;;  %5392 = vmatprep.subr.bf16.mxu0 %v14072_v23  ;;  %v14152_v62 = vld [vmem:[%s19458_s5 + $0x628] ss:$16 sps:$4 sm:$0xff]   ;;  %v14155_v23 = vld [vmem:[%s19458_s5 + $0x840] ss:$16 sps:$4 sm:$0xff]  }
 0x3ac   : > { %4863 = vmatpush1.bf16.msra.mxu1 %v14067_v45  ;;  %5393 = vmatpush1.bf16.msra.mxu0 %v14070_v56  ;;  %v14160_v45 = vld [vmem:[%s19458_s5 + $0x64c] ss:$16 sps:$4 sm:$0xff]   ;;  %v14158_v56 = vld [vmem:[%s19458_s5 + $0x648] ss:$16 sps:$4 sm:$0xff]  }
 0x3ad   : > { %4864 = vmatprep.subr.bf16.mxu1 %v14075_v0  ;;  %5394 = vmatprep.subr.bf16.mxu0 %v14078_v1  ;;  %v14161_v0 = vld [vmem:[%s19458_s5 + $0x860] ss:$16 sps:$4 sm:$0xff]   ;;  %v14166_v1 = vld [vmem:[%s19458_s5 + $0x66c] ss:$16 sps:$4 sm:$0xff]  }
 0x3b0   : > { %4865 = vmatpush1.bf16.msra.mxu1 %v14073_v59  ;;  %5395 = vmatpush1.bf16.msra.mxu0 %v14076_v16  ;;  %v14169_v59 = vld [vmem:[%s19458_s5 + $0x884] ss:$16 sps:$4 sm:$0xff]   ;;  %v14164_v16 = vld [vmem:[%s19458_s5 + $0x668] ss:$16 sps:$4 sm:$0xff]  }
 0x3b1   : > { %4866 = vmatprep.subr.bf16.mxu1 %v14081_v10  ;;  %5396 = vmatprep.subr.bf16.mxu0 %v14084_v49  ;;  %v14167_v10 = vld [vmem:[%s19458_s5 + $0x880] ss:$16 sps:$4 sm:$0xff]   ;;  %v14172_v49 = vld [vmem:[%s19458_s5 + $0x68c] ss:$16 sps:$4 sm:$0xff]  }
 0x3b4   : > { %4867 = vmatpush1.bf16.msra.mxu1 %v14079_v48  ;;  %5397 = vmatpush1.bf16.msra.mxu0 %v14082_v2  ;;  %v14175_v48 = vld [vmem:[%s19458_s5 + $0x8a4] ss:$16 sps:$4 sm:$0xff]   ;;  %v14170_v2 = vld [vmem:[%s19458_s5 + $0x688] ss:$16 sps:$4 sm:$0xff]  }
 0x3b5   : > { %4868 = vmatprep.subr.bf16.mxu1 %v14087_v13  ;;  %5398 = vmatprep.subr.bf16.mxu0 %v14090_v6  ;;  %v14173_v13 = vld [vmem:[%s19458_s5 + $0x8a0] ss:$16 sps:$4 sm:$0xff]   ;;  %v14178_v6 = vld [vmem:[%s19458_s5 + $0x6ac] ss:$16 sps:$4 sm:$0xff]  }
 0x3b8   : > { %4869 = vmatpush1.bf16.msra.mxu1 %v14085_v57  ;;  %5399 = vmatpush1.bf16.msra.mxu0 %v14088_v61  ;;  %v14181_v57 = vld [vmem:[%s19458_s5 + $0x8c4] ss:$16 sps:$4 sm:$0xff]  }
 0x3b9   : > { %4870 = vmatprep.subr.bf16.mxu1 %v14093_v30  ;;  %5668 = vmatprep.subr.bf16.mxu0 %v14097_v19 }
 0x3bb   : > { %5417 = vmatmul.mubr.bf16.vlgmr.msra.gmra.mrb[176].mxu0 %v5222_v55 }
 0x3bc   : > { %4871 = vmatpush1.bf16.msra.mxu1 %v14091_v32  ;;  %5669 = vmatpush1.bf16.msra.mxu0 %v14095_v7  ;;  %v14176_v32 = vld [vmem:[%s19458_s5 + $0x6a8] ss:$16 sps:$4 sm:$0xff]   ;;  %v14179_v7 = vld [vmem:[%s19458_s5 + $0x8c0] ss:$16 sps:$4 sm:$0xff]  }
 0x3bd   : > { %5140 = vmatprep.subr.bf16.mxu1 %v14100_v63  ;;  %5670 = vmatprep.subr.bf16.mxu0 %v14103_v44  ;;  %v14184_v44 = vld [vmem:[%s19458_s5 + $0x6cc] ss:$16 sps:$4 sm:$0xff]  }
 0x3be   : > { %5700 = vmatprep.mubr.bf16.mxu0 %v15222_v27 }
 0x3bf   : > { %4889 = vmatmul.mubr.bf16.vlgmr.msra.gmra.mrb[148].mxu1 %v4653_v21  ;;  %v14110_v21 = vld [vmem:[%s19458_s5 + $0x548] ss:$16 sps:$4 sm:$0xff]  }
 0x3c0   : > { %5141 = vmatpush1.bf16.msra.mxu1 %v14098_v47  ;;  %5671 = vmatpush1.bf16.msra.mxu0 %v14101_v11  ;;  %v14187_v47 = vld [vmem:[%s19458_s5 + $0x8e4] ss:$16 sps:$4 sm:$0xff]  }
 0x3c1   : > { %5142 = vmatprep.subr.bf16.mxu1 %v14106_v53  ;;  %5672 = vmatprep.subr.bf16.mxu0 %v14109_v29 }
 0x3c2   : > { %5172 = vmatprep.mubr.bf16.mxu1 %v15222_v27 }
 0x3c4   : > { %5143 = vmatpush1.bf16.msra.mxu1 %v14104_v52  ;;  %5673 = vmatpush1.bf16.msra.mxu0 %v14107_v15 }
 0x3c5   : > { %5144 = vmatprep.subr.bf16.mxu1 %v14112_v43  ;;  %5674 = vmatprep.subr.bf16.mxu0 %v14115_v60  ;;  %v14182_v43 = vld [vmem:[%s19458_s5 + $0x6c8] ss:$16 sps:$4 sm:$0xff]   ;;  %v14185_v60 = vld [vmem:[%s19458_s5 + $0x8e0] ss:$16 sps:$4 sm:$0xff]  }
 0x3c8   : > { %5145 = vmatpush1.bf16.msra.mxu1 %v14110_v21  ;;  %5675 = vmatpush1.bf16.msra.mxu0 %v14113_v39  ;;  %v14190_v39 = vld [vmem:[%s19458_s5 + $0x6ec] ss:$16 sps:$4 sm:$0xff]  }
 0x3c9   : > { %5146 = vmatprep.subr.bf16.mxu1 %v14118_v12  ;;  %5676 = vmatprep.subr.bf16.mxu0 %v14121_v37  ;;  %v14194_v12 = vld [vmem:[%s19458_s5 + $0x904] ss:$16 sps:$4 sm:$0xff]   ;;  %v14188_v37 = vld [vmem:[%s19458_s5 + $0x6e8] ss:$16 sps:$4 sm:$0xff]  }
 0x3cc   : > { %5147 = vmatpush1.bf16.msra.mxu1 %v14116_v18  ;;  %5677 = vmatpush1.bf16.msra.mxu0 %v14119_v35  ;;  %v14192_v18 = vld [vmem:[%s19458_s5 + $0x900] ss:$16 sps:$4 sm:$0xff]   ;;  %v14197_v35 = vld [vmem:[%s19458_s5 + $0x70c] ss:$16 sps:$4 sm:$0xff]  }
 0x3cd   : > { %5148 = vmatprep.subr.bf16.mxu1 %v14124_v24  ;;  %5678 = vmatprep.subr.bf16.mxu0 %v14127_v41  ;;  %v14200_v24 = vld [vmem:[%s19458_s5 + $0x924] ss:$16 sps:$4 sm:$0xff]   ;;  %v17366_v41 = vld [vmem:[#allocation5 + $0x4] sm:$0x1] }
 0x3d0   : > { %5149 = vmatpush1.bf16.msra.mxu1 %v14122_v4  ;;  %5679 = vmatpush1.bf16.msra.mxu0 %v14125_v33  ;;  %v14195_v4 = vld [vmem:[%s19458_s5 + $0x708] ss:$16 sps:$4 sm:$0xff]   ;;  %v14198_v33 = vld [vmem:[%s19458_s5 + $0x920] ss:$16 sps:$4 sm:$0xff]  }
 0x3d1   : > { %5150 = vmatprep.subr.bf16.mxu1 %v14130_v50  ;;  %5680 = vmatprep.subr.bf16.mxu0 %v14133_v46  ;;  %v14203_v50 = vld [vmem:[%s19458_s5 + $0x72c] ss:$16 sps:$4 sm:$0xff]   ;;  %v14206_v46 = vld [vmem:[%s19458_s5 + $0x944] ss:$16 sps:$4 sm:$0xff]  }
 0x3d4   : > { %5151 = vmatpush1.bf16.msra.mxu1 %v14128_v34  ;;  %5681 = vmatpush1.bf16.msra.mxu0 %v14131_v40  ;;  %v14201_v34 = vld [vmem:[%s19458_s5 + $0x728] ss:$16 sps:$4 sm:$0xff]   ;;  %v14204_v40 = vld [vmem:[%s19458_s5 + $0x940] ss:$16 sps:$4 sm:$0xff]  }
 0x3d5   : > { %5152 = vmatprep.subr.bf16.mxu1 %v14136_v54  ;;  %5682 = vmatprep.subr.bf16.mxu0 %v14139_v20  ;;  %v14209_v54 = vld [vmem:[%s19458_s5 + $0x74c] ss:$16 sps:$4 sm:$0xff]   ;;  %v14210_v20 = vld [vmem:[%s19458_s5 + $0x960] ss:$16 sps:$4 sm:$0xff]  }
 0x3d8   : > { %5153 = vmatpush1.bf16.msra.mxu1 %v14134_v36  ;;  %5683 = vmatpush1.bf16.msra.mxu0 %v14137_v58  ;;  %v14215_v36 = vld [vmem:[%s19458_s5 + $0x76c] ss:$16 sps:$4 sm:$0xff]   ;;  %v14218_v58 = vld [vmem:[%s19458_s5 + $0x984] ss:$16 sps:$4 sm:$0xff]  }
 0x3d9   : > { %5154 = vmatprep.subr.bf16.mxu1 %v14142_v9  ;;  %5948 = vmatprep.subr.bf16.mxu0 %v14145_v14  ;;  %v14213_v9 = vld [vmem:[%s19458_s5 + $0x768] ss:$16 sps:$4 sm:$0xff]   ;;  %v14221_v14 = vld [vmem:[%s19458_s5 + $0x78c] ss:$16 sps:$4 sm:$0xff]  }
 0x3db   : > { %5701 = vmatmul.mubr.bf16.vlgmr.msra.gmra.mrb[180].mxu0 %v17254_v8 }
 0x3dc   : > { %5155 = vmatpush1.bf16.msra.mxu1 %v14140_v25  ;;  %5949 = vmatpush1.bf16.msra.mxu0 %v14143_v5  ;;  %v14224_v25 = vld [vmem:[%s19458_s5 + $0x9a4] ss:$16 sps:$4 sm:$0xff]   ;;  %v14219_v5 = vld [vmem:[%s19458_s5 + $0x788] ss:$16 sps:$4 sm:$0xff]  }
 0x3dd   : > { %5425 = vmatprep.subr.bf16.mxu1 %v14148_v22  ;;  %5950 = vmatprep.subr.bf16.mxu0 %v14151_v17  ;;  %v14222_v22 = vld [vmem:[%s19458_s5 + $0x9a0] ss:$16 sps:$4 sm:$0xff]   ;;  %v14227_v17 = vld [vmem:[%s19458_s5 + $0x7ac] ss:$16 sps:$4 sm:$0xff]  }
 0x3de   : > { %5980 = vmatprep.mubr.bf16.mxu0 %v15222_v27 }
 0x3df   : > { %5173 = vmatmul.mubr.bf16.vlgmr.msra.gmra.mrb[152].mxu1 %v17046_v3  ;;  %v14163_v3 = vld [vmem:[%s19458_s5 + $0x864] ss:$16 sps:$4 sm:$0xff]  }
 0x3e0   : > { %5426 = vmatpush1.bf16.msra.mxu1 %v14146_v31  ;;  %5951 = vmatpush1.bf16.msra.mxu0 %v14149_v42  ;;  %v14230_v31 = vld [vmem:[%s19458_s5 + $0x9c4] ss:$16 sps:$4 sm:$0xff]  }
 0x3e1   : > { %5427 = vmatprep.subr.bf16.mxu1 %v14154_v26  ;;  %5952 = vmatprep.subr.bf16.mxu0 %v14157_v38 }
 0x3e2   : > { %5457 = vmatprep.mubr.bf16.mxu1 %v15222_v27 }
 0x3e4   : > { %5428 = vmatpush1.bf16.msra.mxu1 %v14152_v62  ;;  %5953 = vmatpush1.bf16.msra.mxu0 %v14155_v23 }
 0x3e5   : > { %5429 = vmatprep.subr.bf16.mxu1 %v14160_v45  ;;  %5954 = vmatprep.subr.bf16.mxu0 %v14163_v3  ;;  %v14225_v45 = vld [vmem:[%s19458_s5 + $0x7a8] ss:$16 sps:$4 sm:$0xff]   ;;  %v14228_v3 = vld [vmem:[%s19458_s5 + $0x9c0] ss:$16 sps:$4 sm:$0xff]  }
 0x3e8   : > { %5430 = vmatpush1.bf16.msra.mxu1 %v14158_v56  ;;  %5955 = vmatpush1.bf16.msra.mxu0 %v14161_v0  ;;  %v14233_v0 = vld [vmem:[%s19458_s5 + $0x7cc] ss:$16 sps:$4 sm:$0xff]  }
 0x3e9   : > { %5431 = vmatprep.subr.bf16.mxu1 %v14166_v1  ;;  %5956 = vmatprep.subr.bf16.mxu0 %v14169_v59  ;;  %v14236_v1 = vld [vmem:[%s19458_s5 + $0x9e4] ss:$16 sps:$4 sm:$0xff]  }
 0x3ec   : > { %5432 = vmatpush1.bf16.msra.mxu1 %v14164_v16  ;;  %5957 = vmatpush1.bf16.msra.mxu0 %v14167_v10 }
 0x3ed   : > { %5433 = vmatprep.subr.bf16.mxu1 %v14172_v49  ;;  %5958 = vmatprep.subr.bf16.mxu0 %v14175_v48  ;;  %v14231_v49 = vld [vmem:[%s19458_s5 + $0x7c8] ss:$16 sps:$4 sm:$0xff]   ;;  %v14234_v48 = vld [vmem:[%s19458_s5 + $0x9e0] ss:$16 sps:$4 sm:$0xff]  }
 0x3ee   : > { %v3999_v61 = vpop.f32.mrb[156].mxu0 }
 0x3ef   : > { %v4001_v30 = vpop.f32.mrb[157].mxu0 }
 0x3f0   : > { %5434 = vmatpush1.bf16.msra.mxu1 %v14170_v2  ;;  %5959 = vmatpush1.bf16.msra.mxu0 %v14173_v13  ;;  %v4003_v19 = vpop.f32.mrb[158].mxu0  ;;  %v11914_v2 = vcombine.low %v17366_v41, %v17366_v41 }
 0x3f1   : > { %v4004_v63 = vpop.f32.mrb[159].mxu0  ;;  %5435 = vmatprep.subr.bf16.mxu1 %v14178_v6  ;;  %5960 = vmatprep.subr.bf16.mxu0 %v14181_v57  ;;  %v14239_v6 = vld [vmem:[%s19458_s5 + $0x7ec] ss:$16 sps:$4 sm:$0xff]   ;;  %v14242_v57 = vld [vmem:[%s19458_s5 + $0xa04] ss:$16 sps:$4 sm:$0xff]  }
 0x3f2   : > { %v3757_v11 = vpop.f32.mrb[128].mxu1  ;;  %v17475_v19 = vshrl.u32 %v11914_v2, 16  ;;  %v14243_v63 = vld [vmem:[%s19458_s5 + $0x808] ss:$16 sps:$4 sm:$0xff]  }
 0x3f3   : > { %v17338_v53 = vadd.f32 %v3999_v61, %v3757_v11  ;;  %v3759_v29 = vpop.f32.mrb[129].mxu1  ;;  %v14237_v61 = vld [vmem:[%s19458_s5 + $0x7e8] ss:$16 sps:$4 sm:$0xff]   ;;  %v14254_v11 = vld [vmem:[%s19458_s5 + $0xa44] ss:$16 sps:$4 sm:$0xff]  }
 0x3f4   : > { %v17340_v52 = vadd.f32 %v4001_v30, %v3759_v29  ;;  %5436 = vmatpush1.bf16.msra.mxu1 %v14176_v32  ;;  %5961 = vmatpush1.bf16.msra.mxu0 %v14179_v7  ;;  %v3761_v15 = vpop.f32.mrb[130].mxu1  ;;  %v14240_v30 = vld [vmem:[%s19458_s5 + $0xa00] ss:$16 sps:$4 sm:$0xff]   ;;  %v14245_v32 = vld [vmem:[%s19458_s5 + $0x80c] ss:$16 sps:$4 sm:$0xff]  }
 0x3f5   : > { %v3762_v21 = vpop.f32.mrb[131].mxu1  ;;  %5437 = vmatprep.subr.bf16.mxu1 %v14184_v44  ;;  %5962 = vmatprep.subr.bf16.mxu0 %v14187_v47  ;;  %v14248_v7 = vld [vmem:[%s19458_s5 + $0xa24] ss:$16 sps:$4 sm:$0xff]   ;;  %v14246_v44 = vld [vmem:[%s19458_s5 + $0xa20] ss:$16 sps:$4 sm:$0xff]  }
 0x3f6   : > { %v14251_v47 = vld [vmem:[%s19458_s5 + $0x82c] ss:$16 sps:$4 sm:$0xff]   ;;  %v14252_v29 = vld [vmem:[%s19458_s5 + $0xa40] ss:$16 sps:$4 sm:$0xff]   ;;  %v14255_v15 = vld [vmem:[%s19458_s5 + $0x848] ss:$16 sps:$4 sm:$0xff]  }
 0x3f7   : > { %v14266_v21 = vld [vmem:[%s19458_s5 + $0xa84] ss:$16 sps:$4 sm:$0xff]   ;;  %v14304_v2 = vld [vmem:[%s19458_s5 + $0x948] ss:$16 sps:$4 sm:$0xff]  }
 0x3f8   : > { %5438 = vmatpush1.bf16.msra.mxu1 %v14182_v43  ;;  %5963 = vmatpush1.bf16.msra.mxu0 %v14185_v60  ;;  %v14258_v43 = vld [vmem:[%s19458_s5 + $0xa60] ss:$16 sps:$4 sm:$0xff]   ;;  %v14263_v60 = vld [vmem:[%s19458_s5 + $0x86c] ss:$16 sps:$4 sm:$0xff]  }
 0x3f9   : > { %5439 = vmatprep.subr.bf16.mxu1 %v14190_v39  ;;  %6234 = vmatprep.subr.bf16.mxu0 %v14194_v12  ;;  %v14261_v39 = vld [vmem:[%s19458_s5 + $0x868] ss:$16 sps:$4 sm:$0xff]   ;;  %v14264_v12 = vld [vmem:[%s19458_s5 + $0xa80] ss:$16 sps:$4 sm:$0xff]  }
 0x3fb   : > { %5981 = vmatmul.mubr.bf16.vlgmr.msra.gmra.mrb[184].mxu0 %v17366_v41 }
 0x3fc   : > { %5440 = vmatpush1.bf16.msra.mxu1 %v14188_v37  ;;  %6235 = vmatpush1.bf16.msra.mxu0 %v14192_v18  ;;  %v14269_v37 = vld [vmem:[%s19458_s5 + $0x88c] ss:$16 sps:$4 sm:$0xff]   ;;  %v14272_v18 = vld [vmem:[%s19458_s5 + $0xaa4] ss:$16 sps:$4 sm:$0xff]  }
 0x3fd   : > { %5709 = vmatprep.subr.bf16.mxu1 %v14197_v35  ;;  %6236 = vmatprep.subr.bf16.mxu0 %v14200_v24  ;;  %v14267_v35 = vld [vmem:[%s19458_s5 + $0x888] ss:$16 sps:$4 sm:$0xff]   ;;  %v14270_v24 = vld [vmem:[%s19458_s5 + $0xaa0] ss:$16 sps:$4 sm:$0xff]  }
 0x3fe   : > { %6266 = vmatprep.mubr.bf16.mxu0 %v15222_v27 }
 0x3ff   : > { %5458 = vmatmul.mubr.bf16.vlgmr.msra.gmra.mrb[156].mxu1 %v5222_v55  ;;  %v14207_v55 = vld [vmem:[%s19458_s5 + $0x748] ss:$16 sps:$4 sm:$0xff]  }
 0x400   : > { %5710 = vmatpush1.bf16.msra.mxu1 %v14195_v4  ;;  %6237 = vmatpush1.bf16.msra.mxu0 %v14198_v33  ;;  %v14275_v4 = vld [vmem:[%s19458_s5 + $0x8ac] ss:$16 sps:$4 sm:$0xff]   ;;  %v14278_v33 = vld [vmem:[%s19458_s5 + $0xac4] ss:$16 sps:$4 sm:$0xff]  }
 0x401   : > { %5711 = vmatprep.subr.bf16.mxu1 %v14203_v50  ;;  %6238 = vmatprep.subr.bf16.mxu0 %v14206_v46 }
 0x402   : > { %5741 = vmatprep.mubr.bf16.mxu1 %v15222_v27 }
 0x404   : > { %5712 = vmatpush1.bf16.msra.mxu1 %v14201_v34  ;;  %6239 = vmatpush1.bf16.msra.mxu0 %v14204_v40 }
 0x405   : > { %5713 = vmatprep.subr.bf16.mxu1 %v14209_v54  ;;  %6240 = vmatprep.subr.bf16.mxu0 %v14212_v51  ;;  %v14273_v51 = vld [vmem:[%s19458_s5 + $0x8a8] ss:$16 sps:$4 sm:$0xff]  }
 0x408   : > { %5714 = vmatpush1.bf16.msra.mxu1 %v14207_v55  ;;  %6241 = vmatpush1.bf16.msra.mxu0 %v14210_v20  ;;  %v14276_v55 = vld [vmem:[%s19458_s5 + $0xac0] ss:$16 sps:$4 sm:$0xff]  }
 0x409   : > { %5715 = vmatprep.subr.bf16.mxu1 %v14215_v36  ;;  %6242 = vmatprep.subr.bf16.mxu0 %v14218_v58  ;;  %v14281_v36 = vld [vmem:[%s19458_s5 + $0x8cc] ss:$16 sps:$4 sm:$0xff]   ;;  %v14284_v58 = vld [vmem:[%s19458_s5 + $0xae4] ss:$16 sps:$4 sm:$0xff]  }
 0x40c   : > { %5716 = vmatpush1.bf16.msra.mxu1 %v14213_v9  ;;  %6243 = vmatpush1.bf16.msra.mxu0 %v14216_v28 }
 0x40d   : > { %5717 = vmatprep.subr.bf16.mxu1 %v14221_v14  ;;  %6244 = vmatprep.subr.bf16.mxu0 %v14224_v25  ;;  %v17568_v25 = vld [vmem:[#allocation5 + $0x4] ss:$0 sps:$4 sm:$0x22]  }
 0x40e   : > { %v4280_v42 = vpop.f32.mrb[160].mxu0 }
 0x40f   : > { %v17434_v26 = vadd.f32 %v4280_v42, %v17338_v53  ;;  %v4282_v38 = vpop.f32.mrb[161].mxu0  ;;  %v14249_v53 = vld [vmem:[%s19458_s5 + $0x828] ss:$16 sps:$4 sm:$0xff]  }
 0x410   : > { %v17437_v62 = vadd.f32 %v4282_v38, %v17340_v52  ;;  %v4284_v23 = vpop.f32.mrb[162].mxu0  ;;  %5718 = vmatpush1.bf16.msra.mxu1 %v14219_v5  ;;  %6245 = vmatpush1.bf16.msra.mxu0 %v14222_v22  ;;  %v14257_v52 = vld [vmem:[%s19458_s5 + $0x84c] ss:$16 sps:$4 sm:$0xff]   ;;  %v14291_v38 = vld [vmem:[%s19458_s5 + $0xb04] ss:$16 sps:$4 sm:$0xff]  }
 0x411   : > { %v4285_v56 = vpop.f32.mrb[163].mxu0  ;;  %5719 = vmatprep.subr.bf16.mxu1 %v14227_v17  ;;  %6246 = vmatprep.subr.bf16.mxu0 %v14230_v31  ;;  %v14279_v17 = vld [vmem:[%s19458_s5 + $0x8c8] ss:$16 sps:$4 sm:$0xff]   ;;  %v14282_v31 = vld [vmem:[%s19458_s5 + $0xae0] ss:$16 sps:$4 sm:$0xff]  }
 0x412   : > { %v17451_v59 = vpop.f32.mrb[132].mxu1  ;;  %v14289_v23 = vld [vmem:[%s19458_s5 + $0xb00] ss:$16 sps:$4 sm:$0xff]   ;;  %v14297_v56 = vld [vmem:[%s19458_s5 + $0xb24] ss:$16 sps:$4 sm:$0xff]  }
 0x413   : > { %v17453_v16 = vpop.f32.mrb[133].mxu1 }
 0x414   : > { %v3802_v10 = vpop.f32.mrb[134].mxu1  ;;  %5720 = vmatpush1.bf16.msra.mxu1 %v14225_v45  ;;  %6247 = vmatpush1.bf16.msra.mxu0 %v14228_v3  ;;  %v6357_v45 = vrot.slane %v17568_v25, 1  ;;  %v14294_v3 = vld [vmem:[%s19458_s5 + $0x90c] ss:$16 sps:$4 sm:$0xff]  }
 0x415   : > { %v3803_v13 = vpop.f32.mrb[135].mxu1  ;;  %5721 = vmatprep.subr.bf16.mxu1 %v14233_v0  ;;  %6248 = vmatprep.subr.bf16.mxu0 %v14236_v1  ;;  %v14292_v0 = vld [vmem:[%s19458_s5 + $0x908] ss:$16 sps:$4 sm:$0xff]   ;;  %v14295_v1 = vld [vmem:[%s19458_s5 + $0xb20] ss:$16 sps:$4 sm:$0xff]  }
 0x416   : > { %v14298_v10 = vld [vmem:[%s19458_s5 + $0x928] ss:$16 sps:$4 sm:$0xff]   ;;  %v14307_v13 = vld [vmem:[%s19458_s5 + $0xb60] ss:$16 sps:$4 sm:$0xff]  }
 0x418   : > { %5722 = vmatpush1.bf16.msra.mxu1 %v14231_v49  ;;  %6249 = vmatpush1.bf16.msra.mxu0 %v14234_v48  ;;  %v14301_v49 = vld [vmem:[%s19458_s5 + $0xb40] ss:$16 sps:$4 sm:$0xff]   ;;  %v14306_v48 = vld [vmem:[%s19458_s5 + $0x94c] ss:$16 sps:$4 sm:$0xff]  }
 0x419   : > { %5723 = vmatprep.subr.bf16.mxu1 %v14239_v6  ;;  %6519 = vmatprep.subr.bf16.mxu0 %v14242_v57  ;;  %v14312_v6 = vld [vmem:[%s19458_s5 + $0x96c] ss:$16 sps:$4 sm:$0xff]   ;;  %v14315_v57 = vld [vmem:[%s19458_s5 + $0xb84] ss:$16 sps:$4 sm:$0xff]  }
 0x41b   : > { %6267 = vmatmul.mubr.bf16.vlgmr.msra.gmra.mrb[188].mxu0 %v17475_v19 }
 0x41c   : > { %5724 = vmatpush1.bf16.msra.mxu1 %v14237_v61  ;;  %6520 = vmatpush1.bf16.msra.mxu0 %v14240_v30  ;;  %v14310_v61 = vld [vmem:[%s19458_s5 + $0x968] ss:$16 sps:$4 sm:$0xff]   ;;  %v14313_v30 = vld [vmem:[%s19458_s5 + $0xb80] ss:$16 sps:$4 sm:$0xff]  }
 0x41d   : > { %5989 = vmatprep.subr.bf16.mxu1 %v14245_v32  ;;  %6521 = vmatprep.subr.bf16.mxu0 %v14248_v7  ;;  %v14318_v32 = vld [vmem:[%s19458_s5 + $0x98c] ss:$16 sps:$4 sm:$0xff]   ;;  %v14321_v7 = vld [vmem:[%s19458_s5 + $0xba4] ss:$16 sps:$4 sm:$0xff]  }
 0x41e   : > { %6551 = vmatprep.mubr.bf16.mxu0 %v15222_v27 }
 0x41f   : > { %5742 = vmatmul.mubr.bf16.vlgmr.msra.gmra.mrb[160].mxu1 %v17254_v8  ;;  %v14260_v8 = vld [vmem:[%s19458_s5 + $0xa64] ss:$16 sps:$4 sm:$0xff]  }
 0x420   : > { %5990 = vmatpush1.bf16.msra.mxu1 %v14243_v63  ;;  %6522 = vmatpush1.bf16.msra.mxu0 %v14246_v44  ;;  %v14316_v63 = vld [vmem:[%s19458_s5 + $0x988] ss:$16 sps:$4 sm:$0xff]   ;;  %v14319_v44 = vld [vmem:[%s19458_s5 + $0xba0] ss:$16 sps:$4 sm:$0xff]  }
 0x421   : > { %5991 = vmatprep.subr.bf16.mxu1 %v14251_v47  ;;  %6523 = vmatprep.subr.bf16.mxu0 %v14254_v11  ;;  %v14324_v47 = vld [vmem:[%s19458_s5 + $0x9ac] ss:$16 sps:$4 sm:$0xff]   ;;  %v14327_v11 = vld [vmem:[%s19458_s5 + $0xbc4] ss:$16 sps:$4 sm:$0xff]  }
 0x422   : > { %6021 = vmatprep.mubr.bf16.mxu1 %v15222_v27 }
 0x424   : > { %5992 = vmatpush1.bf16.msra.mxu1 %v14249_v53  ;;  %6524 = vmatpush1.bf16.msra.mxu0 %v14252_v29 }
 0x425   : > { %5993 = vmatprep.subr.bf16.mxu1 %v14257_v52  ;;  %6525 = vmatprep.subr.bf16.mxu0 %v14260_v8 }
 0x428   : > { %5994 = vmatpush1.bf16.msra.mxu1 %v14255_v15  ;;  %6526 = vmatpush1.bf16.msra.mxu0 %v14258_v43  ;;  %v14322_v43 = vld [vmem:[%s19458_s5 + $0x9a8] ss:$16 sps:$4 sm:$0xff]  }
 0x429   : > { %5995 = vmatprep.subr.bf16.mxu1 %v14263_v60  ;;  %6527 = vmatprep.subr.bf16.mxu0 %v14266_v21  ;;  %v14325_v60 = vld [vmem:[%s19458_s5 + $0xbc0] ss:$16 sps:$4 sm:$0xff]  }
 0x42c   : > { %5996 = vmatpush1.bf16.msra.mxu1 %v14261_v39  ;;  %6528 = vmatpush1.bf16.msra.mxu0 %v14264_v12  ;;  %v14330_v39 = vld [vmem:[%s19458_s5 + $0x9cc] ss:$16 sps:$4 sm:$0xff]   ;;  %v14333_v12 = vld [vmem:[%s19458_s5 + $0xbe4] ss:$16 sps:$4 sm:$0xff]  }
 0x42d   : > { %5997 = vmatprep.subr.bf16.mxu1 %v14269_v37  ;;  %6529 = vmatprep.subr.bf16.mxu0 %v14272_v18 }
 0x42e   : > { %v4564_v50 = vpop.f32.mrb[164].mxu0 }
 0x42f   : > { %v17548_v46 = vadd.f32 %v4564_v50, %v17434_v26  ;;  %v4566_v34 = vpop.f32.mrb[165].mxu0  ;;  %v14287_v26 = vld [vmem:[%s19458_s5 + $0x8ec] ss:$16 sps:$4 sm:$0xff]   ;;  %v14331_v50 = vld [vmem:[%s19458_s5 + $0xbe0] ss:$16 sps:$4 sm:$0xff]  }
 0x430   : > { %v17551_v40 = vadd.f32 %v4566_v34, %v17437_v62  ;;  %v4568_v54 = vpop.f32.mrb[166].mxu0  ;;  %5998 = vmatpush1.bf16.msra.mxu1 %v14267_v35  ;;  %6530 = vmatpush1.bf16.msra.mxu0 %v14270_v24  ;;  %v14285_v62 = vld [vmem:[%s19458_s5 + $0x8e8] ss:$16 sps:$4 sm:$0xff]   ;;  %v14336_v34 = vld [vmem:[%s19458_s5 + $0x9ec] ss:$16 sps:$4 sm:$0xff]  }
 0x431   : > { %v4569_v20 = vpop.f32.mrb[167].mxu0  ;;  %5999 = vmatprep.subr.bf16.mxu1 %v14275_v4  ;;  %6531 = vmatprep.subr.bf16.mxu0 %v14278_v33  ;;  %v14328_v33 = vld [vmem:[%s19458_s5 + $0x9c8] ss:$16 sps:$4 sm:$0xff]   ;;  %v14339_v54 = vld [vmem:[%s19458_s5 + $0xc04] ss:$16 sps:$4 sm:$0xff]  }
 0x432   : > { %v4040_v9 = vpop.f32.mrb[136].mxu1 }
 0x433   : > { %v17566_v28 = vadd.f32 %v4040_v9, %v17451_v59  ;;  %v4042_v14 = vpop.f32.mrb[137].mxu1  ;;  %v14300_v59 = vld [vmem:[%s19458_s5 + $0x92c] ss:$16 sps:$4 sm:$0xff]   ;;  %v14340_v9 = vld [vmem:[%s19458_s5 + $0xa08] ss:$16 sps:$4 sm:$0xff]  }
 0x434   : > { %v17571_v5 = vadd.f32 %v4042_v14, %v17453_v16  ;;  %v4044_v22 = vpop.f32.mrb[138].mxu1  ;;  %6000 = vmatpush1.bf16.msra.mxu1 %v14273_v51  ;;  %6532 = vmatpush1.bf16.msra.mxu0 %v14276_v55  ;;  %v14303_v16 = vld [vmem:[%s19458_s5 + $0xb44] ss:$16 sps:$4 sm:$0xff]   ;;  %v14334_v51 = vld [vmem:[%s19458_s5 + $0x9e8] ss:$16 sps:$4 sm:$0xff]  }
 0x435   : > { %v4045_v42 = vpop.f32.mrb[139].mxu1  ;;  %6001 = vmatprep.subr.bf16.mxu1 %v14281_v36  ;;  %6533 = vmatprep.subr.bf16.mxu0 %v14284_v58  ;;  %v14337_v55 = vld [vmem:[%s19458_s5 + $0xc00] ss:$16 sps:$4 sm:$0xff]   ;;  %v14342_v36 = vld [vmem:[%s19458_s5 + $0xa0c] ss:$16 sps:$4 sm:$0xff]  }
 0x436   : > { %v14345_v58 = vld [vmem:[%s19458_s5 + $0xc24] ss:$16 sps:$4 sm:$0xff]   ;;  %v14348_v14 = vld [vmem:[%s19458_s5 + $0xa2c] ss:$16 sps:$4 sm:$0xff]   ;;  %v14346_v22 = vld [vmem:[%s19458_s5 + $0xa28] ss:$16 sps:$4 sm:$0xff]  }
 0x437   : > { %v14352_v42 = vld [vmem:[%s19458_s5 + $0xa48] ss:$16 sps:$4 sm:$0xff]  }
 0x438   : > { %6002 = vmatpush1.bf16.msra.mxu1 %v14279_v17  ;;  %6534 = vmatpush1.bf16.msra.mxu0 %v14282_v31  ;;  %v14349_v17 = vld [vmem:[%s19458_s5 + $0xc40] ss:$16 sps:$4 sm:$0xff]   ;;  %v14354_v31 = vld [vmem:[%s19458_s5 + $0xa4c] ss:$16 sps:$4 sm:$0xff]  }
 0x439   : > { %6003 = vmatprep.subr.bf16.mxu1 %v14287_v26  ;;  %6803 = vmatprep.subr.bf16.mxu0 %v14291_v38  ;;  %v14355_v26 = vld [vmem:[%s19458_s5 + $0xc60] ss:$16 sps:$4 sm:$0xff]   ;;  %v14360_v38 = vld [vmem:[%s19458_s5 + $0xa6c] ss:$16 sps:$4 sm:$0xff]  }
 0x43b   : > { %6552 = vmatmul.mubr.bf16.vlgmr.msra.gmra.mrb[192].mxu0 %v6357_v45 }
 0x43c   : > { %6004 = vmatpush1.bf16.msra.mxu1 %v14285_v62  ;;  %6804 = vmatpush1.bf16.msra.mxu0 %v14289_v23  ;;  %v14363_v62 = vld [vmem:[%s19458_s5 + $0xc84] ss:$16 sps:$4 sm:$0xff]   ;;  %v14358_v23 = vld [vmem:[%s19458_s5 + $0xa68] ss:$16 sps:$4 sm:$0xff]  }
 0x43d   : > { %6275 = vmatprep.subr.bf16.mxu1 %v14294_v3  ;;  %6805 = vmatprep.subr.bf16.mxu0 %v14297_v56  ;;  %v14361_v3 = vld [vmem:[%s19458_s5 + $0xc80] ss:$16 sps:$4 sm:$0xff]   ;;  %v14366_v56 = vld [vmem:[%s19458_s5 + $0xa8c] ss:$16 sps:$4 sm:$0xff]  }
 0x43e   : > { %6835 = vmatprep.mubr.bf16.mxu0 %v15222_v27 }
 0x43f   : > { %6022 = vmatmul.mubr.bf16.vlgmr.msra.gmra.mrb[164].mxu1 %v17366_v41  ;;  %v14309_v41 = vld [vmem:[%s19458_s5 + $0xb64] ss:$16 sps:$4 sm:$0xff]  }
 0x440   : > { %6276 = vmatpush1.bf16.msra.mxu1 %v14292_v0  ;;  %6806 = vmatpush1.bf16.msra.mxu0 %v14295_v1  ;;  %v14369_v0 = vld [vmem:[%s19458_s5 + $0xca4] ss:$16 sps:$4 sm:$0xff]   ;;  %v14364_v1 = vld [vmem:[%s19458_s5 + $0xa88] ss:$16 sps:$4 sm:$0xff]  }
 0x441   : > { %6277 = vmatprep.subr.bf16.mxu1 %v14300_v59  ;;  %6807 = vmatprep.subr.bf16.mxu0 %v14303_v16  ;;  %v14367_v59 = vld [vmem:[%s19458_s5 + $0xca0] ss:$16 sps:$4 sm:$0xff]   ;;  %v14372_v16 = vld [vmem:[%s19458_s5 + $0xaac] ss:$16 sps:$4 sm:$0xff]  }
 0x442   : > { %6307 = vmatprep.mubr.bf16.mxu1 %v15222_v27 }
 0x444   : > { %6278 = vmatpush1.bf16.msra.mxu1 %v14298_v10  ;;  %6808 = vmatpush1.bf16.msra.mxu0 %v14301_v49  ;;  %v14375_v10 = vld [vmem:[%s19458_s5 + $0xcc4] ss:$16 sps:$4 sm:$0xff]  }
 0x445   : > { %6279 = vmatprep.subr.bf16.mxu1 %v14306_v48  ;;  %6809 = vmatprep.subr.bf16.mxu0 %v14309_v41 }
 0x448   : > { %6280 = vmatpush1.bf16.msra.mxu1 %v14304_v2  ;;  %6810 = vmatpush1.bf16.msra.mxu0 %v14307_v13 }
 0x449   : > { %6281 = vmatprep.subr.bf16.mxu1 %v14312_v6  ;;  %6811 = vmatprep.subr.bf16.mxu0 %v14315_v57  ;;  %v14370_v6 = vld [vmem:[%s19458_s5 + $0xaa8] ss:$16 sps:$4 sm:$0xff]   ;;  %v14373_v57 = vld [vmem:[%s19458_s5 + $0xcc0] ss:$16 sps:$4 sm:$0xff]  }
 0x44c   : > { %6282 = vmatpush1.bf16.msra.mxu1 %v14310_v61  ;;  %6812 = vmatpush1.bf16.msra.mxu0 %v14313_v30  ;;  %v14378_v30 = vld [vmem:[%s19458_s5 + $0xacc] ss:$16 sps:$4 sm:$0xff]  }
 0x44d   : > { %6283 = vmatprep.subr.bf16.mxu1 %v14318_v32  ;;  %6813 = vmatprep.subr.bf16.mxu0 %v14321_v7  ;;  %v14381_v32 = vld [vmem:[%s19458_s5 + $0xce4] ss:$16 sps:$4 sm:$0xff]  }
 0x44e   : > { %v4849_v53 = vpop.f32.mrb[168].mxu0 }
 0x44f   : > { %v17664_v29 = vadd.f32 %v4849_v53, %v17548_v46  ;;  %v4851_v52 = vpop.f32.mrb[169].mxu0 }
 0x450   : > { %v17667_v8 = vadd.f32 %v4851_v52, %v17551_v40  ;;  %v4853_v15 = vpop.f32.mrb[170].mxu0  ;;  %6284 = vmatpush1.bf16.msra.mxu1 %v14316_v63  ;;  %6814 = vmatpush1.bf16.msra.mxu0 %v14319_v44  ;;  %v6639_v40 = vshrl.u32 %v17568_v25, 16  ;;  %v14379_v52 = vld [vmem:[%s19458_s5 + $0xce0] ss:$16 sps:$4 sm:$0xff]   ;;  %v14406_v25 = vld [vmem:[%s19458_s5 + $0xd64] ss:$16 sps:$4 sm:$0xff]  }
 0x451   : > { %v4854_v21 = vpop.f32.mrb[171].mxu0  ;;  %6285 = vmatprep.subr.bf16.mxu1 %v14324_v47  ;;  %6815 = vmatprep.subr.bf16.mxu0 %v14327_v11  ;;  %v17799_v47 = vld [vmem:[#allocation5 + $0x4] ss:$0 sps:$4 sm:$0x44]   ;;  %v14384_v15 = vld [vmem:[%s19458_s5 + $0xaec] ss:$16 sps:$4 sm:$0xff]  }
 0x452   : > { %v4321_v37 = vpop.f32.mrb[140].mxu1  ;;  %v17706_v20 = vrot.slane %v6639_v40, 1  ;;  %v14386_v21 = vld [vmem:[%s19458_s5 + $0xd00] ss:$16 sps:$4 sm:$0xff]   ;;  %v14409_v40 = vld [vmem:[%s19458_s5 + $0xb6c] ss:$16 sps:$4 sm:$0xff]  }
 0x453   : > { %v17682_v18 = vadd.f32 %v4321_v37, %v17566_v28  ;;  %v4323_v35 = vpop.f32.mrb[141].mxu1  ;;  %v14343_v28 = vld [vmem:[%s19458_s5 + $0xc20] ss:$16 sps:$4 sm:$0xff]   ;;  %v14394_v37 = vld [vmem:[%s19458_s5 + $0xd24] ss:$16 sps:$4 sm:$0xff]  }
 0x454   : > { %v17685_v24 = vadd.f32 %v4323_v35, %v17571_v5  ;;  %v4325_v4 = vpop.f32.mrb[142].mxu1  ;;  %6286 = vmatpush1.bf16.msra.mxu1 %v14322_v43  ;;  %6816 = vmatpush1.bf16.msra.mxu0 %v14325_v60  ;;  %v14351_v5 = vld [vmem:[%s19458_s5 + $0xc44] ss:$16 sps:$4 sm:$0xff]   ;;  %v14382_v60 = vld [vmem:[%s19458_s5 + $0xae8] ss:$16 sps:$4 sm:$0xff]  }
 0x455   : > { %v4326_v46 = vpop.f32.mrb[143].mxu1  ;;  %6287 = vmatprep.subr.bf16.mxu1 %v14330_v39  ;;  %6817 = vmatprep.subr.bf16.mxu0 %v14333_v12  ;;  %v14388_v43 = vld [vmem:[%s19458_s5 + $0xd04] ss:$16 sps:$4 sm:$0xff]   ;;  %v6926_v39 = vrot.slane %v17799_v47, 2  ;;  %v14391_v12 = vld [vmem:[%s19458_s5 + $0xb0c] ss:$16 sps:$4 sm:$0xff]  }
 0x456   : > { %v14392_v35 = vld [vmem:[%s19458_s5 + $0xd20] ss:$16 sps:$4 sm:$0xff]   ;;  %v14400_v4 = vld [vmem:[%s19458_s5 + $0xd44] ss:$16 sps:$4 sm:$0xff]   ;;  %v14403_v46 = vld [vmem:[%s19458_s5 + $0xb4c] ss:$16 sps:$4 sm:$0xff]  }
 0x458   : > { %6288 = vmatpush1.bf16.msra.mxu1 %v14328_v33  ;;  %6818 = vmatpush1.bf16.msra.mxu0 %v14331_v50  ;;  %v14395_v33 = vld [vmem:[%s19458_s5 + $0xb28] ss:$16 sps:$4 sm:$0xff]   ;;  %v14398_v50 = vld [vmem:[%s19458_s5 + $0xd40] ss:$16 sps:$4 sm:$0xff]  }
 0x459   : > { %6289 = vmatprep.subr.bf16.mxu1 %v14336_v34  ;;  %7088 = vmatprep.subr.bf16.mxu0 %v14339_v54  ;;  %v14404_v34 = vld [vmem:[%s19458_s5 + $0xd60] ss:$16 sps:$4 sm:$0xff]   ;;  %v14412_v54 = vld [vmem:[%s19458_s5 + $0xd84] ss:$16 sps:$4 sm:$0xff]  }
 0x45b   : > { %6836 = vmatmul.mubr.bf16.vlgmr.msra.gmra.mrb[196].mxu0 %v17706_v20 }
 0x45c   : > { %6290 = vmatpush1.bf16.msra.mxu1 %v14334_v51  ;;  %7089 = vmatpush1.bf16.msra.mxu0 %v14337_v55  ;;  %v14407_v51 = vld [vmem:[%s19458_s5 + $0xb68] ss:$16 sps:$4 sm:$0xff]   ;;  %v14410_v55 = vld [vmem:[%s19458_s5 + $0xd80] ss:$16 sps:$4 sm:$0xff]  }
 0x45d   : > { %6560 = vmatprep.subr.bf16.mxu1 %v14342_v36  ;;  %7090 = vmatprep.subr.bf16.mxu0 %v14345_v58  ;;  %v14415_v36 = vld [vmem:[%s19458_s5 + $0xb8c] ss:$16 sps:$4 sm:$0xff]   ;;  %v14418_v58 = vld [vmem:[%s19458_s5 + $0xda4] ss:$16 sps:$4 sm:$0xff]  }
 0x45e   : > { %7120 = vmatprep.mubr.bf16.mxu0 %v15222_v27 }
 0x45f   : > { %6308 = vmatmul.mubr.bf16.vlgmr.msra.gmra.mrb[168].mxu1 %v17475_v19  ;;  %v14357_v19 = vld [vmem:[%s19458_s5 + $0xc64] ss:$16 sps:$4 sm:$0xff]  }
 0x460   : > { %6561 = vmatpush1.bf16.msra.mxu1 %v14340_v9  ;;  %7091 = vmatpush1.bf16.msra.mxu0 %v14343_v28  ;;  %v14413_v9 = vld [vmem:[%s19458_s5 + $0xb88] ss:$16 sps:$4 sm:$0xff]   ;;  %v14416_v28 = vld [vmem:[%s19458_s5 + $0xda0] ss:$16 sps:$4 sm:$0xff]  }
 0x461   : > { %6562 = vmatprep.subr.bf16.mxu1 %v14348_v14  ;;  %7092 = vmatprep.subr.bf16.mxu0 %v14351_v5  ;;  %v14421_v14 = vld [vmem:[%s19458_s5 + $0xbac] ss:$16 sps:$4 sm:$0xff]   ;;  %v14424_v5 = vld [vmem:[%s19458_s5 + $0xdc4] ss:$16 sps:$4 sm:$0xff]  }
 0x462   : > { %6592 = vmatprep.mubr.bf16.mxu1 %v15222_v27 }
 0x464   : > { %6563 = vmatpush1.bf16.msra.mxu1 %v14346_v22  ;;  %7093 = vmatpush1.bf16.msra.mxu0 %v14349_v17 }
 0x465   : > { %6564 = vmatprep.subr.bf16.mxu1 %v14354_v31  ;;  %7094 = vmatprep.subr.bf16.mxu0 %v14357_v19 }
 0x468   : > { %6565 = vmatpush1.bf16.msra.mxu1 %v14352_v42  ;;  %7095 = vmatpush1.bf16.msra.mxu0 %v14355_v26  ;;  %v14419_v26 = vld [vmem:[%s19458_s5 + $0xba8] ss:$16 sps:$4 sm:$0xff]  }
 0x469   : > { %6566 = vmatprep.subr.bf16.mxu1 %v14360_v38  ;;  %7096 = vmatprep.subr.bf16.mxu0 %v14363_v62  ;;  %v14422_v38 = vld [vmem:[%s19458_s5 + $0xdc0] ss:$16 sps:$4 sm:$0xff]  }
 0x46c   : > { %6567 = vmatpush1.bf16.msra.mxu1 %v14358_v23  ;;  %7097 = vmatpush1.bf16.msra.mxu0 %v14361_v3  ;;  %v14427_v23 = vld [vmem:[%s19458_s5 + $0xbcc] ss:$16 sps:$4 sm:$0xff]   ;;  %v14430_v3 = vld [vmem:[%s19458_s5 + $0xde4] ss:$16 sps:$4 sm:$0xff]  }
 0x46d   : > { %6568 = vmatprep.subr.bf16.mxu1 %v14366_v56  ;;  %7098 = vmatprep.subr.bf16.mxu0 %v14369_v0 }
 0x46e   : > { %v5133_v49 = vpop.f32.mrb[172].mxu0 }
 0x46f   : > { %v17779_v48 = vadd.f32 %v5133_v49, %v17664_v29  ;;  %v5135_v41 = vpop.f32.mrb[173].mxu0  ;;  %v14376_v29 = vld [vmem:[%s19458_s5 + $0xac8] ss:$16 sps:$4 sm:$0xff]   ;;  %v14428_v49 = vld [vmem:[%s19458_s5 + $0xde0] ss:$16 sps:$4 sm:$0xff]  }
 0x470   : > { %v17782_v2 = vadd.f32 %v5135_v41, %v17667_v8  ;;  %v5137_v13 = vpop.f32.mrb[174].mxu0  ;;  %6569 = vmatpush1.bf16.msra.mxu1 %v14364_v1  ;;  %7099 = vmatpush1.bf16.msra.mxu0 %v14367_v59  ;;  %v14433_v41 = vld [vmem:[%s19458_s5 + $0xbec] ss:$16 sps:$4 sm:$0xff]  }
 0x471   : > { %v5138_v61 = vpop.f32.mrb[175].mxu0  ;;  %6570 = vmatprep.subr.bf16.mxu1 %v14372_v16  ;;  %7100 = vmatprep.subr.bf16.mxu0 %v14375_v10  ;;  %v14425_v10 = vld [vmem:[%s19458_s5 + $0xbc8] ss:$16 sps:$4 sm:$0xff]   ;;  %v14436_v13 = vld [vmem:[%s19458_s5 + $0xe04] ss:$16 sps:$4 sm:$0xff]  }
 0x472   : > { %v4605_v7 = vpop.f32.mrb[144].mxu1 }
 0x473   : > { %v17797_v63 = vadd.f32 %v4605_v7, %v17682_v18  ;;  %v4607_v44 = vpop.f32.mrb[145].mxu1  ;;  %v14389_v18 = vld [vmem:[%s19458_s5 + $0xb08] ss:$16 sps:$4 sm:$0xff]  }
 0x474   : > { %v17802_v11 = vadd.f32 %v4607_v44, %v17685_v24  ;;  %v4609_v53 = vpop.f32.mrb[146].mxu1  ;;  %6571 = vmatpush1.bf16.msra.mxu1 %v14370_v6  ;;  %7101 = vmatpush1.bf16.msra.mxu0 %v14373_v57  ;;  %v14397_v24 = vld [vmem:[%s19458_s5 + $0xb2c] ss:$16 sps:$4 sm:$0xff]   ;;  %v14431_v6 = vld [vmem:[%s19458_s5 + $0xbe8] ss:$16 sps:$4 sm:$0xff]  }
 0x475   : > { %v4610_v8 = vpop.f32.mrb[147].mxu1  ;;  %6572 = vmatprep.subr.bf16.mxu1 %v14378_v30  ;;  %7102 = vmatprep.subr.bf16.mxu0 %v14381_v32  ;;  %v14434_v57 = vld [vmem:[%s19458_s5 + $0xe00] ss:$16 sps:$4 sm:$0xff]   ;;  %v14439_v30 = vld [vmem:[%s19458_s5 + $0xc0c] ss:$16 sps:$4 sm:$0xff]  }
 0x476   : > { %v14442_v32 = vld [vmem:[%s19458_s5 + $0xe24] ss:$16 sps:$4 sm:$0xff]   ;;  %v14437_v7 = vld [vmem:[%s19458_s5 + $0xc08] ss:$16 sps:$4 sm:$0xff]   ;;  %v14445_v44 = vld [vmem:[%s19458_s5 + $0xc2c] ss:$16 sps:$4 sm:$0xff]  }
 0x477   : > { %v14443_v53 = vld [vmem:[%s19458_s5 + $0xc28] ss:$16 sps:$4 sm:$0xff]  }
 0x478   : > { %6573 = vmatpush1.bf16.msra.mxu1 %v14376_v29  ;;  %7103 = vmatpush1.bf16.msra.mxu0 %v14379_v52  ;;  %v14446_v29 = vld [vmem:[%s19458_s5 + $0xe40] ss:$16 sps:$4 sm:$0xff]   ;;  %v14451_v52 = vld [vmem:[%s19458_s5 + $0xc4c] ss:$16 sps:$4 sm:$0xff]   ;;  %v14449_v8 = vld [vmem:[%s19458_s5 + $0xc48] ss:$16 sps:$4 sm:$0xff]  }
 0x479   : > { %6574 = vmatprep.subr.bf16.mxu1 %v14384_v15  ;;  %7372 = vmatprep.subr.bf16.mxu0 %v14388_v43  ;;  %v14452_v15 = vld [vmem:[%s19458_s5 + $0xe60] ss:$16 sps:$4 sm:$0xff]   ;;  %v14457_v43 = vld [vmem:[%s19458_s5 + $0xc6c] ss:$16 sps:$4 sm:$0xff]  }
 0x47b   : > { %7121 = vmatmul.mubr.bf16.vlgmr.msra.gmra.mrb[200].mxu0 %v6926_v39 }
 0x47c   : > { %6575 = vmatpush1.bf16.msra.mxu1 %v14382_v60  ;;  %7373 = vmatpush1.bf16.msra.mxu0 %v14386_v21  ;;  %v14460_v60 = vld [vmem:[%s19458_s5 + $0xe84] ss:$16 sps:$4 sm:$0xff]   ;;  %v14455_v21 = vld [vmem:[%s19458_s5 + $0xc68] ss:$16 sps:$4 sm:$0xff]  }
 0x47d   : > { %6844 = vmatprep.subr.bf16.mxu1 %v14391_v12  ;;  %7374 = vmatprep.subr.bf16.mxu0 %v14394_v37  ;;  %v14458_v12 = vld [vmem:[%s19458_s5 + $0xe80] ss:$16 sps:$4 sm:$0xff]   ;;  %v14463_v37 = vld [vmem:[%s19458_s5 + $0xc8c] ss:$16 sps:$4 sm:$0xff]  }
 0x47e   : > { %7404 = vmatprep.mubr.bf16.mxu0 %v15222_v27 }
 0x47f   : > { %6593 = vmatmul.mubr.bf16.vlgmr.msra.gmra.mrb[172].mxu1 %v6357_v45  ;;  %v14401_v45 = vld [vmem:[%s19458_s5 + $0xb48] ss:$16 sps:$4 sm:$0xff]  }
 0x480   : > { %6845 = vmatpush1.bf16.msra.mxu1 %v14389_v18  ;;  %7375 = vmatpush1.bf16.msra.mxu0 %v14392_v35  ;;  %v14466_v18 = vld [vmem:[%s19458_s5 + $0xea4] ss:$16 sps:$4 sm:$0xff]   ;;  %v14461_v35 = vld [vmem:[%s19458_s5 + $0xc88] ss:$16 sps:$4 sm:$0xff]  }
 0x481   : > { %6846 = vmatprep.subr.bf16.mxu1 %v14397_v24  ;;  %7376 = vmatprep.subr.bf16.mxu0 %v14400_v4  ;;  %v14464_v24 = vld [vmem:[%s19458_s5 + $0xea0] ss:$16 sps:$4 sm:$0xff]   ;;  %v14469_v4 = vld [vmem:[%s19458_s5 + $0xcac] ss:$16 sps:$4 sm:$0xff]  }
 0x482   : > { %6876 = vmatprep.mubr.bf16.mxu1 %v15222_v27 }
 0x484   : > { %6847 = vmatpush1.bf16.msra.mxu1 %v14395_v33  ;;  %7377 = vmatpush1.bf16.msra.mxu0 %v14398_v50  ;;  %v14472_v33 = vld [vmem:[%s19458_s5 + $0xec4] ss:$16 sps:$4 sm:$0xff]  }
 0x485   : > { %6848 = vmatprep.subr.bf16.mxu1 %v14403_v46  ;;  %7378 = vmatprep.subr.bf16.mxu0 %v14406_v25 }
 0x488   : > { %6849 = vmatpush1.bf16.msra.mxu1 %v14401_v45  ;;  %7379 = vmatpush1.bf16.msra.mxu0 %v14404_v34 }
 0x489   : > { %6850 = vmatprep.subr.bf16.mxu1 %v14409_v40  ;;  %7380 = vmatprep.subr.bf16.mxu0 %v14412_v54  ;;  %v14467_v40 = vld [vmem:[%s19458_s5 + $0xca8] ss:$16 sps:$4 sm:$0xff]   ;;  %v14470_v54 = vld [vmem:[%s19458_s5 + $0xec0] ss:$16 sps:$4 sm:$0xff]  }
 0x48c   : > { %6851 = vmatpush1.bf16.msra.mxu1 %v14407_v51  ;;  %7381 = vmatpush1.bf16.msra.mxu0 %v14410_v55  ;;  %v14475_v55 = vld [vmem:[%s19458_s5 + $0xccc] ss:$16 sps:$4 sm:$0xff]  }
 0x48d   : > { %6852 = vmatprep.subr.bf16.mxu1 %v14415_v36  ;;  %7382 = vmatprep.subr.bf16.mxu0 %v14418_v58  ;;  %v14478_v36 = vld [vmem:[%s19458_s5 + $0xee4] ss:$16 sps:$4 sm:$0xff]  }
 0x48e   : > { %v5418_v22 = vpop.f32.mrb[176].mxu0 }
 0x48f   : > { %v17896_v17 = vadd.f32 %v5418_v22, %v17779_v48  ;;  %v5420_v31 = vpop.f32.mrb[177].mxu0 }
 0x490   : > { %v17899_v19 = vadd.f32 %v5420_v31, %v17782_v2  ;;  %v5422_v42 = vpop.f32.mrb[178].mxu0  ;;  %6853 = vmatpush1.bf16.msra.mxu1 %v14413_v9  ;;  %7383 = vmatpush1.bf16.msra.mxu0 %v14416_v28  ;;  %v7208_v2 = vshrl.u32 %v17799_v47, 16  ;;  %v14476_v31 = vld [vmem:[%s19458_s5 + $0xee0] ss:$16 sps:$4 sm:$0xff]   ;;  %v14503_v47 = vld [vmem:[%s19458_s5 + $0xf64] ss:$16 sps:$4 sm:$0xff]  }
 0x491   : > { %v5423_v62 = vpop.f32.mrb[179].mxu0  ;;  %6854 = vmatprep.subr.bf16.mxu1 %v14421_v14  ;;  %7384 = vmatprep.subr.bf16.mxu0 %v14424_v5  ;;  %v18031_v14 = vld [vmem:[#allocation5 + $0x4] ss:$0 sps:$4 sm:$0x88]   ;;  %v14481_v42 = vld [vmem:[%s19458_s5 + $0xcec] ss:$16 sps:$4 sm:$0xff]  }
 0x492   : > { %v4890_v56 = vpop.f32.mrb[148].mxu1  ;;  %v17938_v61 = vrot.slane %v7208_v2, 2  ;;  %v14483_v62 = vld [vmem:[%s19458_s5 + $0xf00] ss:$16 sps:$4 sm:$0xff]   ;;  %v14506_v2 = vld [vmem:[%s19458_s5 + $0xd6c] ss:$16 sps:$4 sm:$0xff]  }
 0x493   : > { %v17914_v0 = vadd.f32 %v4890_v56, %v17797_v63  ;;  %v4892_v1 = vpop.f32.mrb[149].mxu1  ;;  %v14440_v63 = vld [vmem:[%s19458_s5 + $0xe20] ss:$16 sps:$4 sm:$0xff]   ;;  %v14491_v56 = vld [vmem:[%s19458_s5 + $0xf24] ss:$16 sps:$4 sm:$0xff]  }
 0x494   : > { %v17917_v59 = vadd.f32 %v4892_v1, %v17802_v11  ;;  %v4894_v16 = vpop.f32.mrb[150].mxu1  ;;  %6855 = vmatpush1.bf16.msra.mxu1 %v14419_v26  ;;  %7385 = vmatpush1.bf16.msra.mxu0 %v14422_v38  ;;  %v14448_v11 = vld [vmem:[%s19458_s5 + $0xe44] ss:$16 sps:$4 sm:$0xff]   ;;  %v14479_v38 = vld [vmem:[%s19458_s5 + $0xce8] ss:$16 sps:$4 sm:$0xff]  }
 0x495   : > { %v4895_v48 = vpop.f32.mrb[151].mxu1  ;;  %6856 = vmatprep.subr.bf16.mxu1 %v14427_v23  ;;  %7386 = vmatprep.subr.bf16.mxu0 %v14430_v3  ;;  %v14485_v26 = vld [vmem:[%s19458_s5 + $0xf04] ss:$16 sps:$4 sm:$0xff]   ;;  %v7495_v23 = vrot.slane %v18031_v14, 3  ;;  %v14488_v3 = vld [vmem:[%s19458_s5 + $0xd0c] ss:$16 sps:$4 sm:$0xff]  }
 0x496   : > { %v14489_v1 = vld [vmem:[%s19458_s5 + $0xf20] ss:$16 sps:$4 sm:$0xff]   ;;  %v14497_v16 = vld [vmem:[%s19458_s5 + $0xf44] ss:$16 sps:$4 sm:$0xff]   ;;  %v14500_v48 = vld [vmem:[%s19458_s5 + $0xd4c] ss:$16 sps:$4 sm:$0xff]  }
 0x498   : > { %6857 = vmatpush1.bf16.msra.mxu1 %v14425_v10  ;;  %7387 = vmatpush1.bf16.msra.mxu0 %v14428_v49  ;;  %v14492_v10 = vld [vmem:[%s19458_s5 + $0xd28] ss:$16 sps:$4 sm:$0xff]   ;;  %v14495_v49 = vld [vmem:[%s19458_s5 + $0xf40] ss:$16 sps:$4 sm:$0xff]  }
 0x499   : > { %6858 = vmatprep.subr.bf16.mxu1 %v14433_v41  ;;  %7657 = vmatprep.subr.bf16.mxu0 %v14436_v13  ;;  %v14501_v41 = vld [vmem:[%s19458_s5 + $0xf60] ss:$16 sps:$4 sm:$0xff]   ;;  %v14509_v13 = vld [vmem:[%s19458_s5 + $0xf84] ss:$16 sps:$4 sm:$0xff]  }
 0x49b   : > { %7405 = vmatmul.mubr.bf16.vlgmr.msra.gmra.mrb[204].mxu0 %v17938_v61 }
 0x49c   : > { %6859 = vmatpush1.bf16.msra.mxu1 %v14431_v6  ;;  %7658 = vmatpush1.bf16.msra.mxu0 %v14434_v57  ;;  %v14504_v6 = vld [vmem:[%s19458_s5 + $0xd68] ss:$16 sps:$4 sm:$0xff]   ;;  %v14507_v57 = vld [vmem:[%s19458_s5 + $0xf80] ss:$16 sps:$4 sm:$0xff]  }
 0x49d   : > { %7129 = vmatprep.subr.bf16.mxu1 %v14439_v30  ;;  %7659 = vmatprep.subr.bf16.mxu0 %v14442_v32  ;;  %v14512_v30 = vld [vmem:[%s19458_s5 + $0xd8c] ss:$16 sps:$4 sm:$0xff]   ;;  %v14515_v32 = vld [vmem:[%s19458_s5 + $0xfa4] ss:$16 sps:$4 sm:$0xff]  }
 0x49e   : > { %7689 = vmatprep.mubr.bf16.mxu0 %v15222_v27 }
 0x49f   : > { %6877 = vmatmul.mubr.bf16.vlgmr.msra.gmra.mrb[176].mxu1 %v17706_v20  ;;  %v14454_v20 = vld [vmem:[%s19458_s5 + $0xe64] ss:$16 sps:$4 sm:$0xff]  }
 0x4a0   : > { %7130 = vmatpush1.bf16.msra.mxu1 %v14437_v7  ;;  %7660 = vmatpush1.bf16.msra.mxu0 %v14440_v63  ;;  %v14510_v7 = vld [vmem:[%s19458_s5 + $0xd88] ss:$16 sps:$4 sm:$0xff]   ;;  %v14513_v63 = vld [vmem:[%s19458_s5 + $0xfa0] ss:$16 sps:$4 sm:$0xff]  }
 0x4a1   : > { %7131 = vmatprep.subr.bf16.mxu1 %v14445_v44  ;;  %7661 = vmatprep.subr.bf16.mxu0 %v14448_v11  ;;  %v14518_v44 = vld [vmem:[%s19458_s5 + $0xdac] ss:$16 sps:$4 sm:$0xff]   ;;  %v14521_v11 = vld [vmem:[%s19458_s5 + $0xfc4] ss:$16 sps:$4 sm:$0xff]  }
 0x4a2   : > { %7161 = vmatprep.mubr.bf16.mxu1 %v15222_v27 }
 0x4a4   : > { %7132 = vmatpush1.bf16.msra.mxu1 %v14443_v53  ;;  %7662 = vmatpush1.bf16.msra.mxu0 %v14446_v29 }
 0x4a5   : > { %7133 = vmatprep.subr.bf16.mxu1 %v14451_v52  ;;  %7663 = vmatprep.subr.bf16.mxu0 %v14454_v20 }
 0x4a8   : > { %7134 = vmatpush1.bf16.msra.mxu1 %v14449_v8  ;;  %7664 = vmatpush1.bf16.msra.mxu0 %v14452_v15  ;;  %v14516_v15 = vld [vmem:[%s19458_s5 + $0xda8] ss:$16 sps:$4 sm:$0xff]  }
 0x4a9   : > { %7135 = vmatprep.subr.bf16.mxu1 %v14457_v43  ;;  %7665 = vmatprep.subr.bf16.mxu0 %v14460_v60  ;;  %v14519_v43 = vld [vmem:[%s19458_s5 + $0xfc0] ss:$16 sps:$4 sm:$0xff]  }
 0x4ac   : > { %7136 = vmatpush1.bf16.msra.mxu1 %v14455_v21  ;;  %7666 = vmatpush1.bf16.msra.mxu0 %v14458_v12  ;;  %v14524_v21 = vld [vmem:[%s19458_s5 + $0xdcc] ss:$16 sps:$4 sm:$0xff]   ;;  %v14527_v12 = vld [vmem:[%s19458_s5 + $0xfe4] ss:$16 sps:$4 sm:$0xff]  }
 0x4ad   : > { %7137 = vmatprep.subr.bf16.mxu1 %v14463_v37  ;;  %7667 = vmatprep.subr.bf16.mxu0 %v14466_v18 }
 0x4ae   : > { %v5702_v50 = vpop.f32.mrb[180].mxu0 }
 0x4af   : > { %v18011_v46 = vadd.f32 %v5702_v50, %v17896_v17  ;;  %v5704_v25 = vpop.f32.mrb[181].mxu0  ;;  %v14473_v17 = vld [vmem:[%s19458_s5 + $0xcc8] ss:$16 sps:$4 sm:$0xff]   ;;  %v14525_v50 = vld [vmem:[%s19458_s5 + $0xfe0] ss:$16 sps:$4 sm:$0xff]  }
 0x4b0   : > { %v18014_v45 = vadd.f32 %v5704_v25, %v17899_v19  ;;  %v5706_v34 = vpop.f32.mrb[182].mxu0  ;;  %7138 = vmatpush1.bf16.msra.mxu1 %v14461_v35  ;;  %7668 = vmatpush1.bf16.msra.mxu0 %v14464_v24  ;;  %v14530_v25 = vld [vmem:[%s19458_s5 + $0xdec] ss:$16 sps:$4 sm:$0xff]  }
 0x4b1   : > { %v5707_v51 = vpop.f32.mrb[183].mxu0  ;;  %7139 = vmatprep.subr.bf16.mxu1 %v14469_v4  ;;  %7669 = vmatprep.subr.bf16.mxu0 %v14472_v33  ;;  %v14522_v33 = vld [vmem:[%s19458_s5 + $0xdc8] ss:$16 sps:$4 sm:$0xff]   ;;  %v14533_v34 = vld [vmem:[%s19458_s5 + $0x1004] ss:$16 sps:$4 sm:$0xff]  }
 0x4b2   : > { %v5174_v58 = vpop.f32.mrb[152].mxu1 }
 0x4b3   : > { %v18029_v9 = vadd.f32 %v5174_v58, %v17914_v0  ;;  %v5176_v28 = vpop.f32.mrb[153].mxu1  ;;  %v14486_v0 = vld [vmem:[%s19458_s5 + $0xd08] ss:$16 sps:$4 sm:$0xff]  }
 0x4b4   : > { %v18034_v5 = vadd.f32 %v5176_v28, %v17917_v59  ;;  %v5178_v22 = vpop.f32.mrb[154].mxu1  ;;  %7140 = vmatpush1.bf16.msra.mxu1 %v14467_v40  ;;  %7670 = vmatpush1.bf16.msra.mxu0 %v14470_v54  ;;  %v14494_v59 = vld [vmem:[%s19458_s5 + $0xd2c] ss:$16 sps:$4 sm:$0xff]   ;;  %v14528_v40 = vld [vmem:[%s19458_s5 + $0xde8] ss:$16 sps:$4 sm:$0xff]  }
 0x4b5   : > { %v5179_v19 = vpop.f32.mrb[155].mxu1  ;;  %7141 = vmatprep.subr.bf16.mxu1 %v14475_v55  ;;  %7671 = vmatprep.subr.bf16.mxu0 %v14478_v36  ;;  %v14531_v54 = vld [vmem:[%s19458_s5 + $0x1000] ss:$16 sps:$4 sm:$0xff]   ;;  %v14536_v55 = vld [vmem:[%s19458_s5 + $0xe0c] ss:$16 sps:$4 sm:$0xff]  }
 0x4b6   : > { %v14539_v36 = vld [vmem:[%s19458_s5 + $0x1024] ss:$16 sps:$4 sm:$0xff]   ;;  %v14534_v58 = vld [vmem:[%s19458_s5 + $0xe08] ss:$16 sps:$4 sm:$0xff]   ;;  %v14542_v28 = vld [vmem:[%s19458_s5 + $0xe2c] ss:$16 sps:$4 sm:$0xff]  }
 0x4b7   : > { %v14540_v22 = vld [vmem:[%s19458_s5 + $0xe28] ss:$16 sps:$4 sm:$0xff]  }
 0x4b8   : > { %7142 = vmatpush1.bf16.msra.mxu1 %v14473_v17  ;;  %7672 = vmatpush1.bf16.msra.mxu0 %v14476_v31  ;;  %v14543_v17 = vld [vmem:[%s19458_s5 + $0x1040] ss:$16 sps:$4 sm:$0xff]   ;;  %v14548_v31 = vld [vmem:[%s19458_s5 + $0xe4c] ss:$16 sps:$4 sm:$0xff]   ;;  %v14546_v19 = vld [vmem:[%s19458_s5 + $0xe48] ss:$16 sps:$4 sm:$0xff]  }
 0x4b9   : > { %7143 = vmatprep.subr.bf16.mxu1 %v14481_v42  ;;  %7941 = vmatprep.subr.bf16.mxu0 %v14485_v26  ;;  %v14549_v42 = vld [vmem:[%s19458_s5 + $0x1060] ss:$16 sps:$4 sm:$0xff]   ;;  %v14554_v26 = vld [vmem:[%s19458_s5 + $0xe6c] ss:$16 sps:$4 sm:$0xff]  }
 0x4bb   : > { %7690 = vmatmul.mubr.bf16.vlgmr.msra.gmra.mrb[208].mxu0 %v7495_v23 }
 0x4bc   : > { %7144 = vmatpush1.bf16.msra.mxu1 %v14479_v38  ;;  %7942 = vmatpush1.bf16.msra.mxu0 %v14483_v62  ;;  %v14557_v38 = vld [vmem:[%s19458_s5 + $0x1084] ss:$16 sps:$4 sm:$0xff]   ;;  %v14552_v62 = vld [vmem:[%s19458_s5 + $0xe68] ss:$16 sps:$4 sm:$0xff]  }
 0x4bd   : > { %7413 = vmatprep.subr.bf16.mxu1 %v14488_v3  ;;  %7943 = vmatprep.subr.bf16.mxu0 %v14491_v56  ;;  %v14555_v3 = vld [vmem:[%s19458_s5 + $0x1080] ss:$16 sps:$4 sm:$0xff]   ;;  %v14560_v56 = vld [vmem:[%s19458_s5 + $0xe8c] ss:$16 sps:$4 sm:$0xff]  }
 0x4be   : > { %7973 = vmatprep.mubr.bf16.mxu0 %v15222_v27 }
 0x4bf   : > { %7162 = vmatmul.mubr.bf16.vlgmr.msra.gmra.mrb[180].mxu1 %v6926_v39  ;;  %v14498_v39 = vld [vmem:[%s19458_s5 + $0xd48] ss:$16 sps:$4 sm:$0xff]  }
 0x4c0   : > { %7414 = vmatpush1.bf16.msra.mxu1 %v14486_v0  ;;  %7944 = vmatpush1.bf16.msra.mxu0 %v14489_v1  ;;  %v14563_v0 = vld [vmem:[%s19458_s5 + $0x10a4] ss:$16 sps:$4 sm:$0xff]   ;;  %v14558_v1 = vld [vmem:[%s19458_s5 + $0xe88] ss:$16 sps:$4 sm:$0xff]  }
 0x4c1   : > { %7415 = vmatprep.subr.bf16.mxu1 %v14494_v59  ;;  %7945 = vmatprep.subr.bf16.mxu0 %v14497_v16  ;;  %v14561_v59 = vld [vmem:[%s19458_s5 + $0x10a0] ss:$16 sps:$4 sm:$0xff]   ;;  %v14566_v16 = vld [vmem:[%s19458_s5 + $0xeac] ss:$16 sps:$4 sm:$0xff]  }
 0x4c2   : > { %7445 = vmatprep.mubr.bf16.mxu1 %v15222_v27 }
 0x4c4   : > { %7416 = vmatpush1.bf16.msra.mxu1 %v14492_v10  ;;  %7946 = vmatpush1.bf16.msra.mxu0 %v14495_v49  ;;  %v14569_v10 = vld [vmem:[%s19458_s5 + $0x10c4] ss:$16 sps:$4 sm:$0xff]  }
 0x4c5   : > { %7417 = vmatprep.subr.bf16.mxu1 %v14500_v48  ;;  %7947 = vmatprep.subr.bf16.mxu0 %v14503_v47 }
 0x4c8   : > { %7418 = vmatpush1.bf16.msra.mxu1 %v14498_v39  ;;  %7948 = vmatpush1.bf16.msra.mxu0 %v14501_v41 }
 0x4c9   : > { %7419 = vmatprep.subr.bf16.mxu1 %v14506_v2  ;;  %7949 = vmatprep.subr.bf16.mxu0 %v14509_v13  ;;  %v14564_v2 = vld [vmem:[%s19458_s5 + $0xea8] ss:$16 sps:$4 sm:$0xff]   ;;  %v14567_v13 = vld [vmem:[%s19458_s5 + $0x10c0] ss:$16 sps:$4 sm:$0xff]  }
 0x4cc   : > { %7420 = vmatpush1.bf16.msra.mxu1 %v14504_v6  ;;  %7950 = vmatpush1.bf16.msra.mxu0 %v14507_v57  ;;  %v14572_v57 = vld [vmem:[%s19458_s5 + $0xecc] ss:$16 sps:$4 sm:$0xff]  }
 0x4cd   : > { %7421 = vmatprep.subr.bf16.mxu1 %v14512_v30  ;;  %7951 = vmatprep.subr.bf16.mxu0 %v14515_v32  ;;  %v14575_v30 = vld [vmem:[%s19458_s5 + $0x10e4] ss:$16 sps:$4 sm:$0xff]  }
 0x4ce   : > { %v5982_v53 = vpop.f32.mrb[184].mxu0 }
 0x4cf   : > { %v18128_v29 = vadd.f32 %v5982_v53, %v18011_v46  ;;  %v5984_v52 = vpop.f32.mrb[185].mxu0  ;;  %v14570_v53 = vld [vmem:[%s19458_s5 + $0xec8] ss:$16 sps:$4 sm:$0xff]  }
 0x4d0   : > { %v18131_v20 = vadd.f32 %v5984_v52, %v18014_v45  ;;  %v5986_v8 = vpop.f32.mrb[186].mxu0  ;;  %7422 = vmatpush1.bf16.msra.mxu1 %v14510_v7  ;;  %7952 = vmatpush1.bf16.msra.mxu0 %v14513_v63  ;;  %v7777_v45 = vshrl.u32 %v18031_v14, 16  ;;  %v14600_v14 = vld [vmem:[%s19458_s5 + $0x1164] ss:$16 sps:$4 sm:$0xff]  }
 0x4d1   : > { %v5987_v60 = vpop.f32.mrb[187].mxu0  ;;  %7423 = vmatprep.subr.bf16.mxu1 %v14518_v44  ;;  %7953 = vmatprep.subr.bf16.mxu0 %v14521_v11  ;;  %v14582_v8 = vld [vmem:[%s19458_s5 + $0x1104] ss:$16 sps:$4 sm:$0xff]  }
 0x4d2   : > { %v5459_v37 = vpop.f32.mrb[156].mxu1  ;;  %v18170_v51 = vrot.slane %v7777_v45, 3  ;;  %v14585_v60 = vld [vmem:[%s19458_s5 + $0xf0c] ss:$16 sps:$4 sm:$0xff]   ;;  %v14606_v45 = vld [vmem:[%s19458_s5 + $0x1184] ss:$16 sps:$4 sm:$0xff]  }
 0x4d3   : > { %v18146_v18 = vadd.f32 %v5459_v37, %v18029_v9  ;;  %v5461_v35 = vpop.f32.mrb[157].mxu1  ;;  %v14537_v9 = vld [vmem:[%s19458_s5 + $0x1020] ss:$16 sps:$4 sm:$0xff]   ;;  %v14583_v37 = vld [vmem:[%s19458_s5 + $0xf08] ss:$16 sps:$4 sm:$0xff]  }
 0x4d4   : > { %v18149_v24 = vadd.f32 %v5461_v35, %v18034_v5  ;;  %v5463_v4 = vpop.f32.mrb[158].mxu1  ;;  %7424 = vmatpush1.bf16.msra.mxu1 %v14516_v15  ;;  %7954 = vmatpush1.bf16.msra.mxu0 %v14519_v43  ;;  %v14545_v5 = vld [vmem:[%s19458_s5 + $0x1044] ss:$16 sps:$4 sm:$0xff]   ;;  %v14576_v15 = vld [vmem:[%s19458_s5 + $0xee8] ss:$16 sps:$4 sm:$0xff]  }
 0x4d5   : > { %v5464_v46 = vpop.f32.mrb[159].mxu1  ;;  %7425 = vmatprep.subr.bf16.mxu1 %v14524_v21  ;;  %7955 = vmatprep.subr.bf16.mxu0 %v14527_v12  ;;  %v14580_v43 = vld [vmem:[%s19458_s5 + $0x1100] ss:$16 sps:$4 sm:$0xff]   ;;  %v14588_v21 = vld [vmem:[%s19458_s5 + $0x1124] ss:$16 sps:$4 sm:$0xff]  }
 0x4d6   : > { %v18290_v12 = vld [vmem:[#allocation5 + $0x8] sm:$0x1]  ;;  %v14591_v35 = vld [vmem:[%s19458_s5 + $0xf2c] ss:$16 sps:$4 sm:$0xff]   ;;  %v14589_v4 = vld [vmem:[%s19458_s5 + $0xf28] ss:$16 sps:$4 sm:$0xff]  }
 0x4d7   : > { %v14598_v46 = vld [vmem:[%s19458_s5 + $0x1160] ss:$16 sps:$4 sm:$0xff]  }
 0x4d8   : > { %7426 = vmatpush1.bf16.msra.mxu1 %v14522_v33  ;;  %7956 = vmatpush1.bf16.msra.mxu0 %v14525_v50  ;;  %v14592_v33 = vld [vmem:[%s19458_s5 + $0x1140] ss:$16 sps:$4 sm:$0xff]   ;;  %v14597_v50 = vld [vmem:[%s19458_s5 + $0xf4c] ss:$16 sps:$4 sm:$0xff]  }
 0x4d9   : > { %7427 = vmatprep.subr.bf16.mxu1 %v14530_v25  ;;  %8221 = vmatprep.subr.bf16.mxu0 %v14533_v34  ;;  %v14603_v25 = vld [vmem:[%s19458_s5 + $0xf6c] ss:$16 sps:$4 sm:$0xff]   ;;  %v14601_v34 = vld [vmem:[%s19458_s5 + $0xf68] ss:$16 sps:$4 sm:$0xff]  }
 0x4db   : > { %7974 = vmatmul.mubr.bf16.vlgmr.msra.gmra.mrb[212].mxu0 %v18170_v51 }
 0x4dc   : > { %7428 = vmatpush1.bf16.msra.mxu1 %v14528_v40  ;;  %8222 = vmatpush1.bf16.msra.mxu0 %v14531_v54  ;;  %v14604_v40 = vld [vmem:[%s19458_s5 + $0x1180] ss:$16 sps:$4 sm:$0xff]   ;;  %v14609_v54 = vld [vmem:[%s19458_s5 + $0xf8c] ss:$16 sps:$4 sm:$0xff]  }
 0x4dd   : > { %7698 = vmatprep.subr.bf16.mxu1 %v14536_v55  ;;  %8223 = vmatprep.subr.bf16.mxu0 %v14539_v36  ;;  %v14612_v55 = vld [vmem:[%s19458_s5 + $0x11a4] ss:$16 sps:$4 sm:$0xff]   ;;  %v14607_v36 = vld [vmem:[%s19458_s5 + $0xf88] ss:$16 sps:$4 sm:$0xff]  }
 0x4de   : > { %8253 = vmatprep.mubr.bf16.mxu0 %v15222_v27 }
 0x4df   : > { %7446 = vmatmul.mubr.bf16.vlgmr.msra.gmra.mrb[184].mxu1 %v17938_v61  ;;  %v14551_v61 = vld [vmem:[%s19458_s5 + $0x1064] ss:$16 sps:$4 sm:$0xff]  }
 0x4e0   : > { %7699 = vmatpush1.bf16.msra.mxu1 %v14534_v58  ;;  %8224 = vmatpush1.bf16.msra.mxu0 %v14537_v9  ;;  %v14610_v58 = vld [vmem:[%s19458_s5 + $0x11a0] ss:$16 sps:$4 sm:$0xff]   ;;  %v14615_v9 = vld [vmem:[%s19458_s5 + $0xfac] ss:$16 sps:$4 sm:$0xff]  }
 0x4e1   : > { %7700 = vmatprep.subr.bf16.mxu1 %v14542_v28  ;;  %8225 = vmatprep.subr.bf16.mxu0 %v14545_v5  ;;  %v14618_v28 = vld [vmem:[%s19458_s5 + $0x11c4] ss:$16 sps:$4 sm:$0xff]  }
 0x4e2   : > { %7730 = vmatprep.mubr.bf16.mxu1 %v15222_v27 }
 0x4e4   : > { %7701 = vmatpush1.bf16.msra.mxu1 %v14540_v22  ;;  %8226 = vmatpush1.bf16.msra.mxu0 %v14543_v17 }
 0x4e5   : > { %7702 = vmatprep.subr.bf16.mxu1 %v14548_v31  ;;  %8227 = vmatprep.subr.bf16.mxu0 %v14551_v61 }
 0x4e8   : > { %7703 = vmatpush1.bf16.msra.mxu1 %v14546_v19  ;;  %8228 = vmatpush1.bf16.msra.mxu0 %v14549_v42  ;;  %v14613_v19 = vld [vmem:[%s19458_s5 + $0xfa8] ss:$16 sps:$4 sm:$0xff]   ;;  %v14616_v42 = vld [vmem:[%s19458_s5 + $0x11c0] ss:$16 sps:$4 sm:$0xff]  }
 0x4e9   : > { %7704 = vmatprep.subr.bf16.mxu1 %v14554_v26  ;;  %8229 = vmatprep.subr.bf16.mxu0 %v14557_v38  ;;  %v14621_v38 = vld [vmem:[%s19458_s5 + $0xfcc] ss:$16 sps:$4 sm:$0xff]  }
 0x4ec   : > { %7705 = vmatpush1.bf16.msra.mxu1 %v14552_v62  ;;  %8230 = vmatpush1.bf16.msra.mxu0 %v14555_v3  ;;  %v14624_v62 = vld [vmem:[%s19458_s5 + $0x11e4] ss:$16 sps:$4 sm:$0xff]  }
 0x4ed   : > { %7706 = vmatprep.subr.bf16.mxu1 %v14560_v56  ;;  %8231 = vmatprep.subr.bf16.mxu0 %v14563_v0 }
 0x4ee   : > { %v6268_v49 = vpop.f32.mrb[188].mxu0 }
 0x4ef   : > { %v18243_v48 = vadd.f32 %v6268_v49, %v18128_v29  ;;  %v6270_v47 = vpop.f32.mrb[189].mxu0  ;;  %v14573_v29 = vld [vmem:[%s19458_s5 + $0x10e0] ss:$16 sps:$4 sm:$0xff]   ;;  %v12430_v49 = vcombine.low %v18290_v12, %v18290_v12 }
 0x4f0   : > { %v18246_v39 = vadd.f32 %v6270_v47, %v18131_v20  ;;  %v6272_v41 = vpop.f32.mrb[190].mxu0  ;;  %7707 = vmatpush1.bf16.msra.mxu1 %v14558_v1  ;;  %8232 = vmatpush1.bf16.msra.mxu0 %v14561_v59  ;;  %v14578_v20 = vld [vmem:[%s19458_s5 + $0xeec] ss:$16 sps:$4 sm:$0xff]  }
 0x4f1   : > { %v6273_v6 = vpop.f32.mrb[191].mxu0  ;;  %7708 = vmatprep.subr.bf16.mxu1 %v14566_v16  ;;  %8233 = vmatprep.subr.bf16.mxu0 %v14569_v10  ;;  %v14619_v16 = vld [vmem:[%s19458_s5 + $0xfc8] ss:$16 sps:$4 sm:$0xff]   ;;  %v14622_v10 = vld [vmem:[%s19458_s5 + $0x11e0] ss:$16 sps:$4 sm:$0xff]  }
 0x4f2   : > { %v5743_v32 = vpop.f32.mrb[160].mxu1  ;;  %v14627_v47 = vld [vmem:[%s19458_s5 + $0xfec] ss:$16 sps:$4 sm:$0xff]   ;;  %v14625_v41 = vld [vmem:[%s19458_s5 + $0xfe8] ss:$16 sps:$4 sm:$0xff]  }
 0x4f3   : > { %v18261_v7 = vadd.f32 %v5743_v32, %v18146_v18  ;;  %v5745_v63 = vpop.f32.mrb[161].mxu1  ;;  %v14586_v18 = vld [vmem:[%s19458_s5 + $0x1120] ss:$16 sps:$4 sm:$0xff]   ;;  %v14633_v6 = vld [vmem:[%s19458_s5 + $0x100c] ss:$16 sps:$4 sm:$0xff]  }
 0x4f4   : > { %v18264_v44 = vadd.f32 %v5745_v63, %v18149_v24  ;;  %v5747_v11 = vpop.f32.mrb[162].mxu1  ;;  %7709 = vmatpush1.bf16.msra.mxu1 %v14564_v2  ;;  %8234 = vmatpush1.bf16.msra.mxu0 %v14567_v13  ;;  %v14594_v24 = vld [vmem:[%s19458_s5 + $0x1144] ss:$16 sps:$4 sm:$0xff]   ;;  %v14628_v2 = vld [vmem:[%s19458_s5 + $0x1200] ss:$16 sps:$4 sm:$0xff]   ;;  %v18401_v13 = vshrl.u32 %v12430_v49, 16 }
 0x4f5   : > { %v5748_v52 = vpop.f32.mrb[163].mxu1  ;;  %7710 = vmatprep.subr.bf16.mxu1 %v14572_v57  ;;  %8235 = vmatprep.subr.bf16.mxu0 %v14575_v30  ;;  %v14636_v57 = vld [vmem:[%s19458_s5 + $0x1224] ss:$16 sps:$4 sm:$0xff]   ;;  %v14631_v30 = vld [vmem:[%s19458_s5 + $0x1008] ss:$16 sps:$4 sm:$0xff]  }
 0x4f6   : > { %v14634_v32 = vld [vmem:[%s19458_s5 + $0x1220] ss:$16 sps:$4 sm:$0xff]   ;;  %v14642_v63 = vld [vmem:[%s19458_s5 + $0x1244] ss:$16 sps:$4 sm:$0xff]   ;;  %v14692_v49 = vld [vmem:[%s19458_s5 + $0x1148] ss:$16 sps:$4 sm:$0xff]  }
 0x4f7   : > { %v14640_v11 = vld [vmem:[%s19458_s5 + $0x1240] ss:$16 sps:$4 sm:$0xff]  }
 0x4f8   : > { %7711 = vmatpush1.bf16.msra.mxu1 %v14570_v53  ;;  %8236 = vmatpush1.bf16.msra.mxu0 %v14573_v29  ;;  %v14645_v53 = vld [vmem:[%s19458_s5 + $0x104c] ss:$16 sps:$4 sm:$0xff]   ;;  %v14643_v29 = vld [vmem:[%s19458_s5 + $0x1048] ss:$16 sps:$4 sm:$0xff]   ;;  %v14646_v52 = vld [vmem:[%s19458_s5 + $0x1260] ss:$16 sps:$4 sm:$0xff]  }
 0x4f9   : > { %7712 = vmatprep.subr.bf16.mxu1 %v14578_v20  ;;  %8507 = vmatprep.subr.bf16.mxu0 %v14582_v8  ;;  %v14651_v20 = vld [vmem:[%s19458_s5 + $0x106c] ss:$16 sps:$4 sm:$0xff]   ;;  %v14654_v8 = vld [vmem:[%s19458_s5 + $0x1284] ss:$16 sps:$4 sm:$0xff]  }
 0x4fb   : > { %8254 = vmatmul.mubr.bf16.vlgmr.msra.gmra.mrb[216].mxu0 %v18290_v12 }
 0x4fc   : > { %7713 = vmatpush1.bf16.msra.mxu1 %v14576_v15  ;;  %8508 = vmatpush1.bf16.msra.mxu0 %v14580_v43  ;;  %v14649_v15 = vld [vmem:[%s19458_s5 + $0x1068] ss:$16 sps:$4 sm:$0xff]   ;;  %v14652_v43 = vld [vmem:[%s19458_s5 + $0x1280] ss:$16 sps:$4 sm:$0xff]  }
 0x4fd   : > { %7982 = vmatprep.subr.bf16.mxu1 %v14585_v60  ;;  %8509 = vmatprep.subr.bf16.mxu0 %v14588_v21  ;;  %v14657_v60 = vld [vmem:[%s19458_s5 + $0x108c] ss:$16 sps:$4 sm:$0xff]   ;;  %v14660_v21 = vld [vmem:[%s19458_s5 + $0x12a4] ss:$16 sps:$4 sm:$0xff]  }
 0x4fe   : > { %8539 = vmatprep.mubr.bf16.mxu0 %v15222_v27 }
 0x4ff   : > { %7731 = vmatmul.mubr.bf16.vlgmr.msra.gmra.mrb[188].mxu1 %v7495_v23  ;;  %v14595_v23 = vld [vmem:[%s19458_s5 + $0xf48] ss:$16 sps:$4 sm:$0xff]  }
 0x500   : > { %7983 = vmatpush1.bf16.msra.mxu1 %v14583_v37  ;;  %8510 = vmatpush1.bf16.msra.mxu0 %v14586_v18  ;;  %v14655_v37 = vld [vmem:[%s19458_s5 + $0x1088] ss:$16 sps:$4 sm:$0xff]   ;;  %v14658_v18 = vld [vmem:[%s19458_s5 + $0x12a0] ss:$16 sps:$4 sm:$0xff]  }
 0x501   : > { %7984 = vmatprep.subr.bf16.mxu1 %v14591_v35  ;;  %8511 = vmatprep.subr.bf16.mxu0 %v14594_v24  ;;  %v14663_v35 = vld [vmem:[%s19458_s5 + $0x10ac] ss:$16 sps:$4 sm:$0xff]   ;;  %v14666_v24 = vld [vmem:[%s19458_s5 + $0x12c4] ss:$16 sps:$4 sm:$0xff]  }
 0x502   : > { %8014 = vmatprep.mubr.bf16.mxu1 %v15222_v27 }
 0x504   : > { %7985 = vmatpush1.bf16.msra.mxu1 %v14589_v4  ;;  %8512 = vmatpush1.bf16.msra.mxu0 %v14592_v33 }
 0x505   : > { %7986 = vmatprep.subr.bf16.mxu1 %v14597_v50  ;;  %8513 = vmatprep.subr.bf16.mxu0 %v14600_v14 }
 0x508   : > { %7987 = vmatpush1.bf16.msra.mxu1 %v14595_v23  ;;  %8514 = vmatpush1.bf16.msra.mxu0 %v14598_v46  ;;  %v14661_v46 = vld [vmem:[%s19458_s5 + $0x10a8] ss:$16 sps:$4 sm:$0xff]  }
 0x509   : > { %7988 = vmatprep.subr.bf16.mxu1 %v14603_v25  ;;  %8515 = vmatprep.subr.bf16.mxu0 %v14606_v45  ;;  %v14664_v25 = vld [vmem:[%s19458_s5 + $0x12c0] ss:$16 sps:$4 sm:$0xff]  }
 0x50c   : > { %7989 = vmatpush1.bf16.msra.mxu1 %v14601_v34  ;;  %8516 = vmatpush1.bf16.msra.mxu0 %v14604_v40  ;;  %v14669_v34 = vld [vmem:[%s19458_s5 + $0x10cc] ss:$16 sps:$4 sm:$0xff]   ;;  %v14672_v40 = vld [vmem:[%s19458_s5 + $0x12e4] ss:$16 sps:$4 sm:$0xff]  }
 0x50d   : > { %7990 = vmatprep.subr.bf16.mxu1 %v14609_v54  ;;  %8517 = vmatprep.subr.bf16.mxu0 %v14612_v55 }
 0x50e   : > { %v6553_v5 = vpop.f32.mrb[192].mxu0 }
 0x50f   : > { %v18358_v22 = vadd.f32 %v6553_v5, %v18243_v48  ;;  %v6555_v17 = vpop.f32.mrb[193].mxu0  ;;  %v14667_v5 = vld [vmem:[%s19458_s5 + $0x10c8] ss:$16 sps:$4 sm:$0xff]  }
 0x510   : > { %v18361_v31 = vadd.f32 %v6555_v17, %v18246_v39  ;;  %v6557_v61 = vpop.f32.mrb[194].mxu0  ;;  %7991 = vmatpush1.bf16.msra.mxu1 %v14607_v36  ;;  %8518 = vmatpush1.bf16.msra.mxu0 %v14610_v58  ;;  %v14630_v39 = vld [vmem:[%s19458_s5 + $0x1204] ss:$16 sps:$4 sm:$0xff]  }
 0x511   : > { %v6558_v26 = vpop.f32.mrb[195].mxu0  ;;  %7992 = vmatprep.subr.bf16.mxu1 %v14615_v9  ;;  %8519 = vmatprep.subr.bf16.mxu0 %v14618_v28  ;;  %v18494_v58 = vld [vmem:[#allocation5 + $0x8] ss:$0 sps:$4 sm:$0x22]  }
 0x512   : > { %v6023_v3 = vpop.f32.mrb[164].mxu1  ;;  %v14679_v61 = vld [vmem:[%s19458_s5 + $0x1304] ss:$16 sps:$4 sm:$0xff]   ;;  %v8630_v26 = vrot.slane %v18494_v58, 1 }
 0x513   : > { %v18376_v56 = vadd.f32 %v6023_v3, %v18261_v7  ;;  %v6025_v0 = vpop.f32.mrb[165].mxu1  ;;  %v14639_v7 = vld [vmem:[%s19458_s5 + $0x102c] ss:$16 sps:$4 sm:$0xff]   ;;  %v14680_v3 = vld [vmem:[%s19458_s5 + $0x1108] ss:$16 sps:$4 sm:$0xff]  }
 0x514   : > { %v18379_v1 = vadd.f32 %v6025_v0, %v18264_v44  ;;  %v6027_v59 = vpop.f32.mrb[166].mxu1  ;;  %7993 = vmatpush1.bf16.msra.mxu1 %v14613_v19  ;;  %8520 = vmatpush1.bf16.msra.mxu0 %v14616_v42  ;;  %v14637_v44 = vld [vmem:[%s19458_s5 + $0x1028] ss:$16 sps:$4 sm:$0xff]   ;;  %v14677_v42 = vld [vmem:[%s19458_s5 + $0x1300] ss:$16 sps:$4 sm:$0xff]  }
 0x515   : > { %v6028_v48 = vpop.f32.mrb[167].mxu1  ;;  %7994 = vmatprep.subr.bf16.mxu1 %v14621_v38  ;;  %8521 = vmatprep.subr.bf16.mxu0 %v14624_v62  ;;  %v14673_v19 = vld [vmem:[%s19458_s5 + $0x10e8] ss:$16 sps:$4 sm:$0xff]   ;;  %v14682_v38 = vld [vmem:[%s19458_s5 + $0x110c] ss:$16 sps:$4 sm:$0xff]  }
 0x516   : > { %v14685_v62 = vld [vmem:[%s19458_s5 + $0x1324] ss:$16 sps:$4 sm:$0xff]   ;;  %v14688_v0 = vld [vmem:[%s19458_s5 + $0x112c] ss:$16 sps:$4 sm:$0xff]   ;;  %v14686_v59 = vld [vmem:[%s19458_s5 + $0x1128] ss:$16 sps:$4 sm:$0xff]  }
 0x517   : > { %v14695_v48 = vld [vmem:[%s19458_s5 + $0x1360] ss:$16 sps:$4 sm:$0xff]  }
 0x518   : > { %7995 = vmatpush1.bf16.msra.mxu1 %v14619_v16  ;;  %8522 = vmatpush1.bf16.msra.mxu0 %v14622_v10  ;;  %v14689_v16 = vld [vmem:[%s19458_s5 + $0x1340] ss:$16 sps:$4 sm:$0xff]   ;;  %v14694_v10 = vld [vmem:[%s19458_s5 + $0x114c] ss:$16 sps:$4 sm:$0xff]  }
 0x519   : > { %7996 = vmatprep.subr.bf16.mxu1 %v14627_v47  ;;  %8792 = vmatprep.subr.bf16.mxu0 %v14630_v39  ;;  %v14700_v47 = vld [vmem:[%s19458_s5 + $0x116c] ss:$16 sps:$4 sm:$0xff]   ;;  %v14703_v39 = vld [vmem:[%s19458_s5 + $0x1384] ss:$16 sps:$4 sm:$0xff]  }
 0x51b   : > { %8540 = vmatmul.mubr.bf16.vlgmr.msra.gmra.mrb[220].mxu0 %v18401_v13 }
 0x51c   : > { %7997 = vmatpush1.bf16.msra.mxu1 %v14625_v41  ;;  %8793 = vmatpush1.bf16.msra.mxu0 %v14628_v2  ;;  %v14698_v41 = vld [vmem:[%s19458_s5 + $0x1168] ss:$16 sps:$4 sm:$0xff]   ;;  %v14701_v2 = vld [vmem:[%s19458_s5 + $0x1380] ss:$16 sps:$4 sm:$0xff]  }
 0x51d   : > { %8262 = vmatprep.subr.bf16.mxu1 %v14633_v6  ;;  %8794 = vmatprep.subr.bf16.mxu0 %v14636_v57  ;;  %v14706_v6 = vld [vmem:[%s19458_s5 + $0x118c] ss:$16 sps:$4 sm:$0xff]   ;;  %v14709_v57 = vld [vmem:[%s19458_s5 + $0x13a4] ss:$16 sps:$4 sm:$0xff]  }
 0x51e   : > { %8824 = vmatprep.mubr.bf16.mxu0 %v15222_v27 }
 0x51f   : > { %8015 = vmatmul.mubr.bf16.vlgmr.msra.gmra.mrb[192].mxu1 %v18170_v51  ;;  %v14648_v51 = vld [vmem:[%s19458_s5 + $0x1264] ss:$16 sps:$4 sm:$0xff]  }
 0x520   : > { %8263 = vmatpush1.bf16.msra.mxu1 %v14631_v30  ;;  %8795 = vmatpush1.bf16.msra.mxu0 %v14634_v32  ;;  %v14704_v30 = vld [vmem:[%s19458_s5 + $0x1188] ss:$16 sps:$4 sm:$0xff]   ;;  %v14707_v32 = vld [vmem:[%s19458_s5 + $0x13a0] ss:$16 sps:$4 sm:$0xff]  }
 0x521   : > { %8264 = vmatprep.subr.bf16.mxu1 %v14639_v7  ;;  %8796 = vmatprep.subr.bf16.mxu0 %v14642_v63  ;;  %v14712_v7 = vld [vmem:[%s19458_s5 + $0x11ac] ss:$16 sps:$4 sm:$0xff]   ;;  %v14715_v63 = vld [vmem:[%s19458_s5 + $0x13c4] ss:$16 sps:$4 sm:$0xff]  }
 0x522   : > { %8294 = vmatprep.mubr.bf16.mxu1 %v15222_v27 }
 0x524   : > { %8265 = vmatpush1.bf16.msra.mxu1 %v14637_v44  ;;  %8797 = vmatpush1.bf16.msra.mxu0 %v14640_v11 }
 0x525   : > { %8266 = vmatprep.subr.bf16.mxu1 %v14645_v53  ;;  %8798 = vmatprep.subr.bf16.mxu0 %v14648_v51 }
 0x528   : > { %8267 = vmatpush1.bf16.msra.mxu1 %v14643_v29  ;;  %8799 = vmatpush1.bf16.msra.mxu0 %v14646_v52  ;;  %v14710_v52 = vld [vmem:[%s19458_s5 + $0x11a8] ss:$16 sps:$4 sm:$0xff]  }
 0x529   : > { %8268 = vmatprep.subr.bf16.mxu1 %v14651_v20  ;;  %8800 = vmatprep.subr.bf16.mxu0 %v14654_v8  ;;  %v14713_v20 = vld [vmem:[%s19458_s5 + $0x13c0] ss:$16 sps:$4 sm:$0xff]  }
 0x52c   : > { %8269 = vmatpush1.bf16.msra.mxu1 %v14649_v15  ;;  %8801 = vmatpush1.bf16.msra.mxu0 %v14652_v43  ;;  %v14718_v15 = vld [vmem:[%s19458_s5 + $0x11cc] ss:$16 sps:$4 sm:$0xff]   ;;  %v14721_v43 = vld [vmem:[%s19458_s5 + $0x13e4] ss:$16 sps:$4 sm:$0xff]  }
 0x52d   : > { %8270 = vmatprep.subr.bf16.mxu1 %v14657_v60  ;;  %8802 = vmatprep.subr.bf16.mxu0 %v14660_v21 }
 0x52e   : > { %v6837_v4 = vpop.f32.mrb[196].mxu0 }
 0x52f   : > { %v18474_v33 = vadd.f32 %v6837_v4, %v18358_v22  ;;  %v6839_v50 = vpop.f32.mrb[197].mxu0  ;;  %v14670_v22 = vld [vmem:[%s19458_s5 + $0x12e0] ss:$16 sps:$4 sm:$0xff]  }
 0x530   : > { %v18477_v14 = vadd.f32 %v6839_v50, %v18361_v31  ;;  %v6841_v23 = vpop.f32.mrb[198].mxu0  ;;  %8271 = vmatpush1.bf16.msra.mxu1 %v14655_v37  ;;  %8803 = vmatpush1.bf16.msra.mxu0 %v14658_v18  ;;  %v14675_v31 = vld [vmem:[%s19458_s5 + $0x10ec] ss:$16 sps:$4 sm:$0xff]   ;;  %v14719_v4 = vld [vmem:[%s19458_s5 + $0x13e0] ss:$16 sps:$4 sm:$0xff]  }
 0x531   : > { %v6842_v45 = vpop.f32.mrb[199].mxu0  ;;  %8272 = vmatprep.subr.bf16.mxu1 %v14663_v35  ;;  %8804 = vmatprep.subr.bf16.mxu0 %v14666_v24  ;;  %v14716_v24 = vld [vmem:[%s19458_s5 + $0x11c8] ss:$16 sps:$4 sm:$0xff]   ;;  %v14724_v50 = vld [vmem:[%s19458_s5 + $0x11ec] ss:$16 sps:$4 sm:$0xff]  }
 0x532   : > { %v6309_v54 = vpop.f32.mrb[168].mxu1  ;;  %v14727_v23 = vld [vmem:[%s19458_s5 + $0x1404] ss:$16 sps:$4 sm:$0xff]  }
 0x533   : > { %v18492_v55 = vadd.f32 %v6309_v54, %v18376_v56  ;;  %v6311_v36 = vpop.f32.mrb[169].mxu1  ;;  %v14683_v56 = vld [vmem:[%s19458_s5 + $0x1320] ss:$16 sps:$4 sm:$0xff]   ;;  %v14728_v54 = vld [vmem:[%s19458_s5 + $0x1208] ss:$16 sps:$4 sm:$0xff]  }
 0x534   : > { %v18497_v9 = vadd.f32 %v6311_v36, %v18379_v1  ;;  %v6313_v28 = vpop.f32.mrb[170].mxu1  ;;  %8273 = vmatpush1.bf16.msra.mxu1 %v14661_v46  ;;  %8805 = vmatpush1.bf16.msra.mxu0 %v14664_v25  ;;  %v14691_v1 = vld [vmem:[%s19458_s5 + $0x1344] ss:$16 sps:$4 sm:$0xff]   ;;  %v14722_v46 = vld [vmem:[%s19458_s5 + $0x11e8] ss:$16 sps:$4 sm:$0xff]  }
 0x535   : > { %v6314_v17 = vpop.f32.mrb[171].mxu1  ;;  %8274 = vmatprep.subr.bf16.mxu1 %v14669_v34  ;;  %8806 = vmatprep.subr.bf16.mxu0 %v14672_v40  ;;  %v14725_v25 = vld [vmem:[%s19458_s5 + $0x1400] ss:$16 sps:$4 sm:$0xff]   ;;  %v14730_v34 = vld [vmem:[%s19458_s5 + $0x120c] ss:$16 sps:$4 sm:$0xff]  }
 0x536   : > { %v14733_v40 = vld [vmem:[%s19458_s5 + $0x1424] ss:$16 sps:$4 sm:$0xff]   ;;  %v14736_v36 = vld [vmem:[%s19458_s5 + $0x122c] ss:$16 sps:$4 sm:$0xff]   ;;  %v14734_v28 = vld [vmem:[%s19458_s5 + $0x1228] ss:$16 sps:$4 sm:$0xff]  }
 0x537   : > { %v14740_v17 = vld [vmem:[%s19458_s5 + $0x1248] ss:$16 sps:$4 sm:$0xff]  }
 0x538   : > { %8275 = vmatpush1.bf16.msra.mxu1 %v14667_v5  ;;  %8807 = vmatpush1.bf16.msra.mxu0 %v14670_v22  ;;  %v14737_v5 = vld [vmem:[%s19458_s5 + $0x1440] ss:$16 sps:$4 sm:$0xff]   ;;  %v14742_v22 = vld [vmem:[%s19458_s5 + $0x124c] ss:$16 sps:$4 sm:$0xff]  }
 0x539   : > { %8276 = vmatprep.subr.bf16.mxu1 %v14675_v31  ;;  %9076 = vmatprep.subr.bf16.mxu0 %v14679_v61  ;;  %v14743_v31 = vld [vmem:[%s19458_s5 + $0x1460] ss:$16 sps:$4 sm:$0xff]   ;;  %v14748_v61 = vld [vmem:[%s19458_s5 + $0x126c] ss:$16 sps:$4 sm:$0xff]  }
 0x53b   : > { %8825 = vmatmul.mubr.bf16.vlgmr.msra.gmra.mrb[224].mxu0 %v8630_v26 }
 0x53c   : > { %8277 = vmatpush1.bf16.msra.mxu1 %v14673_v19  ;;  %9077 = vmatpush1.bf16.msra.mxu0 %v14677_v42  ;;  %v14751_v19 = vld [vmem:[%s19458_s5 + $0x1484] ss:$16 sps:$4 sm:$0xff]   ;;  %v14746_v42 = vld [vmem:[%s19458_s5 + $0x1268] ss:$16 sps:$4 sm:$0xff]  }
 0x53d   : > { %8548 = vmatprep.subr.bf16.mxu1 %v14682_v38  ;;  %9078 = vmatprep.subr.bf16.mxu0 %v14685_v62  ;;  %v14749_v38 = vld [vmem:[%s19458_s5 + $0x1480] ss:$16 sps:$4 sm:$0xff]   ;;  %v14754_v62 = vld [vmem:[%s19458_s5 + $0x128c] ss:$16 sps:$4 sm:$0xff]  }
 0x53e   : > { %9108 = vmatprep.mubr.bf16.mxu0 %v15222_v27 }
 0x53f   : > { %8295 = vmatmul.mubr.bf16.vlgmr.msra.gmra.mrb[196].mxu1 %v18290_v12  ;;  %v14697_v12 = vld [vmem:[%s19458_s5 + $0x1364] ss:$16 sps:$4 sm:$0xff]  }
 0x540   : > { %8549 = vmatpush1.bf16.msra.mxu1 %v14680_v3  ;;  %9079 = vmatpush1.bf16.msra.mxu0 %v14683_v56  ;;  %v14757_v3 = vld [vmem:[%s19458_s5 + $0x14a4] ss:$16 sps:$4 sm:$0xff]   ;;  %v14752_v56 = vld [vmem:[%s19458_s5 + $0x1288] ss:$16 sps:$4 sm:$0xff]  }
 0x541   : > { %8550 = vmatprep.subr.bf16.mxu1 %v14688_v0  ;;  %9080 = vmatprep.subr.bf16.mxu0 %v14691_v1  ;;  %v14755_v0 = vld [vmem:[%s19458_s5 + $0x14a0] ss:$16 sps:$4 sm:$0xff]   ;;  %v14760_v1 = vld [vmem:[%s19458_s5 + $0x12ac] ss:$16 sps:$4 sm:$0xff]  }
 0x542   : > { %8580 = vmatprep.mubr.bf16.mxu1 %v15222_v27 }
 0x544   : > { %8551 = vmatpush1.bf16.msra.mxu1 %v14686_v59  ;;  %9081 = vmatpush1.bf16.msra.mxu0 %v14689_v16  ;;  %v14763_v59 = vld [vmem:[%s19458_s5 + $0x14c4] ss:$16 sps:$4 sm:$0xff]  }
 0x545   : > { %8552 = vmatprep.subr.bf16.mxu1 %v14694_v10  ;;  %9082 = vmatprep.subr.bf16.mxu0 %v14697_v12 }
 0x548   : > { %8553 = vmatpush1.bf16.msra.mxu1 %v14692_v49  ;;  %9083 = vmatpush1.bf16.msra.mxu0 %v14695_v48 }
 0x549   : > { %8554 = vmatprep.subr.bf16.mxu1 %v14700_v47  ;;  %9084 = vmatprep.subr.bf16.mxu0 %v14703_v39  ;;  %v14758_v47 = vld [vmem:[%s19458_s5 + $0x12a8] ss:$16 sps:$4 sm:$0xff]   ;;  %v14761_v39 = vld [vmem:[%s19458_s5 + $0x14c0] ss:$16 sps:$4 sm:$0xff]  }
 0x54c   : > { %8555 = vmatpush1.bf16.msra.mxu1 %v14698_v41  ;;  %9085 = vmatpush1.bf16.msra.mxu0 %v14701_v2  ;;  %v14766_v2 = vld [vmem:[%s19458_s5 + $0x12cc] ss:$16 sps:$4 sm:$0xff]  }
 0x54d   : > { %8556 = vmatprep.subr.bf16.mxu1 %v14706_v6  ;;  %9086 = vmatprep.subr.bf16.mxu0 %v14709_v57  ;;  %v14769_v6 = vld [vmem:[%s19458_s5 + $0x14e4] ss:$16 sps:$4 sm:$0xff]  }
 0x54e   : > { %v7122_v44 = vpop.f32.mrb[200].mxu0 }
 0x54f   : > { %v18590_v11 = vadd.f32 %v7122_v44, %v18474_v33  ;;  %v7124_v53 = vpop.f32.mrb[201].mxu0 }
 0x550   : > { %v18593_v51 = vadd.f32 %v7124_v53, %v18477_v14  ;;  %v7126_v29 = vpop.f32.mrb[202].mxu0  ;;  %8557 = vmatpush1.bf16.msra.mxu1 %v14704_v30  ;;  %9087 = vmatpush1.bf16.msra.mxu0 %v14707_v32  ;;  %v8912_v14 = vshrl.u32 %v18494_v58, 16  ;;  %v14767_v53 = vld [vmem:[%s19458_s5 + $0x14e0] ss:$16 sps:$4 sm:$0xff]   ;;  %v14794_v58 = vld [vmem:[%s19458_s5 + $0x1564] ss:$16 sps:$4 sm:$0xff]  }
 0x551   : > { %v7127_v8 = vpop.f32.mrb[203].mxu0  ;;  %8558 = vmatprep.subr.bf16.mxu1 %v14712_v7  ;;  %9088 = vmatprep.subr.bf16.mxu0 %v14715_v63  ;;  %v18725_v7 = vld [vmem:[#allocation5 + $0x8] ss:$0 sps:$4 sm:$0x44]   ;;  %v14772_v29 = vld [vmem:[%s19458_s5 + $0x12ec] ss:$16 sps:$4 sm:$0xff]  }
 0x552   : > { %v6594_v60 = vpop.f32.mrb[172].mxu1  ;;  %v18632_v45 = vrot.slane %v8912_v14, 1  ;;  %v14774_v8 = vld [vmem:[%s19458_s5 + $0x1500] ss:$16 sps:$4 sm:$0xff]   ;;  %v14797_v14 = vld [vmem:[%s19458_s5 + $0x136c] ss:$16 sps:$4 sm:$0xff]  }
 0x553   : > { %v18608_v21 = vadd.f32 %v6594_v60, %v18492_v55  ;;  %v6596_v37 = vpop.f32.mrb[173].mxu1  ;;  %v14731_v55 = vld [vmem:[%s19458_s5 + $0x1420] ss:$16 sps:$4 sm:$0xff]   ;;  %v14782_v60 = vld [vmem:[%s19458_s5 + $0x1524] ss:$16 sps:$4 sm:$0xff]  }
 0x554   : > { %v18611_v18 = vadd.f32 %v6596_v37, %v18497_v9  ;;  %v6598_v35 = vpop.f32.mrb[174].mxu1  ;;  %8559 = vmatpush1.bf16.msra.mxu1 %v14710_v52  ;;  %9089 = vmatpush1.bf16.msra.mxu0 %v14713_v20  ;;  %v14739_v9 = vld [vmem:[%s19458_s5 + $0x1444] ss:$16 sps:$4 sm:$0xff]   ;;  %v14770_v20 = vld [vmem:[%s19458_s5 + $0x12e8] ss:$16 sps:$4 sm:$0xff]  }
 0x555   : > { %v6599_v33 = vpop.f32.mrb[175].mxu1  ;;  %8560 = vmatprep.subr.bf16.mxu1 %v14718_v15  ;;  %9090 = vmatprep.subr.bf16.mxu0 %v14721_v43  ;;  %v14776_v52 = vld [vmem:[%s19458_s5 + $0x1504] ss:$16 sps:$4 sm:$0xff]   ;;  %v9199_v15 = vrot.slane %v18725_v7, 2  ;;  %v14779_v43 = vld [vmem:[%s19458_s5 + $0x130c] ss:$16 sps:$4 sm:$0xff]  }
 0x556   : > { %v14780_v37 = vld [vmem:[%s19458_s5 + $0x1520] ss:$16 sps:$4 sm:$0xff]   ;;  %v14788_v35 = vld [vmem:[%s19458_s5 + $0x1544] ss:$16 sps:$4 sm:$0xff]   ;;  %v14791_v33 = vld [vmem:[%s19458_s5 + $0x134c] ss:$16 sps:$4 sm:$0xff]  }
 0x558   : > { %8561 = vmatpush1.bf16.msra.mxu1 %v14716_v24  ;;  %9091 = vmatpush1.bf16.msra.mxu0 %v14719_v4  ;;  %v14783_v24 = vld [vmem:[%s19458_s5 + $0x1328] ss:$16 sps:$4 sm:$0xff]   ;;  %v14786_v4 = vld [vmem:[%s19458_s5 + $0x1540] ss:$16 sps:$4 sm:$0xff]  }
 0x559   : > { %8562 = vmatprep.subr.bf16.mxu1 %v14724_v50  ;;  %9361 = vmatprep.subr.bf16.mxu0 %v14727_v23  ;;  %v14792_v50 = vld [vmem:[%s19458_s5 + $0x1560] ss:$16 sps:$4 sm:$0xff]   ;;  %v14800_v23 = vld [vmem:[%s19458_s5 + $0x1584] ss:$16 sps:$4 sm:$0xff]  }
 0x55b   : > { %9109 = vmatmul.mubr.bf16.vlgmr.msra.gmra.mrb[228].mxu0 %v18632_v45 }
 0x55c   : > { %8563 = vmatpush1.bf16.msra.mxu1 %v14722_v46  ;;  %9362 = vmatpush1.bf16.msra.mxu0 %v14725_v25  ;;  %v14795_v46 = vld [vmem:[%s19458_s5 + $0x1368] ss:$16 sps:$4 sm:$0xff]   ;;  %v14798_v25 = vld [vmem:[%s19458_s5 + $0x1580] ss:$16 sps:$4 sm:$0xff]  }
 0x55d   : > { %8833 = vmatprep.subr.bf16.mxu1 %v14730_v34  ;;  %9363 = vmatprep.subr.bf16.mxu0 %v14733_v40  ;;  %v14803_v34 = vld [vmem:[%s19458_s5 + $0x138c] ss:$16 sps:$4 sm:$0xff]   ;;  %v14806_v40 = vld [vmem:[%s19458_s5 + $0x15a4] ss:$16 sps:$4 sm:$0xff]  }
 0x55e   : > { %9393 = vmatprep.mubr.bf16.mxu0 %v15222_v27 }
 0x55f   : > { %8581 = vmatmul.mubr.bf16.vlgmr.msra.gmra.mrb[200].mxu1 %v18401_v13  ;;  %v14745_v13 = vld [vmem:[%s19458_s5 + $0x1464] ss:$16 sps:$4 sm:$0xff]  }
 0x560   : > { %8834 = vmatpush1.bf16.msra.mxu1 %v14728_v54  ;;  %9364 = vmatpush1.bf16.msra.mxu0 %v14731_v55  ;;  %v14801_v54 = vld [vmem:[%s19458_s5 + $0x1388] ss:$16 sps:$4 sm:$0xff]   ;;  %v14804_v55 = vld [vmem:[%s19458_s5 + $0x15a0] ss:$16 sps:$4 sm:$0xff]  }
 0x561   : > { %8835 = vmatprep.subr.bf16.mxu1 %v14736_v36  ;;  %9365 = vmatprep.subr.bf16.mxu0 %v14739_v9  ;;  %v14809_v36 = vld [vmem:[%s19458_s5 + $0x13ac] ss:$16 sps:$4 sm:$0xff]   ;;  %v14812_v9 = vld [vmem:[%s19458_s5 + $0x15c4] ss:$16 sps:$4 sm:$0xff]  }
 0x562   : > { %8865 = vmatprep.mubr.bf16.mxu1 %v15222_v27 }
 0x564   : > { %8836 = vmatpush1.bf16.msra.mxu1 %v14734_v28  ;;  %9366 = vmatpush1.bf16.msra.mxu0 %v14737_v5 }
 0x565   : > { %8837 = vmatprep.subr.bf16.mxu1 %v14742_v22  ;;  %9367 = vmatprep.subr.bf16.mxu0 %v14745_v13 }
 0x568   : > { %8838 = vmatpush1.bf16.msra.mxu1 %v14740_v17  ;;  %9368 = vmatpush1.bf16.msra.mxu0 %v14743_v31  ;;  %v14807_v31 = vld [vmem:[%s19458_s5 + $0x13a8] ss:$16 sps:$4 sm:$0xff]  }
 0x569   : > { %8839 = vmatprep.subr.bf16.mxu1 %v14748_v61  ;;  %9369 = vmatprep.subr.bf16.mxu0 %v14751_v19  ;;  %v14810_v61 = vld [vmem:[%s19458_s5 + $0x15c0] ss:$16 sps:$4 sm:$0xff]  }
 0x56c   : > { %8840 = vmatpush1.bf16.msra.mxu1 %v14746_v42  ;;  %9370 = vmatpush1.bf16.msra.mxu0 %v14749_v38  ;;  %v14815_v42 = vld [vmem:[%s19458_s5 + $0x13cc] ss:$16 sps:$4 sm:$0xff]   ;;  %v14818_v38 = vld [vmem:[%s19458_s5 + $0x15e4] ss:$16 sps:$4 sm:$0xff]  }
 0x56d   : > { %8841 = vmatprep.subr.bf16.mxu1 %v14754_v62  ;;  %9371 = vmatprep.subr.bf16.mxu0 %v14757_v3 }
 0x56e   : > { %v7406_v16 = vpop.f32.mrb[204].mxu0 }
 0x56f   : > { %v18705_v10 = vadd.f32 %v7406_v16, %v18590_v11  ;;  %v7408_v12 = vpop.f32.mrb[205].mxu0  ;;  %v14764_v11 = vld [vmem:[%s19458_s5 + $0x12c8] ss:$16 sps:$4 sm:$0xff]   ;;  %v14816_v16 = vld [vmem:[%s19458_s5 + $0x15e0] ss:$16 sps:$4 sm:$0xff]  }
 0x570   : > { %v18708_v49 = vadd.f32 %v7408_v12, %v18593_v51  ;;  %v7410_v48 = vpop.f32.mrb[206].mxu0  ;;  %8842 = vmatpush1.bf16.msra.mxu1 %v14752_v56  ;;  %9372 = vmatpush1.bf16.msra.mxu0 %v14755_v0  ;;  %v14821_v12 = vld [vmem:[%s19458_s5 + $0x13ec] ss:$16 sps:$4 sm:$0xff]  }
 0x571   : > { %v7411_v41 = vpop.f32.mrb[207].mxu0  ;;  %8843 = vmatprep.subr.bf16.mxu1 %v14760_v1  ;;  %9373 = vmatprep.subr.bf16.mxu0 %v14763_v59  ;;  %v14813_v59 = vld [vmem:[%s19458_s5 + $0x13c8] ss:$16 sps:$4 sm:$0xff]   ;;  %v14824_v48 = vld [vmem:[%s19458_s5 + $0x1604] ss:$16 sps:$4 sm:$0xff]  }
 0x572   : > { %v6878_v57 = vpop.f32.mrb[176].mxu1 }
 0x573   : > { %v18723_v30 = vadd.f32 %v6878_v57, %v18608_v21  ;;  %v6880_v32 = vpop.f32.mrb[177].mxu1  ;;  %v14777_v21 = vld [vmem:[%s19458_s5 + $0x1308] ss:$16 sps:$4 sm:$0xff]  }
 0x574   : > { %v18728_v63 = vadd.f32 %v6880_v32, %v18611_v18  ;;  %v6882_v44 = vpop.f32.mrb[178].mxu1  ;;  %8844 = vmatpush1.bf16.msra.mxu1 %v14758_v47  ;;  %9374 = vmatpush1.bf16.msra.mxu0 %v14761_v39  ;;  %v14785_v18 = vld [vmem:[%s19458_s5 + $0x132c] ss:$16 sps:$4 sm:$0xff]   ;;  %v14819_v47 = vld [vmem:[%s19458_s5 + $0x13e8] ss:$16 sps:$4 sm:$0xff]  }
 0x575   : > { %v6883_v51 = vpop.f32.mrb[179].mxu1  ;;  %8845 = vmatprep.subr.bf16.mxu1 %v14766_v2  ;;  %9375 = vmatprep.subr.bf16.mxu0 %v14769_v6  ;;  %v14822_v39 = vld [vmem:[%s19458_s5 + $0x1600] ss:$16 sps:$4 sm:$0xff]   ;;  %v14827_v2 = vld [vmem:[%s19458_s5 + $0x140c] ss:$16 sps:$4 sm:$0xff]  }
 0x576   : > { %v14830_v6 = vld [vmem:[%s19458_s5 + $0x1624] ss:$16 sps:$4 sm:$0xff]   ;;  %v14825_v57 = vld [vmem:[%s19458_s5 + $0x1408] ss:$16 sps:$4 sm:$0xff]   ;;  %v14833_v32 = vld [vmem:[%s19458_s5 + $0x142c] ss:$16 sps:$4 sm:$0xff]  }
 0x577   : > { %v14831_v44 = vld [vmem:[%s19458_s5 + $0x1428] ss:$16 sps:$4 sm:$0xff]  }
 0x578   : > { %8846 = vmatpush1.bf16.msra.mxu1 %v14764_v11  ;;  %9376 = vmatpush1.bf16.msra.mxu0 %v14767_v53  ;;  %v14834_v11 = vld [vmem:[%s19458_s5 + $0x1640] ss:$16 sps:$4 sm:$0xff]   ;;  %v14839_v53 = vld [vmem:[%s19458_s5 + $0x144c] ss:$16 sps:$4 sm:$0xff]   ;;  %v14837_v51 = vld [vmem:[%s19458_s5 + $0x1448] ss:$16 sps:$4 sm:$0xff]  }
 0x579   : > { %8847 = vmatprep.subr.bf16.mxu1 %v14772_v29  ;;  %9645 = vmatprep.subr.bf16.mxu0 %v14776_v52  ;;  %v14840_v29 = vld [vmem:[%s19458_s5 + $0x1660] ss:$16 sps:$4 sm:$0xff]   ;;  %v14845_v52 = vld [vmem:[%s19458_s5 + $0x146c] ss:$16 sps:$4 sm:$0xff]  }
 0x57b   : > { %9394 = vmatmul.mubr.bf16.vlgmr.msra.gmra.mrb[232].mxu0 %v9199_v15 }
 0x57c   : > { %8848 = vmatpush1.bf16.msra.mxu1 %v14770_v20  ;;  %9646 = vmatpush1.bf16.msra.mxu0 %v14774_v8  ;;  %v14848_v20 = vld [vmem:[%s19458_s5 + $0x1684] ss:$16 sps:$4 sm:$0xff]   ;;  %v14843_v8 = vld [vmem:[%s19458_s5 + $0x1468] ss:$16 sps:$4 sm:$0xff]  }
 0x57d   : > { %9117 = vmatprep.subr.bf16.mxu1 %v14779_v43  ;;  %9647 = vmatprep.subr.bf16.mxu0 %v14782_v60  ;;  %v14846_v43 = vld [vmem:[%s19458_s5 + $0x1680] ss:$16 sps:$4 sm:$0xff]   ;;  %v14851_v60 = vld [vmem:[%s19458_s5 + $0x148c] ss:$16 sps:$4 sm:$0xff]  }
 0x57e   : > { %9677 = vmatprep.mubr.bf16.mxu0 %v15222_v27 }
 0x57f   : > { %8866 = vmatmul.mubr.bf16.vlgmr.msra.gmra.mrb[204].mxu1 %v8630_v26  ;;  %v14789_v26 = vld [vmem:[%s19458_s5 + $0x1348] ss:$16 sps:$4 sm:$0xff]  }
 0x580   : > { %9118 = vmatpush1.bf16.msra.mxu1 %v14777_v21  ;;  %9648 = vmatpush1.bf16.msra.mxu0 %v14780_v37  ;;  %v14854_v21 = vld [vmem:[%s19458_s5 + $0x16a4] ss:$16 sps:$4 sm:$0xff]   ;;  %v14849_v37 = vld [vmem:[%s19458_s5 + $0x1488] ss:$16 sps:$4 sm:$0xff]  }
 0x581   : > { %9119 = vmatprep.subr.bf16.mxu1 %v14785_v18  ;;  %9649 = vmatprep.subr.bf16.mxu0 %v14788_v35  ;;  %v14852_v18 = vld [vmem:[%s19458_s5 + $0x16a0] ss:$16 sps:$4 sm:$0xff]   ;;  %v14857_v35 = vld [vmem:[%s19458_s5 + $0x14ac] ss:$16 sps:$4 sm:$0xff]  }
 0x582   : > { %9149 = vmatprep.mubr.bf16.mxu1 %v15222_v27 }
 0x584   : > { %9120 = vmatpush1.bf16.msra.mxu1 %v14783_v24  ;;  %9650 = vmatpush1.bf16.msra.mxu0 %v14786_v4  ;;  %v14860_v24 = vld [vmem:[%s19458_s5 + $0x16c4] ss:$16 sps:$4 sm:$0xff]  }
 0x585   : > { %9121 = vmatprep.subr.bf16.mxu1 %v14791_v33  ;;  %9651 = vmatprep.subr.bf16.mxu0 %v14794_v58 }
 0x588   : > { %9122 = vmatpush1.bf16.msra.mxu1 %v14789_v26  ;;  %9652 = vmatpush1.bf16.msra.mxu0 %v14792_v50 }
 0x589   : > { %9123 = vmatprep.subr.bf16.mxu1 %v14797_v14  ;;  %9653 = vmatprep.subr.bf16.mxu0 %v14800_v23  ;;  %v14855_v14 = vld [vmem:[%s19458_s5 + $0x14a8] ss:$16 sps:$4 sm:$0xff]   ;;  %v14858_v23 = vld [vmem:[%s19458_s5 + $0x16c0] ss:$16 sps:$4 sm:$0xff]  }
 0x58c   : > { %9124 = vmatpush1.bf16.msra.mxu1 %v14795_v46  ;;  %9654 = vmatpush1.bf16.msra.mxu0 %v14798_v25  ;;  %v14863_v25 = vld [vmem:[%s19458_s5 + $0x14cc] ss:$16 sps:$4 sm:$0xff]  }
 0x58d   : > { %9125 = vmatprep.subr.bf16.mxu1 %v14803_v34  ;;  %9655 = vmatprep.subr.bf16.mxu0 %v14806_v40  ;;  %v14866_v34 = vld [vmem:[%s19458_s5 + $0x16e4] ss:$16 sps:$4 sm:$0xff]  }
 0x58e   : > { %v7691_v28 = vpop.f32.mrb[208].mxu0 }
 0x58f   : > { %v18822_v5 = vadd.f32 %v7691_v28, %v18705_v10  ;;  %v7693_v22 = vpop.f32.mrb[209].mxu0 }
 0x590   : > { %v18825_v13 = vadd.f32 %v7693_v22, %v18708_v49  ;;  %v7695_v17 = vpop.f32.mrb[210].mxu0  ;;  %9126 = vmatpush1.bf16.msra.mxu1 %v14801_v54  ;;  %9656 = vmatpush1.bf16.msra.mxu0 %v14804_v55  ;;  %v9481_v49 = vshrl.u32 %v18725_v7, 16  ;;  %v14864_v22 = vld [vmem:[%s19458_s5 + $0x16e0] ss:$16 sps:$4 sm:$0xff]   ;;  %v14891_v7 = vld [vmem:[%s19458_s5 + $0x1764] ss:$16 sps:$4 sm:$0xff]  }
 0x591   : > { %v7696_v19 = vpop.f32.mrb[211].mxu0  ;;  %9127 = vmatprep.subr.bf16.mxu1 %v14809_v36  ;;  %9657 = vmatprep.subr.bf16.mxu0 %v14812_v9  ;;  %v18957_v36 = vld [vmem:[#allocation5 + $0x8] ss:$0 sps:$4 sm:$0x88]   ;;  %v14869_v17 = vld [vmem:[%s19458_s5 + $0x14ec] ss:$16 sps:$4 sm:$0xff]  }
 0x592   : > { %v7163_v62 = vpop.f32.mrb[180].mxu1  ;;  %v18864_v41 = vrot.slane %v9481_v49, 2  ;;  %v14871_v19 = vld [vmem:[%s19458_s5 + $0x1700] ss:$16 sps:$4 sm:$0xff]   ;;  %v14894_v49 = vld [vmem:[%s19458_s5 + $0x156c] ss:$16 sps:$4 sm:$0xff]  }
 0x593   : > { %v18840_v3 = vadd.f32 %v7163_v62, %v18723_v30  ;;  %v7165_v56 = vpop.f32.mrb[181].mxu1  ;;  %v14828_v30 = vld [vmem:[%s19458_s5 + $0x1620] ss:$16 sps:$4 sm:$0xff]   ;;  %v14879_v62 = vld [vmem:[%s19458_s5 + $0x1724] ss:$16 sps:$4 sm:$0xff]  }
 0x594   : > { %v18843_v0 = vadd.f32 %v7165_v56, %v18728_v63  ;;  %v7167_v1 = vpop.f32.mrb[182].mxu1  ;;  %9128 = vmatpush1.bf16.msra.mxu1 %v14807_v31  ;;  %9658 = vmatpush1.bf16.msra.mxu0 %v14810_v61  ;;  %v14836_v63 = vld [vmem:[%s19458_s5 + $0x1644] ss:$16 sps:$4 sm:$0xff]   ;;  %v14867_v61 = vld [vmem:[%s19458_s5 + $0x14e8] ss:$16 sps:$4 sm:$0xff]  }
 0x595   : > { %v7168_v10 = vpop.f32.mrb[183].mxu1  ;;  %9129 = vmatprep.subr.bf16.mxu1 %v14815_v42  ;;  %9659 = vmatprep.subr.bf16.mxu0 %v14818_v38  ;;  %v14873_v31 = vld [vmem:[%s19458_s5 + $0x1704] ss:$16 sps:$4 sm:$0xff]   ;;  %v9768_v42 = vrot.slane %v18957_v36, 3  ;;  %v14876_v38 = vld [vmem:[%s19458_s5 + $0x150c] ss:$16 sps:$4 sm:$0xff]  }
 0x596   : > { %v14877_v56 = vld [vmem:[%s19458_s5 + $0x1720] ss:$16 sps:$4 sm:$0xff]   ;;  %v14885_v1 = vld [vmem:[%s19458_s5 + $0x1744] ss:$16 sps:$4 sm:$0xff]   ;;  %v14888_v10 = vld [vmem:[%s19458_s5 + $0x154c] ss:$16 sps:$4 sm:$0xff]  }
 0x598   : > { %9130 = vmatpush1.bf16.msra.mxu1 %v14813_v59  ;;  %9660 = vmatpush1.bf16.msra.mxu0 %v14816_v16  ;;  %v14880_v59 = vld [vmem:[%s19458_s5 + $0x1528] ss:$16 sps:$4 sm:$0xff]   ;;  %v14883_v16 = vld [vmem:[%s19458_s5 + $0x1740] ss:$16 sps:$4 sm:$0xff]  }
 0x599   : > { %9131 = vmatprep.subr.bf16.mxu1 %v14821_v12  ;;  %9930 = vmatprep.subr.bf16.mxu0 %v14824_v48  ;;  %v14889_v12 = vld [vmem:[%s19458_s5 + $0x1760] ss:$16 sps:$4 sm:$0xff]   ;;  %v14897_v48 = vld [vmem:[%s19458_s5 + $0x1784] ss:$16 sps:$4 sm:$0xff]  }
 0x59b   : > { %9678 = vmatmul.mubr.bf16.vlgmr.msra.gmra.mrb[236].mxu0 %v18864_v41 }
 0x59c   : > { %9132 = vmatpush1.bf16.msra.mxu1 %v14819_v47  ;;  %9931 = vmatpush1.bf16.msra.mxu0 %v14822_v39  ;;  %v14892_v47 = vld [vmem:[%s19458_s5 + $0x1568] ss:$16 sps:$4 sm:$0xff]   ;;  %v14895_v39 = vld [vmem:[%s19458_s5 + $0x1780] ss:$16 sps:$4 sm:$0xff]  }
 0x59d   : > { %9402 = vmatprep.subr.bf16.mxu1 %v14827_v2  ;;  %9932 = vmatprep.subr.bf16.mxu0 %v14830_v6  ;;  %v14900_v2 = vld [vmem:[%s19458_s5 + $0x158c] ss:$16 sps:$4 sm:$0xff]   ;;  %v14903_v6 = vld [vmem:[%s19458_s5 + $0x17a4] ss:$16 sps:$4 sm:$0xff]  }
 0x59e   : > { %9962 = vmatprep.mubr.bf16.mxu0 %v15222_v27 }
 0x59f   : > { %9150 = vmatmul.mubr.bf16.vlgmr.msra.gmra.mrb[208].mxu1 %v18632_v45  ;;  %v14842_v45 = vld [vmem:[%s19458_s5 + $0x1664] ss:$16 sps:$4 sm:$0xff]  }
 0x5a0   : > { %9403 = vmatpush1.bf16.msra.mxu1 %v14825_v57  ;;  %9933 = vmatpush1.bf16.msra.mxu0 %v14828_v30  ;;  %v14898_v57 = vld [vmem:[%s19458_s5 + $0x1588] ss:$16 sps:$4 sm:$0xff]   ;;  %v14901_v30 = vld [vmem:[%s19458_s5 + $0x17a0] ss:$16 sps:$4 sm:$0xff]  }
 0x5a1   : > { %9404 = vmatprep.subr.bf16.mxu1 %v14833_v32  ;;  %9934 = vmatprep.subr.bf16.mxu0 %v14836_v63  ;;  %v14906_v32 = vld [vmem:[%s19458_s5 + $0x15ac] ss:$16 sps:$4 sm:$0xff]   ;;  %v14909_v63 = vld [vmem:[%s19458_s5 + $0x17c4] ss:$16 sps:$4 sm:$0xff]  }
 0x5a2   : > { %9434 = vmatprep.mubr.bf16.mxu1 %v15222_v27 }
 0x5a4   : > { %9405 = vmatpush1.bf16.msra.mxu1 %v14831_v44  ;;  %9935 = vmatpush1.bf16.msra.mxu0 %v14834_v11 }
 0x5a5   : > { %9406 = vmatprep.subr.bf16.mxu1 %v14839_v53  ;;  %9936 = vmatprep.subr.bf16.mxu0 %v14842_v45 }
 0x5a8   : > { %9407 = vmatpush1.bf16.msra.mxu1 %v14837_v51  ;;  %9937 = vmatpush1.bf16.msra.mxu0 %v14840_v29  ;;  %v14904_v29 = vld [vmem:[%s19458_s5 + $0x15a8] ss:$16 sps:$4 sm:$0xff]  }
 0x5a9   : > { %9408 = vmatprep.subr.bf16.mxu1 %v14845_v52  ;;  %9938 = vmatprep.subr.bf16.mxu0 %v14848_v20  ;;  %v14907_v52 = vld [vmem:[%s19458_s5 + $0x17c0] ss:$16 sps:$4 sm:$0xff]  }
 0x5ac   : > { %9409 = vmatpush1.bf16.msra.mxu1 %v14843_v8  ;;  %9939 = vmatpush1.bf16.msra.mxu0 %v14846_v43  ;;  %v14912_v8 = vld [vmem:[%s19458_s5 + $0x15cc] ss:$16 sps:$4 sm:$0xff]   ;;  %v14915_v43 = vld [vmem:[%s19458_s5 + $0x17e4] ss:$16 sps:$4 sm:$0xff]  }
 0x5ad   : > { %9410 = vmatprep.subr.bf16.mxu1 %v14851_v60  ;;  %9940 = vmatprep.subr.bf16.mxu0 %v14854_v21 }
 0x5ae   : > { %v7975_v4 = vpop.f32.mrb[212].mxu0 }
 0x5af   : > { %v18937_v33 = vadd.f32 %v7975_v4, %v18822_v5  ;;  %v7977_v58 = vpop.f32.mrb[213].mxu0  ;;  %v14861_v5 = vld [vmem:[%s19458_s5 + $0x14c8] ss:$16 sps:$4 sm:$0xff]   ;;  %v14913_v4 = vld [vmem:[%s19458_s5 + $0x17e0] ss:$16 sps:$4 sm:$0xff]  }
 0x5b0   : > { %v18940_v26 = vadd.f32 %v7977_v58, %v18825_v13  ;;  %v7979_v50 = vpop.f32.mrb[214].mxu0  ;;  %9411 = vmatpush1.bf16.msra.mxu1 %v14849_v37  ;;  %9941 = vmatpush1.bf16.msra.mxu0 %v14852_v18  ;;  %v14918_v58 = vld [vmem:[%s19458_s5 + $0x15ec] ss:$16 sps:$4 sm:$0xff]  }
 0x5b1   : > { %v7980_v46 = vpop.f32.mrb[215].mxu0  ;;  %9412 = vmatprep.subr.bf16.mxu1 %v14857_v35  ;;  %9942 = vmatprep.subr.bf16.mxu0 %v14860_v24  ;;  %v14910_v24 = vld [vmem:[%s19458_s5 + $0x15c8] ss:$16 sps:$4 sm:$0xff]   ;;  %v14921_v50 = vld [vmem:[%s19458_s5 + $0x1804] ss:$16 sps:$4 sm:$0xff]  }
 0x5b2   : > { %v7447_v40 = vpop.f32.mrb[184].mxu1 }
 0x5b3   : > { %v18955_v54 = vadd.f32 %v7447_v40, %v18840_v3  ;;  %v7449_v55 = vpop.f32.mrb[185].mxu1  ;;  %v14874_v3 = vld [vmem:[%s19458_s5 + $0x1508] ss:$16 sps:$4 sm:$0xff]  }
 0x5b4   : > { %v18960_v9 = vadd.f32 %v7449_v55, %v18843_v0  ;;  %v7451_v28 = vpop.f32.mrb[186].mxu1  ;;  %9413 = vmatpush1.bf16.msra.mxu1 %v14855_v14  ;;  %9943 = vmatpush1.bf16.msra.mxu0 %v14858_v23  ;;  %v14882_v0 = vld [vmem:[%s19458_s5 + $0x152c] ss:$16 sps:$4 sm:$0xff]   ;;  %v14916_v14 = vld [vmem:[%s19458_s5 + $0x15e8] ss:$16 sps:$4 sm:$0xff]  }
 0x5b5   : > { %v7452_v13 = vpop.f32.mrb[187].mxu1  ;;  %9414 = vmatprep.subr.bf16.mxu1 %v14863_v25  ;;  %9944 = vmatprep.subr.bf16.mxu0 %v14866_v34  ;;  %v14919_v23 = vld [vmem:[%s19458_s5 + $0x1800] ss:$16 sps:$4 sm:$0xff]   ;;  %v14924_v25 = vld [vmem:[%s19458_s5 + $0x160c] ss:$16 sps:$4 sm:$0xff]  }
 0x5b6   : > { %v14927_v34 = vld [vmem:[%s19458_s5 + $0x1824] ss:$16 sps:$4 sm:$0xff]   ;;  %v14922_v40 = vld [vmem:[%s19458_s5 + $0x1608] ss:$16 sps:$4 sm:$0xff]   ;;  %v14930_v55 = vld [vmem:[%s19458_s5 + $0x162c] ss:$16 sps:$4 sm:$0xff]  }
 0x5b7   : > { %v14928_v28 = vld [vmem:[%s19458_s5 + $0x1628] ss:$16 sps:$4 sm:$0xff]  }
 0x5b8   : > { %9415 = vmatpush1.bf16.msra.mxu1 %v14861_v5  ;;  %9945 = vmatpush1.bf16.msra.mxu0 %v14864_v22  ;;  %v14931_v5 = vld [vmem:[%s19458_s5 + $0x1840] ss:$16 sps:$4 sm:$0xff]   ;;  %v14936_v22 = vld [vmem:[%s19458_s5 + $0x164c] ss:$16 sps:$4 sm:$0xff]   ;;  %v14934_v13 = vld [vmem:[%s19458_s5 + $0x1648] ss:$16 sps:$4 sm:$0xff]  }
 0x5b9   : > { %9416 = vmatprep.subr.bf16.mxu1 %v14869_v17  ;;  %10214 = vmatprep.subr.bf16.mxu0 %v14873_v31  ;;  %v14937_v17 = vld [vmem:[%s19458_s5 + $0x1860] ss:$16 sps:$4 sm:$0xff]   ;;  %v14942_v31 = vld [vmem:[%s19458_s5 + $0x166c] ss:$16 sps:$4 sm:$0xff]  }
 0x5bb   : > { %9963 = vmatmul.mubr.bf16.vlgmr.msra.gmra.mrb[240].mxu0 %v9768_v42 }
 0x5bc   : > { %9417 = vmatpush1.bf16.msra.mxu1 %v14867_v61  ;;  %10215 = vmatpush1.bf16.msra.mxu0 %v14871_v19  ;;  %v14945_v61 = vld [vmem:[%s19458_s5 + $0x1884] ss:$16 sps:$4 sm:$0xff]   ;;  %v14940_v19 = vld [vmem:[%s19458_s5 + $0x1668] ss:$16 sps:$4 sm:$0xff]  }
 0x5bd   : > { %9686 = vmatprep.subr.bf16.mxu1 %v14876_v38  ;;  %10216 = vmatprep.subr.bf16.mxu0 %v14879_v62  ;;  %v14943_v38 = vld [vmem:[%s19458_s5 + $0x1880] ss:$16 sps:$4 sm:$0xff]   ;;  %v14948_v62 = vld [vmem:[%s19458_s5 + $0x168c] ss:$16 sps:$4 sm:$0xff]  }
 0x5be   : > { %10246 = vmatprep.mubr.bf16.mxu0 %v15222_v27 }
 0x5bf   : > { %9435 = vmatmul.mubr.bf16.vlgmr.msra.gmra.mrb[212].mxu1 %v9199_v15  ;;  %v14886_v15 = vld [vmem:[%s19458_s5 + $0x1548] ss:$16 sps:$4 sm:$0xff]  }
 0x5c0   : > { %9687 = vmatpush1.bf16.msra.mxu1 %v14874_v3  ;;  %10217 = vmatpush1.bf16.msra.mxu0 %v14877_v56  ;;  %v14951_v3 = vld [vmem:[%s19458_s5 + $0x18a4] ss:$16 sps:$4 sm:$0xff]   ;;  %v14946_v56 = vld [vmem:[%s19458_s5 + $0x1688] ss:$16 sps:$4 sm:$0xff]  }
 0x5c1   : > { %9688 = vmatprep.subr.bf16.mxu1 %v14882_v0  ;;  %10218 = vmatprep.subr.bf16.mxu0 %v14885_v1  ;;  %v14949_v0 = vld [vmem:[%s19458_s5 + $0x18a0] ss:$16 sps:$4 sm:$0xff]   ;;  %v14954_v1 = vld [vmem:[%s19458_s5 + $0x16ac] ss:$16 sps:$4 sm:$0xff]  }
 0x5c2   : > { %9718 = vmatprep.mubr.bf16.mxu1 %v15222_v27 }
 0x5c4   : > { %9689 = vmatpush1.bf16.msra.mxu1 %v14880_v59  ;;  %10219 = vmatpush1.bf16.msra.mxu0 %v14883_v16  ;;  %v14957_v59 = vld [vmem:[%s19458_s5 + $0x18c4] ss:$16 sps:$4 sm:$0xff]  }
 0x5c5   : > { %9690 = vmatprep.subr.bf16.mxu1 %v14888_v10  ;;  %10220 = vmatprep.subr.bf16.mxu0 %v14891_v7 }
 0x5c8   : > { %9691 = vmatpush1.bf16.msra.mxu1 %v14886_v15  ;;  %10221 = vmatpush1.bf16.msra.mxu0 %v14889_v12 }
 0x5c9   : > { %9692 = vmatprep.subr.bf16.mxu1 %v14894_v49  ;;  %10222 = vmatprep.subr.bf16.mxu0 %v14897_v48  ;;  %v14952_v49 = vld [vmem:[%s19458_s5 + $0x16a8] ss:$16 sps:$4 sm:$0xff]   ;;  %v14955_v48 = vld [vmem:[%s19458_s5 + $0x18c0] ss:$16 sps:$4 sm:$0xff]  }
 0x5cc   : > { %9693 = vmatpush1.bf16.msra.mxu1 %v14892_v47  ;;  %10223 = vmatpush1.bf16.msra.mxu0 %v14895_v39  ;;  %v14960_v39 = vld [vmem:[%s19458_s5 + $0x16cc] ss:$16 sps:$4 sm:$0xff]  }
 0x5cd   : > { %9694 = vmatprep.subr.bf16.mxu1 %v14900_v2  ;;  %10224 = vmatprep.subr.bf16.mxu0 %v14903_v6  ;;  %v14963_v2 = vld [vmem:[%s19458_s5 + $0x18e4] ss:$16 sps:$4 sm:$0xff]  }
 0x5ce   : > { %v8255_v44 = vpop.f32.mrb[216].mxu0 }
 0x5cf   : > { %v19054_v11 = vadd.f32 %v8255_v44, %v18937_v33  ;;  %v8257_v53 = vpop.f32.mrb[217].mxu0  ;;  %v14958_v44 = vld [vmem:[%s19458_s5 + $0x16c8] ss:$16 sps:$4 sm:$0xff]  }
 0x5d0   : > { %v19057_v45 = vadd.f32 %v8257_v53, %v18940_v26  ;;  %v8259_v51 = vpop.f32.mrb[218].mxu0  ;;  %9695 = vmatpush1.bf16.msra.mxu1 %v14898_v57  ;;  %10225 = vmatpush1.bf16.msra.mxu0 %v14901_v30  ;;  %v10050_v26 = vshrl.u32 %v18957_v36, 16  ;;  %v14978_v36 = vld [vmem:[%s19458_s5 + $0x176c] ss:$16 sps:$4 sm:$0xff]  }
 0x5d1   : > { %v8260_v20 = vpop.f32.mrb[219].mxu0  ;;  %9696 = vmatprep.subr.bf16.mxu1 %v14906_v32  ;;  %10226 = vmatprep.subr.bf16.mxu0 %v14909_v63  ;;  %v14964_v51 = vld [vmem:[%s19458_s5 + $0x16e8] ss:$16 sps:$4 sm:$0xff]  }
 0x5d2   : > { %v7732_v60 = vpop.f32.mrb[188].mxu1  ;;  %v19096_v46 = vrot.slane %v10050_v26, 3  ;;  %v14967_v20 = vld [vmem:[%s19458_s5 + $0x1708] ss:$16 sps:$4 sm:$0xff]  }
 0x5d3   : > { %v19072_v21 = vadd.f32 %v7732_v60, %v18955_v54  ;;  %v7734_v37 = vpop.f32.mrb[189].mxu1  ;;  %v14925_v54 = vld [vmem:[%s19458_s5 + $0x1820] ss:$16 sps:$4 sm:$0xff]   ;;  %v14975_v60 = vld [vmem:[%s19458_s5 + $0x174c] ss:$16 sps:$4 sm:$0xff]  }
 0x5d4   : > { %v19075_v18 = vadd.f32 %v7734_v37, %v18960_v9  ;;  %v7736_v35 = vpop.f32.mrb[190].mxu1  ;;  %9697 = vmatpush1.bf16.msra.mxu1 %v14904_v29  ;;  %10227 = vmatpush1.bf16.msra.mxu0 %v14907_v52  ;;  %v14933_v9 = vld [vmem:[%s19458_s5 + $0x1844] ss:$16 sps:$4 sm:$0xff]   ;;  %v14969_v29 = vld [vmem:[%s19458_s5 + $0x170c] ss:$16 sps:$4 sm:$0xff]  }
 0x5d5   : > { %v7737_v33 = vpop.f32.mrb[191].mxu1  ;;  %9698 = vmatprep.subr.bf16.mxu1 %v14912_v8  ;;  %10228 = vmatprep.subr.bf16.mxu0 %v14915_v43  ;;  %v19199_v52 = vld [vmem:[#allocation5 + $0xc] sm:$0x1]  ;;  %v14972_v8 = vld [vmem:[%s19458_s5 + $0x172c] ss:$16 sps:$4 sm:$0xff]  }
 0x5d6   : > { %v14970_v43 = vld [vmem:[%s19458_s5 + $0x1728] ss:$16 sps:$4 sm:$0xff]   ;;  %v14981_v37 = vld [vmem:[%s19458_s5 + $0x178c] ss:$16 sps:$4 sm:$0xff]  }
 0x5d7   : > { %v14984_v35 = vld [vmem:[%s19458_s5 + $0x17ac] ss:$16 sps:$4 sm:$0xff]  }
 0x5d8   : > { %9699 = vmatpush1.bf16.msra.mxu1 %v14910_v24  ;;  %10229 = vmatpush1.bf16.msra.mxu0 %v14913_v4 }
 0x5d9   : > { %9700 = vmatprep.subr.bf16.mxu1 %v14918_v58  ;;  %10494 = vmatprep.subr.bf16.mxu0 %v14921_v50  ;;  %v14982_v50 = vld [vmem:[%s19458_s5 + $0x17a8] ss:$16 sps:$4 sm:$0xff]  }
 0x5db   : > { %10247 = vmatmul.mubr.bf16.vlgmr.msra.gmra.mrb[244].mxu0 %v19096_v46 }
 0x5dc   : > { %9701 = vmatpush1.bf16.msra.mxu1 %v14916_v14  ;;  %10495 = vmatpush1.bf16.msra.mxu0 %v14919_v23  ;;  %v14987_v23 = vld [vmem:[%s19458_s5 + $0x17cc] ss:$16 sps:$4 sm:$0xff]  }
 0x5dd   : > { %9971 = vmatprep.subr.bf16.mxu1 %v14924_v25  ;;  %10496 = vmatprep.subr.bf16.mxu0 %v14927_v34 }
 0x5de   : > { %10526 = vmatprep.mubr.bf16.mxu0 %v15222_v27 }
 0x5df   : > { %9719 = vmatmul.mubr.bf16.vlgmr.msra.gmra.mrb[216].mxu1 %v18864_v41  ;;  %v14939_v41 = vld [vmem:[%s19458_s5 + $0x1864] ss:$16 sps:$4 sm:$0xff]  }
 0x5e0   : > { %9972 = vmatpush1.bf16.msra.mxu1 %v14922_v40  ;;  %10497 = vmatpush1.bf16.msra.mxu0 %v14925_v54 }
 0x5e1   : > { %9973 = vmatprep.subr.bf16.mxu1 %v14930_v55  ;;  %10498 = vmatprep.subr.bf16.mxu0 %v14933_v9  ;;  %v14985_v9 = vld [vmem:[%s19458_s5 + $0x17c8] ss:$16 sps:$4 sm:$0xff]  }
 0x5e2   : > { %10003 = vmatprep.mubr.bf16.mxu1 %v15222_v27 }
 0x5e4   : > { %9974 = vmatpush1.bf16.msra.mxu1 %v14928_v28  ;;  %10499 = vmatpush1.bf16.msra.mxu0 %v14931_v5  ;;  %v14990_v5 = vld [vmem:[%s19458_s5 + $0x17ec] ss:$16 sps:$4 sm:$0xff]  }
 0x5e5   : > { %9975 = vmatprep.subr.bf16.mxu1 %v14936_v22  ;;  %10500 = vmatprep.subr.bf16.mxu0 %v14939_v41  ;;  %v14988_v22 = vld [vmem:[%s19458_s5 + $0x17e8] ss:$16 sps:$4 sm:$0xff]   ;;  %v14993_v41 = vld [vmem:[%s19458_s5 + $0x180c] ss:$16 sps:$4 sm:$0xff]  }
 0x5e8   : > { %9976 = vmatpush1.bf16.msra.mxu1 %v14934_v13  ;;  %10501 = vmatpush1.bf16.msra.mxu0 %v14937_v17  ;;  %v14991_v13 = vld [vmem:[%s19458_s5 + $0x1808] ss:$16 sps:$4 sm:$0xff]   ;;  %v14996_v17 = vld [vmem:[%s19458_s5 + $0x182c] ss:$16 sps:$4 sm:$0xff]  }
 0x5e9   : > { %9977 = vmatprep.subr.bf16.mxu1 %v14942_v31  ;;  %10502 = vmatprep.subr.bf16.mxu0 %v14945_v61  ;;  %v14994_v31 = vld [vmem:[%s19458_s5 + $0x1828] ss:$16 sps:$4 sm:$0xff]   ;;  %v14999_v61 = vld [vmem:[%s19458_s5 + $0x184c] ss:$16 sps:$4 sm:$0xff]  }
 0x5ec   : > { %9978 = vmatpush1.bf16.msra.mxu1 %v14940_v19  ;;  %10503 = vmatpush1.bf16.msra.mxu0 %v14943_v38  ;;  %v14997_v19 = vld [vmem:[%s19458_s5 + $0x1848] ss:$16 sps:$4 sm:$0xff]   ;;  %v15005_v38 = vld [vmem:[%s19458_s5 + $0x188c] ss:$16 sps:$4 sm:$0xff]  }
 0x5ed   : > { %9979 = vmatprep.subr.bf16.mxu1 %v14948_v62  ;;  %10504 = vmatprep.subr.bf16.mxu0 %v14951_v3  ;;  %v15003_v62 = vld [vmem:[%s19458_s5 + $0x1888] ss:$16 sps:$4 sm:$0xff]   ;;  %v15008_v3 = vld [vmem:[%s19458_s5 + $0x18ac] ss:$16 sps:$4 sm:$0xff]  }
 0x5ee   : > { %v8541_v16 = vpop.f32.mrb[220].mxu0 }
 0x5ef   : > { %v8589_v10 = vadd.f32 %v8541_v16, %v19054_v11  ;;  %v8543_v7 = vpop.f32.mrb[221].mxu0  ;;  %v14961_v11 = vld [vmem:[%s19458_s5 + $0x18e0] ss:$16 sps:$4 sm:$0xff]  }
 0x5f0   : > { %v8590_v15 = vadd.f32 %v8543_v7, %v19057_v45  ;;  %v8545_v12 = vpop.f32.mrb[222].mxu0  ;;  %9980 = vmatpush1.bf16.msra.mxu1 %v14946_v56  ;;  %10505 = vmatpush1.bf16.msra.mxu0 %v14949_v0  ;;  %v14966_v45 = vld [vmem:[%s19458_s5 + $0x16ec] ss:$16 sps:$4 sm:$0xff]  }
 0x5f1   : > { %v8546_v47 = vpop.f32.mrb[223].mxu0  ;;  %9981 = vmatprep.subr.bf16.mxu1 %v14954_v1  ;;  %10506 = vmatprep.subr.bf16.mxu0 %v14957_v59 }
 0x5f2   : > { %v8016_v6 = vpop.f32.mrb[192].mxu1 }
 0x5f3   : > { %v8025_v57 = vadd.f32 %v8016_v6, %v19072_v21  ;;  %v8018_v30 = vpop.f32.mrb[193].mxu1  ;;  %v14973_v21 = vld [vmem:[%s19458_s5 + $0x1748] ss:$16 sps:$4 sm:$0xff]   ;;  %v15014_v6 = vld [vmem:[%s19458_s5 + $0x18ec] ss:$16 sps:$4 sm:$0xff]  }
 0x5f4   : > { %v8026_v32 = vadd.f32 %v8018_v30, %v19075_v18  ;;  %v8020_v63 = vpop.f32.mrb[194].mxu1  ;;  %9982 = vmatpush1.bf16.msra.mxu1 %v14952_v49  ;;  %10507 = vmatpush1.bf16.msra.mxu0 %v14955_v48  ;;  %v14979_v18 = vld [vmem:[%s19458_s5 + $0x1788] ss:$16 sps:$4 sm:$0xff]   ;;  %v15015_v30 = vld [vmem:[%s19460_s7 + $0x40] sm:$0xff]  }
 0x5f5   : > { %v8021_v53 = vpop.f32.mrb[195].mxu1  ;;  %9983 = vmatprep.subr.bf16.mxu1 %v14960_v39  ;;  %10508 = vmatprep.subr.bf16.mxu0 %v14963_v2  ;;  %v15009_v2 = vld [vmem:[%s19458_s5 + $0x18c8] ss:$16 sps:$4 sm:$0xff]  }
 0x5f6   : > { %v15017_v63 = vld [vmem:[%s19460_s7 + $0x48] sm:$0xff]   ;;  %v15019_v53 = vld [vmem:[%s19460_s7 + $0x50] sm:$0xff]  }
 0x5f8   : > { %9984 = vmatpush1.bf16.msra.mxu1 %v14958_v44  ;;  %10509 = vmatpush1.bf16.msra.mxu0 %v14961_v11  ;;  %v15012_v44 = vld [vmem:[%s19458_s5 + $0x18e8] ss:$16 sps:$4 sm:$0xff]  }
 0x5f9   : > { %9985 = vmatprep.subr.bf16.mxu1 %v14966_v45  ;;  %13137 = vmatprep.subr.bf16.mxu0 %v15015_v30  ;;  %v15018_v11 = vld [vmem:[%s19460_s7 + $0x8] sm:$0xff]   ;;  %v15020_v45 = vld [vmem:[%s19460_s7 + $0x10] sm:$0xff]  }
 0x5fa   : > { %v15042_v30 = vld [vmem:[%s19460_s7 + $0xa8] sm:$0xff]  }
 0x5fb   : > { %10527 = vmatmul.mubr.bf16.vlgmr.msra.gmra.mrb[248].mxu0 %v19199_v52 }
 0x5fc   : > { %9986 = vmatpush1.bf16.msra.mxu1 %v14964_v51 }
 0x5fd   : > { %10255 = vmatprep.subr.bf16.mxu1 %v14969_v29 }
 0x5ff   : > { %10004 = vmatmul.mubr.bf16.vlgmr.msra.gmra.mrb[220].mxu1 %v9768_v42  ;;  %v14976_v42 = vld [vmem:[%s19458_s5 + $0x1768] ss:$16 sps:$4 sm:$0xff]  }
 0x600   : > { %10256 = vmatpush1.bf16.msra.mxu1 %v14967_v20  ;;  %10287 = vmatprep.mubr.bf16.mxu1 %v15222_v27 }
 0x601   : > { %10257 = vmatprep.subr.bf16.mxu1 %v14972_v8 }
 0x604   : > { %10258 = vmatpush1.bf16.msra.mxu1 %v14970_v43 }
 0x605   : > { %10259 = vmatprep.subr.bf16.mxu1 %v14975_v60 }
 0x608   : > { %10260 = vmatpush1.bf16.msra.mxu1 %v14973_v21 }
 0x609   : > { %10261 = vmatprep.subr.bf16.mxu1 %v14978_v36 }
 0x60c   : > { %10262 = vmatpush1.bf16.msra.mxu1 %v14976_v42 }
 0x60d   : > { %10263 = vmatprep.subr.bf16.mxu1 %v14981_v37 }
 0x60e   : > { %v8826_v24 = vpop.f32.mrb[224].mxu0 }
 0x60f   : > { %v8874_v4 = vadd.f32 %v8826_v24, %v8589_v10  ;;  %v8828_v33 = vpop.f32.mrb[225].mxu0  ;;  %v15006_v10 = vld [vmem:[%s19458_s5 + $0x18a8] ss:$16 sps:$4 sm:$0xff]  }
 0x610   : > { %v8875_v58 = vadd.f32 %v8828_v33, %v8590_v15  ;;  %v8830_v26 = vpop.f32.mrb[226].mxu0  ;;  %10264 = vmatpush1.bf16.msra.mxu1 %v14979_v18  ;;  %v15011_v15 = vld [vmem:[%s19458_s5 + $0x18cc] ss:$16 sps:$4 sm:$0xff]   ;;  %v15024_v33 = vld [vmem:[%s19460_s7 + $0x20] sm:$0xff]  }
 0x611   : > { %v8831_v14 = vpop.f32.mrb[227].mxu0  ;;  %10265 = vmatprep.subr.bf16.mxu1 %v14984_v35  ;;  %v15021_v24 = vld [vmem:[%s19460_s7 + $0x58] sm:$0xff]   ;;  %v15026_v26 = vld [vmem:[%s19460_s7 + $0x28] sm:$0xff]  }
 0x612   : > { %v8296_v25 = vpop.f32.mrb[196].mxu1  ;;  %v15028_v14 = vld [vmem:[%s19460_s7 + $0x30] sm:$0xff]  }
 0x613   : > { %v8305_v34 = vadd.f32 %v8296_v25, %v8025_v57  ;;  %v8298_v40 = vpop.f32.mrb[197].mxu1  ;;  %v15030_v25 = vld [vmem:[%s19460_s7 + $0x38] sm:$0xff]  }
 0x614   : > { %v8306_v54 = vadd.f32 %v8298_v40, %v8026_v32  ;;  %v8300_v55 = vpop.f32.mrb[198].mxu1  ;;  %10266 = vmatpush1.bf16.msra.mxu1 %v14982_v50  ;;  %v15016_v32 = vld [vmem:[%s19460_s7] sm:$0xff]   ;;  %v15027_v50 = vld [vmem:[%s19460_s7 + $0x70] sm:$0xff]  }
 0x615   : > { %v8301_v28 = vpop.f32.mrb[199].mxu1  ;;  %10267 = vmatprep.subr.bf16.mxu1 %v14987_v23  ;;  %13138 = vmatpush3.bf16.msra.mxu0 %v15016_v32  ;;  %v15029_v23 = vld [vmem:[%s19460_s7 + $0x78] sm:$0xff]   ;;  %v15043_v32 = vld [vmem:[%s19460_s7 + $0xf0] sm:$0xff]  }
 0x616   : > { %13139 = vmatprep.subr.bf16.mxu0 %v15017_v63  ;;  %v15044_v63 = vld [vmem:[%s19460_s7 + $0xb0] sm:$0xff]  }
 0x618   : > { %10268 = vmatpush1.bf16.msra.mxu1 %v14985_v9 }
 0x619   : > { %10269 = vmatprep.subr.bf16.mxu1 %v14990_v5  ;;  %13140 = vmatpush3.bf16.msra.mxu0 %v15018_v11  ;;  %v15045_v11 = vld [vmem:[%s19460_s7 + $0xf8] sm:$0xff]  }
 0x61a   : > { %13141 = vmatprep.subr.bf16.mxu0 %v15019_v53 }
 0x61c   : > { %10270 = vmatpush1.bf16.msra.mxu1 %v14988_v22 }
 0x61d   : > { %10535 = vmatprep.subr.bf16.mxu1 %v14993_v41  ;;  %13142 = vmatpush3.bf16.msra.mxu0 %v15020_v45 }
 0x61e   : > { %13143 = vmatprep.subr.bf16.mxu0 %v15021_v24 }
 0x61f   : > { %10288 = vmatmul.mubr.bf16.vlgmr.msra.gmra.mrb[224].mxu1 %v19096_v46  ;;  %v15002_v46 = vld [vmem:[%s19458_s5 + $0x186c] ss:$16 sps:$4 sm:$0xff]  }
 0x620   : > { %10536 = vmatpush1.bf16.msra.mxu1 %v14991_v13  ;;  %10567 = vmatprep.mubr.bf16.mxu1 %v15222_v27  ;;  %v15000_v27 = vld [vmem:[%s19458_s5 + $0x1868] ss:$16 sps:$4 sm:$0xff]  }
 0x621   : > { %10537 = vmatprep.subr.bf16.mxu1 %v14996_v17 }
 0x624   : > { %10538 = vmatpush1.bf16.msra.mxu1 %v14994_v31 }
 0x625   : > { %10539 = vmatprep.subr.bf16.mxu1 %v14999_v61  ;;  %v15031_v61 = vld [vmem:[%s19460_s7 + $0xc0] sm:$0xff]  }
 0x628   : > { %10540 = vmatpush1.bf16.msra.mxu1 %v14997_v19  ;;  %v15032_v19 = vld [vmem:[%s19460_s7 + $0x80] sm:$0xff]  }
 0x629   : > { %10541 = vmatprep.subr.bf16.mxu1 %v15002_v46  ;;  %v15033_v46 = vld [vmem:[%s19460_s7 + $0xc8] sm:$0xff]  }
 0x62c   : > { %10542 = vmatpush1.bf16.msra.mxu1 %v15000_v27  ;;  %v15034_v27 = vld [vmem:[%s19460_s7 + $0x88] sm:$0xff]  }
 0x62d   : > { %10543 = vmatprep.subr.bf16.mxu1 %v15005_v38  ;;  %v15035_v38 = vld [vmem:[%s19460_s7 + $0xd0] sm:$0xff]  }
 0x62e   : > { %v9110_v56 = vpop.f32.mrb[228].mxu0 }
 0x62f   : > { %v9158_v0 = vadd.f32 %v9110_v56, %v8874_v4  ;;  %v9112_v1 = vpop.f32.mrb[229].mxu0  ;;  %v15023_v4 = vld [vmem:[%s19460_s7 + $0x60] sm:$0xff]  }
 0x630   : > { %v9159_v59 = vadd.f32 %v9112_v1, %v8875_v58  ;;  %v9114_v16 = vpop.f32.mrb[230].mxu0  ;;  %10544 = vmatpush1.bf16.msra.mxu1 %v15003_v62  ;;  %v15025_v58 = vld [vmem:[%s19460_s7 + $0x68] sm:$0xff]   ;;  %v15036_v62 = vld [vmem:[%s19460_s7 + $0x90] sm:$0xff]  }
 0x631   : > { %v9115_v7 = vpop.f32.mrb[231].mxu0  ;;  %10545 = vmatprep.subr.bf16.mxu1 %v15008_v3 }
 0x632   : > { %v8582_v12 = vpop.f32.mrb[200].mxu1 }
 0x633   : > { %v8591_v49 = vadd.f32 %v8582_v12, %v8305_v34  ;;  %v8584_v48 = vpop.f32.mrb[201].mxu1 }
 0x634   : > { %v8592_v47 = vadd.f32 %v8584_v48, %v8306_v54  ;;  %v8586_v39 = vpop.f32.mrb[202].mxu1  ;;  %10546 = vmatpush1.bf16.msra.mxu1 %v15006_v10 }
 0x635   : > { %v8587_v57 = vpop.f32.mrb[203].mxu1  ;;  %10547 = vmatprep.subr.bf16.mxu1 %v15011_v15  ;;  %v15038_v39 = vld [vmem:[%s19460_s7 + $0x98] sm:$0xff]  }
 0x636   : > { %v15041_v57 = vld [vmem:[%s19460_s7 + $0xe8] sm:$0xff]  }
 0x638   : > { %10548 = vmatpush1.bf16.msra.mxu1 %v15009_v2  ;;  %v15039_v2 = vld [vmem:[%s19460_s7 + $0xe0] sm:$0xff]  }
 0x639   : > { %10549 = vmatprep.subr.bf16.mxu1 %v15014_v6  ;;  %v15040_v6 = vld [vmem:[%s19460_s7 + $0xa0] sm:$0xff]  }
 0x63c   : > { %10550 = vmatpush1.bf16.msra.mxu1 %v15012_v44 }
 0x63d   : > { %13159 = vmatprep.subr.bf16.mxu1 %v15031_v61 }
 0x63f   : > { %10568 = vmatmul.mubr.bf16.vlgmr.msra.gmra.mrb[228].mxu1 %v19199_v52  ;;  %v15022_v52 = vld [vmem:[%s19460_s7 + $0x18] sm:$0xff]  }
 0x640   : > { %13144 = vmatpush3.bf16.msra.mxu0 %v15022_v52  ;;  %13160 = vmatpush3.bf16.msra.mxu1 %v15032_v19  ;;  %v10580_v52 = vld [vmem:[%s19459_s6] sm:$0xf] }
 0x641   : > { %13145 = vmatprep.subr.bf16.mxu0 %v15023_v4  ;;  %13161 = vmatprep.subr.bf16.mxu1 %v15033_v46 }
 0x644   : > { %13146 = vmatpush3.bf16.msra.mxu0 %v15024_v33  ;;  %13162 = vmatpush3.bf16.msra.mxu1 %v15034_v27 }
 0x645   : > { %13147 = vmatprep.subr.bf16.mxu0 %v15025_v58  ;;  %13163 = vmatprep.subr.bf16.mxu1 %v15035_v38 }
 0x648   : > { %13148 = vmatpush3.bf16.msra.mxu0 %v15026_v26  ;;  %13164 = vmatpush3.bf16.msra.mxu1 %v15036_v62 }
 0x649   : > { %13149 = vmatprep.subr.bf16.mxu0 %v15027_v50 }
 0x64c   : > { %13150 = vmatpush3.bf16.msra.mxu0 %v15028_v14 }
 0x64d   : > { %13151 = vmatprep.subr.bf16.mxu0 %v15029_v23 }
 0x64e   : > { %v9395_v51 = vpop.f32.mrb[232].mxu0 }
 0x64f   : > { %v9443_v29 = vadd.f32 %v9395_v51, %v9158_v0  ;;  %v9397_v20 = vpop.f32.mrb[233].mxu0 }
 0x650   : > { %v9444_v8 = vadd.f32 %v9397_v20, %v9159_v59  ;;  %v9399_v43 = vpop.f32.mrb[234].mxu0  ;;  %13152 = vmatpush3.bf16.msra.mxu0 %v15030_v25 }
 0x651   : > { %v9400_v60 = vpop.f32.mrb[235].mxu0 }
 0x652   : > { %v8867_v21 = vpop.f32.mrb[204].mxu1 }
 0x653   : > { %v8876_v36 = vadd.f32 %v8867_v21, %v8591_v49  ;;  %v8869_v42 = vpop.f32.mrb[205].mxu1 }
 0x654   : > { %v8877_v37 = vadd.f32 %v8869_v42, %v8592_v47  ;;  %v8871_v18 = vpop.f32.mrb[206].mxu1  ;;  %v15037_v47 = vld [vmem:[%s19460_s7 + $0xd8] sm:$0xff]  }
 0x655   : > { %v8872_v35 = vpop.f32.mrb[207].mxu1  ;;  %13165 = vmatprep.subr.bf16.mxu1 %v15037_v47  ;;  %v10582_v18 = vlaneseq }
 0x656   : > { %13166 = vmatpush3.bf16.msra.mxu1 %v15038_v39 }
 0x657   : > { %13167 = vmatprep.subr.bf16.mxu1 %v15039_v2  ;;  %v10583_v35 = vshrl.u32 %v10582_v18, 7 }
 0x659   : > { %v10584_v24 = vsub.s32 0, %v10583_v35  ;;  %v10588_v4 = vsub.s32 1, %v10583_v35 }
 0x65a   : > { %13168 = vmatpush3.bf16.msra.mxu1 %v15040_v6 }
 0x65b   : > { %13169 = vmatprep.subr.bf16.mxu1 %v15041_v57  ;;  %v10585_v33 = vrot.slane %v10580_v52, %v10584_v24  ;;  %v10589_v26 = vrot.slane %v10580_v52, %v10588_v4 }
 0x65e   : > { %13170 = vmatpush3.bf16.msra.mxu1 %v15042_v30 }
 0x65f   : > { %13171 = vmatprep.subr.bf16.mxu1 %v15043_v32 }
 0x662   : > { %13172 = vmatpush3.bf16.msra.mxu1 %v15044_v63 }
 0x663   : > { %13173 = vmatprep.subr.bf16.mxu1 %v15045_v11 }
 0x66e   : > { %v9679_v34 = vpop.f32.mrb[236].mxu0 }
 0x66f   : > { %v9727_v40 = vadd.f32 %v9679_v34, %v9443_v29  ;;  %v9681_v54 = vpop.f32.mrb[237].mxu0 }
 0x670   : > { %v9728_v55 = vadd.f32 %v9681_v54, %v9444_v8  ;;  %v9683_v9 = vpop.f32.mrb[238].mxu0  ;;  %v15046_v8 = vld [vmem:[%s19460_s7 + $0xb8] sm:$0xff]  }
 0x671   : > { %v9684_v28 = vpop.f32.mrb[239].mxu0  ;;  %13174 = vmatpush3.bf16.msra.mxu1 %v15046_v8 }
 0x672   : > { %v9151_v5 = vpop.f32.mrb[208].mxu1 }
 0x673   : > { %v9160_v22 = vadd.f32 %v9151_v5, %v8876_v36  ;;  %v9153_v41 = vpop.f32.mrb[209].mxu1 }
 0x674   : > { %v9161_v13 = vadd.f32 %v9153_v41, %v8877_v37  ;;  %v9155_v17 = vpop.f32.mrb[210].mxu1 }
 0x675   : > { %v9156_v31 = vpop.f32.mrb[211].mxu1 }
 0x68e   : > { %v9964_v3 = vpop.f32.mrb[240].mxu0 }
 0x68f   : > { %v10012_v56 = vadd.f32 %v9964_v3, %v9727_v40  ;;  %v9966_v0 = vpop.f32.mrb[241].mxu0 }
 0x690   : > { %v10013_v1 = vadd.f32 %v9966_v0, %v9728_v55  ;;  %v9968_v59 = vpop.f32.mrb[242].mxu0  ;;  %v10596_v0 = vsub.s32 3, %v10583_v35 }
 0x691   : > { %v9969_v16 = vpop.f32.mrb[243].mxu0 }
 0x692   : > { %v9436_v10 = vpop.f32.mrb[212].mxu1  ;;  %v10597_v16 = vrot.slane %v10580_v52, %v10596_v0 }
 0x693   : > { %v9445_v7 = vadd.f32 %v9436_v10, %v9160_v22  ;;  %v9438_v15 = vpop.f32.mrb[213].mxu1 }
 0x694   : > { %v9446_v12 = vadd.f32 %v9438_v15, %v9161_v13  ;;  %v9440_v49 = vpop.f32.mrb[214].mxu1 }
 0x695   : > { %v9441_v48 = vpop.f32.mrb[215].mxu1 }
 0x6ae   : > { %v10248_v44 = vpop.f32.mrb[244].mxu0 }
 0x6af   : > { %v10296_v53 = vadd.f32 %v10248_v44, %v10012_v56  ;;  %v10250_v45 = vpop.f32.mrb[245].mxu0  ;;  %v10592_v56 = vsub.s32 2, %v10583_v35 }
 0x6b0   : > { %v10297_v51 = vadd.f32 %v10250_v45, %v10013_v1  ;;  %v10252_v29 = vpop.f32.mrb[246].mxu0 }
 0x6b1   : > { %v10253_v20 = vpop.f32.mrb[247].mxu0  ;;  %v10593_v1 = vrot.slane %v10580_v52, %v10592_v56 }
 0x6b2   : > { %v9720_v43 = vpop.f32.mrb[216].mxu1 }
 0x6b3   : > { %v9729_v60 = vadd.f32 %v9720_v43, %v9445_v7  ;;  %v9722_v21 = vpop.f32.mrb[217].mxu1 }
 0x6b4   : > { %v9730_v36 = vadd.f32 %v9722_v21, %v9446_v12  ;;  %v9724_v42 = vpop.f32.mrb[218].mxu1 }
 0x6b5   : > { %v9725_v37 = vpop.f32.mrb[219].mxu1 }
 0x6ce   : > { %v10528_v58 = vpop.f32.mrb[248].mxu0 }
 0x6cf   : > { %v10576_v50 = vadd.f32 %v10528_v58, %v10296_v53  ;;  %v10530_v14 = vpop.f32.mrb[249].mxu0  ;;  %v10678_v53 = vld [vmem:[%s19461_s8] sm:$0x1] }
 0x6d0   : > { %v10577_v23 = vadd.f32 %v10530_v14, %v10297_v51  ;;  %v10532_v25 = vpop.f32.mrb[250].mxu0 }
 0x6d1   : > { %v10602_v34 = vadd.f32 %v10585_v33, %v10576_v50  ;;  %v10533_v40 = vpop.f32.mrb[251].mxu0 }
 0x6d2   : > { %v10603_v54 = vadd.f32 %v10589_v26, %v10577_v23  ;;  %v10005_v55 = vpop.f32.mrb[220].mxu1 }
 0x6d3   : > { %15137 = vtanh.f32 %v10602_v34  ;;  %v10014_v9 = vadd.f32 %v10005_v55, %v9729_v60  ;;  %v10007_v28 = vpop.f32.mrb[221].mxu1 }
 0x6d4   : > { %15139 = vtanh.f32 %v10603_v54  ;;  %v10015_v5 = vadd.f32 %v10007_v28, %v9730_v36  ;;  %v10009_v22 = vpop.f32.mrb[222].mxu1 }
 0x6d5   : > { %v10010_v41 = vpop.f32.mrb[223].mxu1 }
 0x6dd   : > { %v15138_v13 = vpop.eup %15137 }
 0x6de   : > { %v15140_v17 = vpop.eup %15139  ;;  %v10610_v61 = vpack.c.bf16 %v15138_v13, %v15138_v13 }
 0x6df   : > { %v10611_v31 = vpack.c.bf16 %v15140_v17, %v15140_v17 }
 0x6e1   : > { %10903 = vmatprep.mubr.bf16.mxu0 %v10611_v31 }
 0x6e2   : > { %10904 = vmatmul.mubr.bf16.vlgmr.msra.gmra.mrb[252].mxu0 %v10610_v61 }
 0x6f2   : > { %v10289_v19 = vpop.f32.mrb[224].mxu1 }
 0x6f3   : > { %v10298_v46 = vadd.f32 %v10289_v19, %v10014_v9  ;;  %v10291_v27 = vpop.f32.mrb[225].mxu1 }
 0x6f4   : > { %v10299_v38 = vadd.f32 %v10291_v27, %v10015_v5  ;;  %v10293_v62 = vpop.f32.mrb[226].mxu1 }
 0x6f5   : > { %v10294_v3 = vpop.f32.mrb[227].mxu1 }
 0x712   : > { %v10569_v59 = vpop.f32.mrb[228].mxu1 }
 0x713   : > { %v10578_v10 = vadd.f32 %v10569_v59, %v10298_v46  ;;  %v10571_v7 = vpop.f32.mrb[229].mxu1 }
 0x714   : > { %v10579_v15 = vadd.f32 %v10571_v7, %v10299_v38  ;;  %v10573_v12 = vpop.f32.mrb[230].mxu1 }
 0x715   : > { %v10604_v49 = vadd.f32 %v10593_v1, %v10578_v10  ;;  %v10574_v48 = vpop.f32.mrb[231].mxu1 }
 0x716   : > { %v10605_v47 = vadd.f32 %v10597_v16, %v10579_v15 }
 0x717   : > { %15141 = vtanh.f32 %v10604_v49 }
 0x718   : > { %15143 = vtanh.f32 %v10605_v47 }
 0x721   : > { %v15142_v39 = vpop.eup %15141 }
 0x722   : > { %v15144_v2 = vpop.eup %15143  ;;  %v10612_v57 = vpack.c.bf16 %v15142_v39, %v15142_v39 }
 0x723   : > { %v10613_v6 = vpack.c.bf16 %v15144_v2, %v15144_v2 }
 0x725   : > { %10943 = vmatprep.mubr.bf16.mxu1 %v10613_v6 }
 0x726   : > { %10944 = vmatmul.mubr.bf16.vlgmr.msra.gmra.mrb[232].mxu1 %v10612_v57 }
 0x7b5   : > { %v13153_v30 = vpop.f32.mrb[252].mxu0 }
 0x7b6   : > { %v13154_v32 = vpop.f32.mrb[253].mxu0 }
 0x7b7   : > { %v13155_v63 = vadd.f32 %v13154_v32, %v13153_v30  ;;  %v13156_v44 = vpop.f32.mrb[254].mxu0 }
 0x7b8   : > { %v13157_v11 = vpop.f32.mrb[255].mxu0 }
 0x7b9   : > { %v10906_v29 = vadd.f32 %v13155_v63, %v10678_v53 }
 0x7f9   : > { %v13175_v45 = vpop.f32.mrb[232].mxu1 }
 0x7fa   : > { %v13176_v51 = vpop.f32.mrb[233].mxu1 }
 0x7fb   : > { %v13177_v20 = vadd.f32 %v13176_v51, %v13175_v45  ;;  %v13178_v8 = vpop.f32.mrb[234].mxu1 }
 0x7fc   : > { %v13179_v43 = vpop.f32.mrb[235].mxu1 }
 0x7fd   : > { %v10946_v60 = vadd.f32 %v13177_v20, %v10906_v29 }
 0x7ff   : > { %v10952_v21 = vsel %vm10951_vm15, %v10946_v60, -inf }
 0x800   : > { %10953 = vmax.xlane.f32.xlu0 %v10952_v21 }
 0x88d   : > { %v10954_v36 = vpop.xlane.xlu0 %10953 }
 0x88e   : > { %v10955_v42 = vsub.f32 %v10946_v60, %v10954_v36 }
 0x890   : > { %v10956_v37 = vmul.f32 1.442695, %v10955_v42 }
 0x892   : > { %15145 = vpow2.f32 %v10956_v37 }
 0x89c   : > { %v15146_v18 = vpop.eup %15145 }
 0x89d   : > { %v10958_v35 = vsel %vm10951_vm15, %v15146_v18, 0.0 }
 0x89e   : > { %10959 = vadd.xlane.f32.xlu0 %v10958_v35 }
 0x92b   : > { %v10960_v24 = vpop.xlane.xlu0 %10959 }
 0x92c   : > { %15147 = vrcp.f32 %v10960_v24 }
 0x936   : > { %v15148_v52 = vpop.eup %15147 }
 0x937   : > { %v10962_v4 = vmul.f32 %v15148_v52, %v15146_v18 }
 0x939   : > { %10963 = vst.msk [vmem:[%s324_s26] sm:$0x1] %vm10951_vm15, %v10962_v4 }
 0x93a   : > { %15169 = shalt.err (!%p15166_p3)
}
 0x93b   : > { %s15170_s23 = scalar_lea.hbm %s19410_s14, 16  ;;  %s15174_s26 = scalar_lea.hbm %s19462_s9, 32 }
 0x93c   : > { %p15171_p4 = scmp.ne.s32.totalorder %s19410_s14, %s15170_s23  ;;  %p15175_p9 = scmp.lt.u32.totalorder %s19410_s14, %s19462_s9 }
 0x93d   : > { %p15176_p10 = scmp.lt.u32.totalorder %s15174_s26, %s15170_s23  ;;  %p15178_p12 = scmp.lt.u32.totalorder %s15170_s23, %s19410_s14 }
 0x93e   : > { %p15172_p7 = pnand %p15171_p4, %p15313_p5 }
 0x93f   : > { %p15177_p11 = por %p15176_p10, %p15175_p9 }
 0x940   : > { %p15173_p8 = pneg %p15172_p7 }
 0x941   : > { %p15179_p13 = por %p15178_p12, %p15177_p11 }
 0x943   : > { %p15180_p0 = pnand %p15179_p13, %p15173_p8 }
 0x945   : > { %15183 = shalt.err (!%p15180_p0)
}
 0x946   : > { %13637 = dma.vmem_to_hbm [thread:$0]  (%p15313_p5), %s19412_s27, 16, %s19410_s14, %s10965_s16  }
 0x947 PF: > { %p13643_p1 = scmp.ge.s32.totalorder %s15218_s12, 2  ;;  %s10989_s17 = sand.u32 1, %s15206_s30  }
 0x948   : > { %s10990_s13 = scalar_lea.sflag [#allocation7], %s10989_s17 }
 0x949   : > { %p13640_p2 = pnand %p13643_p1, %p15317_p6 }
 0x94b   : > { %15201 = dma.done.wait (!%p13640_p2), %s10990_s13, 16  }
 0x94c   : > { %15203 = vsyncadd (!%p13640_p2), %s10990_s13, 4294967280  ;;  %p19_p3 = scmp.ge.s32.totalorder %s15300_s15, 4   ;;  %s19522_s30 = smov %s15210_s10 }
 0x94d   : > { %s19523_s10 = smov %s15214_s11  ;;  %s19524_s11 = smov %s15311_s18 }
 0x94e   : > { %s19525_s12 = smov %s15300_s15  ;;  %21 = sbr.rel (!%p19_p3) target bundleno = 3 (0x3), region = 177 }
 0x955   :  { %10994 = vsyncpa [#allocation7], 1 }
 0x956   :  { %10996 = vsyncpa [#allocation7 + $0x1], 1 }

</bundles_post_ra>
